<compile_context>
chip_gen: v6e
topology: v6e:2x2x1
jax: 0.10.0
libtpu: 0.0.40
codegen_flags: <defaults>
</compile_context>

<pallas_src>
from functools import partial

import jax
import jax.numpy as jnp
from jax.experimental import pallas as pl
from jax.experimental.pallas import tpu as pltpu


def attention_kernel(x_ref, wqkv_ref, mem_ref, bias_ref, wout_ref, bout_ref,
                     o_ref, *, heads, dim_head, hidden):
    # x_ref    : (1, N, C)  f32   token-major input for this batch element
    # wqkv_ref : (C, 3*hidden) bf16  fused q|k|v weights (scales pre-folded)
    # mem_ref  : (Mpad, 2*hidden) bf16  mem_k | mem_v rows, zero padded
    # bias_ref : (1, KVpad) f32   additive key-padding mask (0 / -1e30)
    # wout_ref : (C, hidden) bf16 to_out weight
    # bout_ref : (C, 1) f32       to_out bias
    # o_ref    : (1, C, N) f32    channel-major output block
    x = x_ref[0]                                                  # (N, C) f32

    # RMSNorm over channels (F.normalize eps=1e-12 -> eps^2 on squared norm).
    # The g * sqrt(C) gain is folded into the projection weights.
    ss = jnp.sum(x * x, axis=-1, keepdims=True)                   # (N, 1)
    xn = (x * jax.lax.rsqrt(jnp.maximum(ss, 1e-24))).astype(jnp.bfloat16)

    # Fused QKV projection: one MXU GEMM, f32 accumulation, bf16 operands.
    qkv = jnp.dot(xn, wqkv_ref[...],
                  preferred_element_type=jnp.float32)             # (N, 3h) f32
    qkv = qkv.astype(jnp.bfloat16)

    q_all = qkv[:, :hidden]                                       # (N, hidden)
    # Append (zero padded) memory K/V rows: token axis grows N -> KVpad.
    kv_all = jnp.concatenate([qkv[:, hidden:], mem_ref[...]], axis=0)

    bias = bias_ref[...]                                          # (1, KVpad)

    outs = []
    for h in range(heads):                                        # static loop
        lo = h * dim_head
        q_h = q_all[:, lo:lo + dim_head]                          # (N, d)
        k_h = kv_all[:, lo:lo + dim_head]                         # (KVpad, d)
        v_h = kv_all[:, hidden + lo:hidden + lo + dim_head]       # (KVpad, d)

        # sim[i, j] = sum_d q[i, d] * k[j, d]   (scale folded into q weights)
        sim = jax.lax.dot_general(q_h, k_h, (((1,), (1,)), ((), ())),
                                  preferred_element_type=jnp.float32)
        sim = sim + bias                                          # mask pads

        # Softmax over keys, f32 statistics, EUP reciprocal.
        m = jnp.max(sim, axis=-1, keepdims=True)
        p = jnp.exp(sim - m)
        l = jnp.sum(p, axis=-1, keepdims=True)
        attn = (p * pl.reciprocal(l, approx=True)).astype(jnp.bfloat16)

        # Canonical PV matmul: attn is the streaming operand, never transposed.
        out_h = jax.lax.dot_general(attn, v_h, (((1,), (0,)), ((), ())),
                                    preferred_element_type=jnp.float32)
        outs.append(out_h.astype(jnp.bfloat16))                   # (N, d)

    hout = jnp.concatenate(outs, axis=-1)                         # (N, hidden)

    # to_out as ONE GEMM with K = hidden; result is channel-major (C, N) so the
    # store is lane-dense.
    out = jax.lax.dot_general(wout_ref[...], hout, (((1,), (1,)), ((), ())),
                              preferred_element_type=jnp.float32)  # (C, N)
    o_ref[0] = out + bout_ref[...]


def attention_forward(x, g, w_qkv, mem_kv, w_out, b_out, *, heads, dim_head):
    """x: (B, C, H, W) NCHW, like the PyTorch module. Returns (B, C, H, W)."""
    B, C, H, W = x.shape
    N = H * W
    hidden = heads * dim_head
    num_mem = mem_kv.shape[2]
    assert w_qkv.shape == (3 * hidden, C)
    assert w_out.shape == (C, hidden)

    kv_valid = N + num_mem
    kv_pad = ((kv_valid + 127) // 128) * 128           # total KV length, %128
    m_pad = kv_pad - N                                 # rows appended after N

    # ---- one-off wrapper-side plumbing (parameters + a single x transpose) --
    # Token-major activations: (B, N, C).
    x_tok = jnp.transpose(x.reshape(B, C, N), (0, 2, 1)).astype(jnp.float32)

    # to_qkv weight (3*hidden, C): fold attention scale into the q rows and
    # RMSNorm's g*sqrt(C) into the input-channel axis; pre-transpose to
    # (C, 3*hidden) bf16 so the kernel GEMM is canonical.
    w = w_qkv.astype(jnp.float32).reshape(3, hidden, C)
    w = w.at[0].multiply(dim_head ** -0.5)
    w = w.reshape(3 * hidden, C) * (g.reshape(1, C).astype(jnp.float32) * (C ** 0.5))
    w_qkvT = jnp.transpose(w).astype(jnp.bfloat16)                  # (C, 3h)

    # mem_kv (2, heads, num_mem, d) -> (Mpad, 2*hidden): row = memory slot,
    # columns [h*d + j] = mem_k, [hidden + h*d + j] = mem_v; zero-pad rows.
    mem = jnp.transpose(mem_kv.astype(jnp.float32), (0, 2, 1, 3)).reshape(2, num_mem, hidden)
    mem_block = jnp.concatenate([mem[0], mem[1]], axis=-1)          # (M, 2h)
    mem_block = jnp.pad(mem_block, ((0, m_pad - num_mem), (0, 0))).astype(jnp.bfloat16)

    # Additive key mask: 0 for the N spatial + num_mem memory keys, -1e30 pad.
    bias = jnp.where(jnp.arange(kv_pad) < kv_valid, 0.0, -1e30)
    bias = bias[None, :].astype(jnp.float32)                        # (1, KVpad)

    w_out_bf = w_out.astype(jnp.bfloat16)                           # (C, hidden)
    bout = b_out.reshape(C, 1).astype(jnp.float32)

    kernel = partial(attention_kernel, heads=heads, dim_head=dim_head,
                     hidden=hidden)

    out = pl.pallas_call(
        kernel,
        out_shape=jax.ShapeDtypeStruct((B, C, N), jnp.float32),
        grid_spec=pltpu.PrefetchScalarGridSpec(
            num_scalar_prefetch=0,
            grid=(B,),
            in_specs=[
                pl.BlockSpec((1, N, C), lambda b: (b, 0, 0)),
                # Whole-array resident parameter blocks (constant index_map).
                pl.BlockSpec((C, 3 * hidden), lambda b: (0, 0)),
                pl.BlockSpec((m_pad, 2 * hidden), lambda b: (0, 0)),
                pl.BlockSpec((1, kv_pad), lambda b: (0, 0)),
                pl.BlockSpec((C, hidden), lambda b: (0, 0)),
                pl.BlockSpec((C, 1), lambda b: (0, 0)),
            ],
            out_specs=pl.BlockSpec((1, C, N), lambda b: (b, 0, 0)),
        ),
        compiler_params=pltpu.CompilerParams(
            dimension_semantics=("parallel",),
            vmem_limit_bytes=64 * 1024 * 1024,
        ),
    )(x_tok, w_qkvT, mem_block, bias, w_out_bf, bout)

    return out.reshape(B, C, H, W)


def reference_forward(x, g, w_qkv, mem_kv, w_out, b_out, *, heads, dim_head):
    """Pure-JAX reference mirroring the PyTorch Attention module (f32)."""
    B, C, H, W = x.shape
    hp = jax.lax.Precision.HIGHEST
    norm = jnp.sqrt(jnp.sum(x * x, axis=1, keepdims=True))
    xn = x / jnp.maximum(norm, 1e-12) * g.reshape(1, C, 1, 1) * (C ** 0.5)
    qkv = jnp.einsum('oc,bchw->bohw', w_qkv, xn, precision=hp)
    q, k, v = jnp.split(qkv, 3, axis=1)

    def to_heads(t):   # 'b (h c) x y -> b h (x y) c'
        return t.reshape(B, heads, dim_head, H * W).transpose(0, 1, 3, 2)

    q, k, v = map(to_heads, (q, k, v))
    mk = jnp.broadcast_to(mem_kv[0], (B,) + mem_kv[0].shape)
    mv = jnp.broadcast_to(mem_kv[1], (B,) + mem_kv[1].shape)
    k = jnp.concatenate([mk, k], axis=2)
    v = jnp.concatenate([mv, v], axis=2)
    sim = jnp.einsum('bhid,bhjd->bhij', q, k, precision=hp) * (dim_head ** -0.5)
    attn = jax.nn.softmax(sim, axis=-1)
    out = jnp.einsum('bhij,bhjd->bhid', attn, v, precision=hp)
    out = out.transpose(0, 1, 3, 2).reshape(B, heads * dim_head, H, W)
    return jnp.einsum('oc,bchw->bohw', w_out, out, precision=hp) + b_out.reshape(1, C, 1, 1)


if __name__ == "__main__":
    key = jax.random.PRNGKey(0)
    B, C, H, W = 2, 4, 16, 16
    heads, dim_head, num_mem_kv = 4, 32, 4
    hidden = heads * dim_head

    k0, k1, k2, k3, k4 = jax.random.split(key, 5)
    x = jax.random.normal(k0, (B, C, H, W), dtype=jnp.float32)
    g = jnp.ones((C,), dtype=jnp.float32)                      # RMSNorm.g init
    mem_kv = jax.random.normal(k1, (2, heads, num_mem_kv, dim_head), dtype=jnp.float32)
    w_qkv = 0.2 * jax.random.normal(k2, (3 * hidden, C), dtype=jnp.float32)
    w_out = 0.1 * jax.random.normal(k3, (C, hidden), dtype=jnp.float32)
    b_out = 0.05 * jax.random.normal(k4, (C,), dtype=jnp.float32)

    out = attention_forward(x, g, w_qkv, mem_kv, w_out, b_out,
                            heads=heads, dim_head=dim_head)
    out = jax.block_until_ready(out)

    ref = reference_forward(x, g, w_qkv, mem_kv, w_out, b_out,
                            heads=heads, dim_head=dim_head)
    assert out.shape == (B, C, H, W)
    # bf16 MXU operands (f32 softmax statistics / accumulation) -> loosened
    # tolerance vs the HIGHEST-precision f32 reference.
    assert jnp.allclose(out, ref, atol=1e-2, rtol=1e-2), "mismatch vs reference"

    print("KERNEL_OK")
</pallas_src>

<mosaic_0001>
module attributes {stable_mosaic.version = 11 : i64} {
  func.func @attention_kernel(%arg0: i32, %arg1: memref<1x256x4xf32, #tpu.memory_space<vmem>>, %arg2: memref<4x384xbf16, #tpu.memory_space<vmem>>, %arg3: memref<128x256xbf16, #tpu.memory_space<vmem>>, %arg4: memref<1x384xf32, #tpu.memory_space<vmem>>, %arg5: memref<4x128xbf16, #tpu.memory_space<vmem>>, %arg6: memref<4x1xf32, #tpu.memory_space<vmem>>, %arg7: memref<1x4x256xf32, #tpu.memory_space<vmem>>) attributes {dimension_semantics = [#tpu.dimension_semantics<parallel>], iteration_bounds = array<i64: 2>, scalar_prefetch = 0 : i64, scratch_operands = 0 : i64, tpu.core_type = #tpu.core_type<tc>, window_params = [{transform_indices = @transform_0, window_bounds = array<i64: 1, 256, 4>}, {pipeline_mode = #tpu.pipeline_mode<synchronous>, transform_indices = @transform_1, window_bounds = array<i64: 4, 384>}, {pipeline_mode = #tpu.pipeline_mode<synchronous>, transform_indices = @transform_2, window_bounds = array<i64: 128, 256>}, {pipeline_mode = #tpu.pipeline_mode<synchronous>, transform_indices = @transform_3, window_bounds = array<i64: 1, 384>}, {pipeline_mode = #tpu.pipeline_mode<synchronous>, transform_indices = @transform_4, window_bounds = array<i64: 4, 128>}, {pipeline_mode = #tpu.pipeline_mode<synchronous>, transform_indices = @transform_5, window_bounds = array<i64: 4, 1>}, {transform_indices = @transform_6, window_bounds = array<i64: 1, 4, 256>}]} {
    %c0 = arith.constant 0 : index
    %c0_0 = arith.constant 0 : index
    %c0_1 = arith.constant 0 : index
    %0 = vector.load %arg1[%c0, %c0_0, %c0_1] : memref<1x256x4xf32, #tpu.memory_space<vmem>>, vector<1x256x4xf32>
    %1 = vector.shape_cast %0 : vector<1x256x4xf32> to vector<256x4xf32>
    %2 = arith.mulf %1, %1 : vector<256x4xf32>
    %cst = arith.constant dense<0.000000e+00> : vector<256xf32>
    %3 = vector.multi_reduction <add>, %2, %cst [1] : vector<256x4xf32> to vector<256xf32>
    %4 = vector.shape_cast %3 : vector<256xf32> to vector<256x1xf32>
    %cst_2 = arith.constant 1.000000e-24 : f32
    %5 = vector.broadcast %cst_2 : f32 to vector<256x1xf32>
    %6 = arith.maximumf %4, %5 : vector<256x1xf32>
    %7 = math.rsqrt %6 : vector<256x1xf32>
    %8 = vector.broadcast %7 : vector<256x1xf32> to vector<256x4xf32>
    %9 = arith.mulf %1, %8 : vector<256x4xf32>
    %10 = arith.truncf %9 : vector<256x4xf32> to vector<256x4xbf16>
    %c0_3 = arith.constant 0 : index
    %c0_4 = arith.constant 0 : index
    %11 = vector.load %arg2[%c0_3, %c0_4] : memref<4x384xbf16, #tpu.memory_space<vmem>>, vector<4x384xbf16>
    %cst_5 = arith.constant dense<0.000000e+00> : vector<256x384xf32>
    %12 = tpu.matmul %10, %11, %cst_5 {dimension_numbers = #tpu.dot_dimension_numbers<[1], [0], [0], [1], [0, 0, 1, 1], [], []>} : vector<256x4xbf16>, vector<4x384xbf16>, vector<256x384xf32> -> vector<256x384xf32>
    %13 = arith.truncf %12 : vector<256x384xf32> to vector<256x384xbf16>
    %14 = vector.extract_strided_slice %13 {offsets = [0, 0], sizes = [256, 128], strides = [1, 1]} : vector<256x384xbf16> to vector<256x128xbf16>
    %15 = vector.extract_strided_slice %13 {offsets = [0, 128], sizes = [256, 256], strides = [1, 1]} : vector<256x384xbf16> to vector<256x256xbf16>
    %c0_6 = arith.constant 0 : index
    %c0_7 = arith.constant 0 : index
    %16 = vector.load %arg3[%c0_6, %c0_7] : memref<128x256xbf16, #tpu.memory_space<vmem>>, vector<128x256xbf16>
    %17 = tpu.concatenate %15, %16 in 0 : vector<256x256xbf16>, vector<128x256xbf16> -> vector<384x256xbf16>
    %c0_8 = arith.constant 0 : index
    %c0_9 = arith.constant 0 : index
    %18 = vector.load %arg4[%c0_8, %c0_9] : memref<1x384xf32, #tpu.memory_space<vmem>>, vector<1x384xf32>
    %19 = vector.extract_strided_slice %14 {offsets = [0, 0], sizes = [256, 32], strides = [1, 1]} : vector<256x128xbf16> to vector<256x32xbf16>
    %20 = vector.extract_strided_slice %17 {offsets = [0, 0], sizes = [384, 32], strides = [1, 1]} : vector<384x256xbf16> to vector<384x32xbf16>
    %21 = vector.extract_strided_slice %17 {offsets = [0, 128], sizes = [384, 32], strides = [1, 1]} : vector<384x256xbf16> to vector<384x32xbf16>
    %cst_10 = arith.constant dense<0.000000e+00> : vector<256x384xf32>
    %22 = tpu.matmul %19, %20, %cst_10 {dimension_numbers = #tpu.dot_dimension_numbers<[1], [1], [0], [0], [0, 0, 1, 0], [], []>} : vector<256x32xbf16>, vector<384x32xbf16>, vector<256x384xf32> -> vector<256x384xf32>
    %23 = vector.broadcast %18 : vector<1x384xf32> to vector<256x384xf32>
    %24 = arith.addf %22, %23 : vector<256x384xf32>
    %cst_11 = arith.constant dense<0xFF800000> : vector<256xf32>
    %25 = vector.multi_reduction <maximumf>, %24, %cst_11 [1] : vector<256x384xf32> to vector<256xf32>
    %26 = vector.shape_cast %25 : vector<256xf32> to vector<256x1xf32>
    %27 = vector.broadcast %26 : vector<256x1xf32> to vector<256x384xf32>
    %28 = arith.subf %24, %27 : vector<256x384xf32>
    %29 = math.exp %28 : vector<256x384xf32>
    %cst_12 = arith.constant dense<0.000000e+00> : vector<256xf32>
    %30 = vector.multi_reduction <add>, %29, %cst_12 [1] : vector<256x384xf32> to vector<256xf32>
    %31 = vector.shape_cast %30 : vector<256xf32> to vector<256x1xf32>
    %32 = tpu.reciprocal %31 {approx = true} : vector<256x1xf32> -> vector<256x1xf32>
    %33 = vector.broadcast %32 : vector<256x1xf32> to vector<256x384xf32>
    %34 = arith.mulf %29, %33 : vector<256x384xf32>
    %35 = arith.truncf %34 : vector<256x384xf32> to vector<256x384xbf16>
    %cst_13 = arith.constant dense<0.000000e+00> : vector<256x32xf32>
    %36 = tpu.matmul %35, %21, %cst_13 {dimension_numbers = #tpu.dot_dimension_numbers<[1], [0], [0], [1], [0, 0, 1, 1], [], []>} : vector<256x384xbf16>, vector<384x32xbf16>, vector<256x32xf32> -> vector<256x32xf32>
    %37 = arith.truncf %36 : vector<256x32xf32> to vector<256x32xbf16>
    %38 = vector.extract_strided_slice %14 {offsets = [0, 32], sizes = [256, 32], strides = [1, 1]} : vector<256x128xbf16> to vector<256x32xbf16>
    %39 = vector.extract_strided_slice %17 {offsets = [0, 32], sizes = [384, 32], strides = [1, 1]} : vector<384x256xbf16> to vector<384x32xbf16>
    %40 = vector.extract_strided_slice %17 {offsets = [0, 160], sizes = [384, 32], strides = [1, 1]} : vector<384x256xbf16> to vector<384x32xbf16>
    %cst_14 = arith.constant dense<0.000000e+00> : vector<256x384xf32>
    %41 = tpu.matmul %38, %39, %cst_14 {dimension_numbers = #tpu.dot_dimension_numbers<[1], [1], [0], [0], [0, 0, 1, 0], [], []>} : vector<256x32xbf16>, vector<384x32xbf16>, vector<256x384xf32> -> vector<256x384xf32>
    %42 = vector.broadcast %18 : vector<1x384xf32> to vector<256x384xf32>
    %43 = arith.addf %41, %42 : vector<256x384xf32>
    %cst_15 = arith.constant dense<0xFF800000> : vector<256xf32>
    %44 = vector.multi_reduction <maximumf>, %43, %cst_15 [1] : vector<256x384xf32> to vector<256xf32>
    %45 = vector.shape_cast %44 : vector<256xf32> to vector<256x1xf32>
    %46 = vector.broadcast %45 : vector<256x1xf32> to vector<256x384xf32>
    %47 = arith.subf %43, %46 : vector<256x384xf32>
    %48 = math.exp %47 : vector<256x384xf32>
    %cst_16 = arith.constant dense<0.000000e+00> : vector<256xf32>
    %49 = vector.multi_reduction <add>, %48, %cst_16 [1] : vector<256x384xf32> to vector<256xf32>
    %50 = vector.shape_cast %49 : vector<256xf32> to vector<256x1xf32>
    %51 = tpu.reciprocal %50 {approx = true} : vector<256x1xf32> -> vector<256x1xf32>
    %52 = vector.broadcast %51 : vector<256x1xf32> to vector<256x384xf32>
    %53 = arith.mulf %48, %52 : vector<256x384xf32>
    %54 = arith.truncf %53 : vector<256x384xf32> to vector<256x384xbf16>
    %cst_17 = arith.constant dense<0.000000e+00> : vector<256x32xf32>
    %55 = tpu.matmul %54, %40, %cst_17 {dimension_numbers = #tpu.dot_dimension_numbers<[1], [0], [0], [1], [0, 0, 1, 1], [], []>} : vector<256x384xbf16>, vector<384x32xbf16>, vector<256x32xf32> -> vector<256x32xf32>
    %56 = arith.truncf %55 : vector<256x32xf32> to vector<256x32xbf16>
    %57 = vector.extract_strided_slice %14 {offsets = [0, 64], sizes = [256, 32], strides = [1, 1]} : vector<256x128xbf16> to vector<256x32xbf16>
    %58 = vector.extract_strided_slice %17 {offsets = [0, 64], sizes = [384, 32], strides = [1, 1]} : vector<384x256xbf16> to vector<384x32xbf16>
    %59 = vector.extract_strided_slice %17 {offsets = [0, 192], sizes = [384, 32], strides = [1, 1]} : vector<384x256xbf16> to vector<384x32xbf16>
    %cst_18 = arith.constant dense<0.000000e+00> : vector<256x384xf32>
    %60 = tpu.matmul %57, %58, %cst_18 {dimension_numbers = #tpu.dot_dimension_numbers<[1], [1], [0], [0], [0, 0, 1, 0], [], []>} : vector<256x32xbf16>, vector<384x32xbf16>, vector<256x384xf32> -> vector<256x384xf32>
    %61 = vector.broadcast %18 : vector<1x384xf32> to vector<256x384xf32>
    %62 = arith.addf %60, %61 : vector<256x384xf32>
    %cst_19 = arith.constant dense<0xFF800000> : vector<256xf32>
    %63 = vector.multi_reduction <maximumf>, %62, %cst_19 [1] : vector<256x384xf32> to vector<256xf32>
    %64 = vector.shape_cast %63 : vector<256xf32> to vector<256x1xf32>
    %65 = vector.broadcast %64 : vector<256x1xf32> to vector<256x384xf32>
    %66 = arith.subf %62, %65 : vector<256x384xf32>
    %67 = math.exp %66 : vector<256x384xf32>
    %cst_20 = arith.constant dense<0.000000e+00> : vector<256xf32>
    %68 = vector.multi_reduction <add>, %67, %cst_20 [1] : vector<256x384xf32> to vector<256xf32>
    %69 = vector.shape_cast %68 : vector<256xf32> to vector<256x1xf32>
    %70 = tpu.reciprocal %69 {approx = true} : vector<256x1xf32> -> vector<256x1xf32>
    %71 = vector.broadcast %70 : vector<256x1xf32> to vector<256x384xf32>
    %72 = arith.mulf %67, %71 : vector<256x384xf32>
    %73 = arith.truncf %72 : vector<256x384xf32> to vector<256x384xbf16>
    %cst_21 = arith.constant dense<0.000000e+00> : vector<256x32xf32>
    %74 = tpu.matmul %73, %59, %cst_21 {dimension_numbers = #tpu.dot_dimension_numbers<[1], [0], [0], [1], [0, 0, 1, 1], [], []>} : vector<256x384xbf16>, vector<384x32xbf16>, vector<256x32xf32> -> vector<256x32xf32>
    %75 = arith.truncf %74 : vector<256x32xf32> to vector<256x32xbf16>
    %76 = vector.extract_strided_slice %14 {offsets = [0, 96], sizes = [256, 32], strides = [1, 1]} : vector<256x128xbf16> to vector<256x32xbf16>
    %77 = vector.extract_strided_slice %17 {offsets = [0, 96], sizes = [384, 32], strides = [1, 1]} : vector<384x256xbf16> to vector<384x32xbf16>
    %78 = vector.extract_strided_slice %17 {offsets = [0, 224], sizes = [384, 32], strides = [1, 1]} : vector<384x256xbf16> to vector<384x32xbf16>
    %cst_22 = arith.constant dense<0.000000e+00> : vector<256x384xf32>
    %79 = tpu.matmul %76, %77, %cst_22 {dimension_numbers = #tpu.dot_dimension_numbers<[1], [1], [0], [0], [0, 0, 1, 0], [], []>} : vector<256x32xbf16>, vector<384x32xbf16>, vector<256x384xf32> -> vector<256x384xf32>
    %80 = vector.broadcast %18 : vector<1x384xf32> to vector<256x384xf32>
    %81 = arith.addf %79, %80 : vector<256x384xf32>
    %cst_23 = arith.constant dense<0xFF800000> : vector<256xf32>
    %82 = vector.multi_reduction <maximumf>, %81, %cst_23 [1] : vector<256x384xf32> to vector<256xf32>
    %83 = vector.shape_cast %82 : vector<256xf32> to vector<256x1xf32>
    %84 = vector.broadcast %83 : vector<256x1xf32> to vector<256x384xf32>
    %85 = arith.subf %81, %84 : vector<256x384xf32>
    %86 = math.exp %85 : vector<256x384xf32>
    %cst_24 = arith.constant dense<0.000000e+00> : vector<256xf32>
    %87 = vector.multi_reduction <add>, %86, %cst_24 [1] : vector<256x384xf32> to vector<256xf32>
    %88 = vector.shape_cast %87 : vector<256xf32> to vector<256x1xf32>
    %89 = tpu.reciprocal %88 {approx = true} : vector<256x1xf32> -> vector<256x1xf32>
    %90 = vector.broadcast %89 : vector<256x1xf32> to vector<256x384xf32>
    %91 = arith.mulf %86, %90 : vector<256x384xf32>
    %92 = arith.truncf %91 : vector<256x384xf32> to vector<256x384xbf16>
    %cst_25 = arith.constant dense<0.000000e+00> : vector<256x32xf32>
    %93 = tpu.matmul %92, %78, %cst_25 {dimension_numbers = #tpu.dot_dimension_numbers<[1], [0], [0], [1], [0, 0, 1, 1], [], []>} : vector<256x384xbf16>, vector<384x32xbf16>, vector<256x32xf32> -> vector<256x32xf32>
    %94 = arith.truncf %93 : vector<256x32xf32> to vector<256x32xbf16>
    %95 = tpu.concatenate %37, %56, %75, %94 in 1 : vector<256x32xbf16>, vector<256x32xbf16>, vector<256x32xbf16>, vector<256x32xbf16> -> vector<256x128xbf16>
    %c0_26 = arith.constant 0 : index
    %c0_27 = arith.constant 0 : index
    %96 = vector.load %arg5[%c0_26, %c0_27] : memref<4x128xbf16, #tpu.memory_space<vmem>>, vector<4x128xbf16>
    %cst_28 = arith.constant dense<0.000000e+00> : vector<4x256xf32>
    %97 = tpu.matmul %96, %95, %cst_28 {dimension_numbers = #tpu.dot_dimension_numbers<[1], [1], [0], [0], [0, 0, 1, 0], [], []>} : vector<4x128xbf16>, vector<256x128xbf16>, vector<4x256xf32> -> vector<4x256xf32>
    %c0_29 = arith.constant 0 : index
    %c0_30 = arith.constant 0 : index
    %98 = vector.load %arg6[%c0_29, %c0_30] : memref<4x1xf32, #tpu.memory_space<vmem>>, vector<4x1xf32>
    %99 = vector.broadcast %98 : vector<4x1xf32> to vector<4x256xf32>
    %100 = arith.addf %97, %99 : vector<4x256xf32>
    %c0_31 = arith.constant 0 : index
    %c0_32 = arith.constant 0 : index
    %c0_33 = arith.constant 0 : index
    %101 = vector.load %arg7[%c0_31, %c0_32, %c0_33] : memref<1x4x256xf32, #tpu.memory_space<vmem>>, vector<1x4x256xf32>
    %102 = vector.shape_cast %101 : vector<1x4x256xf32> to vector<4x256xf32>
    %103 = vector.shape_cast %100 : vector<4x256xf32> to vector<1x4x256xf32>
    tpu.vector_store %arg7[%c0_31, %c0_32, %c0_33], %103 {strides = array<i32>} : memref<1x4x256xf32, #tpu.memory_space<vmem>>, vector<1x4x256xf32>,
    return
  }
  func.func @transform_0(%arg0: i32) -> (i32, i32, i32) {
    %c0_i32 = arith.constant 0 : i32
    %c0_i32_0 = arith.constant 0 : i32
    %c0_i32_1 = arith.constant 0 : i32
    return %arg0, %c0_i32, %c0_i32_0 : i32, i32, i32
  }
  func.func @transform_1(%arg0: i32) -> (i32, i32) {
    %c0_i32 = arith.constant 0 : i32
    %c0_i32_0 = arith.constant 0 : i32
    %c0_i32_1 = arith.constant 0 : i32
    return %c0_i32, %c0_i32_0 : i32, i32
  }
  func.func @transform_2(%arg0: i32) -> (i32, i32) {
    %c0_i32 = arith.constant 0 : i32
    %c0_i32_0 = arith.constant 0 : i32
    %c0_i32_1 = arith.constant 0 : i32
    return %c0_i32, %c0_i32_0 : i32, i32
  }
  func.func @transform_3(%arg0: i32) -> (i32, i32) {
    %c0_i32 = arith.constant 0 : i32
    %c0_i32_0 = arith.constant 0 : i32
    %c0_i32_1 = arith.constant 0 : i32
    return %c0_i32, %c0_i32_0 : i32, i32
  }
  func.func @transform_4(%arg0: i32) -> (i32, i32) {
    %c0_i32 = arith.constant 0 : i32
    %c0_i32_0 = arith.constant 0 : i32
    %c0_i32_1 = arith.constant 0 : i32
    return %c0_i32, %c0_i32_0 : i32, i32
  }
  func.func @transform_5(%arg0: i32) -> (i32, i32) {
    %c0_i32 = arith.constant 0 : i32
    %c0_i32_0 = arith.constant 0 : i32
    %c0_i32_1 = arith.constant 0 : i32
    return %c0_i32, %c0_i32_0 : i32, i32
  }
  func.func @transform_6(%arg0: i32) -> (i32, i32, i32) {
    %c0_i32 = arith.constant 0 : i32
    %c0_i32_0 = arith.constant 0 : i32
    %c0_i32_1 = arith.constant 0 : i32
    return %arg0, %c0_i32, %c0_i32_0 : i32, i32, i32
  }
}

</mosaic_0001>

<bundles_post_ra>
// kernel: tpu_custom_call.1
= control target key start
LH: loop header
LB: loop body
LE: loop exit
PB: predicated region body
PF: predicated region fallthrough
CT: control target
= control target key end

     0   :  { %11 = vsyncpa [#allocation3], 0  ;;  %s17459_s0 = inlined_call_operand.vmem [shape: f32[2,256,4], index: 0, kind: input, shape index: {}]   ;;  %s17460_s1 = inlined_call_operand.vmem [shape: bf16[4,384], index: 1, kind: input, shape index: {}]   ;;  %s17461_s2 = inlined_call_operand.vmem [shape: bf16[128,256], index: 2, kind: input, shape index: {}]   ;;  %s17462_s3 = inlined_call_operand.vmem [shape: f32[1,384], index: 3, kind: input, shape index: {}]   ;;  %s17463_s4 = inlined_call_operand.vmem [shape: bf16[4,128], index: 4, kind: input, shape index: {}]   ;;  %s17464_s5 = inlined_call_operand.vmem [shape: f32[4,1], index: 5, kind: input, shape index: {}]   ;;  %s17465_s6 = inlined_call_operand.hbm [shape: f32[2,4,256], index: 6, kind: output, shape index: {}]  }
   0x1   :  { %13 = vsyncpa [#allocation3 + $0x1], 0  ;;  %s10988_s21 = smov 0   ;;  %s10990_s22 = smov 0  }
   0x2   :  { %s10992_s23 = smov 0   ;;  %s10994_s24 = smov 0  }
   0x3 LB: > { %s11009_s25 = sadd.s32 4294967295, %s10945_s24   ;;  %s8141_s26 = sadd.s32 4294967294, %s10945_s24   ;;  %s10945_s24 = sphi %s10994_s24, %s19318_s24   ;;  %s10941_s23 = sphi %s10992_s23, %s19317_s23   ;;  %s10937_s22 = sphi %s10990_s22, %s19316_s22   ;;  %s10933_s21 = sphi %s10988_s21, %s19315_s21  }
   0x4   : > { %s11013_s27 = sadd.s32 1, %s10945_s24   ;;  %s157_s28 = sadd.s32 1, %s10941_s23 }
   0x5   : > { %s154_s29 = ssub.s32 %s10945_s24, %s11013_s27  ;;  %p167_p0 = scmp.ne.s32.totalorder %s10941_s23, %s10937_s22 }
   0x6   : > { %p155_p1 = scmp.eq.s32.totalorder %s154_s29, 0  ;;  %p168_p2 = scmp.eq.s32.totalorder %s11009_s25, 1 }
   0x7   : > { %p173_p3 = scmp.ne.s32.totalorder %s10937_s22, %s10933_s21  ;;  %p174_p4 = scmp.eq.s32.totalorder %s8141_s26, 1 }
   0x8   : > { %s11024_s30 = scalar_select %p155_p1, %s10941_s23, %s157_s28  }
   0x9   : > { %p11026_p5 = por %p168_p2, %p167_p0  ;;  %p11030_p6 = por %p174_p4, %p173_p3 }
   0xa   : > { %p8144_p7 = scmp.ge.s32.totalorder %s10945_s24, 1  ;;  %p215_p8 = scmp.lt.s32.totalorder %s10945_s24, 3 }
   0xc   : > { %p216_p9 = pnand %p8144_p7, %p215_p8 }
   0xe   : > { %219 = sbr.rel (%p216_p9) target bundleno = 4054 (0xfd6), region = 44 }
  0x13   : > { %p245_p10 = scmp.lt.s32.totalorder %s11009_s25, 1  ;;  %vm315_vm0 = vcmask 31744   ;;  %v10947_v46 = vmov 1983009808   ;;  %v530_v48 = vlaneseq  ;;  %v11163_v60 = vld [vmem:[%s17460_s1] sm:$0x3f] }
  0x14   : > { %v528_v47 = vunpack.c.l.s4 %v10947_v46  ;;  %vm590_vm1 = vcmask 1041408   ;;  %vm1107_vm2 = vcmask 261120   ;;  %s10949_s17 = smov 96   ;;  %s10950_s20 = smov 64   ;;  %vm7932_vm3 = vcmask 523264  }
  0x15   : > { %s246_s9 = scalar_select %p245_p10, %s11009_s25, 1  ;;  %v11143_v52 = vshrl.u32 %v530_v48, 7  ;;  %vm7965_vm4 = vcmask 785408  }
  0x16   : > { %v529_v51 = vunpack.c.0.s8 %v528_v47 }
  0x17   : > { %s8330_s10 = sshll.u32 %s246_s9, 8  ;;  %18052 = vst [vmem:[#allocation5_spill] sm:$0xff] %v11143_v52 }
  0x18   : > { %s11041_s13 = scalar_lea.vmem %s17459_s0, %s8330_s10  ;;  %v11155_v58 = vsub.s32 %v529_v51, %v11143_v52  ;;  %s10951_s10 = smov 32  }
  0x19   : > { %v11044_v0 = vld [vmem:[%s11041_s13 + $0x10] sm:$0xff]  ;;  %v11047_v1 = vld [vmem:[%s11041_s13] sm:$0xff]  ;;  %v11050_v2 = vld [vmem:[%s11041_s13 + $0x18] sm:$0xff] }
  0x1a   : > { %v285_v3 = vmul.f32 %v11044_v0, %v11044_v0  ;;  %v283_v4 = vmul.f32 %v11047_v1, %v11047_v1  ;;  %v286_v5 = vmul.f32 %v11050_v2, %v11050_v2  ;;  %v11059_v6 = vld [vmem:[%s11041_s13 + $0x8] sm:$0xff]  ;;  %v11067_v9 = vld [vmem:[%s11041_s13 + $0x20] sm:$0xff]  ;;  %v11078_v16 = vld [vmem:[%s11041_s13 + $0x38] sm:$0xff]  ;;  %v533_v61 = vrot.slane %v11163_v60, %v11155_v58 }
  0x1b   : > { %v284_v7 = vmul.f32 %v11059_v6, %v11059_v6  ;;  %v11064_v8 = vld [vmem:[%s11041_s13 + $0x28] sm:$0xff]  ;;  %v287_v15 = vmul.f32 %v11067_v9, %v11067_v9  ;;  %v11081_v17 = vld [vmem:[%s11041_s13 + $0x30] sm:$0xff]  ;;  %v290_v20 = vmul.f32 %v11078_v16, %v11078_v16  ;;  %v11093_v23 = vld [vmem:[%s11041_s13 + $0x40] sm:$0xff] }
  0x1c   : > { %v322_v10 = vsel %vm315_vm0, %v285_v3, 0.0  ;;  %v316_v11 = vsel %vm315_vm0, %v283_v4, 0.0  ;;  %v325_v12 = vsel %vm315_vm0, %v286_v5, 0.0  ;;  %v288_v14 = vmul.f32 %v11064_v8, %v11064_v8  ;;  %v11090_v22 = vld [vmem:[%s11041_s13 + $0x48] sm:$0xff]  ;;  %v11102_v28 = vld [vmem:[%s11041_s13 + $0x58] sm:$0xff]  ;;  %v11105_v29 = vld [vmem:[%s11041_s13 + $0x50] sm:$0xff] }
  0x1d   : > { %323 = vadd.xlane.f32.xlu1 %v322_v10  ;;  %317 = vadd.xlane.f32.xlu0 %v316_v11  ;;  %v319_v13 = vsel %vm315_vm0, %v284_v7, 0.0  ;;  %v328_v19 = vsel %vm315_vm0, %v287_v15, 0.0  ;;  %v289_v21 = vmul.f32 %v11081_v17, %v11081_v17  ;;  %v337_v24 = vsel %vm315_vm0, %v290_v20, 0.0  ;;  %v11114_v34 = vld [vmem:[%s11041_s13 + $0x68] sm:$0xff]  ;;  %v11117_v35 = vld [vmem:[%s11041_s13 + $0x60] sm:$0xff]  ;;  %v11126_v40 = vld [vmem:[%s11041_s13 + $0x78] sm:$0xff] }
  0x1e   : > { %v331_v18 = vsel %vm315_vm0, %v288_v14, 0.0  ;;  %v292_v26 = vmul.f32 %v11090_v22, %v11090_v22  ;;  %v291_v27 = vmul.f32 %v11093_v23, %v11093_v23  ;;  %v294_v32 = vmul.f32 %v11102_v28, %v11102_v28  ;;  %v11129_v41 = vld [vmem:[%s11041_s13 + $0x70] sm:$0xff]  ;;  %v11138_v49 = vld [vmem:[%s11041_s13 + $0xd8] sm:$0xff]  ;;  %v11152_v57 = vld [vmem:[%s11041_s13 + $0x88] sm:$0xff] }
  0x1f   : > { %v334_v25 = vsel %vm315_vm0, %v289_v21, 0.0  ;;  %v293_v33 = vmul.f32 %v11105_v29, %v11105_v29  ;;  %v296_v36 = vmul.f32 %v11114_v34, %v11114_v34  ;;  %v295_v39 = vmul.f32 %v11117_v35, %v11117_v35  ;;  %v11141_v50 = vld [vmem:[%s11041_s13 + $0xd0] sm:$0xff]  ;;  %v11158_v59 = vld [vmem:[%s11041_s13 + $0x80] sm:$0xff]  ;;  %v11174_v7 = vld [vmem:[%s11041_s13 + $0xe8] sm:$0xff] }
  0x20   : > { %v343_v30 = vsel %vm315_vm0, %v292_v26, 0.0  ;;  %v340_v31 = vsel %vm315_vm0, %v291_v27, 0.0  ;;  %v349_v37 = vsel %vm315_vm0, %v294_v32, 0.0  ;;  %v298_v43 = vmul.f32 %v11126_v40, %v11126_v40  ;;  %v11177_v10 = vld [vmem:[%s11041_s13 + $0xe0] sm:$0xff]  ;;  %v11205_v27 = vld [vmem:[%s11041_s13 + $0xf8] sm:$0xff]  ;;  %v11232_v46 = vld [vmem:[%s11041_s13 + $0xb0] sm:$0xff] }
  0x21   : > { %326 = vadd.xlane.f32.xlu1 %v325_v12  ;;  %320 = vadd.xlane.f32.xlu0 %v319_v13  ;;  %v346_v38 = vsel %vm315_vm0, %v293_v33, 0.0  ;;  %v355_v42 = vsel %vm315_vm0, %v296_v36, 0.0  ;;  %v352_v44 = vsel %vm315_vm0, %v295_v39, 0.0  ;;  %v297_v45 = vmul.f32 %v11129_v41, %v11129_v41 }
  0x22   : > { %v361_v53 = vsel %vm315_vm0, %v298_v43, 0.0  ;;  %v310_v55 = vmul.f32 %v11138_v49, %v11138_v49  ;;  %v309_v56 = vmul.f32 %v11141_v50, %v11141_v50  ;;  %v300_v62 = vmul.f32 %v11152_v57, %v11152_v57 }
  0x23   : > { %v358_v54 = vsel %vm315_vm0, %v297_v45, 0.0  ;;  %v299_v4 = vmul.f32 %v11158_v59, %v11158_v59  ;;  %v541_v5 = vcombine.high %v533_v61, %v533_v61  ;;  %v592_v11 = vsel %vm590_vm1, %v533_v61, 0  ;;  %v11229_v45 = vld [vmem:[%s11041_s13 + $0xb8] sm:$0xff] }
  0x24   : > { %v397_v63 = vsel %vm315_vm0, %v310_v55, 0.0  ;;  %v394_v3 = vsel %vm315_vm0, %v309_v56, 0.0  ;;  %v367_v12 = vsel %vm315_vm0, %v300_v62, 0.0  ;;  %v312_v14 = vmul.f32 %v11174_v7, %v11174_v7  ;;  %v11244_v55 = vld [vmem:[%s11041_s13 + $0xc0] sm:$0xff] }
  0x25   : > { %332 = vadd.xlane.f32.xlu1 %v331_v18  ;;  %329 = vadd.xlane.f32.xlu0 %v328_v19  ;;  %v364_v13 = vsel %vm315_vm0, %v299_v4, 0.0  ;;  %v311_v15 = vmul.f32 %v11177_v10, %v11177_v10  ;;  %v11189_v18 = vld [vmem:[%s11041_s13 + $0x98] sm:$0xff]  ;;  %v11192_v19 = vld [vmem:[%s11041_s13 + $0x90] sm:$0xff]  ;;  %v10948_v20 = vmov 0   ;;  %v314_v33 = vmul.f32 %v11205_v27, %v11205_v27 }
  0x26   : > { %8148 = vmatprep.subr.msk.bf16.mxu0 %vm590_vm1, %v541_v5  ;;  %9617 = vmatprep.subr.msk.bf16.mxu1 %vm590_vm1, %v541_v5  ;;  %v403_v21 = vsel %vm315_vm0, %v312_v14, 0.0  ;;  %v301_v26 = vmul.f32 %v11192_v19, %v11192_v19  ;;  %v306_v51 = vmul.f32 %v11229_v45, %v11229_v45  ;;  %v526_v5 = vcombine.high %v11163_v60, %v11163_v60 }
  0x27   : > { %615 = vmatpush1.bf16.msra.mxu0 %v592_v11  ;;  %9618 = vmatpush1.bf16.msra.mxu1 %v592_v11  ;;  %v409_v39 = vsel %vm315_vm0, %v314_v33, 0.0 }
  0x28   : > { %632 = vmatprep.mubr.bf16.mxu0 %v10948_v20  ;;  %762 = vmatprep.mubr.bf16.mxu1 %v10948_v20  ;;  %v370_v32 = vsel %vm315_vm0, %v301_v26, 0.0  ;;  %v385_v56 = vsel %vm315_vm0, %v306_v51, 0.0  ;;  %v540_v11 = vrot.slane %v526_v5, %v11155_v58  ;;  %v11264_v26 = vld [vmem:[%s17461_s2 + $0x70] ss:$8 sps:$4 sm:$0xff]  }
  0x29   : > { %338 = vadd.xlane.f32.xlu1 %v337_v24  ;;  %335 = vadd.xlane.f32.xlu0 %v334_v25  ;;  %v400_v24 = vsel %vm315_vm0, %v311_v15, 0.0  ;;  %v302_v25 = vmul.f32 %v11189_v18, %v11189_v18 }
  0x2a   : > { %9728 = vset.pattern.permute.xlu1 %v10948_v20  ;;  %9729 = vset.pattern.permute.xlu0 %v10948_v20 }
  0x2b   : > { %9619 = vmatprep.subr.msk.bf16.mxu1 %vm590_vm1, %v540_v11  ;;  %9628 = vmatprep.subr.msk.bf16.mxu0 %vm1107_vm2, %v11264_v26 }
  0x2d   : > { %344 = vadd.xlane.f32.xlu1 %v343_v30  ;;  %341 = vadd.xlane.f32.xlu0 %v340_v31  ;;  %v11208_v30 = vld [vmem:[%s11041_s13 + $0xf0] sm:$0xff]  ;;  %v373_v31 = vsel %vm315_vm0, %v302_v25, 0.0 }
  0x2e   : > { %v313_v36 = vmul.f32 %v11208_v30, %v11208_v30 }
  0x31   : > { %350 = vadd.xlane.f32.xlu1 %v349_v37  ;;  %347 = vadd.xlane.f32.xlu0 %v346_v38  ;;  %v11217_v37 = vld [vmem:[%s11041_s13 + $0xa8] sm:$0xff]  ;;  %v11220_v38 = vld [vmem:[%s11041_s13 + $0xa0] sm:$0xff] }
  0x32   : > { %v304_v43 = vmul.f32 %v11217_v37, %v11217_v37 }
  0x34   : > { %v379_v47 = vsel %vm315_vm0, %v304_v43, 0.0 }
  0x35   : > { %356 = vadd.xlane.f32.xlu1 %v355_v42  ;;  %353 = vadd.xlane.f32.xlu0 %v352_v44  ;;  %v406_v42 = vsel %vm315_vm0, %v313_v36, 0.0  ;;  %v303_v44 = vmul.f32 %v11220_v38, %v11220_v38 }
  0x37   : > { %v376_v48 = vsel %vm315_vm0, %v303_v44, 0.0 }
  0x39   : > { %362 = vadd.xlane.f32.xlu1 %v361_v53  ;;  %359 = vadd.xlane.f32.xlu0 %v358_v54  ;;  %v305_v53 = vmul.f32 %v11232_v46, %v11232_v46  ;;  %v11241_v54 = vld [vmem:[%s11041_s13 + $0xc8] sm:$0xff] }
  0x3a   : > { %v308_v62 = vmul.f32 %v11241_v54, %v11241_v54 }
  0x3b   : > { %v382_v61 = vsel %vm315_vm0, %v305_v53, 0.0 }
  0x3d   : > { %398 = vadd.xlane.f32.xlu1 %v397_v63  ;;  %395 = vadd.xlane.f32.xlu0 %v394_v3  ;;  %v307_v63 = vmul.f32 %v11244_v55, %v11244_v55  ;;  %v391_v3 = vsel %vm315_vm0, %v308_v62, 0.0 }
  0x3f   : > { %v388_v4 = vsel %vm315_vm0, %v307_v63, 0.0 }
  0x41   : > { %368 = vadd.xlane.f32.xlu1 %v367_v12  ;;  %365 = vadd.xlane.f32.xlu0 %v364_v13  ;;  %v11259_v12 = vsel %vm590_vm1, %v540_v11, 0 }
  0x45   : > { %404 = vadd.xlane.f32.xlu1 %v403_v21  ;;  %401 = vadd.xlane.f32.xlu0 %v400_v24 }
  0x49   : > { %374 = vadd.xlane.f32.xlu1 %v373_v31  ;;  %371 = vadd.xlane.f32.xlu0 %v370_v32 }
  0x4d   : > { %410 = vadd.xlane.f32.xlu1 %v409_v39  ;;  %407 = vadd.xlane.f32.xlu0 %v406_v42 }
  0x51   : > { %380 = vadd.xlane.f32.xlu1 %v379_v47  ;;  %377 = vadd.xlane.f32.xlu0 %v376_v48 }
  0x55   : > { %386 = vadd.xlane.f32.xlu1 %v385_v56  ;;  %383 = vadd.xlane.f32.xlu0 %v382_v61 }
  0x59   : > { %392 = vadd.xlane.f32.xlu1 %v391_v3  ;;  %389 = vadd.xlane.f32.xlu0 %v388_v4 }
  0x6a   : > { %2750 = vrot.lane.b32.xlu1 %v11264_v26, %s10949_s17 }
  0xa6   : > { %v324_v13 = vpop.xlane.xlu1 %323  ;;  %v318_v14 = vpop.xlane.xlu0 %317 }
  0xa7   : > { %v412_v15 = vmax.f32 %v318_v14, 1e-24  ;;  %v414_v60 = vmax.f32 %v324_v13, 1e-24  ;;  %v1226_v13 = vsel %vm1107_vm2, %v11264_v26, 0 }
  0xa8   : > { %v11281_v14 = vld [vmem:[%s17461_s2 + $0x60] ss:$8 sps:$4 sm:$0xff]  }
  0xa9   : > { %9755 = vrsqrt.f32 %v412_v15  ;;  %2748 = vrot.lane.b32.xlu1 %v11281_v14, %s10949_s17 }
  0xaa   : > { %v327_v21 = vpop.xlane.xlu1 %326  ;;  %v321_v24 = vpop.xlane.xlu0 %320 }
  0xab   : > { %v413_v25 = vmax.f32 %v321_v24, 1e-24  ;;  %v415_v58 = vmax.f32 %v327_v21, 1e-24 }
  0xad   : > { %9757 = vrsqrt.f32 %v413_v25 }
  0xae   : > { %v333_v31 = vpop.xlane.xlu1 %332  ;;  %v330_v32 = vpop.xlane.xlu0 %329  ;;  %9759 = vrsqrt.f32 %v414_v60 }
  0xaf   : > { %9761 = vrsqrt.f32 %v415_v58  ;;  %v417_v39 = vmax.f32 %v333_v31, 1e-24  ;;  %v416_v42 = vmax.f32 %v330_v32, 1e-24 }
  0xb1   : > { %9763 = vrsqrt.f32 %v417_v39  ;;  %v1223_v39 = vsel %vm1107_vm2, %v11281_v14, 0 }
  0xb2   : > { %v339_v33 = vpop.xlane.xlu1 %338  ;;  %v336_v36 = vpop.xlane.xlu0 %335  ;;  %9765 = vrsqrt.f32 %v416_v42 }
  0xb3   : > { %v419_v56 = vmax.f32 %v339_v33, 1e-24  ;;  %v418_v61 = vmax.f32 %v336_v36, 1e-24 }
  0xb5   : > { %9767 = vrsqrt.f32 %v419_v56 }
  0xb6   : > { %v345_v43 = vpop.xlane.xlu1 %344  ;;  %v342_v44 = vpop.xlane.xlu0 %341  ;;  %9769 = vrsqrt.f32 %v418_v61 }
  0xb7   : > { %v9756_v47 = vpop.eup %9755  ;;  %v421_v25 = vmax.f32 %v345_v43, 1e-24  ;;  %v420_v58 = vmax.f32 %v342_v44, 1e-24 }
  0xb8   : > { %v476_v62 = vmul.f32 %v9756_v47, %v11047_v1 }
  0xb9   : > { %9771 = vrsqrt.f32 %v421_v25 }
  0xba   : > { %v351_v48 = vpop.xlane.xlu1 %350  ;;  %v348_v51 = vpop.xlane.xlu0 %347  ;;  %9773 = vrsqrt.f32 %v420_v58 }
  0xbb   : > { %v9758_v53 = vpop.eup %9757  ;;  %v423_v56 = vmax.f32 %v351_v48, 1e-24 }
  0xbc   : > { %v477_v63 = vmul.f32 %v9758_v53, %v11059_v6  ;;  %v9760_v3 = vpop.eup %9759 }
  0xbd   : > { %v9762_v15 = vpop.eup %9761  ;;  %v478_v21 = vmul.f32 %v9760_v3, %v11044_v0  ;;  %v11301_v0 = vld [vmem:[%s17461_s2 + $0x50] ss:$8 sps:$4 sm:$0xff]  }
  0xbe   : > { %v11270_v4 = vpop.xlane.xlu1 %356  ;;  %v11272_v5 = vpop.xlane.xlu0 %353  ;;  %v11274_v11 = vpack.c.bf16 %v477_v63, %v476_v62  ;;  %v479_v24 = vmul.f32 %v9762_v15, %v11050_v2  ;;  %v422_v62 = vmax.f32 %v348_v51, 1e-24  ;;  %v11321_v15 = vld [vmem:[%s17461_s2 + $0x40] ss:$8 sps:$4 sm:$0xff]   ;;  %2746 = vrot.lane.b32.xlu0 %v11301_v0, %s10949_s17 }
  0xbf   : > { %v9764_v60 = vpop.eup %9763  ;;  %v425_v58 = vmax.f32 %v11270_v4, 1e-24 }
  0xc0   : > { %8149 = vmatmul.mubr.msk.bf16.vlgmr.msra.gmra.mxu0 %vm315_vm0, %v11274_v11  ;;  %v9766_v31 = vpop.eup %9765  ;;  %v11294_v36 = vpack.c.bf16 %v479_v24, %v478_v21  ;;  %v481_v44 = vmul.f32 %v9764_v60, %v11064_v8 }
  0xc1   : > { %642 = vmatprep.mubr.bf16.mxu0 %v10948_v20  ;;  %9234 = vmatpush3.bf16.xpose.msra.mxu0 %v1226_v13  ;;  %v480_v43 = vmul.f32 %v9766_v31, %v11067_v9  ;;  %v1220_v13 = vsel %vm1107_vm2, %v11301_v0, 0 }
  0xc2   : > { %v11286_v1 = vpop.xlane.xlu1 %362  ;;  %v11288_v6 = vpop.xlane.xlu0 %359  ;;  %9629 = vmatprep.subr.msk.bf16.mxu0 %vm1107_vm2, %v11281_v14  ;;  %2744 = vrot.lane.b32.xlu0 %v11321_v15, %s10949_s17 }
  0xc3   : > { %v9768_v61 = vpop.eup %9767  ;;  %v11314_v63 = vpack.c.bf16 %v481_v44, %v480_v43  ;;  %v11343_v43 = vld [vmem:[%s17461_s2 + $0x30] ss:$8 sps:$4 sm:$0xff]  }
  0xc4   : > { %v9770_v9 = vpop.eup %9769  ;;  %v483_v51 = vmul.f32 %v9768_v61, %v11078_v16 }
  0xc5   : > { %v482_v48 = vmul.f32 %v9770_v9, %v11081_v17 }
  0xc6   : > { %v399_v32 = vpop.xlane.xlu1 %398  ;;  %v396_v33 = vpop.xlane.xlu0 %395  ;;  %2742 = vrot.lane.b32.xlu0 %v11343_v43, %s10949_s17 }
  0xc7   : > { %v439_v2 = vmax.f32 %v399_v32, 1e-24  ;;  %v438_v42 = vmax.f32 %v396_v33, 1e-24  ;;  %v9772_v31 = vpop.eup %9771  ;;  %v424_v32 = vmax.f32 %v11272_v5, 1e-24  ;;  %v11336_v17 = vpack.c.bf16 %v483_v51, %v482_v48 }
  0xc8   : > { %8150 = vmatmul.mubr.msk.bf16.gmra.mxu0 %vm315_vm0, %v11294_v36  ;;  %v9774_v16 = vpop.eup %9773  ;;  %v485_v9 = vmul.f32 %v9772_v31, %v11090_v22 }
  0xc9   : > { %9775 = vrsqrt.f32 %v439_v2  ;;  %652 = vmatprep.mubr.bf16.mxu0 %v10948_v20  ;;  %9236 = vmatpush3.bf16.xpose.msra.mxu0 %v1223_v39 }
  0xca   : > { %9777 = vrsqrt.f32 %v438_v42  ;;  %v11308_v47 = vpop.xlane.xlu1 %368  ;;  %v11310_v53 = vpop.xlane.xlu0 %365  ;;  %9630 = vmatprep.subr.msk.bf16.mxu0 %vm1107_vm2, %v11301_v0  ;;  %v1217_v42 = vsel %vm1107_vm2, %v11321_v15, 0 }
  0xcb   : > { %9779 = vrsqrt.f32 %v423_v56 }
  0xcc   : > { %9781 = vrsqrt.f32 %v422_v62  ;;  %v484_v62 = vmul.f32 %v9774_v16, %v11093_v23  ;;  %v427_v23 = vmax.f32 %v11286_v1, 1e-24 }
  0xce   : > { %v405_v3 = vpop.xlane.xlu1 %404  ;;  %v402_v8 = vpop.xlane.xlu0 %401 }
  0xcf   : > { %v441_v21 = vmax.f32 %v405_v3, 1e-24  ;;  %v440_v24 = vmax.f32 %v402_v8, 1e-24  ;;  %v11358_v8 = vpack.c.bf16 %v485_v9, %v484_v62 }
  0xd0   : > { %8151 = vmatmul.mubr.msk.bf16.gmra.mxu0 %vm315_vm0, %v11314_v63 }
  0xd1   : > { %9783 = vrsqrt.f32 %v441_v21  ;;  %662 = vmatprep.mubr.bf16.mxu0 %v10948_v20  ;;  %9238 = vmatpush3.bf16.xpose.msra.mxu0 %v1220_v13  ;;  %v426_v13 = vmax.f32 %v11288_v6, 1e-24  ;;  %v1214_v21 = vsel %vm1107_vm2, %v11343_v43, 0 }
  0xd2   : > { %9785 = vrsqrt.f32 %v440_v24  ;;  %v11328_v25 = vpop.xlane.xlu1 %374  ;;  %v11330_v60 = vpop.xlane.xlu0 %371  ;;  %9631 = vmatprep.subr.msk.bf16.mxu0 %vm1107_vm2, %v11321_v15  ;;  %v11369_v24 = vld [vmem:[%s17461_s2 + $0x20] ss:$8 sps:$4 sm:$0xff]  }
  0xd3   : > { %9787 = vrsqrt.f32 %v425_v58  ;;  %v1211_v16 = vsel %vm1107_vm2, %v11369_v24, 0  ;;  %2740 = vrot.lane.b32.xlu1 %v11369_v24, %s10949_s17 }
  0xd4   : > { %9789 = vrsqrt.f32 %v424_v32  ;;  %v428_v32 = vmax.f32 %v11310_v53, 1e-24 }
  0xd6   : > { %v9776_v33 = vpop.eup %9775  ;;  %v411_v39 = vpop.xlane.xlu1 %410 }
  0xd7   : > { %v408_v2 = vpop.xlane.xlu0 %407  ;;  %v9778_v44 = vpop.eup %9777  ;;  %v443_v4 = vmax.f32 %v411_v39, 1e-24  ;;  %v503_v5 = vmul.f32 %v9776_v33, %v11138_v49  ;;  %v9743_v33 = vld [vmem:[%s17461_s2 + $0x10] ss:$8 sps:$4 sm:$0xff]  }
  0xd8   : > { %v442_v56 = vmax.f32 %v408_v2, 1e-24  ;;  %8152 = vmatmul.mubr.msk.bf16.gmra.mxu0 %vm315_vm0, %v11336_v17  ;;  %v502_v61 = vmul.f32 %v9778_v44, %v11141_v50  ;;  %v9780_v49 = vpop.eup %9779 }
  0xd9   : > { %9791 = vrsqrt.f32 %v443_v4  ;;  %672 = vmatprep.mubr.bf16.mxu0 %v10948_v20  ;;  %9240 = vmatpush3.bf16.xpose.msra.mxu0 %v1217_v42  ;;  %v9782_v50 = vpop.eup %9781  ;;  %v487_v6 = vmul.f32 %v9780_v49, %v11102_v28  ;;  %v431_v4 = vmax.f32 %v11328_v25, 1e-24 }
  0xda   : > { %9793 = vrsqrt.f32 %v442_v56  ;;  %v11352_v3 = vpack.c.bf16 %v503_v5, %v502_v61  ;;  %9632 = vmatprep.subr.msk.bf16.mxu0 %vm1107_vm2, %v11343_v43  ;;  %v381_v56 = vpop.xlane.xlu1 %380 }
  0xdb   : > { %9795 = vrsqrt.f32 %v427_v23  ;;  %v378_v5 = vpop.xlane.xlu0 %377  ;;  %v433_v25 = vmax.f32 %v381_v56, 1e-24 }
  0xdc   : > { %8162 = vmatmul.mubr.msk.bf16.vlgmr.msra.gmra.mxu1 %vm315_vm0, %v11352_v3  ;;  %9797 = vrsqrt.f32 %v426_v13 }
  0xdd   : > { %772 = vmatprep.mubr.bf16.mxu1 %v10948_v20  ;;  %9200 = vmatpush3.bf16.msra.mxu1 %v11259_v12  ;;  %v486_v12 = vmul.f32 %v9782_v50, %v11105_v29  ;;  %v429_v29 = vmax.f32 %v11308_v47, 1e-24 }
  0xde   : > { %v9784_v22 = vpop.eup %9783  ;;  %v387_v50 = vpop.xlane.xlu1 %386 }
  0xdf   : > { %v9786_v48 = vpop.eup %9785  ;;  %v505_v51 = vmul.f32 %v9784_v22, %v11174_v7  ;;  %v11384_v31 = vpack.c.bf16 %v487_v6, %v486_v12  ;;  %9799 = vrsqrt.f32 %v429_v29 }
  0xe0   : > { %8153 = vmatmul.mubr.msk.bf16.gmra.mxu0 %vm315_vm0, %v11358_v8  ;;  %v504_v1 = vmul.f32 %v9786_v48, %v11177_v10  ;;  %v9788_v7 = vpop.eup %9787  ;;  %9801 = vrsqrt.f32 %v428_v32 }
  0xe1   : > { %682 = vmatprep.mubr.bf16.mxu0 %v10948_v20  ;;  %9242 = vmatpush3.bf16.xpose.msra.mxu0 %v1214_v21  ;;  %v9790_v10 = vpop.eup %9789  ;;  %v489_v44 = vmul.f32 %v9788_v7, %v11114_v34  ;;  %v430_v34 = vmax.f32 %v11330_v60, 1e-24  ;;  %9803 = vrsqrt.f32 %v431_v4  ;;  %v9745_v7 = vld [vmem:[%s17461_s2] ss:$8 sps:$4 sm:$0xff]  }
  0xe2   : > { %v11378_v58 = vpack.c.bf16 %v505_v51, %v504_v1  ;;  %9633 = vmatprep.subr.msk.bf16.mxu0 %vm1107_vm2, %v11369_v24  ;;  %v488_v42 = vmul.f32 %v9790_v10, %v11117_v35  ;;  %v393_v22 = vpop.xlane.xlu1 %392  ;;  %v1208_v1 = vsel %vm1107_vm2, %v9743_v33, 0 }
  0xe3   : > { %9805 = vrsqrt.f32 %v430_v34 }
  0xe4   : > { %8163 = vmatmul.mubr.msk.bf16.gmra.mxu1 %vm315_vm0, %v11378_v58  ;;  %9807 = vrsqrt.f32 %v433_v25 }
  0xe5   : > { %782 = vmatprep.mubr.bf16.mxu1 %v10948_v20 }
  0xe6   : > { %v9792_v28 = vpop.eup %9791 }
  0xe7   : > { %v9794_v39 = vpop.eup %9793  ;;  %v507_v2 = vmul.f32 %v9792_v28, %v11205_v27  ;;  %v514_v27 = vpack.c.bf16 %v489_v44, %v488_v42 }
  0xe8   : > { %8154 = vmatmul.mubr.msk.bf16.gmra.mxu0 %vm315_vm0, %v11384_v31  ;;  %v506_v47 = vmul.f32 %v9794_v39, %v11208_v30  ;;  %v9796_v35 = vpop.eup %9795 }
  0xe9   : > { %692 = vmatprep.mubr.bf16.mxu0 %v10948_v20  ;;  %9244 = vmatpush3.bf16.xpose.msra.mxu0 %v1211_v16  ;;  %v9798_v30 = vpop.eup %9797  ;;  %v491_v62 = vmul.f32 %v9796_v35, %v11126_v40 }
  0xea   : > { %v11401_v53 = vpack.c.bf16 %v507_v2, %v506_v47  ;;  %9634 = vmatprep.subr.msk.bf16.mxu0 %vm1107_vm2, %v9743_v33  ;;  %v490_v61 = vmul.f32 %v9798_v30, %v11129_v41  ;;  %v384_v41 = vpop.xlane.xlu0 %383 }
  0xec   : > { %8164 = vmatmul.mubr.msk.bf16.gmra.mxu1 %vm315_vm0, %v11401_v53  ;;  %v9800_v60 = vpop.eup %9799  ;;  %v515_v9 = vpack.c.bf16 %v491_v62, %v490_v61 }
  0xed   : > { %9201 = vmatprep.mubr.msk.bf16.mxu1 %vm315_vm0, %v11274_v11  ;;  %v432_v11 = vmax.f32 %v378_v5, 1e-24  ;;  %v9802_v49 = vpop.eup %9801  ;;  %v493_v23 = vmul.f32 %v9800_v60, %v11152_v57  ;;  %v437_v57 = vmax.f32 %v393_v22, 1e-24 }
  0xee   : > { %v492_v40 = vmul.f32 %v9802_v49, %v11158_v59  ;;  %v9804_v13 = vpop.eup %9803  ;;  %v390_v48 = vpop.xlane.xlu0 %389 }
  0xef   : > { %9809 = vrsqrt.f32 %v432_v11  ;;  %v436_v59 = vmax.f32 %v390_v48, 1e-24 }
  0xf0   : > { %8155 = vmatmul.mubr.msk.bf16.gmra.mxu0 %vm315_vm0, %v514_v27  ;;  %v516_v21 = vpack.c.bf16 %v493_v23, %v492_v40  ;;  %v9806_v51 = vpop.eup %9805 }
  0xf1   : > { %702 = vmatprep.mubr.bf16.mxu0 %v10948_v20  ;;  %9246 = vmatpush3.bf16.xpose.msra.mxu0 %v1208_v1  ;;  %v9808_v12 = vpop.eup %9807 }
  0xf2   : > { %9635 = vmatprep.subr.msk.bf16.mxu0 %vm1107_vm2, %v9745_v7 }
  0xf4   : > { %9202 = vmatmul.mubr.msk.bf16.vlgmr.msra.gmra.mxu1 %vm315_vm0, %v11294_v36  ;;  %v435_v36 = vmax.f32 %v387_v50, 1e-24 }
  0xf5   : > { %9205 = vmatprep.mubr.msk.bf16.mxu1 %vm315_vm0, %v11314_v63  ;;  %v434_v63 = vmax.f32 %v384_v41, 1e-24 }
  0xf6   : > { %9811 = vrsqrt.f32 %v435_v36 }
  0xf7   : > { %9813 = vrsqrt.f32 %v434_v63 }
  0xf8   : > { %8156 = vmatmul.mubr.msk.bf16.gmra.mxu0 %vm315_vm0, %v515_v9  ;;  %9815 = vrsqrt.f32 %v437_v57 }
  0xf9   : > { %712 = vmatprep.mubr.bf16.mxu0 %v10948_v20  ;;  %9817 = vrsqrt.f32 %v436_v59 }
  0xfc   : > { %9206 = vmatmul.mubr.msk.bf16.gmra.mxu1 %vm315_vm0, %v11336_v17  ;;  %v494_v17 = vmul.f32 %v9806_v51, %v11192_v19  ;;  %v9810_v6 = vpop.eup %9809  ;;  %v1205_v19 = vsel %vm1107_vm2, %v9745_v7, 0 }
  0xfd   : > { %9209 = vmatprep.mubr.msk.bf16.mxu1 %vm315_vm0, %v11358_v8  ;;  %v495_v8 = vmul.f32 %v9804_v13, %v11189_v18  ;;  %v496_v18 = vmul.f32 %v9810_v6, %v11220_v38  ;;  %9248 = vmatpush3.bf16.xpose.msra.mxu0 %v1205_v19 }
  0xff   : > { %v517_v10 = vpack.c.bf16 %v495_v8, %v494_v17 }
 0x100   : > { %8157 = vmatmul.mubr.msk.bf16.gmra.mxu0 %vm315_vm0, %v516_v21 }
 0x101   : > { %722 = vmatprep.mubr.bf16.mxu0 %v10948_v20 }
 0x103   : > { %v9812_v29 = vpop.eup %9811 }
 0x104   : > { %9210 = vmatmul.mubr.msk.bf16.gmra.mxu1 %vm315_vm0, %v11384_v31  ;;  %v497_v31 = vmul.f32 %v9808_v12, %v11217_v37  ;;  %v9814_v32 = vpop.eup %9813  ;;  %v499_v33 = vmul.f32 %v9812_v29, %v11229_v45 }
 0x105   : > { %9213 = vmatprep.mubr.msk.bf16.mxu1 %vm315_vm0, %v514_v27  ;;  %v498_v16 = vmul.f32 %v9814_v32, %v11232_v46  ;;  %v9816_v39 = vpop.eup %9815 }
 0x106   : > { %v518_v28 = vpack.c.bf16 %v497_v31, %v496_v18  ;;  %v9818_v37 = vpop.eup %9817  ;;  %v501_v47 = vmul.f32 %v9816_v39, %v11241_v54 }
 0x107   : > { %v519_v38 = vpack.c.bf16 %v499_v33, %v498_v16  ;;  %v500_v2 = vmul.f32 %v9818_v37, %v11244_v55 }
 0x108   : > { %8158 = vmatmul.mubr.msk.bf16.gmra.mxu0 %vm315_vm0, %v517_v10 }
 0x109   : > { %732 = vmatprep.mubr.bf16.mxu0 %v10948_v20  ;;  %v520_v46 = vpack.c.bf16 %v501_v47, %v500_v2 }
 0x10c   : > { %9214 = vmatmul.mubr.msk.bf16.gmra.mxu1 %vm315_vm0, %v515_v9 }
 0x10d   : > { %9217 = vmatprep.mubr.msk.bf16.mxu1 %vm315_vm0, %v516_v21 }
 0x110   : > { %8159 = vmatmul.mubr.msk.bf16.gmra.mxu0 %vm315_vm0, %v518_v28 }
 0x111   : > { %742 = vmatprep.mubr.bf16.mxu0 %v10948_v20 }
 0x114   : > { %9218 = vmatmul.mubr.msk.bf16.gmra.mxu1 %vm315_vm0, %v517_v10 }
 0x115   : > { %9221 = vmatprep.mubr.msk.bf16.mxu1 %vm315_vm0, %v518_v28 }
 0x118   : > { %8160 = vmatmul.mubr.msk.bf16.gmra.mxu0 %vm315_vm0, %v519_v38 }
 0x119   : > { %752 = vmatprep.mubr.bf16.mxu0 %v10948_v20 }
 0x11c   : > { %9222 = vmatmul.mubr.msk.bf16.gmra.mxu1 %vm315_vm0, %v519_v38 }
 0x11d   : > { %9225 = vmatprep.mubr.msk.bf16.mxu1 %vm315_vm0, %v520_v46 }
 0x120   : > { %8161 = vmatmul.mubr.msk.bf16.gmra.mxu0 %vm315_vm0, %v520_v46 }
 0x124   : > { %9226 = vmatmul.mubr.msk.bf16.gmra.mxu1 %vm315_vm0, %v11352_v3 }
 0x125   : > { %9229 = vmatprep.mubr.msk.bf16.mxu1 %vm315_vm0, %v11378_v58 }
 0x12c   : > { %9230 = vmatmul.mubr.msk.bf16.gmra.mxu1 %vm315_vm0, %v11401_v53 }
 0x180   : > { %v634_v20 = vpop.f32.mrf.mxu0 }
 0x182   : > { %v11476_v45 = vpop.f32.mrf.mxu0 }
 0x184   : > { %v638_v54 = vpop.f32.mrf.mxu0 }
 0x185   : > { %v11478_v55 = vpack.c.bf16 %v638_v54, %v634_v20 }
 0x186   : > { %v11480_v26 = vpop.f32.mrf.mxu0 }
 0x187   : > { %18053 = vst [vmem:[#allocation6_spill] sm:$0xff] %v11478_v55  ;;  %8365 = vmatprep.mubr.msk.bf16.mxu1 %vm1107_vm2, %v11478_v55  ;;  %9249 = vmatprep.mubr.msk.bf16.mxu0 %vm1107_vm2, %v11478_v55 }
 0x188   : > { %v644_v14 = vpop.f32.mrf.mxu0 }
 0x18a   : > { %v11486_v0 = vpop.f32.mrf.mxu0 }
 0x18c   : > { %v648_v15 = vpop.f32.mrf.mxu0 }
 0x18d   : > { %v11488_v43 = vpack.c.bf16 %v648_v15, %v644_v14 }
 0x18e   : > { %v11490_v3 = vpop.f32.mrf.mxu0 }
 0x18f   : > { %18054 = vst [vmem:[#allocation7_spill] sm:$0xff] %v11488_v43  ;;  %9250 = vmatmul.mubr.msk.bf16.vlgmr.msra.gmra.mxu0 %vm1107_vm2, %v11488_v43 }
 0x190   : > { %v654_v24 = vpop.f32.mrf.mxu0 }
 0x192   : > { %v656_v58 = vpop.f32.mrf.mxu0 }
 0x194   : > { %v658_v42 = vpop.f32.mrf.mxu0 }
 0x195   : > { %v11494_v44 = vpack.c.bf16 %v658_v42, %v654_v24 }
 0x196   : > { %v660_v53 = vpop.f32.mrf.mxu0 }
 0x197   : > { %18055 = vst [vmem:[#allocation8_spill] sm:$0xff] %v11494_v44  ;;  %9253 = vmatprep.mubr.msk.bf16.mxu0 %vm1107_vm2, %v11494_v44  ;;  %v11546_v16 = vpack.c.bf16 %v660_v53, %v656_v58 }
 0x198   : > { %v664_v27 = vpop.f32.mrf.mxu0 }
 0x199   : > { %18066 = vst [vmem:[#allocation19_spill] sm:$0xff] %v11546_v16 }
 0x19a   : > { %v666_v4 = vpop.f32.mrf.mxu0 }
 0x19c   : > { %v668_v35 = vpop.f32.mrf.mxu0  ;;  %v764_v34 = vpop.f32.mrf.mxu1 }
 0x19d   : > { %v11498_v30 = vpack.c.bf16 %v668_v35, %v664_v27 }
 0x19e   : > { %v670_v56 = vpop.f32.mrf.mxu0  ;;  %v766_v5 = vpop.f32.mrf.mxu1 }
 0x19f   : > { %18056 = vst [vmem:[#allocation9_spill] sm:$0xff] %v11498_v30  ;;  %9254 = vmatmul.mubr.msk.bf16.gmra.mxu0 %vm1107_vm2, %v11498_v30  ;;  %v11560_v46 = vpack.c.bf16 %v670_v56, %v666_v4 }
 0x1a0   : > { %v674_v61 = vpop.f32.mrf.mxu0  ;;  %v768_v62 = vpop.f32.mrf.mxu1 }
 0x1a1   : > { %v11502_v25 = vpack.c.bf16 %v768_v62, %v764_v34  ;;  %18069 = vst [vmem:[#allocation22_spill] sm:$0xff] %v11560_v46 }
 0x1a2   : > { %v676_v11 = vpop.f32.mrf.mxu0  ;;  %v770_v60 = vpop.f32.mrf.mxu1 }
 0x1a3   : > { %18057 = vst [vmem:[#allocation10_spill] sm:$0xff] %v11502_v25  ;;  %v11504_v9 = vpack.c.bf16 %v770_v60, %v766_v5 }
 0x1a4   : > { %v678_v49 = vpop.f32.mrf.mxu0  ;;  %v11506_v50 = vpop.f32.mrf.mxu1 }
 0x1a5   : > { %18058 = vst [vmem:[#allocation11_spill] sm:$0xff] %v11504_v9  ;;  %v11508_v41 = vpack.c.bf16 %v678_v49, %v674_v61  ;;  %2730 = vrot.lane.b32.xlu1 %v11504_v9, %s10949_s17 }
 0x1a6   : > { %v680_v40 = vpop.f32.mrf.mxu0  ;;  %v776_v23 = vpop.f32.mrf.mxu1 }
 0x1a7   : > { %18059 = vst [vmem:[#allocation12_spill] sm:$0xff] %v11508_v41  ;;  %v11512_v36 = vpack.c.bf16 %v680_v40, %v676_v11  ;;  %9257 = vmatprep.mubr.msk.bf16.mxu0 %vm1107_vm2, %v11508_v41 }
 0x1a8   : > { %v684_v63 = vpop.f32.mrf.mxu0  ;;  %v11516_v22 = vpop.f32.mrf.mxu1 }
 0x1a9   : > { %18060 = vst [vmem:[#allocation13_spill] sm:$0xff] %v11512_v36  ;;  %2712 = vrot.lane.b32.xlu0 %v11512_v36, %s10949_s17 }
 0x1aa   : > { %v686_v13 = vpop.f32.mrf.mxu0  ;;  %v780_v21 = vpop.f32.mrf.mxu1 }
 0x1ab   : > { %v11520_v48 = vpack.c.bf16 %v780_v21, %v776_v23 }
 0x1ac   : > { %v688_v51 = vpop.f32.mrf.mxu0  ;;  %v11522_v1 = vpop.f32.mrf.mxu1 }
 0x1ad   : > { %18061 = vst [vmem:[#allocation14_spill] sm:$0xff] %v11520_v48  ;;  %v11524_v57 = vpack.c.bf16 %v688_v51, %v684_v63  ;;  %2732 = vrot.lane.b32.xlu1 %v11520_v48, %s10949_s17 }
 0x1ae   : > { %v690_v59 = vpop.f32.mrf.mxu0  ;;  %v786_v17 = vpop.f32.mrf.mxu1 }
 0x1af   : > { %18062 = vst [vmem:[#allocation15_spill] sm:$0xff] %v11524_v57  ;;  %v11528_v8 = vpack.c.bf16 %v690_v59, %v686_v13  ;;  %9258 = vmatmul.mubr.msk.bf16.gmra.mxu0 %vm1107_vm2, %v11524_v57 }
 0x1b0   : > { %v694_v12 = vpop.f32.mrf.mxu0  ;;  %v11532_v6 = vpop.f32.mrf.mxu1 }
 0x1b1   : > { %18063 = vst [vmem:[#allocation16_spill] sm:$0xff] %v11528_v8  ;;  %2714 = vrot.lane.b32.xlu0 %v11528_v8, %s10949_s17 }
 0x1b2   : > { %v696_v7 = vpop.f32.mrf.mxu0  ;;  %v790_v10 = vpop.f32.mrf.mxu1 }
 0x1b3   : > { %v11536_v19 = vpack.c.bf16 %v790_v10, %v786_v17  ;;  %v1172_v10 = vsel %vm1107_vm2, %v11528_v8, 0 }
 0x1b4   : > { %v698_v18 = vpop.f32.mrf.mxu0  ;;  %v9203_v31 = vpop.f32.mrf.mxu1 }
 0x1b5   : > { %18064 = vst [vmem:[#allocation17_spill] sm:$0xff] %v11536_v19  ;;  %v11538_v29 = vpack.c.bf16 %v698_v18, %v694_v12  ;;  %2734 = vrot.lane.b32.xlu1 %v11536_v19, %s10949_s17  ;;  %9620 = vmatprep.subr.msk.bf16.mxu1 %vm1107_vm2, %v11536_v19 }
 0x1b6   : > { %v700_v28 = vpop.f32.mrf.mxu0  ;;  %v11544_v32 = vpop.f32.mrf.mxu1 }
 0x1b7   : > { %18065 = vst [vmem:[#allocation18_spill] sm:$0xff] %v11538_v29  ;;  %v11548_v33 = vpack.c.bf16 %v700_v28, %v696_v7  ;;  %9261 = vmatprep.mubr.msk.bf16.mxu0 %vm1107_vm2, %v11538_v29 }
 0x1b8   : > { %v704_v39 = vpop.f32.mrf.mxu0  ;;  %v9204_v37 = vpop.f32.mrf.mxu1 }
 0x1b9   : > { %18067 = vst [vmem:[#allocation20_spill] sm:$0xff] %v11548_v33  ;;  %v11552_v38 = vpack.c.bf16 %v9204_v37, %v9203_v31  ;;  %2716 = vrot.lane.b32.xlu0 %v11548_v33, %s10949_s17  ;;  %2708 = vrot.lane.b32.xlu1 %v11546_v16, %s10949_s17  ;;  %v1175_v40 = vsel %vm1107_vm2, %v11548_v33, 0 }
 0x1ba   : > { %v706_v2 = vpop.f32.mrf.mxu0  ;;  %v11558_v47 = vpop.f32.mrf.mxu1 }
 0x1bb   : > { %18068 = vst [vmem:[#allocation21_spill] sm:$0xff] %v11552_v38 }
 0x1bc   : > { %v708_v20 = vpop.f32.mrf.mxu0  ;;  %v9207_v54 = vpop.f32.mrf.mxu1 }
 0x1bd   : > { %v11562_v14 = vpack.c.bf16 %v708_v20, %v704_v39  ;;  %2710 = vrot.lane.b32.xlu1 %v11560_v46, %s10949_s17 }
 0x1be   : > { %v710_v15 = vpop.f32.mrf.mxu0  ;;  %v11566_v24 = vpop.f32.mrf.mxu1 }
 0x1bf   : > { %18070 = vst [vmem:[#allocation23_spill] sm:$0xff] %v11562_v14  ;;  %v11568_v58 = vpack.c.bf16 %v710_v15, %v706_v2  ;;  %9262 = vmatmul.mubr.msk.bf16.gmra.mxu0 %vm1107_vm2, %v11562_v14 }
 0x1c0   : > { %v714_v42 = vpop.f32.mrf.mxu0  ;;  %v9208_v53 = vpop.f32.mrf.mxu1 }
 0x1c1   : > { %18071 = vst [vmem:[#allocation24_spill] sm:$0xff] %v11568_v58  ;;  %v11572_v27 = vpack.c.bf16 %v9208_v53, %v9207_v54  ;;  %2718 = vrot.lane.b32.xlu0 %v11568_v58, %s10949_s17  ;;  %v1178_v4 = vsel %vm1107_vm2, %v11568_v58, 0 }
 0x1c2   : > { %v11578_v35 = vpop.f32.mrf.mxu0  ;;  %v11580_v34 = vpop.f32.mrf.mxu1  ;;  %8350 = vmatpush3.bf16.xpose.msra.mxu1 %v1178_v4 }
 0x1c3   : > { %18072 = vst [vmem:[#allocation25_spill] sm:$0xff] %v11572_v27  ;;  %9621 = vmatprep.subr.msk.bf16.mxu1 %vm1107_vm2, %v11520_v48 }
 0x1c4   : > { %v718_v56 = vpop.f32.mrf.mxu0  ;;  %v11584_v5 = vpop.f32.mrf.mxu1 }
 0x1c5   : > { %v11586_v61 = vpack.c.bf16 %v718_v56, %v714_v42 }
 0x1c6   : > { %v11588_v62 = vpop.f32.mrf.mxu0  ;;  %v11590_v11 = vpop.f32.mrf.mxu1 }
 0x1c7   : > { %18073 = vst [vmem:[#allocation26_spill] sm:$0xff] %v11586_v61  ;;  %9265 = vmatprep.mubr.msk.bf16.mxu0 %vm1107_vm2, %v11586_v61 }
 0x1c8   : > { %v724_v60 = vpop.f32.mrf.mxu0  ;;  %v11594_v49 = vpop.f32.mrf.mxu1 }
 0x1ca   : > { %v11598_v23 = vpop.f32.mrf.mxu0  ;;  %v11600_v63 = vpop.f32.mrf.mxu1  ;;  %8352 = vmatpush3.bf16.xpose.msra.mxu1 %v1175_v40 }
 0x1cb   : > { %9622 = vmatprep.subr.msk.bf16.mxu1 %vm1107_vm2, %v11504_v9 }
 0x1cc   : > { %v728_v13 = vpop.f32.mrf.mxu0  ;;  %v9215_v21 = vpop.f32.mrf.mxu1 }
 0x1cd   : > { %v11604_v51 = vpack.c.bf16 %v728_v13, %v724_v60 }
 0x1ce   : > { %v11606_v59 = vpop.f32.mrf.mxu0  ;;  %v11608_v17 = vpop.f32.mrf.mxu1 }
 0x1cf   : > { %18074 = vst [vmem:[#allocation27_spill] sm:$0xff] %v11604_v51  ;;  %9266 = vmatmul.mubr.msk.bf16.gmra.mxu0 %vm1107_vm2, %v11604_v51 }
 0x1d0   : > { %v734_v12 = vpop.f32.mrf.mxu0  ;;  %v9216_v7 = vpop.f32.mrf.mxu1 }
 0x1d2   : > { %v736_v18 = vpop.f32.mrf.mxu0  ;;  %v878_v31 = vpop.f32.mrf.mxu1  ;;  %8354 = vmatpush3.bf16.xpose.msra.mxu1 %v1172_v10 }
 0x1d4   : > { %v738_v28 = vpop.f32.mrf.mxu0  ;;  %v11614_v39 = vpop.f32.mrf.mxu1 }
 0x1d5   : > { %v11616_v37 = vpack.c.bf16 %v738_v28, %v734_v12 }
 0x1d6   : > { %v740_v2 = vpop.f32.mrf.mxu0  ;;  %v11618_v20 = vpop.f32.mrf.mxu1 }
 0x1d7   : > { %18075 = vst [vmem:[#allocation28_spill] sm:$0xff] %v11616_v37  ;;  %v11620_v54 = vpack.c.bf16 %v740_v2, %v736_v18  ;;  %9269 = vmatprep.mubr.msk.bf16.mxu0 %vm1107_vm2, %v11616_v37 }
 0x1d8   : > { %v744_v15 = vpop.f32.mrf.mxu0  ;;  %v11624_v42 = vpop.f32.mrf.mxu1 }
 0x1d9   : > { %18076 = vst [vmem:[#allocation29_spill] sm:$0xff] %v11620_v54  ;;  %2724 = vrot.lane.b32.xlu0 %v11620_v54, %s10949_s17 }
 0x1da   : > { %v746_v53 = vpop.f32.mrf.mxu0  ;;  %v11628_v4 = vpop.f32.mrf.mxu1 }
 0x1dc   : > { %v748_v56 = vpop.f32.mrf.mxu0  ;;  %v9223_v60 = vpop.f32.mrf.mxu1 }
 0x1dd   : > { %v11630_v40 = vpack.c.bf16 %v748_v56, %v744_v15 }
 0x1de   : > { %v750_v13 = vpop.f32.mrf.mxu0  ;;  %v907_v12 = vpop.f32.mrf.mxu1 }
 0x1df   : > { %18077 = vst [vmem:[#allocation30_spill] sm:$0xff] %v11630_v40  ;;  %v11632_v10 = vpack.c.bf16 %v750_v13, %v746_v53  ;;  %9270 = vmatmul.mubr.msk.bf16.gmra.mxu0 %vm1107_vm2, %v11630_v40  ;;  %v11642_v53 = vpack.c.bf16 %v11516_v22, %v11506_v50  ;;  %v1169_v22 = vsel %vm1107_vm2, %v11512_v36, 0 }
 0x1e0   : > { %v754_v18 = vpop.f32.mrf.mxu0  ;;  %v9224_v28 = vpop.f32.mrf.mxu1 }
 0x1e1   : > { %18078 = vst [vmem:[#allocation31_spill] sm:$0xff] %v11632_v10  ;;  %2726 = vrot.lane.b32.xlu1 %v11632_v10, %s10949_s17  ;;  %18080 = vst [vmem:[#allocation33_spill] sm:$0xff] %v11642_v53 }
 0x1e2   : > { %v756_v2 = vpop.f32.mrf.mxu0  ;;  %v910_v8 = vpop.f32.mrf.mxu1 }
 0x1e4   : > { %v758_v33 = vpop.f32.mrf.mxu0  ;;  %v9227_v9 = vpop.f32.mrf.mxu1 }
 0x1e5   : > { %v11638_v48 = vpack.c.bf16 %v758_v33, %v754_v18  ;;  %v11662_v18 = vpack.c.bf16 %v11532_v6, %v11522_v1  ;;  %v11680_v1 = vpack.c.bf16 %v878_v31, %v11608_v17  ;;  %v9752_v31 = vld [vmem:[%s17461_s2 + $0x24] ss:$8 sps:$4 sm:$0xff]  }
 0x1e6   : > { %v760_v15 = vpop.f32.mrf.mxu0  ;;  %v923_v56 = vpop.f32.mrf.mxu1 }
 0x1e7   : > { %18079 = vst [vmem:[#allocation32_spill] sm:$0xff] %v11638_v48  ;;  %v11644_v13 = vpack.c.bf16 %v760_v15, %v756_v2  ;;  %9273 = vmatprep.mubr.msk.bf16.mxu0 %vm1107_vm2, %v11638_v48  ;;  %18082 = vst [vmem:[#allocation35_spill] sm:$0xff] %v11662_v18 }
 0x1e8   : > { %v9228_v19 = vpop.f32.mrf.mxu1  ;;  %9274 = vmatmul.mubr.msk.bf16.gmra.mxu0 %vm1107_vm2, %v11502_v25  ;;  %18086 = vst [vmem:[#allocation39_spill] sm:$0xff] %v11680_v1 }
 0x1e9   : > { %18081 = vst [vmem:[#allocation34_spill] sm:$0xff] %v11644_v13  ;;  %9277 = vmatprep.mubr.msk.bf16.mxu0 %vm1107_vm2, %v11642_v53  ;;  %2728 = vrot.lane.b32.xlu1 %v11644_v13, %s10949_s17  ;;  %v11682_v6 = vpack.c.bf16 %v9228_v19, %v9227_v9  ;;  %v11704_v9 = vpack.c.bf16 %v11490_v3, %v11486_v0 }
 0x1ea   : > { %9623 = vmatprep.subr.msk.bf16.mxu1 %vm1107_vm2, %v11644_v13  ;;  %v926_v50 = vpop.f32.mrf.mxu1  ;;  %v11668_v13 = vpack.c.bf16 %v9216_v7, %v9215_v21  ;;  %v11692_v21 = vpack.c.bf16 %v11606_v59, %v11598_v23  ;;  %v1163_v7 = vsel %vm1107_vm2, %v11546_v16, 0  ;;  %v11708_v19 = vpack.c.bf16 %v11600_v63, %v11590_v11  ;;  %v9750_v11 = vld [vmem:[%s17461_s2 + $0x44] ss:$8 sps:$4 sm:$0xff]   ;;  %v9751_v63 = vld [vmem:[%s17461_s2 + $0x34] ss:$8 sps:$4 sm:$0xff]  }
 0x1eb   : > { %8356 = vmatpush3.bf16.xpose.msra.mxu1 %v1169_v22  ;;  %v1166_v22 = vsel %vm1107_vm2, %v11560_v46, 0  ;;  %18087 = vst [vmem:[#allocation40_spill] sm:$0xff] %v11682_v6  ;;  %18091 = vst [vmem:[#allocation44_spill] sm:$0xff] %v11704_v9  ;;  %v1160_v23 = vsel %vm1107_vm2, %v11704_v9, 0  ;;  %v11720_v59 = vpack.c.bf16 %v910_v8, %v907_v12  ;;  %v11728_v0 = vpack.c.bf16 %v11480_v26, %v11476_v45 }
 0x1ec   : > { %9624 = vmatprep.subr.msk.bf16.mxu1 %vm1107_vm2, %v11632_v10  ;;  %v9231_v33 = vpop.f32.mrf.mxu1  ;;  %18084 = vst [vmem:[#allocation37_spill] sm:$0xff] %v11668_v13  ;;  %18089 = vst [vmem:[#allocation42_spill] sm:$0xff] %v11692_v21  ;;  %v11732_v3 = vpack.c.bf16 %v11580_v34, %v11566_v24  ;;  %v11736_v8 = vpack.c.bf16 %v11624_v42, %v11614_v39  ;;  %v11747_v26 = vpack.c.bf16 %v11628_v4, %v11618_v20  ;;  %v11756_v34 = vpop.permute.xlu1 %2750  ;;  %v9753_v20 = vld [vmem:[%s17461_s2 + $0x14] ss:$8 sps:$4 sm:$0xff]   ;;  %v9754_v42 = vld [vmem:[%s17461_s2 + $0x4] ss:$8 sps:$4 sm:$0xff]  }
 0x1ed   : > { %18092 = vst [vmem:[#allocation45_spill] sm:$0xff] %v11708_v19  ;;  %18095 = vst [vmem:[#allocation48_spill] sm:$0xff] %v11720_v59  ;;  %v1157_v45 = vsel %vm1107_vm2, %v11728_v0, 0  ;;  %v11753_v24 = vpack.c.bf16 %v11558_v47, %v11544_v32  ;;  %v9749_v32 = vld [vmem:[%s17461_s2 + $0x54] ss:$8 sps:$4 sm:$0xff]  }
 0x1ee   : > { %v939_v2 = vpop.f32.mrf.mxu1  ;;  %18096 = vst [vmem:[#allocation49_spill] sm:$0xff] %v11728_v0  ;;  %18097 = vst [vmem:[#allocation50_spill] sm:$0xff] %v11732_v3 }
 0x1ef   : > { %18098 = vst [vmem:[#allocation51_spill] sm:$0xff] %v11736_v8  ;;  %18099 = vst [vmem:[#allocation52_spill] sm:$0xff] %v11747_v26 }
 0x1f0   : > { %v9232_v15 = vpop.f32.mrf.mxu1  ;;  %9278 = vmatmul.mubr.msk.bf16.gmra.mxu0 %vm1107_vm2, %v11662_v18  ;;  %18100 = vst [vmem:[#allocation53_spill] sm:$0xff] %v11753_v24  ;;  %18101 = vst [vmem:[#allocation54_spill] sm:$0xff] %v11756_v34  ;;  %v11770_v47 = vpop.permute.xlu1 %2748 }
 0x1f1   : > { %v11666_v58 = vpack.c.bf16 %v9232_v15, %v9231_v33  ;;  %v11696_v33 = vpack.c.bf16 %v926_v50, %v923_v56  ;;  %18102 = vst [vmem:[#allocation55_spill] sm:$0xff] %v11770_v47 }
 0x1f2   : > { %v942_v52 = vpop.f32.mrf.mxu1 }
 0x1f3   : > { %18083 = vst [vmem:[#allocation36_spill] sm:$0xff] %v11666_v58  ;;  %v11672_v36 = vpack.c.bf16 %v942_v52, %v939_v2  ;;  %8358 = vmatpush3.bf16.xpose.msra.mxu1 %v1166_v22  ;;  %8421 = vmatprep.subr.bf16.mxu0 %v11666_v58  ;;  %v11688_v52 = vpack.c.bf16 %v11594_v49, %v11584_v5  ;;  %18090 = vst [vmem:[#allocation43_spill] sm:$0xff] %v11696_v33  ;;  %v1090_v2 = vld [vmem:[%s17462_s3] sm:$0x7] }
 0x1f4   : > { %9625 = vmatprep.subr.msk.bf16.mxu1 %vm1107_vm2, %v11620_v54  ;;  %8422 = vmatpush3.bf16.msra.mxu0 %v11668_v13  ;;  %v11710_v5 = vpack.c.bf16 %v9224_v28, %v9223_v60  ;;  %v11716_v49 = vpack.c.bf16 %v11588_v62, %v11578_v35  ;;  %v9747_v35 = vld [vmem:[%s17461_s2 + $0x74] ss:$8 sps:$4 sm:$0xff]   ;;  %v9748_v62 = vld [vmem:[%s17461_s2 + $0x64] ss:$8 sps:$4 sm:$0xff]   ;;  %v11782_v17 = vpop.permute.xlu1 %2740 }
 0x1f5   : > { %18085 = vst [vmem:[#allocation38_spill] sm:$0xff] %v11672_v36  ;;  %8423 = vmatprep.subr.bf16.mxu0 %v11672_v36  ;;  %18088 = vst [vmem:[#allocation41_spill] sm:$0xff] %v11688_v52  ;;  %v18106_v28 = vld [vmem:[#allocation5_spill] sm:$0xff] }
 0x1f6   : > { %18093 = vst [vmem:[#allocation46_spill] sm:$0xff] %v11710_v5  ;;  %18094 = vst [vmem:[#allocation47_spill] sm:$0xff] %v11716_v49  ;;  %v1094_v56 = vsub.s32 0, %v18106_v28  ;;  %v1098_v50 = vsub.s32 1, %v18106_v28 }
 0x1f7   : > { %18103 = vst [vmem:[#allocation56_spill] sm:$0xff] %v11782_v17 }
 0x1f8   : > { %8424 = vmatpush3.bf16.msra.mxu0 %v11680_v1  ;;  %v11857_v22 = vrot.slane %v1090_v2, %v1094_v56 }
 0x1f9   : > { %8425 = vmatprep.subr.bf16.mxu0 %v11682_v6 }
 0x1fa   : > { %18107 = vst [vmem:[#allocation5_spill] sm:$0xff] %v11857_v22 }
 0x1fb   : > { %8360 = vmatpush3.bf16.xpose.msra.mxu1 %v1163_v7  ;;  %v11859_v7 = vrot.slane %v1090_v2, %v1098_v50 }
 0x1fc   : > { %9626 = vmatprep.subr.msk.bf16.mxu1 %vm1107_vm2, %v11692_v21  ;;  %8426 = vmatpush3.bf16.msra.mxu0 %v11688_v52 }
 0x1fd   : > { %8427 = vmatprep.subr.bf16.mxu0 %v11696_v33  ;;  %18108 = vst [vmem:[#allocation59_spill] sm:$0xff] %v11859_v7 }
 0x200   : > { %8428 = vmatpush3.bf16.msra.mxu0 %v11708_v19 }
 0x201   : > { %8429 = vmatprep.subr.bf16.mxu0 %v11710_v5 }
 0x203   : > { %8362 = vmatpush3.bf16.xpose.msra.mxu1 %v1160_v23  ;;  %v1102_v23 = vsub.s32 2, %v18106_v28 }
 0x204   : > { %9627 = vmatprep.subr.msk.bf16.mxu1 %vm1107_vm2, %v11716_v49  ;;  %8430 = vmatpush3.bf16.msra.mxu0 %v11572_v27 }
 0x205   : > { %8431 = vmatprep.subr.bf16.mxu0 %v11720_v59 }
 0x208   : > { %8432 = vmatpush3.bf16.msra.mxu0 %v11732_v3 }
 0x209   : > { %8433 = vmatprep.subr.bf16.mxu0 %v11736_v8 }
 0x20b   : > { %8364 = vmatpush3.bf16.xpose.msra.mxu1 %v1157_v45 }
 0x20c   : > { %8434 = vmatpush3.bf16.msra.mxu0 %v11552_v38  ;;  %9281 = vmatprep.subr.bf16.mxu1 %v9747_v35 }
 0x20d   : > { %8435 = vmatprep.subr.bf16.mxu0 %v11747_v26 }
 0x210   : > { %8436 = vmatpush3.bf16.msra.mxu0 %v11753_v24 }
 0x211   : > { %9644 = vmatprep.subr.msk.bf16.mxu0 %vm1107_vm2, %v11756_v34 }
 0x212   : > { %8366 = vmatmul.mubr.msk.bf16.vlgmr.msra.gmra.mxu1 %vm1107_vm2, %v11478_v55 }
 0x213   : > { %8367 = vmatprep.mubr.msk.bf16.mxu1 %vm1107_vm2, %v11488_v43  ;;  %9282 = vmatpush3.bf16.msra.mxu1 %v9747_v35 }
 0x214   : > { %9283 = vmatprep.subr.bf16.mxu1 %v9748_v62 }
 0x217   : > { %9284 = vmatpush3.bf16.msra.mxu1 %v9748_v62  ;;  %v11789_v39 = vpop.permute.xlu1 %2730 }
 0x218   : > { %9285 = vmatprep.subr.bf16.mxu1 %v9749_v32  ;;  %18104 = vst [vmem:[#allocation57_spill] sm:$0xff] %v11789_v39 }
 0x21a   : > { %8368 = vmatmul.mubr.msk.bf16.gmra.mxu1 %vm1107_vm2, %v11488_v43 }
 0x21b   : > { %8369 = vmatprep.mubr.msk.bf16.mxu1 %vm1107_vm2, %v11494_v44  ;;  %9286 = vmatpush3.bf16.msra.mxu1 %v9749_v32  ;;  %v11862_v32 = vrot.slane %v1090_v2, %v1102_v23 }
 0x21c   : > { %9287 = vmatprep.subr.bf16.mxu1 %v9750_v11 }
 0x21d   : > { %18109 = vst [vmem:[#allocation60_spill] sm:$0xff] %v11862_v32 }
 0x21f   : > { %9288 = vmatpush3.bf16.msra.mxu1 %v9750_v11  ;;  %v11799_v4 = vpop.permute.xlu1 %2732 }
 0x220   : > { %9289 = vmatprep.subr.bf16.mxu1 %v9751_v63  ;;  %18105 = vst [vmem:[#allocation58_spill] sm:$0xff] %v11799_v4 }
 0x222   : > { %8370 = vmatmul.mubr.msk.bf16.gmra.mxu1 %vm1107_vm2, %v11494_v44 }
 0x223   : > { %8371 = vmatprep.mubr.msk.bf16.mxu1 %vm1107_vm2, %v11498_v30  ;;  %9290 = vmatpush3.bf16.msra.mxu1 %v9751_v63 }
 0x224   : > { %9291 = vmatprep.subr.bf16.mxu1 %v9752_v31 }
 0x227   : > { %9292 = vmatpush3.bf16.msra.mxu1 %v9752_v31  ;;  %v2735_v60 = vpop.permute.xlu1 %2734 }
 0x228   : > { %9293 = vmatprep.subr.bf16.mxu1 %v9753_v20 }
 0x22a   : > { %8372 = vmatmul.mubr.msk.bf16.gmra.mxu1 %vm1107_vm2, %v11498_v30 }
 0x22b   : > { %8373 = vmatprep.mubr.msk.bf16.mxu1 %vm1107_vm2, %v11508_v41  ;;  %9294 = vmatpush3.bf16.msra.mxu1 %v9753_v20 }
 0x22c   : > { %9295 = vmatprep.subr.bf16.mxu1 %v9754_v42 }
 0x22f   : > { %9296 = vmatpush3.bf16.msra.mxu1 %v9754_v42 }
 0x230   : > { %9636 = vmatprep.subr.msk.bf16.mxu1 %vm1107_vm2, %v2735_v60 }
 0x232   : > { %8374 = vmatmul.mubr.msk.bf16.gmra.mxu1 %vm1107_vm2, %v11508_v41 }
 0x233   : > { %8375 = vmatprep.mubr.msk.bf16.mxu1 %vm1107_vm2, %v11524_v57 }
 0x23a   : > { %8376 = vmatmul.mubr.msk.bf16.gmra.mxu1 %vm1107_vm2, %v11524_v57 }
 0x23b   : > { %8377 = vmatprep.mubr.msk.bf16.mxu1 %vm1107_vm2, %v11538_v29 }
 0x242   : > { %8378 = vmatmul.mubr.msk.bf16.gmra.mxu1 %vm1107_vm2, %v11538_v29 }
 0x243   : > { %8379 = vmatprep.mubr.msk.bf16.mxu1 %vm1107_vm2, %v11562_v14 }
 0x24a   : > { %8380 = vmatmul.mubr.msk.bf16.gmra.mxu1 %vm1107_vm2, %v11562_v14 }
 0x24b   : > { %8381 = vmatprep.mubr.msk.bf16.mxu1 %vm1107_vm2, %v11586_v61 }
 0x24f   : > { %v9251_v12 = vpop.f32.mrf.mxu0 }
 0x251   : > { %v1455_v15 = vpop.f32.mrf.mxu0 }
 0x252   : > { %8382 = vmatmul.mubr.msk.bf16.gmra.mxu1 %vm1107_vm2, %v11586_v61  ;;  %v11871_v20 = vadd.f32 %v1455_v15, %v11862_v32 }
 0x253   : > { %8383 = vmatprep.mubr.msk.bf16.mxu1 %vm1107_vm2, %v11604_v51  ;;  %v9252_v45 = vpop.f32.mrf.mxu0 }
 0x255   : > { %v1458_v60 = vpop.f32.mrf.mxu0 }
 0x25a   : > { %8384 = vmatmul.mubr.msk.bf16.gmra.mxu1 %vm1107_vm2, %v11604_v51 }
 0x25b   : > { %8385 = vmatprep.mubr.msk.bf16.mxu1 %vm1107_vm2, %v11616_v37 }
 0x262   : > { %8386 = vmatmul.mubr.msk.bf16.gmra.mxu1 %vm1107_vm2, %v11616_v37 }
 0x263   : > { %8387 = vmatprep.mubr.msk.bf16.mxu1 %vm1107_vm2, %v11630_v40 }
 0x26a   : > { %8388 = vmatmul.mubr.msk.bf16.gmra.mxu1 %vm1107_vm2, %v11630_v40 }
 0x26b   : > { %8389 = vmatprep.mubr.msk.bf16.mxu1 %vm1107_vm2, %v11638_v48 }
 0x272   : > { %8390 = vmatmul.mubr.msk.bf16.gmra.mxu1 %vm1107_vm2, %v11638_v48 }
 0x273   : > { %8391 = vmatprep.mubr.msk.bf16.mxu1 %vm1107_vm2, %v11502_v25 }
 0x27a   : > { %8392 = vmatmul.mubr.msk.bf16.gmra.mxu1 %vm1107_vm2, %v11502_v25 }
 0x27b   : > { %8393 = vmatprep.mubr.msk.bf16.mxu1 %vm1107_vm2, %v11642_v53 }
 0x282   : > { %8394 = vmatmul.mubr.msk.bf16.gmra.mxu1 %vm1107_vm2, %v11642_v53 }
 0x283   : > { %8395 = vmatprep.mubr.msk.bf16.mxu1 %vm1107_vm2, %v11662_v18 }
 0x28a   : > { %8396 = vmatmul.mubr.msk.bf16.gmra.mxu1 %vm1107_vm2, %v11662_v18 }
 0x2d2   : > { %v1262_v35 = vpop.f32.mrf.mxu1 }
 0x2d3   : > { %v11865_v11 = vadd.f32 %v1262_v35, %v11857_v22  ;;  %v11883_v35 = vadd.f32 %v1458_v60, %v11862_v32 }
 0x2d4   : > { %v1264_v62 = vpop.f32.mrf.mxu1 }
 0x2d5   : > { %v11868_v63 = vadd.f32 %v1264_v62, %v11859_v7  ;;  %v9255_v62 = vpop.f32.mrf.mxu0 }
 0x2d6   : > { %v1266_v31 = vpop.f32.mrf.mxu1 }
 0x2d7   : > { %v1582_v42 = vmax.f32 %v11865_v11, %v11868_v63  ;;  %v11876_v56 = vadd.f32 %v1266_v31, %v11857_v22 }
 0x2d8   : > { %v1268_v28 = vpop.f32.mrf.mxu1 }
 0x2d9   : > { %v11879_v50 = vadd.f32 %v1268_v28, %v11859_v7  ;;  %v1583_v2 = vmax.f32 %v1582_v42, %v11871_v20  ;;  %v11895_v42 = vadd.f32 %v9251_v12, %v11862_v32 }
 0x2da   : > { %v1272_v23 = vpop.f32.mrf.mxu1 }
 0x2db   : > { %1584 = vmax.xlane.f32.xlu0 %v1583_v2  ;;  %v1586_v15 = vmax.f32 %v11876_v56, %v11879_v50  ;;  %v11888_v16 = vadd.f32 %v1272_v23, %v11857_v22  ;;  %v1471_v2 = vpop.f32.mrf.mxu0 }
 0x2dc   : > { %v1274_v54 = vpop.f32.mrf.mxu1 }
 0x2dd   : > { %v11891_v31 = vadd.f32 %v1274_v54, %v11859_v7  ;;  %v1587_v28 = vmax.f32 %v1586_v15, %v11883_v35  ;;  %v11907_v15 = vadd.f32 %v9252_v45, %v11862_v32  ;;  %v9256_v3 = vpop.f32.mrf.mxu0 }
 0x2de   : > { %v1276_v10 = vpop.f32.mrf.mxu1 }
 0x2df   : > { %v1590_v60 = vmax.f32 %v11888_v16, %v11891_v31  ;;  %1588 = vmax.xlane.f32.xlu1 %v1587_v28  ;;  %v11900_v24 = vadd.f32 %v1276_v10, %v11857_v22 }
 0x2e0   : > { %v1278_v46 = vpop.f32.mrf.mxu1 }
 0x2e1   : > { %v11903_v23 = vadd.f32 %v1278_v46, %v11859_v7  ;;  %v1591_v54 = vmax.f32 %v1590_v60, %v11895_v42  ;;  %v11919_v60 = vadd.f32 %v1471_v2, %v11862_v32 }
 0x2e2   : > { %v1282_v38 = vpop.f32.mrf.mxu1 }
 0x2e3   : > { %1592 = vmax.xlane.f32.xlu0 %v1591_v54  ;;  %v1594_v12 = vmax.f32 %v11900_v24, %v11903_v23  ;;  %v11912_v26 = vadd.f32 %v1282_v38, %v11857_v22  ;;  %v1474_v54 = vpop.f32.mrf.mxu0 }
 0x2e4   : > { %v1284_v28 = vpop.f32.mrf.mxu1 }
 0x2e5   : > { %v11915_v10 = vadd.f32 %v1284_v28, %v11859_v7  ;;  %v1595_v46 = vmax.f32 %v1594_v12, %v11907_v15  ;;  %v11931_v12 = vadd.f32 %v1474_v54, %v11862_v32  ;;  %v9259_v52 = vpop.f32.mrf.mxu0 }
 0x2e6   : > { %v1286_v27 = vpop.f32.mrf.mxu1 }
 0x2e7   : > { %v1598_v45 = vmax.f32 %v11912_v26, %v11915_v10  ;;  %1596 = vmax.xlane.f32.xlu1 %v1595_v46  ;;  %v11924_v19 = vadd.f32 %v1286_v27, %v11857_v22 }
 0x2e8   : > { %v1288_v8 = vpop.f32.mrf.mxu1 }
 0x2e9   : > { %v11927_v38 = vadd.f32 %v1288_v8, %v11859_v7  ;;  %v1599_v28 = vmax.f32 %v1598_v45, %v11919_v60  ;;  %v11943_v45 = vadd.f32 %v9255_v62, %v11862_v32 }
 0x2ea   : > { %v1292_v59 = vpop.f32.mrf.mxu1 }
 0x2eb   : > { %1600 = vmax.xlane.f32.xlu0 %v1599_v28  ;;  %v1602_v2 = vmax.f32 %v11924_v19, %v11927_v38  ;;  %v11936_v5 = vadd.f32 %v1292_v59, %v11857_v22  ;;  %v1487_v28 = vpop.f32.mrf.mxu0 }
 0x2ec   : > { %v1294_v46 = vpop.f32.mrf.mxu1 }
 0x2ed   : > { %v11939_v27 = vadd.f32 %v1294_v46, %v11859_v7  ;;  %v1603_v8 = vmax.f32 %v1602_v2, %v11931_v12  ;;  %v11955_v2 = vadd.f32 %v9256_v3, %v11862_v32  ;;  %v9260_v58 = vpop.f32.mrf.mxu0 }
 0x2ee   : > { %v1296_v1 = vpop.f32.mrf.mxu1 }
 0x2ef   : > { %v1606_v54 = vmax.f32 %v11936_v5, %v11939_v27  ;;  %1604 = vmax.xlane.f32.xlu1 %v1603_v8  ;;  %v11948_v36 = vadd.f32 %v1296_v1, %v11857_v22 }
 0x2f0   : > { %v1298_v33 = vpop.f32.mrf.mxu1 }
 0x2f1   : > { %v11951_v59 = vadd.f32 %v1298_v33, %v11859_v7  ;;  %v1607_v46 = vmax.f32 %v1606_v54, %v11943_v45  ;;  %v11967_v54 = vadd.f32 %v1487_v28, %v11862_v32 }
 0x2f2   : > { %v1302_v6 = vpop.f32.mrf.mxu1 }
 0x2f3   : > { %1608 = vmax.xlane.f32.xlu0 %v1607_v46  ;;  %v1610_v62 = vmax.f32 %v11948_v36, %v11951_v59  ;;  %v11960_v13 = vadd.f32 %v1302_v6, %v11857_v22  ;;  %v1490_v46 = vpop.f32.mrf.mxu0 }
 0x2f4   : > { %v1304_v8 = vpop.f32.mrf.mxu1 }
 0x2f5   : > { %v11963_v1 = vadd.f32 %v1304_v8, %v11859_v7  ;;  %v1611_v33 = vmax.f32 %v1610_v62, %v11955_v2  ;;  %v11979_v62 = vadd.f32 %v1490_v46, %v11862_v32  ;;  %v9263_v37 = vpop.f32.mrf.mxu0 }
 0x2f6   : > { %v1306_v53 = vpop.f32.mrf.mxu1 }
 0x2f7   : > { %v1614_v3 = vmax.f32 %v11960_v13, %v11963_v1  ;;  %1612 = vmax.xlane.f32.xlu1 %v1611_v33  ;;  %v11972_v48 = vadd.f32 %v1306_v53, %v11857_v22 }
 0x2f8   : > { %v1308_v18 = vpop.f32.mrf.mxu1 }
 0x2f9   : > { %v11975_v6 = vadd.f32 %v1308_v18, %v11859_v7  ;;  %v1615_v8 = vmax.f32 %v1614_v3, %v11967_v54  ;;  %v11991_v3 = vadd.f32 %v9259_v52, %v11862_v32 }
 0x2fa   : > { %v1312_v25 = vpop.f32.mrf.mxu1 }
 0x2fb   : > { %1616 = vmax.xlane.f32.xlu0 %v1615_v8  ;;  %v1618_v28 = vmax.f32 %v11972_v48, %v11975_v6  ;;  %v11984_v40 = vadd.f32 %v1312_v25, %v11857_v22  ;;  %v1503_v8 = vpop.f32.mrf.mxu0 }
 0x2fc   : > { %v1314_v33 = vpop.f32.mrf.mxu1 }
 0x2fd   : > { %v11987_v53 = vadd.f32 %v1314_v33, %v11859_v7  ;;  %v1619_v18 = vmax.f32 %v1618_v28, %v11979_v62  ;;  %v12003_v28 = vadd.f32 %v9260_v58, %v11862_v32  ;;  %v9264_v41 = vpop.f32.mrf.mxu0 }
 0x2fe   : > { %v1316_v61 = vpop.f32.mrf.mxu1 }
 0x2ff   : > { %v1622_v46 = vmax.f32 %v11984_v40, %v11987_v53  ;;  %1620 = vmax.xlane.f32.xlu1 %v1619_v18  ;;  %v11996_v29 = vadd.f32 %v1316_v61, %v11857_v22 }
 0x300   : > { %v1318_v51 = vpop.f32.mrf.mxu1 }
 0x301   : > { %v11999_v25 = vadd.f32 %v1318_v51, %v11859_v7  ;;  %v1623_v33 = vmax.f32 %v1622_v46, %v11991_v3  ;;  %v12015_v46 = vadd.f32 %v1503_v8, %v11862_v32 }
 0x302   : > { %v1322_v14 = vpop.f32.mrf.mxu1 }
 0x303   : > { %1624 = vmax.xlane.f32.xlu0 %v1623_v33  ;;  %v1626_v52 = vmax.f32 %v11996_v29, %v11999_v25  ;;  %v12008_v57 = vadd.f32 %v1322_v14, %v11857_v22  ;;  %v1506_v33 = vpop.f32.mrf.mxu0 }
 0x304   : > { %v1324_v18 = vpop.f32.mrf.mxu1 }
 0x305   : > { %v12011_v61 = vadd.f32 %v1324_v18, %v11859_v7  ;;  %v1627_v51 = vmax.f32 %v1626_v52, %v12003_v28  ;;  %v12027_v52 = vadd.f32 %v1506_v33, %v11862_v32  ;;  %v9267_v43 = vpop.f32.mrf.mxu0 }
 0x306   : > { %v1326_v17 = vpop.f32.mrf.mxu1 }
 0x307   : > { %v1630_v58 = vmax.f32 %v12008_v57, %v12011_v61  ;;  %1628 = vmax.xlane.f32.xlu1 %v1627_v51  ;;  %v12020_v30 = vadd.f32 %v1326_v17, %v11857_v22 }
 0x308   : > { %v1328_v44 = vpop.f32.mrf.mxu1 }
 0x309   : > { %v12023_v14 = vadd.f32 %v1328_v44, %v11859_v7  ;;  %v1631_v18 = vmax.f32 %v1630_v58, %v12015_v46  ;;  %v12039_v58 = vadd.f32 %v9263_v37, %v11862_v32 }
 0x30a   : > { %v1332_v55 = vpop.f32.mrf.mxu1 }
 0x30b   : > { %1632 = vmax.xlane.f32.xlu0 %v1631_v18  ;;  %v1634_v8 = vmax.f32 %v12020_v30, %v12023_v14  ;;  %v12032_v49 = vadd.f32 %v1332_v55, %v11857_v22  ;;  %18112 = vst [vmem:[#allocation63_spill] sm:$0xff] %v12039_v58  ;;  %v1519_v18 = vpop.f32.mrf.mxu0 }
 0x30c   : > { %v1334_v51 = vpop.f32.mrf.mxu1 }
 0x30d   : > { %18110 = vst [vmem:[#allocation61_spill] sm:$0xff] %v12032_v49  ;;  %v12035_v17 = vadd.f32 %v1334_v51, %v11859_v7  ;;  %v1635_v44 = vmax.f32 %v1634_v8, %v12027_v52  ;;  %v12051_v8 = vadd.f32 %v9264_v41, %v11862_v32  ;;  %v9268_v0 = vpop.f32.mrf.mxu0 }
 0x30e   : > { %v1336_v39 = vpop.f32.mrf.mxu1 }
 0x30f   : > { %18111 = vst [vmem:[#allocation62_spill] sm:$0xff] %v12035_v17  ;;  %v1638_v33 = vmax.f32 %v12032_v49, %v12035_v17  ;;  %1636 = vmax.xlane.f32.xlu1 %v1635_v44  ;;  %v12044_v47 = vadd.f32 %v1336_v39, %v11857_v22  ;;  %18115 = vst [vmem:[#allocation66_spill] sm:$0xff] %v12051_v8 }
 0x310   : > { %v1338_v4 = vpop.f32.mrf.mxu1 }
 0x311   : > { %18113 = vst [vmem:[#allocation64_spill] sm:$0xff] %v12044_v47  ;;  %v12047_v55 = vadd.f32 %v1338_v4, %v11859_v7  ;;  %v1639_v51 = vmax.f32 %v1638_v33, %v12039_v58  ;;  %v12063_v33 = vadd.f32 %v1519_v18, %v11862_v32 }
 0x312   : > { %v1342_v34 = vpop.f32.mrf.mxu1 }
 0x313   : > { %18114 = vst [vmem:[#allocation65_spill] sm:$0xff] %v12047_v55  ;;  %1640 = vmax.xlane.f32.xlu0 %v1639_v51  ;;  %v1642_v37 = vmax.f32 %v12044_v47, %v12047_v55  ;;  %v12056_v17 = vadd.f32 %v1342_v34, %v11857_v22  ;;  %18118 = vst [vmem:[#allocation69_spill] sm:$0xff] %v12063_v33  ;;  %v1522_v51 = vpop.f32.mrf.mxu0 }
 0x314   : > { %v1344_v44 = vpop.f32.mrf.mxu1 }
 0x315   : > { %18116 = vst [vmem:[#allocation67_spill] sm:$0xff] %v12056_v17  ;;  %v12059_v39 = vadd.f32 %v1344_v44, %v11859_v7  ;;  %v1643_v4 = vmax.f32 %v1642_v37, %v12051_v8  ;;  %v12075_v37 = vadd.f32 %v1522_v51, %v11862_v32 }
 0x316   : > { %v1346_v49 = vpop.f32.mrf.mxu1 }
 0x317   : > { %18117 = vst [vmem:[#allocation68_spill] sm:$0xff] %v12059_v39  ;;  %v1646_v41 = vmax.f32 %v12056_v17, %v12059_v39  ;;  %1644 = vmax.xlane.f32.xlu1 %v1643_v4  ;;  %v12068_v47 = vadd.f32 %v1346_v49, %v11857_v22  ;;  %18121 = vst [vmem:[#allocation72_spill] sm:$0xff] %v12075_v37  ;;  %v9271_v39 = vpop.f32.mrf.mxu0 }
 0x318   : > { %v1348_v55 = vpop.f32.mrf.mxu1 }
 0x319   : > { %18119 = vst [vmem:[#allocation70_spill] sm:$0xff] %v12068_v47  ;;  %v12071_v34 = vadd.f32 %v1348_v55, %v11859_v7  ;;  %v1647_v44 = vmax.f32 %v1646_v41, %v12063_v33  ;;  %v12087_v41 = vadd.f32 %v9267_v43, %v11862_v32 }
 0x31a   : > { %v1352_v58 = vpop.f32.mrf.mxu1 }
 0x31b   : > { %18120 = vst [vmem:[#allocation71_spill] sm:$0xff] %v12071_v34  ;;  %1648 = vmax.xlane.f32.xlu0 %v1647_v44  ;;  %v1650_v18 = vmax.f32 %v12068_v47, %v12071_v34  ;;  %v12080_v17 = vadd.f32 %v1352_v58, %v11857_v22  ;;  %18124 = vst [vmem:[#allocation75_spill] sm:$0xff] %v12087_v41  ;;  %v1535_v44 = vpop.f32.mrf.mxu0 }
 0x31c   : > { %v1354_v4 = vpop.f32.mrf.mxu1 }
 0x31d   : > { %18122 = vst [vmem:[#allocation73_spill] sm:$0xff] %v12080_v17  ;;  %v12083_v49 = vadd.f32 %v1354_v4, %v11859_v7  ;;  %v1651_v55 = vmax.f32 %v1650_v18, %v12075_v37  ;;  %v12099_v18 = vadd.f32 %v9268_v0, %v11862_v32 }
 0x31e   : > { %v1356_v8 = vpop.f32.mrf.mxu1 }
 0x31f   : > { %18123 = vst [vmem:[#allocation74_spill] sm:$0xff] %v12083_v49  ;;  %v1654_v51 = vmax.f32 %v12080_v17, %v12083_v49  ;;  %1652 = vmax.xlane.f32.xlu1 %v1651_v55  ;;  %v12092_v47 = vadd.f32 %v1356_v8, %v11857_v22  ;;  %18127 = vst [vmem:[#allocation78_spill] sm:$0xff] %v12099_v18  ;;  %v9272_v49 = vpop.f32.mrf.mxu0 }
 0x320   : > { %v1358_v34 = vpop.f32.mrf.mxu1 }
 0x321   : > { %18125 = vst [vmem:[#allocation76_spill] sm:$0xff] %v12092_v47  ;;  %v12095_v58 = vadd.f32 %v1358_v34, %v11859_v7  ;;  %v1655_v4 = vmax.f32 %v1654_v51, %v12087_v41  ;;  %v12111_v51 = vadd.f32 %v1535_v44, %v11862_v32 }
 0x322   : > { %v1362_v33 = vpop.f32.mrf.mxu1 }
 0x323   : > { %18126 = vst [vmem:[#allocation77_spill] sm:$0xff] %v12095_v58  ;;  %1656 = vmax.xlane.f32.xlu0 %v1655_v4  ;;  %v1658_v43 = vmax.f32 %v12092_v47, %v12095_v58  ;;  %v12104_v17 = vadd.f32 %v1362_v33, %v11857_v22  ;;  %18130 = vst [vmem:[#allocation81_spill] sm:$0xff] %v12111_v51  ;;  %v1538_v4 = vpop.f32.mrf.mxu0 }
 0x324   : > { %v1364_v55 = vpop.f32.mrf.mxu1 }
 0x325   : > { %18128 = vst [vmem:[#allocation79_spill] sm:$0xff] %v12104_v17  ;;  %v12107_v8 = vadd.f32 %v1364_v55, %v11859_v7  ;;  %v1659_v34 = vmax.f32 %v1658_v43, %v12099_v18  ;;  %v12123_v43 = vadd.f32 %v1538_v4, %v11862_v32 }
 0x326   : > { %v1366_v37 = vpop.f32.mrf.mxu1 }
 0x327   : > { %18129 = vst [vmem:[#allocation80_spill] sm:$0xff] %v12107_v8  ;;  %v1662_v0 = vmax.f32 %v12104_v17, %v12107_v8  ;;  %1660 = vmax.xlane.f32.xlu1 %v1659_v34  ;;  %v12116_v47 = vadd.f32 %v1366_v37, %v11857_v22  ;;  %18133 = vst [vmem:[#allocation84_spill] sm:$0xff] %v12123_v43  ;;  %v9275_v8 = vpop.f32.mrf.mxu0 }
 0x328   : > { %v1368_v58 = vpop.f32.mrf.mxu1 }
 0x329   : > { %18131 = vst [vmem:[#allocation82_spill] sm:$0xff] %v12116_v47  ;;  %v12119_v33 = vadd.f32 %v1368_v58, %v11859_v7  ;;  %v1663_v55 = vmax.f32 %v1662_v0, %v12111_v51  ;;  %v12135_v0 = vadd.f32 %v9271_v39, %v11862_v32 }
 0x32a   : > { %v1372_v41 = vpop.f32.mrf.mxu1 }
 0x32b   : > { %18132 = vst [vmem:[#allocation83_spill] sm:$0xff] %v12119_v33  ;;  %1664 = vmax.xlane.f32.xlu0 %v1663_v55  ;;  %v1666_v44 = vmax.f32 %v12116_v47, %v12119_v33  ;;  %v12128_v17 = vadd.f32 %v1372_v41, %v11857_v22  ;;  %18136 = vst [vmem:[#allocation87_spill] sm:$0xff] %v12135_v0  ;;  %v1551_v55 = vpop.f32.mrf.mxu0 }
 0x32c   : > { %v1374_v34 = vpop.f32.mrf.mxu1 }
 0x32d   : > { %18134 = vst [vmem:[#allocation85_spill] sm:$0xff] %v12128_v17  ;;  %v12131_v37 = vadd.f32 %v1374_v34, %v11859_v7  ;;  %v1667_v58 = vmax.f32 %v1666_v44, %v12123_v43  ;;  %v12147_v44 = vadd.f32 %v9272_v49, %v11862_v32 }
 0x32e   : > { %v1376_v18 = vpop.f32.mrf.mxu1 }
 0x32f   : > { %18135 = vst [vmem:[#allocation86_spill] sm:$0xff] %v12131_v37  ;;  %v1670_v4 = vmax.f32 %v12128_v17, %v12131_v37  ;;  %1668 = vmax.xlane.f32.xlu1 %v1667_v58  ;;  %v12140_v47 = vadd.f32 %v1376_v18, %v11857_v22  ;;  %18139 = vst [vmem:[#allocation90_spill] sm:$0xff] %v12147_v44  ;;  %v9276_v37 = vpop.f32.mrf.mxu0 }
 0x330   : > { %v1378_v33 = vpop.f32.mrf.mxu1 }
 0x331   : > { %18137 = vst [vmem:[#allocation88_spill] sm:$0xff] %v12140_v47  ;;  %v12143_v41 = vadd.f32 %v1378_v33, %v11859_v7  ;;  %v1671_v34 = vmax.f32 %v1670_v4, %v12135_v0  ;;  %v12159_v4 = vadd.f32 %v1551_v55, %v11862_v32 }
 0x332   : > { %v1382_v51 = vpop.f32.mrf.mxu1 }
 0x333   : > { %18138 = vst [vmem:[#allocation89_spill] sm:$0xff] %v12143_v41  ;;  %1672 = vmax.xlane.f32.xlu0 %v1671_v34  ;;  %v1674_v39 = vmax.f32 %v12140_v47, %v12143_v41  ;;  %v12152_v17 = vadd.f32 %v1382_v51, %v11857_v22  ;;  %18142 = vst [vmem:[#allocation93_spill] sm:$0xff] %v12159_v4  ;;  %v1554_v34 = vpop.f32.mrf.mxu0 }
 0x334   : > { %v1384_v58 = vpop.f32.mrf.mxu1 }
 0x335   : > { %18140 = vst [vmem:[#allocation91_spill] sm:$0xff] %v12152_v17  ;;  %v12155_v18 = vadd.f32 %v1384_v58, %v11859_v7  ;;  %v1675_v33 = vmax.f32 %v1674_v39, %v12147_v44  ;;  %v12171_v39 = vadd.f32 %v1554_v34, %v11862_v32  ;;  %v12185_v34 = vadd.f32 %v9275_v8, %v11862_v32 }
 0x336   : > { %v1386_v43 = vpop.f32.mrf.mxu1  ;;  %v12199_v8 = vadd.f32 %v9276_v37, %v11862_v32 }
 0x337   : > { %18141 = vst [vmem:[#allocation92_spill] sm:$0xff] %v12155_v18  ;;  %v1678_v49 = vmax.f32 %v12152_v17, %v12155_v18  ;;  %1676 = vmax.xlane.f32.xlu1 %v1675_v33  ;;  %v12164_v47 = vadd.f32 %v1386_v43, %v11857_v22  ;;  %18145 = vst [vmem:[#allocation96_spill] sm:$0xff] %v12171_v39  ;;  %v9279_v18 = vpop.f32.mrf.mxu0  ;;  %v12175_v17 = vpop.permute.xlu0 %2746 }
 0x338   : > { %v1388_v41 = vpop.f32.mrf.mxu1  ;;  %18146 = vst [vmem:[#allocation97_spill] sm:$0xff] %v12175_v17  ;;  %18149 = vst [vmem:[#allocation100_spill] sm:$0xff] %v12185_v34 }
 0x339   : > { %18143 = vst [vmem:[#allocation94_spill] sm:$0xff] %v12164_v47  ;;  %v12167_v51 = vadd.f32 %v1388_v41, %v11859_v7  ;;  %v1679_v58 = vmax.f32 %v1678_v49, %v12159_v4 }
 0x33a   : > { %v1392_v0 = vpop.f32.mrf.mxu1 }
 0x33b   : > { %18144 = vst [vmem:[#allocation95_spill] sm:$0xff] %v12167_v51  ;;  %1680 = vmax.xlane.f32.xlu0 %v1679_v58  ;;  %v1682_v55 = vmax.f32 %v12164_v47, %v12167_v51  ;;  %v12178_v43 = vadd.f32 %v1392_v0, %v11857_v22  ;;  %v1567_v51 = vpop.f32.mrf.mxu0 }
 0x33c   : > { %v1394_v33 = vpop.f32.mrf.mxu1 }
 0x33d   : > { %18147 = vst [vmem:[#allocation98_spill] sm:$0xff] %v12178_v43  ;;  %v12181_v41 = vadd.f32 %v1394_v33, %v11859_v7  ;;  %v1683_v49 = vmax.f32 %v1682_v55, %v12171_v39  ;;  %v12196_v55 = vpop.permute.xlu0 %2744 }
 0x33e   : > { %v1396_v4 = vpop.f32.mrf.mxu1  ;;  %18152 = vst [vmem:[#allocation103_spill] sm:$0xff] %v12196_v55  ;;  %v12211_v55 = vadd.f32 %v1567_v51, %v11862_v32 }
 0x33f   : > { %18148 = vst [vmem:[#allocation99_spill] sm:$0xff] %v12181_v41  ;;  %v1686_v58 = vmax.f32 %v12178_v43, %v12181_v41  ;;  %1684 = vmax.xlane.f32.xlu1 %v1683_v49  ;;  %v12190_v17 = vadd.f32 %v1396_v4, %v11857_v22  ;;  %v9280_v41 = vpop.f32.mrf.mxu0 }
 0x340   : > { %v1398_v47 = vpop.f32.mrf.mxu1  ;;  %18155 = vst [vmem:[#allocation106_spill] sm:$0xff] %v12211_v55 }
 0x341   : > { %18150 = vst [vmem:[#allocation101_spill] sm:$0xff] %v12190_v17  ;;  %v12193_v0 = vadd.f32 %v1398_v47, %v11859_v7  ;;  %v1687_v33 = vmax.f32 %v1686_v58, %v12185_v34  ;;  %v12222_v39 = vpop.permute.xlu0 %2742 }
 0x342   : > { %v1402_v44 = vpop.f32.mrf.mxu1  ;;  %18157 = vst [vmem:[#allocation108_spill] sm:$0xff] %v12222_v39  ;;  %v12237_v39 = vadd.f32 %v9279_v18, %v11862_v32 }
 0x343   : > { %18151 = vst [vmem:[#allocation102_spill] sm:$0xff] %v12193_v0  ;;  %1688 = vmax.xlane.f32.xlu0 %v1687_v33  ;;  %v1690_v49 = vmax.f32 %v12190_v17, %v12193_v0  ;;  %v12204_v4 = vadd.f32 %v1402_v44, %v11857_v22  ;;  %v1570_v33 = vpop.f32.mrf.mxu0 }
 0x344   : > { %v1404_v43 = vpop.f32.mrf.mxu1  ;;  %v12225_v51 = vadd.f32 %v1570_v33, %v11862_v32  ;;  %18159 = vst [vmem:[#allocation110_spill] sm:$0xff] %v12237_v39 }
 0x345   : > { %18153 = vst [vmem:[#allocation104_spill] sm:$0xff] %v12204_v4  ;;  %v12207_v47 = vadd.f32 %v1404_v43, %v11859_v7  ;;  %v1691_v58 = vmax.f32 %v1690_v49, %v12199_v8 }
 0x346   : > { %v1406_v34 = vpop.f32.mrf.mxu1 }
 0x347   : > { %18154 = vst [vmem:[#allocation105_spill] sm:$0xff] %v12207_v47  ;;  %v1694_v37 = vmax.f32 %v12204_v4, %v12207_v47  ;;  %1692 = vmax.xlane.f32.xlu1 %v1691_v58  ;;  %v12216_v17 = vadd.f32 %v1406_v34, %v11857_v22 }
 0x348   : > { %v1408_v0 = vpop.f32.mrf.mxu1 }
 0x349   : > { %v12219_v44 = vadd.f32 %v1408_v0, %v11859_v7  ;;  %v1695_v43 = vmax.f32 %v1694_v37, %v12211_v55 }
 0x34a   : > { %v1412_v49 = vpop.f32.mrf.mxu1 }
 0x34b   : > { %18156 = vst [vmem:[#allocation107_spill] sm:$0xff] %v12219_v44  ;;  %1696 = vmax.xlane.f32.xlu0 %v1695_v43  ;;  %v1698_v58 = vmax.f32 %v12216_v17, %v12219_v44  ;;  %v12230_v4 = vadd.f32 %v1412_v49, %v11857_v22  ;;  %v12241_v43 = vpop.permute.xlu0 %2712 }
 0x34c   : > { %v1414_v47 = vpop.f32.mrf.mxu1  ;;  %18160 = vst [vmem:[#allocation111_spill] sm:$0xff] %v12241_v43  ;;  %v12258_v43 = vpop.permute.xlu1 %2708 }
 0x34d   : > { %v12233_v34 = vadd.f32 %v1414_v47, %v11859_v7  ;;  %v1699_v0 = vmax.f32 %v1698_v58, %v12225_v51  ;;  %v12251_v58 = vadd.f32 %v9280_v41, %v11862_v32  ;;  %18163 = vst [vmem:[#allocation114_spill] sm:$0xff] %v12258_v43 }
 0x34e   : > { %v1416_v37 = vpop.f32.mrf.mxu1 }
 0x34f   : > { %18158 = vst [vmem:[#allocation109_spill] sm:$0xff] %v12233_v34  ;;  %v1702_v33 = vmax.f32 %v12230_v4, %v12233_v34  ;;  %1700 = vmax.xlane.f32.xlu1 %v1699_v0  ;;  %v12244_v44 = vadd.f32 %v1416_v37, %v11857_v22  ;;  %18161 = vst [vmem:[#allocation112_spill] sm:$0xff] %v12251_v58  ;;  %v12255_v34 = vpop.permute.xlu0 %2714 }
 0x350   : > { %v1418_v55 = vpop.f32.mrf.mxu1  ;;  %18162 = vst [vmem:[#allocation113_spill] sm:$0xff] %v12255_v34 }
 0x351   : > { %v12247_v49 = vadd.f32 %v1418_v55, %v11859_v7  ;;  %v1703_v47 = vmax.f32 %v1702_v33, %v12237_v39  ;;  %v12262_v55 = vpop.permute.xlu1 %2710 }
 0x352   : > { %18165 = vst [vmem:[#allocation116_spill] sm:$0xff] %v12262_v55 }
 0x353   : > { %1704 = vmax.xlane.f32.xlu0 %v1703_v47  ;;  %v1706_v18 = vmax.f32 %v12244_v44, %v12247_v49  ;;  %v12260_v37 = vpop.permute.xlu0 %2716 }
 0x354   : > { %18164 = vst [vmem:[#allocation115_spill] sm:$0xff] %v12260_v37 }
 0x355   : > { %v1707_v0 = vmax.f32 %v1706_v18, %v12251_v58  ;;  %v12268_v41 = vpop.permute.xlu1 %2726 }
 0x356   : > { %18168 = vst [vmem:[#allocation119_spill] sm:$0xff] %v12268_v41 }
 0x357   : > { %1708 = vmax.xlane.f32.xlu1 %v1707_v0  ;;  %v12264_v22 = vpop.permute.xlu0 %2718 }
 0x358   : > { %18166 = vst [vmem:[#allocation117_spill] sm:$0xff] %v12264_v22 }
 0x359   : > { %v12270_v47 = vpop.permute.xlu1 %2728 }
 0x35a   : > { %18169 = vst [vmem:[#allocation120_spill] sm:$0xff] %v12270_v47 }
 0x35b   : > { %v12266_v33 = vpop.permute.xlu0 %2724 }
 0x35c   : > { %18167 = vst [vmem:[#allocation118_spill] sm:$0xff] %v12266_v33 }
 0x364   : > { %v1585_v32 = vpop.xlane.xlu0 %1584 }
 0x365   : > { %v1710_v7 = vsub.f32 %v11865_v11, %v1585_v32  ;;  %v1711_v18 = vsub.f32 %v11868_v63, %v1585_v32  ;;  %v1712_v43 = vsub.f32 %v11871_v20, %v1585_v32 }
 0x367   : > { %v1806_v0 = vmul.f32 1.442695, %v1710_v7  ;;  %v1808_v34 = vmul.f32 1.442695, %v1711_v18  ;;  %v1810_v37 = vmul.f32 1.442695, %v1712_v43 }
 0x368   : > { %v1589_v39 = vpop.xlane.xlu1 %1588 }
 0x369   : > { %9819 = vpow2.f32 %v1806_v0  ;;  %v1713_v55 = vsub.f32 %v11876_v56, %v1589_v39  ;;  %v1714_v33 = vsub.f32 %v11879_v50, %v1589_v39  ;;  %v1715_v41 = vsub.f32 %v11883_v35, %v1589_v39 }
 0x36a   : > { %9821 = vpow2.f32 %v1808_v34 }
 0x36b   : > { %v1812_v47 = vmul.f32 1.442695, %v1713_v55  ;;  %v1814_v22 = vmul.f32 1.442695, %v1714_v33  ;;  %9823 = vpow2.f32 %v1810_v37  ;;  %v1816_v11 = vmul.f32 1.442695, %v1715_v41 }
 0x36c   : > { %v1593_v58 = vpop.xlane.xlu0 %1592 }
 0x36d   : > { %9825 = vpow2.f32 %v1812_v47  ;;  %v1716_v32 = vsub.f32 %v11888_v16, %v1593_v58  ;;  %v1717_v7 = vsub.f32 %v11891_v31, %v1593_v58  ;;  %v1718_v63 = vsub.f32 %v11895_v42, %v1593_v58 }
 0x36e   : > { %9827 = vpow2.f32 %v1814_v22 }
 0x36f   : > { %v1818_v20 = vmul.f32 1.442695, %v1716_v32  ;;  %v1820_v56 = vmul.f32 1.442695, %v1717_v7  ;;  %9829 = vpow2.f32 %v1816_v11  ;;  %v1822_v50 = vmul.f32 1.442695, %v1718_v63 }
 0x370   : > { %v1597_v43 = vpop.xlane.xlu1 %1596 }
 0x371   : > { %9831 = vpow2.f32 %v1818_v20  ;;  %v1719_v35 = vsub.f32 %v11900_v24, %v1597_v43  ;;  %v1720_v39 = vsub.f32 %v11903_v23, %v1597_v43  ;;  %v1721_v34 = vsub.f32 %v11907_v15, %v1597_v43 }
 0x372   : > { %9833 = vpow2.f32 %v1820_v56 }
 0x373   : > { %v1824_v37 = vmul.f32 1.442695, %v1719_v35  ;;  %v1826_v16 = vmul.f32 1.442695, %v1720_v39  ;;  %9835 = vpow2.f32 %v1822_v50  ;;  %v1828_v31 = vmul.f32 1.442695, %v1721_v34 }
 0x374   : > { %v1601_v43 = vpop.xlane.xlu0 %1600 }
 0x375   : > { %9837 = vpow2.f32 %v1824_v37  ;;  %v1722_v39 = vsub.f32 %v11912_v26, %v1601_v43  ;;  %v1723_v37 = vsub.f32 %v11915_v10, %v1601_v43 }
 0x376   : > { %v12284_v42 = vpop.eup %9819  ;;  %9839 = vpow2.f32 %v1826_v16  ;;  %v1724_v16 = vsub.f32 %v11919_v60, %v1601_v43 }
 0x377   : > { %v12286_v22 = vpop.eup %9821  ;;  %9841 = vpow2.f32 %v1828_v31 }
 0x378   : > { %v1998_v58 = vadd.f32 %v12286_v22, %v12284_v42  ;;  %v12290_v24 = vpop.eup %9823  ;;  %v1605_v34 = vpop.xlane.xlu1 %1604 }
 0x379   : > { %v1725_v31 = vsub.f32 %v11924_v19, %v1605_v34 }
 0x37a   : > { %v12292_v23 = vpop.eup %9825  ;;  %v1999_v15 = vadd.f32 %v12290_v24, %v1998_v58 }
 0x37b   : > { %v12295_v55 = vpop.eup %9827  ;;  %v1836_v26 = vmul.f32 1.442695, %v1725_v31 }
 0x37c   : > { %2000 = vadd.xlane.f32.xlu0 %v1999_v15  ;;  %v2002_v33 = vadd.f32 %v12295_v55, %v12292_v23  ;;  %v12299_v41 = vpop.eup %9829  ;;  %v1609_v58 = vpop.xlane.xlu0 %1608  ;;  %v1830_v15 = vmul.f32 1.442695, %v1722_v39 }
 0x37d   : > { %v1730_v60 = vsub.f32 %v11943_v45, %v1609_v58 }
 0x37e   : > { %v12301_v47 = vpop.eup %9831  ;;  %v2003_v18 = vadd.f32 %v12299_v41, %v2002_v33  ;;  %v1726_v33 = vsub.f32 %v11927_v38, %v1605_v34  ;;  %9843 = vpow2.f32 %v1830_v15 }
 0x37f   : > { %v12304_v0 = vpop.eup %9833 }
 0x380   : > { %2004 = vadd.xlane.f32.xlu1 %v2003_v18  ;;  %v2006_v11 = vadd.f32 %v12304_v0, %v12301_v47  ;;  %v12308_v32 = vpop.eup %9835  ;;  %v1832_v18 = vmul.f32 1.442695, %v1723_v37  ;;  %v1838_v10 = vmul.f32 1.442695, %v1726_v33  ;;  %v1846_v37 = vmul.f32 1.442695, %v1730_v60 }
 0x382   : > { %v12310_v7 = vpop.eup %9837  ;;  %v2007_v63 = vadd.f32 %v12308_v32, %v2006_v11  ;;  %v1727_v11 = vsub.f32 %v11931_v12, %v1605_v34  ;;  %9845 = vpow2.f32 %v1832_v18 }
 0x383   : > { %18170 = vst [vmem:[#allocation121_spill] sm:$0xff] %v12310_v7  ;;  %v12313_v20 = vpop.eup %9839 }
 0x384   : > { %2008 = vadd.xlane.f32.xlu0 %v2007_v63  ;;  %v2010_v56 = vadd.f32 %v12313_v20, %v12310_v7  ;;  %v12317_v50 = vpop.eup %9841  ;;  %v1834_v63 = vmul.f32 1.442695, %v1724_v16  ;;  %v1613_v7 = vpop.xlane.xlu1 %1612  ;;  %v1840_v19 = vmul.f32 1.442695, %v1727_v11 }
 0x385   : > { %v1731_v43 = vsub.f32 %v11948_v36, %v1613_v7  ;;  %v1617_v39 = vpop.xlane.xlu0 %1616  ;;  %v1732_v12 = vsub.f32 %v11951_v59, %v1613_v7 }
 0x386   : > { %v2011_v35 = vadd.f32 %v12317_v50, %v2010_v56  ;;  %v1728_v56 = vsub.f32 %v11936_v5, %v1609_v58  ;;  %9847 = vpow2.f32 %v1834_v63  ;;  %v1733_v5 = vsub.f32 %v11955_v2, %v1613_v7 }
 0x387   : > { %9849 = vpow2.f32 %v1836_v26  ;;  %v1848_v45 = vmul.f32 1.442695, %v1731_v43  ;;  %v1735_v31 = vsub.f32 %v11963_v1, %v1617_v39  ;;  %v1850_v36 = vmul.f32 1.442695, %v1732_v12 }
 0x388   : > { %2012 = vadd.xlane.f32.xlu1 %v2011_v35  ;;  %v1729_v35 = vsub.f32 %v11939_v27, %v1609_v58  ;;  %v1842_v38 = vmul.f32 1.442695, %v1728_v56  ;;  %9851 = vpow2.f32 %v1838_v10  ;;  %v1734_v27 = vsub.f32 %v11960_v13, %v1617_v39  ;;  %v1621_v16 = vpop.xlane.xlu1 %1620 }
 0x389   : > { %9853 = vpow2.f32 %v1840_v19  ;;  %v1736_v58 = vsub.f32 %v11967_v54, %v1617_v39  ;;  %v1852_v15 = vmul.f32 1.442695, %v1733_v5  ;;  %v1737_v59 = vsub.f32 %v11972_v48, %v1621_v16 }
 0x38a   : > { %v1844_v34 = vmul.f32 1.442695, %v1729_v35  ;;  %9855 = vpow2.f32 %v1842_v38  ;;  %v1854_v2 = vmul.f32 1.442695, %v1734_v27  ;;  %v1738_v7 = vsub.f32 %v11975_v6, %v1621_v16 }
 0x38b   : > { %v1856_v13 = vmul.f32 1.442695, %v1735_v31  ;;  %v1739_v18 = vsub.f32 %v11979_v62, %v1621_v16  ;;  %v1858_v1 = vmul.f32 1.442695, %v1736_v58  ;;  %v1860_v48 = vmul.f32 1.442695, %v1737_v59  ;;  %v12345_v62 = vpop.eup %9843 }
 0x38c   : > { %9857 = vpow2.f32 %v1844_v34  ;;  %v1625_v33 = vpop.xlane.xlu0 %1624  ;;  %v1862_v6 = vmul.f32 1.442695, %v1738_v7  ;;  %18171 = vst [vmem:[#allocation122_spill] sm:$0xff] %v12345_v62  ;;  %v18179_v7 = vld [vmem:[#allocation61_spill] sm:$0xff] }
 0x38d   : > { %9859 = vpow2.f32 %v1846_v37  ;;  %v1740_v54 = vsub.f32 %v11984_v40, %v1625_v33  ;;  %v1741_v63 = vsub.f32 %v11987_v53, %v1625_v33  ;;  %v1742_v56 = vsub.f32 %v11991_v3, %v1625_v33 }
 0x38e   : > { %9861 = vpow2.f32 %v1848_v45  ;;  %v1864_v26 = vmul.f32 1.442695, %v1739_v18 }
 0x38f   : > { %9863 = vpow2.f32 %v1850_v36  ;;  %v12348_v40 = vpop.eup %9845  ;;  %v1866_v60 = vmul.f32 1.442695, %v1740_v54  ;;  %v1868_v53 = vmul.f32 1.442695, %v1741_v63  ;;  %v1870_v38 = vmul.f32 1.442695, %v1742_v56 }
 0x390   : > { %v1629_v11 = vpop.xlane.xlu1 %1628  ;;  %9865 = vpow2.f32 %v1852_v15  ;;  %18172 = vst [vmem:[#allocation123_spill] sm:$0xff] %v12348_v40  ;;  %v18180_v54 = vld [vmem:[#allocation62_spill] sm:$0xff]  ;;  %v18181_v63 = vld [vmem:[#allocation63_spill] sm:$0xff] }
 0x391   : > { %9867 = vpow2.f32 %v1854_v2  ;;  %v1743_v35 = vsub.f32 %v11996_v29, %v1629_v11  ;;  %v1744_v19 = vsub.f32 %v11999_v25, %v1629_v11  ;;  %v1745_v39 = vsub.f32 %v12003_v28, %v1629_v11 }
 0x392   : > { %9869 = vpow2.f32 %v1856_v13 }
 0x393   : > { %9871 = vpow2.f32 %v1858_v1  ;;  %v12351_v43 = vpop.eup %9847  ;;  %v1872_v5 = vmul.f32 1.442695, %v1743_v35  ;;  %v1874_v27 = vmul.f32 1.442695, %v1744_v19  ;;  %v1876_v45 = vmul.f32 1.442695, %v1745_v39 }
 0x394   : > { %v1633_v10 = vpop.xlane.xlu0 %1632  ;;  %9873 = vpow2.f32 %v1860_v48  ;;  %v12354_v3 = vpop.eup %9849 }
 0x395   : > { %18173 = vst [vmem:[#allocation124_spill] sm:$0xff] %v12354_v3  ;;  %9875 = vpow2.f32 %v1862_v6  ;;  %v1746_v12 = vsub.f32 %v12008_v57, %v1633_v10  ;;  %v12357_v34 = vpop.eup %9851  ;;  %v1747_v37 = vsub.f32 %v12011_v61, %v1633_v10  ;;  %v1748_v16 = vsub.f32 %v12015_v46, %v1633_v10 }
 0x396   : > { %18174 = vst [vmem:[#allocation125_spill] sm:$0xff] %v12357_v34  ;;  %9877 = vpow2.f32 %v1864_v26  ;;  %v12360_v25 = vpop.eup %9853  ;;  %v18183_v26 = vld [vmem:[#allocation64_spill] sm:$0xff] }
 0x397   : > { %9879 = vpow2.f32 %v1866_v60  ;;  %v12363_v28 = vpop.eup %9855  ;;  %v1878_v58 = vmul.f32 1.442695, %v1746_v12  ;;  %v1880_v59 = vmul.f32 1.442695, %v1747_v37  ;;  %v1882_v2 = vmul.f32 1.442695, %v1748_v16 }
 0x398   : > { %v1637_v29 = vpop.xlane.xlu1 %1636  ;;  %18175 = vst [vmem:[#allocation126_spill] sm:$0xff] %v12363_v28  ;;  %9881 = vpow2.f32 %v1868_v53  ;;  %v18185_v53 = vld [vmem:[#allocation65_spill] sm:$0xff]  ;;  %v18188_v16 = vld [vmem:[#allocation67_spill] sm:$0xff] }
 0x399   : > { %2722 = vrot.lane.b32.xlu1 %v11692_v21, %s10949_s17  ;;  %v1749_v31 = vsub.f32 %v12020_v30, %v1637_v29  ;;  %v12366_v36 = vpop.eup %9857  ;;  %9883 = vpow2.f32 %v1870_v38  ;;  %v1750_v15 = vsub.f32 %v12023_v14, %v1637_v29  ;;  %v1751_v33 = vsub.f32 %v12027_v52, %v1637_v29  ;;  %v18186_v29 = vld [vmem:[#allocation66_spill] sm:$0xff] }
 0x39a   : > { %2706 = vrot.lane.b32.xlu0 %v11704_v9, %s10949_s17  ;;  %18176 = vst [vmem:[#allocation127_spill] sm:$0xff] %v12366_v36  ;;  %v12369_v61 = vpop.eup %9859  ;;  %9885 = vpow2.f32 %v1872_v5 }
 0x39b   : > { %18177 = vst [vmem:[#allocation128_spill] sm:$0xff] %v12369_v61  ;;  %v12372_v46 = vpop.eup %9861  ;;  %9887 = vpow2.f32 %v1874_v27  ;;  %v1884_v1 = vmul.f32 1.442695, %v1749_v31  ;;  %v1886_v48 = vmul.f32 1.442695, %v1750_v15  ;;  %v18190_v15 = vld [vmem:[#allocation68_spill] sm:$0xff] }
 0x39c   : > { %v1641_v57 = vpop.xlane.xlu0 %1640  ;;  %18178 = vst [vmem:[#allocation129_spill] sm:$0xff] %v12372_v46  ;;  %v12375_v18 = vpop.eup %9863  ;;  %9889 = vpow2.f32 %v1876_v45  ;;  %v1888_v56 = vmul.f32 1.442695, %v1751_v33 }
 0x39d   : > { %v1752_v13 = vsub.f32 %v18179_v7, %v1641_v57  ;;  %v1753_v11 = vsub.f32 %v18180_v54, %v1641_v57  ;;  %v12378_v14 = vpop.eup %9865  ;;  %9891 = vpow2.f32 %v1878_v58  ;;  %v1754_v6 = vsub.f32 %v18181_v63, %v1641_v57  ;;  %v18191_v7 = vld [vmem:[#allocation69_spill] sm:$0xff]  ;;  %v18193_v54 = vld [vmem:[#allocation70_spill] sm:$0xff] }
 0x39e   : > { %v12381_v52 = vpop.eup %9867  ;;  %9893 = vpow2.f32 %v1880_v59 }
 0x39f   : > { %18182 = vst [vmem:[#allocation61_spill] sm:$0xff] %v12381_v52  ;;  %v12384_v60 = vpop.eup %9869  ;;  %9895 = vpow2.f32 %v1882_v2  ;;  %v1890_v19 = vmul.f32 1.442695, %v1752_v13  ;;  %v1892_v12 = vmul.f32 1.442695, %v1753_v11 }
 0x3a0   : > { %v1645_v30 = vpop.xlane.xlu1 %1644  ;;  %18184 = vst [vmem:[#allocation62_spill] sm:$0xff] %v12384_v60  ;;  %v12387_v38 = vpop.eup %9871  ;;  %9897 = vpow2.f32 %v1884_v1  ;;  %v1894_v27 = vmul.f32 1.442695, %v1754_v6 }
 0x3a1   : > { %v1755_v35 = vsub.f32 %v18183_v26, %v1645_v30  ;;  %v1756_v39 = vsub.f32 %v18185_v53, %v1645_v30  ;;  %v1757_v5 = vsub.f32 %v18186_v29, %v1645_v30  ;;  %v12390_v37 = vpop.eup %9873  ;;  %9899 = vpow2.f32 %v1886_v48  ;;  %v18196_v53 = vld [vmem:[#allocation72_spill] sm:$0xff]  ;;  %v18197_v29 = vld [vmem:[#allocation73_spill] sm:$0xff] }
 0x3a2   : > { %18187 = vst [vmem:[#allocation63_spill] sm:$0xff] %v12390_v37  ;;  %v12393_v57 = vpop.eup %9875  ;;  %9901 = vpow2.f32 %v1888_v56  ;;  %v18195_v56 = vld [vmem:[#allocation71_spill] sm:$0xff] }
 0x3a3   : > { %18189 = vst [vmem:[#allocation64_spill] sm:$0xff] %v12393_v57  ;;  %v1896_v58 = vmul.f32 1.442695, %v1755_v35  ;;  %v12396_v33 = vpop.eup %9877  ;;  %9903 = vpow2.f32 %v1890_v19  ;;  %v1898_v2 = vmul.f32 1.442695, %v1756_v39 }
 0x3a4   : > { %v1649_v10 = vpop.xlane.xlu0 %1648  ;;  %v12399_v30 = vpop.eup %9879  ;;  %9905 = vpow2.f32 %v1892_v12  ;;  %v1900_v1 = vmul.f32 1.442695, %v1757_v5 }
 0x3a5   : > { %v1758_v45 = vsub.f32 %v18188_v16, %v1649_v10  ;;  %v1759_v59 = vsub.f32 %v18190_v15, %v1649_v10  ;;  %v1760_v13 = vsub.f32 %v18191_v7, %v1649_v10  ;;  %18192 = vst [vmem:[#allocation65_spill] sm:$0xff] %v12399_v30  ;;  %v12402_v63 = vpop.eup %9881  ;;  %9907 = vpow2.f32 %v1894_v27 }
 0x3a6   : > { %18194 = vst [vmem:[#allocation66_spill] sm:$0xff] %v12402_v63  ;;  %v12405_v35 = vpop.eup %9883  ;;  %9909 = vpow2.f32 %v1896_v58 }
 0x3a7   : > { %v1902_v6 = vmul.f32 1.442695, %v1758_v45  ;;  %v1904_v19 = vmul.f32 1.442695, %v1759_v59  ;;  %v12408_v10 = vpop.eup %9885  ;;  %9911 = vpow2.f32 %v1898_v2  ;;  %v1906_v12 = vmul.f32 1.442695, %v1760_v13 }
 0x3a8   : > { %v1653_v31 = vpop.xlane.xlu1 %1652  ;;  %v12411_v15 = vpop.eup %9887  ;;  %9913 = vpow2.f32 %v1900_v1  ;;  %v18198_v45 = vld [vmem:[#allocation74_spill] sm:$0xff]  ;;  %v18199_v59 = vld [vmem:[#allocation75_spill] sm:$0xff]  ;;  %v2018_v2 = vadd.f32 %v12357_v34, %v12354_v3  ;;  %v18201_v1 = vld [vmem:[#allocation76_spill] sm:$0xff] }
 0x3a9   : > { %v1761_v11 = vsub.f32 %v18193_v54, %v1653_v31  ;;  %v1762_v26 = vsub.f32 %v18195_v56, %v1653_v31  ;;  %v1763_v39 = vsub.f32 %v18196_v53, %v1653_v31  ;;  %v2014_v54 = vadd.f32 %v12348_v40, %v12345_v62  ;;  %v12416_v58 = vpop.eup %9889  ;;  %v18204_v3 = vld [vmem:[#allocation78_spill] sm:$0xff]  ;;  %v18206_v62 = vld [vmem:[#allocation79_spill] sm:$0xff]  ;;  %v18208_v40 = vld [vmem:[#allocation80_spill] sm:$0xff] }
 0x3aa   : > { %9915 = vpow2.f32 %v1902_v6  ;;  %v12421_v13 = vpop.eup %9891 }
 0x3ab   : > { %v1908_v27 = vmul.f32 1.442695, %v1761_v11  ;;  %v1910_v31 = vmul.f32 1.442695, %v1762_v26  ;;  %18200 = vst [vmem:[#allocation67_spill] sm:$0xff] %v12421_v13  ;;  %9917 = vpow2.f32 %v1904_v19  ;;  %v12426_v9 = vpop.eup %9893  ;;  %v18203_v26 = vld [vmem:[#allocation77_spill] sm:$0xff]  ;;  %v2015_v19 = vadd.f32 %v12351_v43, %v2014_v54 }
 0x3ac   : > { %v1657_v48 = vpop.xlane.xlu0 %1656  ;;  %v1912_v53 = vmul.f32 1.442695, %v1763_v39  ;;  %18202 = vst [vmem:[#allocation68_spill] sm:$0xff] %v12426_v9  ;;  %9919 = vpow2.f32 %v1906_v12  ;;  %v2019_v12 = vadd.f32 %v12360_v25, %v2018_v2  ;;  %v18209_v54 = vld [vmem:[#allocation81_spill] sm:$0xff] }
 0x3ad   : > { %v1764_v5 = vsub.f32 %v18197_v29, %v1657_v48  ;;  %v1765_v7 = vsub.f32 %v18198_v45, %v1657_v48  ;;  %v1766_v56 = vsub.f32 %v18199_v59, %v1657_v48  ;;  %v2022_v45 = vadd.f32 %v12366_v36, %v12363_v28  ;;  %v12429_v48 = vpop.eup %9895 }
 0x3ae   : > { %9921 = vpow2.f32 %v1908_v27  ;;  %v12433_v39 = vpop.eup %9897 }
 0x3af   : > { %v1914_v6 = vmul.f32 1.442695, %v1764_v5  ;;  %v1916_v59 = vmul.f32 1.442695, %v1765_v7  ;;  %18205 = vst [vmem:[#allocation69_spill] sm:$0xff] %v12433_v39  ;;  %9923 = vpow2.f32 %v1910_v31  ;;  %v12437_v5 = vpop.eup %9899 }
 0x3b0   : > { %v1661_v16 = vpop.xlane.xlu1 %1660  ;;  %18207 = vst [vmem:[#allocation70_spill] sm:$0xff] %v12437_v5  ;;  %9925 = vpow2.f32 %v1912_v53  ;;  %v18211_v53 = vld [vmem:[#allocation82_spill] sm:$0xff] }
 0x3b1   : > { %v1767_v11 = vsub.f32 %v18201_v1, %v1661_v16  ;;  %v1768_v21 = vsub.f32 %v18203_v26, %v1661_v16  ;;  %v1769_v34 = vsub.f32 %v18204_v3, %v1661_v16  ;;  %v1918_v1 = vmul.f32 1.442695, %v1766_v56  ;;  %v12441_v16 = vpop.eup %9901 }
 0x3b2   : > { %v2023_v3 = vadd.f32 %v12369_v61, %v2022_v45  ;;  %9927 = vpow2.f32 %v1914_v6  ;;  %v12446_v56 = vpop.eup %9903  ;;  %v18213_v6 = vld [vmem:[#allocation83_spill] sm:$0xff] }
 0x3b3   : > { %v1920_v26 = vmul.f32 1.442695, %v1767_v11  ;;  %v1922_v7 = vmul.f32 1.442695, %v1768_v21  ;;  %18210 = vst [vmem:[#allocation71_spill] sm:$0xff] %v12446_v56  ;;  %9929 = vpow2.f32 %v1916_v59 }
 0x3b4   : > { %v1665_v29 = vpop.xlane.xlu0 %1664  ;;  %v1924_v2 = vmul.f32 1.442695, %v1769_v34  ;;  %9931 = vpow2.f32 %v1918_v1  ;;  %v18214_v34 = vld [vmem:[#allocation84_spill] sm:$0xff]  ;;  %v18216_v1 = vld [vmem:[#allocation85_spill] sm:$0xff] }
 0x3b5   : > { %v1770_v28 = vsub.f32 %v18206_v62, %v1665_v29  ;;  %v1771_v27 = vsub.f32 %v18208_v40, %v1665_v29  ;;  %v1772_v31 = vsub.f32 %v18209_v54, %v1665_v29  ;;  %v2026_v62 = vadd.f32 %v12375_v18, %v12372_v46 }
 0x3b6   : > { %v2030_v40 = vadd.f32 %v12384_v60, %v12381_v52  ;;  %v2034_v29 = vadd.f32 %v12393_v57, %v12390_v37  ;;  %9933 = vpow2.f32 %v1920_v26 }
 0x3b7   : > { %v1926_v45 = vmul.f32 1.442695, %v1770_v28  ;;  %v1928_v59 = vmul.f32 1.442695, %v1771_v27  ;;  %9935 = vpow2.f32 %v1922_v7  ;;  %v1930_v28 = vmul.f32 1.442695, %v1772_v31 }
 0x3b8   : > { %v1669_v36 = vpop.xlane.xlu1 %1668  ;;  %v2027_v60 = vadd.f32 %v12378_v14, %v2026_v62  ;;  %v18218_v27 = vld [vmem:[#allocation86_spill] sm:$0xff]  ;;  %v2035_v31 = vadd.f32 %v12396_v33, %v2034_v29 }
 0x3b9   : > { %2016 = vadd.xlane.f32.xlu0 %v2015_v19  ;;  %v1773_v11 = vsub.f32 %v18211_v53, %v1669_v36  ;;  %v12451_v19 = vpop.eup %9905  ;;  %v1774_v21 = vsub.f32 %v18213_v6, %v1669_v36  ;;  %v1775_v46 = vsub.f32 %v18214_v34, %v1669_v36  ;;  %v2038_v53 = vadd.f32 %v12402_v63, %v12399_v30  ;;  %v18219_v34 = vld [vmem:[#allocation87_spill] sm:$0xff] }
 0x3ba   : > { %18212 = vst [vmem:[#allocation72_spill] sm:$0xff] %v12451_v19  ;;  %v12456_v54 = vpop.eup %9907  ;;  %9937 = vpow2.f32 %v1924_v2  ;;  %v2031_v36 = vadd.f32 %v12387_v38, %v2030_v40  ;;  %v18221_v2 = vld [vmem:[#allocation88_spill] sm:$0xff] }
 0x3bb   : > { %v12461_v52 = vpop.eup %9909  ;;  %v1932_v26 = vmul.f32 1.442695, %v1773_v11  ;;  %9939 = vpow2.f32 %v1926_v45  ;;  %v1936_v62 = vmul.f32 1.442695, %v1775_v46  ;;  %v18224_v46 = vld [vmem:[#allocation90_spill] sm:$0xff] }
 0x3bc   : > { %v1673_v61 = vpop.xlane.xlu0 %1672  ;;  %18215 = vst [vmem:[#allocation73_spill] sm:$0xff] %v12461_v52  ;;  %v12465_v37 = vpop.eup %9911  ;;  %9941 = vpow2.f32 %v1928_v59 }
 0x3bd   : > { %2020 = vadd.xlane.f32.xlu1 %v2019_v12  ;;  %2024 = vadd.xlane.f32.xlu0 %v2023_v3  ;;  %v1776_v6 = vsub.f32 %v18216_v1, %v1673_v61  ;;  %18217 = vst [vmem:[#allocation74_spill] sm:$0xff] %v12465_v37  ;;  %v1777_v57 = vsub.f32 %v18218_v27, %v1673_v61  ;;  %v12469_v12 = vpop.eup %9913  ;;  %v1934_v3 = vmul.f32 1.442695, %v1774_v21  ;;  %9943 = vpow2.f32 %v1930_v28  ;;  %v18223_v21 = vld [vmem:[#allocation89_spill] sm:$0xff] }
 0x3be   : > { %v1778_v30 = vsub.f32 %v18219_v34, %v1673_v61  ;;  %v12473_v1 = vpop.eup %9915  ;;  %v2039_v27 = vadd.f32 %v12405_v35, %v2038_v53  ;;  %v2042_v61 = vadd.f32 %v12411_v15, %v12408_v10  ;;  %9945 = vpow2.f32 %v1932_v26 }
 0x3bf   : > { %18220 = vst [vmem:[#allocation75_spill] sm:$0xff] %v12473_v1  ;;  %v12477_v40 = vpop.eup %9917  ;;  %v1938_v45 = vmul.f32 1.442695, %v1776_v6  ;;  %v1940_v59 = vmul.f32 1.442695, %v1777_v57  ;;  %9947 = vpow2.f32 %v1934_v3  ;;  %v2050_v6 = vadd.f32 %v12437_v5, %v12433_v39  ;;  %v18226_v57 = vld [vmem:[#allocation91_spill] sm:$0xff] }
 0x3c0   : > { %v1677_v7 = vpop.xlane.xlu1 %1676  ;;  %18222 = vst [vmem:[#allocation76_spill] sm:$0xff] %v12477_v40  ;;  %v12482_v29 = vpop.eup %9919  ;;  %v1942_v53 = vmul.f32 1.442695, %v1778_v30  ;;  %9949 = vpow2.f32 %v1936_v62  ;;  %v2054_v30 = vadd.f32 %v12451_v19, %v12446_v56  ;;  %v18231_v56 = vld [vmem:[#allocation95_spill] sm:$0xff]  ;;  %v18232_v19 = vld [vmem:[#allocation96_spill] sm:$0xff] }
 0x3c1   : > { %2028 = vadd.xlane.f32.xlu1 %v2027_v60  ;;  %v1779_v11 = vsub.f32 %v18221_v2, %v1677_v7  ;;  %2032 = vadd.xlane.f32.xlu0 %v2031_v36  ;;  %v1780_v63 = vsub.f32 %v18223_v21, %v1677_v7  ;;  %v1781_v60 = vsub.f32 %v18224_v46, %v1677_v7  ;;  %v12487_v34 = vpop.eup %9921  ;;  %9951 = vpow2.f32 %v1938_v45 }
 0x3c2   : > { %v2046_v36 = vadd.f32 %v12426_v9, %v12421_v13  ;;  %18225 = vst [vmem:[#allocation77_spill] sm:$0xff] %v12487_v34  ;;  %v12491_v2 = vpop.eup %9923  ;;  %v2043_v13 = vadd.f32 %v12416_v58, %v2042_v61  ;;  %9953 = vpow2.f32 %v1940_v59  ;;  %v18228_v9 = vld [vmem:[#allocation92_spill] sm:$0xff]  ;;  %v2058_v45 = vadd.f32 %v12465_v37, %v12461_v52  ;;  %v18230_v59 = vld [vmem:[#allocation94_spill] sm:$0xff] }
 0x3c3   : > { %v1944_v21 = vmul.f32 1.442695, %v1779_v11  ;;  %v12494_v7 = vpop.eup %9925  ;;  %v1946_v46 = vmul.f32 1.442695, %v1780_v63  ;;  %v1948_v39 = vmul.f32 1.442695, %v1781_v60  ;;  %9955 = vpow2.f32 %v1942_v53 }
 0x3c4   : > { %v1681_v28 = vpop.xlane.xlu0 %1680  ;;  %v12499_v3 = vpop.eup %9927  ;;  %v2051_v63 = vadd.f32 %v12441_v16, %v2050_v6  ;;  %v18234_v53 = vld [vmem:[#allocation93_spill] sm:$0xff]  ;;  %v2055_v6 = vadd.f32 %v12456_v54, %v2054_v30  ;;  %v2062_v52 = vadd.f32 %v12477_v40, %v12473_v1 }
 0x3c5   : > { %2036 = vadd.xlane.f32.xlu1 %v2035_v31  ;;  %2040 = vadd.xlane.f32.xlu0 %v2039_v27  ;;  %v1782_v26 = vsub.f32 %v18226_v57, %v1681_v28  ;;  %18227 = vst [vmem:[#allocation78_spill] sm:$0xff] %v12499_v3  ;;  %v1783_v62 = vsub.f32 %v18228_v9, %v1681_v28  ;;  %v12503_v11 = vpop.eup %9929  ;;  %9957 = vpow2.f32 %v1944_v21 }
 0x3c6   : > { %v2047_v31 = vadd.f32 %v12429_v48, %v2046_v36  ;;  %18229 = vst [vmem:[#allocation79_spill] sm:$0xff] %v12503_v11  ;;  %v12508_v61 = vpop.eup %9931  ;;  %9959 = vpow2.f32 %v1946_v46  ;;  %v2059_v46 = vadd.f32 %v12469_v12, %v2058_v45  ;;  %v2070_v45 = vadd.f32 %v12503_v11, %v12499_v3 }
 0x3c7   : > { %v1950_v27 = vmul.f32 1.442695, %v1782_v26  ;;  %v12513_v5 = vpop.eup %9933  ;;  %v1784_v26 = vsub.f32 %v18234_v53, %v1681_v28  ;;  %9961 = vpow2.f32 %v1948_v39  ;;  %v18236_v28 = vld [vmem:[#allocation98_spill] sm:$0xff]  ;;  %v18237_v53 = vld [vmem:[#allocation99_spill] sm:$0xff]  ;;  %v18238_v39 = vld [vmem:[#allocation100_spill] sm:$0xff] }
 0x3c8   : > { %v1685_v57 = vpop.xlane.xlu1 %1684  ;;  %18233 = vst [vmem:[#allocation80_spill] sm:$0xff] %v12513_v5  ;;  %v12519_v37 = vpop.eup %9935 }
 0x3c9   : > { %2044 = vadd.xlane.f32.xlu1 %v2043_v13  ;;  %v1785_v60 = vsub.f32 %v18230_v59, %v1685_v57  ;;  %v1786_v9 = vsub.f32 %v18231_v56, %v1685_v57  ;;  %v1787_v36 = vsub.f32 %v18232_v19, %v1685_v57  ;;  %2048 = vadd.xlane.f32.xlu0 %v2047_v31  ;;  %v1952_v13 = vmul.f32 1.442695, %v1783_v62  ;;  %v12521_v56 = vpop.eup %9937 }
 0x3ca   : > { %9963 = vpow2.f32 %v1950_v27  ;;  %v12524_v57 = vpop.eup %9939  ;;  %v2063_v27 = vadd.f32 %v12482_v29, %v2062_v52  ;;  %v18242_v52 = vld [vmem:[#allocation101_spill] sm:$0xff] }
 0x3cb   : > { %v1956_v21 = vmul.f32 1.442695, %v1785_v60  ;;  %v1958_v59 = vmul.f32 1.442695, %v1786_v9  ;;  %v1960_v19 = vmul.f32 1.442695, %v1787_v36  ;;  %v12529_v60 = vpop.eup %9941  ;;  %v2066_v9 = vadd.f32 %v12491_v2, %v12487_v34 }
 0x3cc   : > { %v1689_v31 = vpop.xlane.xlu0 %1688  ;;  %18235 = vst [vmem:[#allocation81_spill] sm:$0xff] %v12524_v57  ;;  %18239 = vst [vmem:[#allocation82_spill] sm:$0xff] %v12529_v60  ;;  %v12536_v36 = vpop.eup %9943  ;;  %v18243_v34 = vld [vmem:[#allocation102_spill] sm:$0xff] }
 0x3cd   : > { %9965 = vpow2.f32 %v1956_v21  ;;  %2052 = vadd.xlane.f32.xlu1 %v2051_v63  ;;  %2056 = vadd.xlane.f32.xlu0 %v2055_v6  ;;  %v1788_v30 = vsub.f32 %v18236_v28, %v1689_v31  ;;  %v1789_v1 = vsub.f32 %v18237_v53, %v1689_v31  ;;  %v1790_v62 = vsub.f32 %v18238_v39, %v1689_v31  ;;  %v12538_v28 = vpop.eup %9945 }
 0x3ce   : > { %9967 = vpow2.f32 %v1958_v59  ;;  %v1954_v63 = vmul.f32 1.442695, %v1784_v26  ;;  %18240 = vst [vmem:[#allocation83_spill] sm:$0xff] %v12538_v28  ;;  %v12540_v59 = vpop.eup %9947  ;;  %v2071_v26 = vadd.f32 %v12508_v61, %v2070_v45 }
 0x3cf   : > { %9969 = vpow2.f32 %v1952_v13  ;;  %v1962_v6 = vmul.f32 1.442695, %v1788_v30  ;;  %v1964_v21 = vmul.f32 1.442695, %v1789_v1  ;;  %v1966_v31 = vmul.f32 1.442695, %v1790_v62  ;;  %v12545_v13 = vpop.eup %9949 }
 0x3d0   : > { %9971 = vpow2.f32 %v1960_v19  ;;  %v1693_v53 = vpop.xlane.xlu1 %1692  ;;  %18241 = vst [vmem:[#allocation84_spill] sm:$0xff] %v12540_v59  ;;  %v2067_v1 = vadd.f32 %v12494_v7, %v2066_v9  ;;  %v2074_v19 = vadd.f32 %v12519_v37, %v12513_v5  ;;  %v12551_v30 = vpop.eup %9951  ;;  %v18260_v5 = vld [vmem:[#allocation106_spill] sm:$0xff] }
 0x3d1   : > { %9973 = vpow2.f32 %v1962_v6  ;;  %2060 = vadd.xlane.f32.xlu1 %v2059_v46  ;;  %v1791_v39 = vsub.f32 %v18242_v52, %v1693_v53  ;;  %v1792_v40 = vsub.f32 %v18243_v34, %v1693_v53  ;;  %v1793_v3 = vsub.f32 %v12199_v8, %v1693_v53  ;;  %2064 = vadd.xlane.f32.xlu0 %v2063_v27  ;;  %v12555_v8 = vpop.eup %9953 }
 0x3d2   : > { %9975 = vpow2.f32 %v1964_v21  ;;  %18244 = vst [vmem:[#allocation85_spill] sm:$0xff] %v12551_v30  ;;  %v2078_v34 = vadd.f32 %v12529_v60, %v12524_v57  ;;  %18245 = vst [vmem:[#allocation86_spill] sm:$0xff] %v12555_v8  ;;  %v12557_v6 = vpop.eup %9955  ;;  %v2082_v21 = vadd.f32 %v12540_v59, %v12538_v28  ;;  %v18259_v57 = vld [vmem:[#allocation105_spill] sm:$0xff] }
 0x3d3   : > { %9977 = vpow2.f32 %v1954_v63  ;;  %v1968_v46 = vmul.f32 1.442695, %v1791_v39  ;;  %v1970_v62 = vmul.f32 1.442695, %v1792_v40  ;;  %v1972_v27 = vmul.f32 1.442695, %v1793_v3  ;;  %v12559_v9 = vpop.eup %9957 }
 0x3d4   : > { %9979 = vpow2.f32 %v1966_v31  ;;  %18246 = vst [vmem:[#allocation87_spill] sm:$0xff] %v12559_v9  ;;  %v12561_v45 = vpop.eup %9959  ;;  %v2075_v63 = vadd.f32 %v12521_v56, %v2074_v19  ;;  %v2079_v40 = vadd.f32 %v12536_v36, %v2078_v34  ;;  %v2086_v3 = vadd.f32 %v12555_v8, %v12551_v30  ;;  %v18257_v8 = vld [vmem:[#allocation107_spill] sm:$0xff] }
 0x3d5   : > { %9981 = vpow2.f32 %v1968_v46  ;;  %2068 = vadd.xlane.f32.xlu1 %v2067_v1  ;;  %2072 = vadd.xlane.f32.xlu0 %v2071_v26  ;;  %18247 = vst [vmem:[#allocation88_spill] sm:$0xff] %v12561_v45  ;;  %v12569_v31 = vpop.eup %9961  ;;  %v2083_v1 = vadd.f32 %v12545_v13, %v2082_v21  ;;  %v2090_v19 = vadd.f32 %v12561_v45, %v12559_v9 }
 0x3d6   : > { %9983 = vpow2.f32 %v1970_v62  ;;  %v2087_v26 = vadd.f32 %v12557_v6, %v2086_v3 }
 0x3d7   : > { %9985 = vpow2.f32 %v1972_v27  ;;  %v12571_v53 = vpop.eup %9963  ;;  %v2091_v21 = vadd.f32 %v12569_v31, %v2090_v19 }
 0x3d8   : > { %18248 = vst [vmem:[#allocation89_spill] sm:$0xff] %v12571_v53 }
 0x3d9   : > { %2076 = vadd.xlane.f32.xlu1 %v2075_v63  ;;  %2080 = vadd.xlane.f32.xlu0 %v2079_v40 }
 0x3da   : > { %v12573_v52 = vpop.eup %9965 }
 0x3db   : > { %18249 = vst [vmem:[#allocation90_spill] sm:$0xff] %v12573_v52  ;;  %v12575_v39 = vpop.eup %9967 }
 0x3dc   : > { %18250 = vst [vmem:[#allocation91_spill] sm:$0xff] %v12575_v39  ;;  %v12581_v46 = vpop.eup %9969  ;;  %v2098_v62 = vadd.f32 %v12575_v39, %v12573_v52 }
 0x3dd   : > { %18251 = vst [vmem:[#allocation92_spill] sm:$0xff] %v12581_v46  ;;  %v12585_v34 = vpop.eup %9971  ;;  %2084 = vadd.xlane.f32.xlu1 %v2083_v1  ;;  %2088 = vadd.xlane.f32.xlu0 %v2087_v26  ;;  %v2094_v3 = vadd.f32 %v12581_v46, %v12571_v53 }
 0x3de   : > { %v12587_v27 = vpop.eup %9973  ;;  %v2099_v63 = vadd.f32 %v12585_v34, %v2098_v62 }
 0x3df   : > { %18252 = vst [vmem:[#allocation94_spill] sm:$0xff] %v12587_v27  ;;  %v12590_v40 = vpop.eup %9975 }
 0x3e0   : > { %18253 = vst [vmem:[#allocation95_spill] sm:$0xff] %v12590_v40  ;;  %v12595_v30 = vpop.eup %9977  ;;  %v2102_v52 = vadd.f32 %v12590_v40, %v12587_v27 }
 0x3e1   : > { %v12599_v39 = vpop.eup %9979  ;;  %2092 = vadd.xlane.f32.xlu1 %v2091_v21  ;;  %2100 = vadd.xlane.f32.xlu0 %v2099_v63  ;;  %v2095_v19 = vadd.f32 %v12595_v30, %v2094_v3  ;;  %v1701_v21 = vpop.xlane.xlu1 %1700 }
 0x3e2   : > { %v12601_v1 = vpop.eup %9981  ;;  %v2103_v26 = vadd.f32 %v12599_v39, %v2102_v52  ;;  %v1697_v63 = vpop.xlane.xlu0 %1696  ;;  %v1797_v40 = vsub.f32 %v12216_v17, %v1701_v21  ;;  %v18256_v52 = vld [vmem:[#allocation49_spill] sm:$0xff]  ;;  %v1798_v3 = vsub.f32 %v18257_v8, %v1701_v21 }
 0x3e3   : > { %18254 = vst [vmem:[#allocation96_spill] sm:$0xff] %v12601_v1  ;;  %v12604_v62 = vpop.eup %9983  ;;  %v1795_v45 = vsub.f32 %v18259_v57, %v1697_v63  ;;  %v1796_v11 = vsub.f32 %v18260_v5, %v1697_v63  ;;  %v18262_v57 = vld [vmem:[#allocation112_spill] sm:$0xff] }
 0x3e4   : > { %18255 = vst [vmem:[#allocation93_spill] sm:$0xff] %v12604_v62  ;;  %v2106_v53 = vadd.f32 %v12604_v62, %v12601_v1  ;;  %v12609_v46 = vpop.eup %9985  ;;  %v10843_v1 = vld [vmem:[%s17461_s2 + $0x10] ss:$8 sps:$4 sm:$0xff]   ;;  %v1982_v17 = vmul.f32 1.442695, %v1798_v3 }
 0x3e5   : > { %2096 = vadd.xlane.f32.xlu1 %v2095_v19  ;;  %2104 = vadd.xlane.f32.xlu0 %v2103_v26  ;;  %v1709_v9 = vpop.xlane.xlu1 %1708  ;;  %v18258_v26 = vld [vmem:[#allocation104_spill] sm:$0xff] }
 0x3e6   : > { %v2107_v27 = vadd.f32 %v12609_v46, %v2106_v53  ;;  %v1794_v19 = vsub.f32 %v18258_v26, %v1697_v63  ;;  %v1803_v53 = vsub.f32 %v12244_v44, %v1709_v9  ;;  %v1804_v62 = vsub.f32 %v12247_v49, %v1709_v9  ;;  %v1705_v8 = vpop.xlane.xlu0 %1704  ;;  %v18261_v26 = vld [vmem:[#allocation109_spill] sm:$0xff] }
 0x3e7   : > { %v1800_v44 = vsub.f32 %v12230_v4, %v1705_v8  ;;  %v1801_v49 = vsub.f32 %v18261_v26, %v1705_v8 }
 0x3e8   : > { %v1974_v28 = vmul.f32 1.442695, %v1794_v19  ;;  %v1992_v60 = vmul.f32 1.442695, %v1803_v53  ;;  %v1994_v59 = vmul.f32 1.442695, %v1804_v62  ;;  %v1805_v19 = vsub.f32 %v18262_v57, %v1709_v9 }
 0x3e9   : > { %2108 = vadd.xlane.f32.xlu1 %v2107_v27  ;;  %v1980_v27 = vmul.f32 1.442695, %v1797_v40  ;;  %v1988_v62 = vmul.f32 1.442695, %v1801_v49 }
 0x3ea   : > { %v1996_v63 = vmul.f32 1.442695, %v1805_v19 }
 0x3eb   : > { %9987 = vpow2.f32 %v1980_v27 }
 0x3ec   : > { %9989 = vpow2.f32 %v1982_v17 }
 0x3ed   : > { %9991 = vpow2.f32 %v1974_v28  ;;  %v18263_v28 = vld [vmem:[#allocation110_spill] sm:$0xff] }
 0x3ee   : > { %9993 = vpow2.f32 %v1992_v60  ;;  %v1802_v4 = vsub.f32 %v18263_v28, %v1705_v8 }
 0x3ef   : > { %9995 = vpow2.f32 %v1994_v59 }
 0x3f0   : > { %v1990_v9 = vmul.f32 1.442695, %v1802_v4 }
 0x3f8   : > { %v12630_v60 = vpop.eup %9987 }
 0x3fa   : > { %2704 = vrot.lane.b32.xlu1 %v18256_v52, %s10949_s17  ;;  %v1799_v52 = vsub.f32 %v12225_v51, %v1701_v21  ;;  %v1978_v51 = vmul.f32 1.442695, %v1796_v11  ;;  %v1986_v21 = vmul.f32 1.442695, %v1800_v44  ;;  %v12632_v11 = vpop.eup %9989 }
 0x3fb   : > { %2738 = vrot.lane.b32.xlu0 %v10843_v1, %s10949_s17  ;;  %v1976_v1 = vmul.f32 1.442695, %v1795_v45  ;;  %v12634_v59 = vpop.eup %9991  ;;  %v2114_v17 = vadd.f32 %v12632_v11, %v12630_v60 }
 0x3fc   : > { %v1984_v40 = vmul.f32 1.442695, %v1799_v52  ;;  %v12636_v53 = vpop.eup %9993 }
 0x3fd   : > { %v12638_v27 = vpop.eup %9995 }
 0x3fe   : > { %v2122_v57 = vadd.f32 %v12638_v27, %v12636_v53 }
 0x405   : > { %v2001_v3 = vpop.xlane.xlu0 %2000 }
 0x406   : > { %9997 = vrcp.f32 %v2001_v3 }
 0x407   : > { %9999 = vpow2.f32 %v1976_v1 }
 0x408   : > { %10001 = vpow2.f32 %v1984_v40 }
 0x409   : > { %v2005_v5 = vpop.xlane.xlu1 %2004 }
 0x40a   : > { %10003 = vrcp.f32 %v2005_v5 }
 0x40b   : > { %10005 = vpow2.f32 %v1978_v51 }
 0x40c   : > { %10007 = vpow2.f32 %v1986_v21 }
 0x40d   : > { %10009 = vpow2.f32 %v1988_v62  ;;  %v2009_v45 = vpop.xlane.xlu0 %2008 }
 0x40e   : > { %10011 = vpow2.f32 %v1996_v63 }
 0x40f   : > { %10013 = vrcp.f32 %v2009_v45 }
 0x411   : > { %v2013_v52 = vpop.xlane.xlu1 %2012 }
 0x412   : > { %10015 = vrcp.f32 %v2013_v52 }
 0x413   : > { %10017 = vpow2.f32 %v1990_v9  ;;  %v9998_v8 = vpop.eup %9997 }
 0x414   : > { %v12642_v1 = vpop.eup %9999  ;;  %v2159_v49 = vmul.f32 %v9998_v8, %v12286_v22  ;;  %v2160_v3 = vmul.f32 %v9998_v8, %v12290_v24  ;;  %v2158_v62 = vmul.f32 %v9998_v8, %v12284_v42 }
 0x415   : > { %v12644_v44 = vpop.eup %10001  ;;  %v2110_v22 = vadd.f32 %v12642_v1, %v12634_v59 }
 0x416   : > { %v2115_v26 = vadd.f32 %v12644_v44, %v2114_v17 }
 0x417   : > { %v10004_v40 = vpop.eup %10003 }
 0x418   : > { %v12651_v19 = vpop.eup %10005  ;;  %v2162_v51 = vmul.f32 %v10004_v40, %v12295_v55  ;;  %v2163_v21 = vmul.f32 %v10004_v40, %v12299_v41  ;;  %v2161_v5 = vmul.f32 %v10004_v40, %v12292_v23  ;;  %v18264_v23 = vld [vmem:[#allocation54_spill] sm:$0xff]  ;;  %v18265_v40 = vld [vmem:[#allocation55_spill] sm:$0xff] }
 0x419   : > { %v12657_v63 = vpop.eup %10007  ;;  %v2870_v41 = vsel %vm1107_vm2, %v18264_v23, 0  ;;  %v2111_v52 = vadd.f32 %v12651_v19, %v2110_v22 }
 0x41a   : > { %v12661_v28 = vpop.eup %10009  ;;  %2116 = vadd.xlane.f32.xlu0 %v2115_v26  ;;  %v2255_v24 = vpack.c.bf16 %v2162_v51, %v2159_v49  ;;  %v2256_v4 = vpack.c.bf16 %v2163_v21, %v2160_v3  ;;  %v2254_v45 = vpack.c.bf16 %v2161_v5, %v2158_v62  ;;  %v18266_v62 = vld [vmem:[#allocation121_spill] sm:$0xff] }
 0x41b   : > { %v12663_v9 = vpop.eup %10011  ;;  %v2118_v17 = vadd.f32 %v12661_v28, %v12657_v63 }
 0x41c   : > { %v10014_v55 = vpop.eup %10013  ;;  %2334 = vmatprep.mubr.bf16.mxu0 %v2255_v24  ;;  %9297 = vmatprep.mubr.bf16.mxu1 %v2256_v4  ;;  %v2123_v42 = vadd.f32 %v12663_v9, %v2122_v57 }
 0x41d   : > { %2335 = vmatmul.mubr.bf16.vlgmr.msra.gmra.mxu0 %v2254_v45  ;;  %v2165_v26 = vmul.f32 %v10014_v55, %v12304_v0  ;;  %v2166_v49 = vmul.f32 %v10014_v55, %v12308_v32  ;;  %v2164_v21 = vmul.f32 %v10014_v55, %v12301_v47  ;;  %v2867_v32 = vsel %vm1107_vm2, %v18265_v40, 0  ;;  %v18269_v47 = vld [vmem:[#allocation97_spill] sm:$0xff] }
 0x41e   : > { %9330 = vmatpush3.bf16.xpose.msra.mxu0 %v2870_v41  ;;  %2124 = vadd.xlane.f32.xlu0 %v2123_v42  ;;  %v18267_v42 = vld [vmem:[#allocation117_spill] sm:$0xff]  ;;  %v2864_v23 = vsel %vm1107_vm2, %v18269_v47, 0 }
 0x41f   : > { %v10016_v8 = vpop.eup %10015  ;;  %2112 = vadd.xlane.f32.xlu1 %v2111_v52  ;;  %9645 = vmatprep.subr.msk.bf16.mxu0 %vm1107_vm2, %v18265_v40  ;;  %v2822_v0 = vsel %vm1107_vm2, %v18267_v42, 0  ;;  %v18271_v41 = vld [vmem:[#allocation57_spill] sm:$0xff]  ;;  %v18272_v52 = vld [vmem:[#allocation103_spill] sm:$0xff]  ;;  %v2707_v42 = vpop.permute.xlu0 %2706 }
 0x420   : > { %v12675_v3 = vpop.eup %10017  ;;  %v2168_v57 = vmul.f32 %v10016_v8, %v12313_v20  ;;  %v2169_v51 = vmul.f32 %v10016_v8, %v12317_v50  ;;  %v2167_v5 = vmul.f32 %v10016_v8, %v18266_v62  ;;  %v18268_v20 = vld [vmem:[#allocation58_spill] sm:$0xff]  ;;  %v18270_v50 = vld [vmem:[#allocation115_spill] sm:$0xff] }
 0x421   : > { %v2119_v22 = vadd.f32 %v12675_v3, %v2118_v17  ;;  %v2819_v55 = vsel %vm1107_vm2, %v18270_v50, 0  ;;  %v18273_v17 = vld [vmem:[#allocation113_spill] sm:$0xff]  ;;  %v10844_v40 = vld [vmem:[%s17461_s2] ss:$8 sps:$4 sm:$0xff]   ;;  %v18278_v62 = vld [vmem:[#allocation6_spill] sm:$0xff]  ;;  %v2723_v50 = vpop.permute.xlu1 %2722 }
 0x422   : > { %v2258_v24 = vpack.c.bf16 %v2168_v57, %v2165_v26  ;;  %v2259_v4 = vpack.c.bf16 %v2169_v51, %v2166_v49  ;;  %v2257_v45 = vpack.c.bf16 %v2167_v5, %v2164_v21  ;;  %v2816_v8 = vsel %vm1107_vm2, %v18273_v17, 0  ;;  %v18274_v26 = vld [vmem:[#allocation47_spill] sm:$0xff]  ;;  %v18275_v57 = vld [vmem:[#allocation120_spill] sm:$0xff]  ;;  %v18288_v17 = vld [vmem:[#allocation18_spill] sm:$0xff] }
 0x423   : > { %2120 = vadd.xlane.f32.xlu1 %v2119_v22  ;;  %v2861_v49 = vsel %vm1107_vm2, %v18272_v52, 0  ;;  %v18276_v51 = vld [vmem:[#allocation108_spill] sm:$0xff]  ;;  %v18277_v21 = vld [vmem:[#allocation7_spill] sm:$0xff] }
 0x424   : > { %2342 = vmatprep.mubr.bf16.mxu0 %v2258_v24  ;;  %9298 = vmatmul.mubr.bf16.vlgmr.msra.gmra.mxu1 %v2259_v4  ;;  %v18279_v5 = vld [vmem:[#allocation111_spill] sm:$0xff]  ;;  %v18280_v24 = vld [vmem:[#allocation9_spill] sm:$0xff]  ;;  %v18281_v4 = vld [vmem:[#allocation8_spill] sm:$0xff] }
 0x425   : > { %8558 = vmatpush3.bf16.xpose.msra.mxu1 %v2822_v0  ;;  %2343 = vmatmul.mubr.bf16.gmra.mxu0 %v2257_v45  ;;  %v2813_v22 = vsel %vm1107_vm2, %v18279_v5, 0  ;;  %v2858_v45 = vsel %vm1107_vm2, %v18276_v51, 0  ;;  %v18282_v0 = vld [vmem:[#allocation119_spill] sm:$0xff]  ;;  %v18291_v5 = vld [vmem:[#allocation26_spill] sm:$0xff] }
 0x426   : > { %9637 = vmatprep.subr.msk.bf16.mxu1 %vm1107_vm2, %v18268_v20  ;;  %9332 = vmatpush3.bf16.xpose.msra.mxu0 %v2867_v32  ;;  %v18283_v32 = vld [vmem:[#allocation56_spill] sm:$0xff]  ;;  %v18284_v20 = vld [vmem:[#allocation15_spill] sm:$0xff] }
 0x427   : > { %9646 = vmatprep.subr.msk.bf16.mxu0 %vm1107_vm2, %v18269_v47  ;;  %v18285_v47 = vld [vmem:[#allocation12_spill] sm:$0xff] }
 0x42d   : > { %8560 = vmatpush3.bf16.xpose.msra.mxu1 %v2819_v55 }
 0x42e   : > { %9638 = vmatprep.subr.msk.bf16.mxu1 %vm1107_vm2, %v18271_v41  ;;  %9334 = vmatpush3.bf16.xpose.msra.mxu0 %v2864_v23  ;;  %v18286_v23 = vld [vmem:[#allocation116_spill] sm:$0xff] }
 0x42f   : > { %9647 = vmatprep.subr.msk.bf16.mxu0 %vm1107_vm2, %v18272_v52  ;;  %v2810_v41 = vsel %vm1107_vm2, %v18286_v23, 0  ;;  %v18287_v52 = vld [vmem:[#allocation23_spill] sm:$0xff]  ;;  %v18294_v23 = vld [vmem:[#allocation28_spill] sm:$0xff] }
 0x434   : > { %2736 = vrot.lane.b32.xlu1 %v10844_v40, %s10949_s17  ;;  %2720 = vrot.lane.b32.xlu0 %v18274_v26, %s10949_s17  ;;  %v18289_v40 = vld [vmem:[#allocation118_spill] sm:$0xff] }
 0x435   : > { %8562 = vmatpush3.bf16.xpose.msra.mxu1 %v2816_v8  ;;  %v2855_v8 = vsel %vm1107_vm2, %v18283_v32, 0 }
 0x436   : > { %9639 = vmatprep.subr.msk.bf16.mxu1 %vm1107_vm2, %v18275_v57  ;;  %9336 = vmatpush3.bf16.xpose.msra.mxu0 %v2861_v49 }
 0x437   : > { %9648 = vmatprep.subr.msk.bf16.mxu0 %vm1107_vm2, %v18276_v51  ;;  %v18290_v51 = vld [vmem:[#allocation27_spill] sm:$0xff] }
 0x438   : > { %2658 = vrot.lane.b32.xlu1 %v18277_v21, %s10949_s17  ;;  %2656 = vrot.lane.b32.xlu0 %v18278_v62, %s10949_s17 }
 0x43c   : > { %2662 = vrot.lane.b32.xlu1 %v18280_v24, %s10949_s17  ;;  %2660 = vrot.lane.b32.xlu0 %v18281_v4, %s10949_s17 }
 0x43d   : > { %8564 = vmatpush3.bf16.xpose.msra.mxu1 %v2813_v22 }
 0x43e   : > { %9640 = vmatprep.subr.msk.bf16.mxu1 %vm1107_vm2, %v18282_v0  ;;  %9338 = vmatpush3.bf16.xpose.msra.mxu0 %v2858_v45  ;;  %v18292_v0 = vld [vmem:[#allocation114_spill] sm:$0xff] }
 0x43f   : > { %9649 = vmatprep.subr.msk.bf16.mxu0 %vm1107_vm2, %v18283_v32  ;;  %v2807_v32 = vsel %vm1107_vm2, %v18292_v0, 0 }
 0x440   : > { %2666 = vrot.lane.b32.xlu1 %v18284_v20, %s10949_s17  ;;  %2664 = vrot.lane.b32.xlu0 %v18285_v47, %s10949_s17 }
 0x442   : > { %v2017_v55 = vpop.xlane.xlu0 %2016 }
 0x443   : > { %10019 = vrcp.f32 %v2017_v55  ;;  %v18293_v55 = vld [vmem:[#allocation30_spill] sm:$0xff] }
 0x444   : > { %2670 = vrot.lane.b32.xlu1 %v18287_v52, %s10949_s17  ;;  %2668 = vrot.lane.b32.xlu0 %v18288_v17, %s10949_s17  ;;  %v18300_v17 = vld [vmem:[#allocation122_spill] sm:$0xff] }
 0x445   : > { %8566 = vmatpush3.bf16.xpose.msra.mxu1 %v2810_v41 }
 0x446   : > { %9641 = vmatprep.subr.msk.bf16.mxu1 %vm1107_vm2, %v18289_v40  ;;  %9340 = vmatpush3.bf16.xpose.msra.mxu0 %v2855_v8  ;;  %v2021_v49 = vpop.xlane.xlu1 %2020  ;;  %v2025_v57 = vpop.xlane.xlu0 %2024  ;;  %v18295_v40 = vld [vmem:[#allocation10_spill] sm:$0xff] }
 0x447   : > { %10021 = vrcp.f32 %v2021_v49  ;;  %v18296_v49 = vld [vmem:[#allocation32_spill] sm:$0xff] }
 0x448   : > { %10023 = vrcp.f32 %v2025_v57  ;;  %2674 = vrot.lane.b32.xlu1 %v18290_v51, %s10949_s17  ;;  %2672 = vrot.lane.b32.xlu0 %v18291_v5, %s10949_s17 }
 0x44a   : > { %v2029_v22 = vpop.xlane.xlu1 %2028  ;;  %v2033_v45 = vpop.xlane.xlu0 %2032 }
 0x44b   : > { %10025 = vrcp.f32 %v2029_v22 }
 0x44c   : > { %2678 = vrot.lane.b32.xlu1 %v18293_v55, %s10949_s17  ;;  %2676 = vrot.lane.b32.xlu0 %v18294_v23, %s10949_s17  ;;  %10027 = vrcp.f32 %v2033_v45  ;;  %v2804_v45 = vsel %vm1107_vm2, %v2707_v42, 0  ;;  %v18302_v42 = vld [vmem:[#allocation124_spill] sm:$0xff] }
 0x44d   : > { %8568 = vmatpush3.bf16.xpose.msra.mxu1 %v2807_v32  ;;  %v18297_v32 = vld [vmem:[#allocation35_spill] sm:$0xff] }
 0x44e   : > { %9642 = vmatprep.subr.msk.bf16.mxu1 %vm1107_vm2, %v2723_v50  ;;  %v2037_v41 = vpop.xlane.xlu1 %2036  ;;  %v2041_v8 = vpop.xlane.xlu0 %2040  ;;  %v18298_v50 = vld [vmem:[#allocation33_spill] sm:$0xff] }
 0x44f   : > { %10029 = vrcp.f32 %v2037_v41  ;;  %v18299_v41 = vld [vmem:[#allocation123_spill] sm:$0xff] }
 0x450   : > { %2682 = vrot.lane.b32.xlu1 %v18295_v40, %s10949_s17  ;;  %2680 = vrot.lane.b32.xlu0 %v18296_v49, %s10949_s17  ;;  %v10020_v57 = vpop.eup %10019  ;;  %10031 = vrcp.f32 %v2041_v8  ;;  %v18301_v8 = vld [vmem:[#allocation125_spill] sm:$0xff] }
 0x451   : > { %v2171_v23 = vmul.f32 %v10020_v57, %v18299_v41  ;;  %v2172_v40 = vmul.f32 %v10020_v57, %v12351_v43  ;;  %v2170_v49 = vmul.f32 %v10020_v57, %v18300_v17  ;;  %v18303_v43 = vld [vmem:[#allocation37_spill] sm:$0xff]  ;;  %v18304_v17 = vld [vmem:[#allocation36_spill] sm:$0xff]  ;;  %v18305_v57 = vld [vmem:[#allocation127_spill] sm:$0xff] }
 0x452   : > { %v2045_v22 = vpop.xlane.xlu1 %2044  ;;  %v2049_v0 = vpop.xlane.xlu0 %2048 }
 0x453   : > { %10033 = vrcp.f32 %v2045_v22 }
 0x454   : > { %v10022_v5 = vpop.eup %10021  ;;  %2686 = vrot.lane.b32.xlu1 %v18297_v32, %s10949_s17  ;;  %2684 = vrot.lane.b32.xlu0 %v18298_v50, %s10949_s17  ;;  %10035 = vrcp.f32 %v2049_v0 }
 0x455   : > { %v10024_v55 = vpop.eup %10023  ;;  %8570 = vmatpush3.bf16.xpose.msra.mxu1 %v2804_v45  ;;  %v2174_v22 = vmul.f32 %v10022_v5, %v18301_v8  ;;  %v2175_v47 = vmul.f32 %v10022_v5, %v12360_v25  ;;  %v2173_v51 = vmul.f32 %v10022_v5, %v18302_v42  ;;  %v18306_v5 = vld [vmem:[#allocation128_spill] sm:$0xff] }
 0x456   : > { %v2053_v4 = vpop.xlane.xlu1 %2052  ;;  %v2057_v32 = vpop.xlane.xlu0 %2056  ;;  %v2177_v0 = vmul.f32 %v10024_v55, %v18305_v57  ;;  %v2178_v45 = vmul.f32 %v10024_v55, %v18306_v5  ;;  %v18311_v5 = vld [vmem:[#allocation126_spill] sm:$0xff] }
 0x457   : > { %10037 = vrcp.f32 %v2053_v4  ;;  %v2261_v52 = vpack.c.bf16 %v2174_v22, %v2171_v23  ;;  %v2262_v50 = vpack.c.bf16 %v2175_v47, %v2172_v40  ;;  %v2260_v62 = vpack.c.bf16 %v2173_v51, %v2170_v49  ;;  %v18307_v22 = vld [vmem:[#allocation40_spill] sm:$0xff] }
 0x458   : > { %v10026_v41 = vpop.eup %10025  ;;  %3976 = vrot.lane.b32.xlu1 %v18303_v43, %s10949_s17  ;;  %3992 = vrot.lane.b32.xlu0 %v18304_v17, %s10949_s17  ;;  %10039 = vrcp.f32 %v2057_v32  ;;  %v18309_v32 = vld [vmem:[#allocation129_spill] sm:$0xff] }
 0x459   : > { %2350 = vmatprep.mubr.bf16.mxu0 %v2261_v52  ;;  %9301 = vmatprep.mubr.bf16.mxu1 %v2262_v50  ;;  %v2180_v25 = vmul.f32 %v10026_v41, %v12375_v18  ;;  %v2181_v4 = vmul.f32 %v10026_v41, %v12378_v14  ;;  %v10028_v47 = vpop.eup %10027  ;;  %v18308_v52 = vld [vmem:[#allocation38_spill] sm:$0xff]  ;;  %v2179_v18 = vmul.f32 %v10026_v41, %v18309_v32  ;;  %v18310_v50 = vld [vmem:[#allocation64_spill] sm:$0xff] }
 0x45a   : > { %v2061_v51 = vpop.xlane.xlu1 %2060  ;;  %2351 = vmatmul.mubr.bf16.gmra.mxu0 %v2260_v62  ;;  %v2065_v23 = vpop.xlane.xlu0 %2064  ;;  %v2184_v14 = vmul.f32 %v10028_v47, %v12387_v38  ;;  %v18314_v38 = vld [vmem:[#allocation39_spill] sm:$0xff] }
 0x45b   : > { %10041 = vrcp.f32 %v2061_v51  ;;  %v2264_v40 = vpack.c.bf16 %v2180_v25, %v2177_v0  ;;  %v2265_v49 = vpack.c.bf16 %v2181_v4, %v2178_v45  ;;  %v2176_v45 = vmul.f32 %v10024_v55, %v18311_v5  ;;  %v18312_v51 = vld [vmem:[#allocation62_spill] sm:$0xff] }
 0x45c   : > { %v10030_v8 = vpop.eup %10029  ;;  %3988 = vrot.lane.b32.xlu1 %v18307_v22, %s10949_s17  ;;  %3990 = vrot.lane.b32.xlu0 %v18308_v52, %s10949_s17  ;;  %10043 = vrcp.f32 %v2065_v23  ;;  %v2183_v52 = vmul.f32 %v10028_v47, %v18312_v51  ;;  %v18313_v23 = vld [vmem:[#allocation43_spill] sm:$0xff] }
 0x45d   : > { %2358 = vmatprep.mubr.bf16.mxu0 %v2264_v40  ;;  %9302 = vmatmul.mubr.bf16.gmra.mxu1 %v2265_v49  ;;  %v2187_v62 = vmul.f32 %v10030_v8, %v12396_v33  ;;  %v2186_v42 = vmul.f32 %v10030_v8, %v18310_v50  ;;  %v12784_v57 = vpop.eup %10031  ;;  %v2263_v33 = vpack.c.bf16 %v2179_v18, %v2176_v45  ;;  %v18315_v18 = vld [vmem:[#allocation46_spill] sm:$0xff] }
 0x45e   : > { %v2069_v0 = vpop.xlane.xlu1 %2068  ;;  %v2073_v25 = vpop.xlane.xlu0 %2072  ;;  %v2190_v49 = vmul.f32 %v12784_v57, %v12405_v35 }
 0x45f   : > { %10045 = vrcp.f32 %v2069_v0  ;;  %v2268_v4 = vpack.c.bf16 %v2187_v62, %v2184_v14  ;;  %v2267_v40 = vpack.c.bf16 %v2186_v42, %v2183_v52  ;;  %v18316_v52 = vld [vmem:[#allocation41_spill] sm:$0xff]  ;;  %v18317_v42 = vld [vmem:[#allocation63_spill] sm:$0xff] }
 0x460   : > { %v10034_v41 = vpop.eup %10033  ;;  %3986 = vrot.lane.b32.xlu1 %v18313_v23, %s10949_s17  ;;  %3974 = vrot.lane.b32.xlu0 %v18314_v38, %s10949_s17  ;;  %10047 = vrcp.f32 %v2073_v25  ;;  %v2185_v35 = vmul.f32 %v10030_v8, %v18317_v42 }
 0x461   : > { %9305 = vmatprep.mubr.bf16.mxu1 %v2268_v4  ;;  %v2193_v55 = vmul.f32 %v10034_v41, %v12416_v58  ;;  %v12795_v32 = vpop.eup %10035  ;;  %v2192_v5 = vmul.f32 %v10034_v41, %v12411_v15 }
 0x462   : > { %v2077_v14 = vpop.xlane.xlu1 %2076  ;;  %2359 = vmatmul.mubr.bf16.gmra.mxu0 %v2263_v33  ;;  %v2081_v62 = vpop.xlane.xlu0 %2080  ;;  %v2196_v58 = vmul.f32 %v12795_v32, %v12429_v48  ;;  %v18318_v33 = vld [vmem:[#allocation61_spill] sm:$0xff]  ;;  %v18320_v48 = vld [vmem:[#allocation48_spill] sm:$0xff] }
 0x463   : > { %10049 = vrcp.f32 %v2077_v14  ;;  %2366 = vmatprep.mubr.bf16.mxu0 %v2267_v40  ;;  %v2271_v50 = vpack.c.bf16 %v2193_v55, %v2190_v49  ;;  %v2182_v40 = vmul.f32 %v10028_v47, %v18318_v33  ;;  %v18319_v55 = vld [vmem:[#allocation66_spill] sm:$0xff] }
 0x464   : > { %v12797_v0 = vpop.eup %10037  ;;  %3984 = vrot.lane.b32.xlu1 %v18315_v18, %s10949_s17  ;;  %3972 = vrot.lane.b32.xlu0 %v18316_v52, %s10949_s17  ;;  %10051 = vrcp.f32 %v2081_v62  ;;  %v2189_v8 = vmul.f32 %v12784_v57, %v18319_v55 }
 0x465   : > { %9306 = vmatmul.mubr.bf16.gmra.mxu1 %v2271_v50  ;;  %v2199_v25 = vmul.f32 %v12797_v0, %v12441_v16  ;;  %v12809_v45 = vpop.eup %10039  ;;  %v18321_v16 = vld [vmem:[#allocation45_spill] sm:$0xff]  ;;  %v2266_v15 = vpack.c.bf16 %v2185_v35, %v2182_v40  ;;  %v18322_v35 = vld [vmem:[#allocation51_spill] sm:$0xff]  ;;  %v18324_v40 = vld [vmem:[#allocation70_spill] sm:$0xff] }
 0x466   : > { %v2085_v4 = vpop.xlane.xlu1 %2084  ;;  %v2089_v51 = vpop.xlane.xlu0 %2088  ;;  %v2270_v62 = vpack.c.bf16 %v2192_v5, %v2189_v8  ;;  %v2202_v47 = vmul.f32 %v12809_v45, %v12456_v54  ;;  %v18323_v5 = vld [vmem:[#allocation25_spill] sm:$0xff]  ;;  %v2191_v54 = vmul.f32 %v10034_v41, %v12408_v10  ;;  %v18326_v41 = vld [vmem:[#allocation68_spill] sm:$0xff] }
 0x467   : > { %10053 = vrcp.f32 %v2085_v4  ;;  %v2274_v49 = vpack.c.bf16 %v2199_v25, %v2196_v58 }
 0x468   : > { %v12814_v14 = vpop.eup %10041  ;;  %3982 = vrot.lane.b32.xlu1 %v18320_v48, %s10949_s17  ;;  %3970 = vrot.lane.b32.xlu0 %v18321_v16, %s10949_s17  ;;  %10055 = vrcp.f32 %v2089_v51 }
 0x469   : > { %9309 = vmatprep.mubr.bf16.mxu1 %v2274_v49  ;;  %v2205_v50 = vmul.f32 %v12814_v14, %v12469_v12  ;;  %v12824_v42 = vpop.eup %10043  ;;  %v2198_v49 = vmul.f32 %v12797_v0, %v18324_v40 }
 0x46a   : > { %v2093_v58 = vpop.xlane.xlu1 %2092  ;;  %2367 = vmatmul.mubr.bf16.gmra.mxu0 %v2266_v15  ;;  %v2101_v25 = vpop.xlane.xlu0 %2100  ;;  %v2208_v12 = vmul.f32 %v12824_v42, %v12482_v29  ;;  %v18327_v29 = vld [vmem:[#allocation52_spill] sm:$0xff] }
 0x46b   : > { %10057 = vrcp.f32 %v2093_v58  ;;  %2374 = vmatprep.mubr.bf16.mxu0 %v2270_v62  ;;  %v2277_v4 = vpack.c.bf16 %v2205_v50, %v2202_v47  ;;  %v18325_v62 = vld [vmem:[#allocation65_spill] sm:$0xff]  ;;  %v2195_v50 = vmul.f32 %v12795_v32, %v18326_v41 }
 0x46c   : > { %v12826_v33 = vpop.eup %10045  ;;  %3980 = vrot.lane.b32.xlu1 %v18322_v35, %s10949_s17  ;;  %3968 = vrot.lane.b32.xlu0 %v18323_v5, %s10949_s17  ;;  %10059 = vrcp.f32 %v2101_v25  ;;  %v2188_v47 = vmul.f32 %v12784_v57, %v18325_v62 }
 0x46d   : > { %9310 = vmatmul.mubr.bf16.gmra.mxu1 %v2277_v4  ;;  %v2211_v51 = vmul.f32 %v12826_v33, %v12494_v7  ;;  %v12839_v55 = vpop.eup %10047  ;;  %v18328_v7 = vld [vmem:[#allocation50_spill] sm:$0xff]  ;;  %v2273_v4 = vpack.c.bf16 %v2198_v49, %v2195_v50  ;;  %v18330_v49 = vld [vmem:[#allocation69_spill] sm:$0xff] }
 0x46e   : > { %v2097_v8 = vpop.xlane.xlu1 %2096  ;;  %v2105_v15 = vpop.xlane.xlu0 %2104  ;;  %v2269_v25 = vpack.c.bf16 %v2191_v54, %v2188_v47  ;;  %v2214_v57 = vmul.f32 %v12839_v55, %v12508_v61  ;;  %v10845_v61 = vld [vmem:[%s17461_s2 + $0x64] ss:$8 sps:$4 sm:$0xff]   ;;  %v2197_v47 = vmul.f32 %v12797_v0, %v18330_v49  ;;  %v18331_v50 = vld [vmem:[#allocation74_spill] sm:$0xff] }
 0x46f   : > { %10061 = vrcp.f32 %v2097_v8  ;;  %v2280_v10 = vpack.c.bf16 %v2211_v51, %v2208_v12 }
 0x470   : > { %v12845_v58 = vpop.eup %10049  ;;  %3978 = vrot.lane.b32.xlu1 %v18327_v29, %s10949_s17  ;;  %3966 = vrot.lane.b32.xlu0 %v18328_v7, %s10949_s17  ;;  %10063 = vrcp.f32 %v2105_v15 }
 0x471   : > { %9313 = vmatprep.mubr.bf16.mxu1 %v2280_v10  ;;  %v2217_v12 = vmul.f32 %v12845_v58, %v12521_v56  ;;  %v12855_v51 = vpop.eup %10051  ;;  %v18329_v56 = vld [vmem:[#allocation21_spill] sm:$0xff] }
 0x472   : > { %v2109_v40 = vpop.xlane.xlu1 %2108  ;;  %2375 = vmatmul.mubr.bf16.gmra.mxu0 %v2269_v25  ;;  %v2739_v8 = vpop.permute.xlu0 %2738  ;;  %v2220_v10 = vmul.f32 %v12855_v51, %v12536_v36  ;;  %v2204_v25 = vmul.f32 %v12814_v14, %v18331_v50  ;;  %v10846_v36 = vld [vmem:[%s17461_s2 + $0x34] ss:$8 sps:$4 sm:$0xff]  }
 0x473   : > { %10065 = vrcp.f32 %v2109_v40  ;;  %2382 = vmatprep.mubr.bf16.mxu0 %v2273_v4  ;;  %9650 = vmatprep.subr.msk.bf16.mxu0 %vm1107_vm2, %v2739_v8  ;;  %v2852_v54 = vsel %vm1107_vm2, %v2739_v8, 0  ;;  %v2283_v15 = vpack.c.bf16 %v2217_v12, %v2214_v57  ;;  %v18332_v57 = vld [vmem:[#allocation67_spill] sm:$0xff]  ;;  %v18333_v8 = vld [vmem:[#allocation72_spill] sm:$0xff] }
 0x474   : > { %v12859_v62 = vpop.eup %10053  ;;  %4006 = vrot.lane.b32.xlu1 %v10845_v61, %s10949_s17  ;;  %3964 = vrot.lane.b32.xlu0 %v18329_v56, %s10949_s17  ;;  %v2194_v12 = vmul.f32 %v12795_v32, %v18332_v57  ;;  %v2201_v0 = vmul.f32 %v12809_v45, %v18333_v8  ;;  %v10847_v57 = vld [vmem:[%s17461_s2 + $0x14] ss:$8 sps:$4 sm:$0xff]  }
 0x475   : > { %9342 = vmatpush3.bf16.xpose.msra.mxu0 %v2852_v54  ;;  %9314 = vmatmul.mubr.bf16.gmra.mxu1 %v2283_v15  ;;  %v2223_v41 = vmul.f32 %v12859_v62, %v12545_v13  ;;  %v12875_v4 = vpop.eup %10055  ;;  %v18334_v13 = vld [vmem:[#allocation53_spill] sm:$0xff] }
 0x476   : > { %v2272_v15 = vpack.c.bf16 %v2197_v47, %v2194_v12  ;;  %v2276_v61 = vpack.c.bf16 %v2204_v25, %v2201_v0  ;;  %v2226_v32 = vmul.f32 %v12875_v4, %v12557_v6  ;;  %v10848_v6 = vld [vmem:[%s17461_s2 + $0x74] ss:$8 sps:$4 sm:$0xff]   ;;  %v18336_v0 = vld [vmem:[#allocation71_spill] sm:$0xff] }
 0x477   : > { %v2286_v40 = vpack.c.bf16 %v2223_v41, %v2220_v10 }
 0x478   : > { %v12881_v54 = vpop.eup %10057  ;;  %4000 = vrot.lane.b32.xlu1 %v10846_v36, %s10949_s17  ;;  %3962 = vrot.lane.b32.xlu0 %v18334_v13, %s10949_s17  ;;  %v2200_v36 = vmul.f32 %v12809_v45, %v18336_v0 }
 0x479   : > { %9317 = vmatprep.mubr.bf16.mxu1 %v2286_v40  ;;  %v2229_v49 = vmul.f32 %v12881_v54, %v12569_v31  ;;  %v12893_v10 = vpop.eup %10059  ;;  %v18335_v31 = vld [vmem:[#allocation73_spill] sm:$0xff]  ;;  %v2210_v40 = vmul.f32 %v12826_v33, %v12491_v2 }
 0x47a   : > { %2383 = vmatmul.mubr.bf16.gmra.mxu0 %v2272_v15  ;;  %v2203_v47 = vmul.f32 %v12814_v14, %v18335_v31  ;;  %v2235_v12 = vmul.f32 %v12893_v10, %v12585_v34  ;;  %v10849_v34 = vld [vmem:[%s17461_s2 + $0x54] ss:$8 sps:$4 sm:$0xff]   ;;  %v10850_v31 = vld [vmem:[%s17461_s2 + $0x44] ss:$8 sps:$4 sm:$0xff]  }
 0x47b   : > { %2390 = vmatprep.mubr.bf16.mxu0 %v2276_v61  ;;  %v2289_v41 = vpack.c.bf16 %v2229_v49, %v2226_v32  ;;  %v18337_v61 = vld [vmem:[#allocation76_spill] sm:$0xff] }
 0x47c   : > { %v12895_v50 = vpop.eup %10061  ;;  %3996 = vrot.lane.b32.xlu1 %v10847_v57, %s10949_s17  ;;  %4008 = vrot.lane.b32.xlu0 %v10848_v6, %s10949_s17  ;;  %v2207_v32 = vmul.f32 %v12824_v42, %v18337_v61  ;;  %v2275_v2 = vpack.c.bf16 %v2203_v47, %v2200_v36  ;;  %v18339_v6 = vld [vmem:[#allocation17_spill] sm:$0xff]  ;;  %v18343_v36 = vld [vmem:[#allocation14_spill] sm:$0xff] }
 0x47d   : > { %9318 = vmatmul.mubr.bf16.gmra.mxu1 %v2289_v41  ;;  %v2232_v25 = vmul.f32 %v12895_v50, %v12595_v30  ;;  %v12913_v8 = vpop.eup %10063  ;;  %v18338_v30 = vld [vmem:[#allocation24_spill] sm:$0xff]  ;;  %v18340_v47 = vld [vmem:[#allocation77_spill] sm:$0xff] }
 0x47e   : > { %v2279_v49 = vpack.c.bf16 %v2210_v40, %v2207_v32  ;;  %v2238_v45 = vmul.f32 %v12913_v8, %v12599_v39  ;;  %v2216_v39 = vmul.f32 %v12845_v58, %v12519_v37  ;;  %v18342_v40 = vld [vmem:[#allocation79_spill] sm:$0xff]  ;;  %v18344_v32 = vld [vmem:[#allocation80_spill] sm:$0xff] }
 0x47f   : > { %v2292_v15 = vpack.c.bf16 %v2235_v12, %v2232_v25  ;;  %v2209_v25 = vmul.f32 %v12826_v33, %v18340_v47  ;;  %v2213_v0 = vmul.f32 %v12839_v55, %v18342_v40  ;;  %v10852_v37 = vld [vmem:[%s17461_s2 + $0x60] ss:$8 sps:$4 sm:$0xff]  }
 0x480   : > { %v12919_v14 = vpop.eup %10065  ;;  %4418 = vrot.lane.b32.xlu1 %v18338_v30, %s10950_s20  ;;  %4004 = vrot.lane.b32.xlu0 %v10849_v34, %s10949_s17  ;;  %v2215_v34 = vmul.f32 %v12845_v58, %v18344_v32  ;;  %v18348_v47 = vld [vmem:[#allocation11_spill] sm:$0xff]  ;;  %v18355_v32 = vld [vmem:[#allocation22_spill] sm:$0xff] }
 0x481   : > { %9321 = vmatprep.mubr.bf16.mxu1 %v2292_v15  ;;  %v2241_v41 = vmul.f32 %v12919_v14, %v12609_v46  ;;  %v18341_v46 = vld [vmem:[#allocation75_spill] sm:$0xff]  ;;  %v2282_v61 = vpack.c.bf16 %v2216_v39, %v2213_v0  ;;  %v18352_v0 = vld [vmem:[#allocation88_spill] sm:$0xff] }
 0x482   : > { %2391 = vmatmul.mubr.bf16.gmra.mxu0 %v2275_v2  ;;  %v2206_v12 = vmul.f32 %v12824_v42, %v18341_v46  ;;  %v10851_v15 = vld [vmem:[%s17461_s2 + $0x24] ss:$8 sps:$4 sm:$0xff]   ;;  %v18349_v46 = vld [vmem:[#allocation34_spill] sm:$0xff] }
 0x483   : > { %2398 = vmatprep.mubr.bf16.mxu0 %v2279_v49  ;;  %v2295_v57 = vpack.c.bf16 %v2241_v41, %v2238_v45  ;;  %v10853_v42 = vld [vmem:[%s17461_s2 + $0x4] ss:$8 sps:$4 sm:$0xff]   ;;  %v18346_v45 = vld [vmem:[#allocation78_spill] sm:$0xff] }
 0x484   : > { %4434 = vrot.lane.b32.xlu1 %v18339_v6, %s10950_s20  ;;  %4002 = vrot.lane.b32.xlu0 %v10850_v31, %s10949_s17  ;;  %v2278_v33 = vpack.c.bf16 %v2209_v25, %v2206_v12  ;;  %v18345_v2 = vld [vmem:[#allocation84_spill] sm:$0xff]  ;;  %v2212_v41 = vmul.f32 %v12839_v55, %v18346_v45  ;;  %v10854_v25 = vld [vmem:[%s17461_s2 + $0x70] ss:$8 sps:$4 sm:$0xff]   ;;  %v18351_v12 = vld [vmem:[#allocation83_spill] sm:$0xff] }
 0x485   : > { %9322 = vmatmul.mubr.bf16.gmra.mxu1 %v2295_v57  ;;  %v2222_v49 = vmul.f32 %v12859_v62, %v18345_v2  ;;  %v18347_v57 = vld [vmem:[#allocation82_spill] sm:$0xff]  ;;  %v18350_v55 = vld [vmem:[#allocation20_spill] sm:$0xff]  ;;  %v2221_v40 = vmul.f32 %v12859_v62, %v18351_v12  ;;  %v18357_v62 = vld [vmem:[#allocation31_spill] sm:$0xff] }
 0x486   : > { %v2219_v31 = vmul.f32 %v12855_v51, %v18347_v57  ;;  %v2281_v39 = vpack.c.bf16 %v2215_v34, %v2212_v41  ;;  %v18356_v34 = vld [vmem:[#allocation16_spill] sm:$0xff]  ;;  %v18358_v45 = vld [vmem:[#allocation87_spill] sm:$0xff] }
 0x487   : > { %v2227_v41 = vmul.f32 %v12881_v54, %v18358_v45  ;;  %v18359_v57 = vld [vmem:[#allocation92_spill] sm:$0xff]  ;;  %v18366_v45 = vld [vmem:[#allocation90_spill] sm:$0xff] }
 0x488   : > { %4432 = vrot.lane.b32.xlu1 %v18343_v36, %s10950_s20  ;;  %3998 = vrot.lane.b32.xlu0 %v10851_v15, %s10949_s17  ;;  %v2285_v58 = vpack.c.bf16 %v2222_v49, %v2219_v31  ;;  %v2228_v15 = vmul.f32 %v12881_v54, %v18352_v0  ;;  %v2231_v31 = vmul.f32 %v12895_v50, %v18359_v57  ;;  %v18363_v0 = vld [vmem:[#allocation13_spill] sm:$0xff] }
 0x48a   : > { %2399 = vmatmul.mubr.bf16.gmra.mxu0 %v2278_v33  ;;  %v18353_v33 = vld [vmem:[#allocation81_spill] sm:$0xff] }
 0x48b   : > { %2406 = vmatprep.mubr.bf16.mxu0 %v2282_v61  ;;  %v2218_v61 = vmul.f32 %v12855_v51, %v18353_v33  ;;  %v10855_v51 = vld [vmem:[%s17461_s2 + $0x50] ss:$8 sps:$4 sm:$0xff]  }
 0x48c   : > { %4448 = vrot.lane.b32.xlu1 %v10852_v37, %s10950_s20  ;;  %3994 = vrot.lane.b32.xlu0 %v10853_v42, %s10949_s17  ;;  %v18354_v37 = vld [vmem:[#allocation86_spill] sm:$0xff] }
 0x48d   : > { %v2225_v42 = vmul.f32 %v12875_v4, %v18354_v37  ;;  %v2284_v2 = vpack.c.bf16 %v2221_v40, %v2218_v61  ;;  %v18362_v40 = vld [vmem:[#allocation19_spill] sm:$0xff]  ;;  %v2705_v61 = vpop.permute.xlu1 %2704 }
 0x48e   : > { %v10856_v37 = vld [vmem:[%s17461_s2 + $0x40] ss:$8 sps:$4 sm:$0xff]  }
 0x48f   : > { %v2288_v49 = vpack.c.bf16 %v2228_v15, %v2225_v42 }
 0x490   : > { %4430 = vrot.lane.b32.xlu1 %v18348_v47, %s10950_s20  ;;  %4450 = vrot.lane.b32.xlu0 %v10854_v25, %s10950_s20  ;;  %v18360_v25 = vld [vmem:[#allocation85_spill] sm:$0xff] }
 0x492   : > { %2407 = vmatmul.mubr.bf16.gmra.mxu0 %v2281_v39  ;;  %v2224_v39 = vmul.f32 %v12875_v4, %v18360_v25  ;;  %v18364_v4 = vld [vmem:[#allocation89_spill] sm:$0xff] }
 0x493   : > { %2414 = vmatprep.mubr.bf16.mxu0 %v2285_v58  ;;  %v18361_v58 = vld [vmem:[#allocation91_spill] sm:$0xff]  ;;  %v2230_v42 = vmul.f32 %v12895_v50, %v18364_v4  ;;  %v10858_v50 = vld [vmem:[%s17461_s2 + $0x30] ss:$8 sps:$4 sm:$0xff]  }
 0x494   : > { %4428 = vrot.lane.b32.xlu1 %v18349_v46, %s10950_s20  ;;  %4416 = vrot.lane.b32.xlu0 %v18350_v55, %s10950_s20  ;;  %v2234_v12 = vmul.f32 %v12893_v10, %v18361_v58  ;;  %v2287_v15 = vpack.c.bf16 %v2227_v41, %v2224_v39  ;;  %v2233_v41 = vmul.f32 %v12893_v10, %v18366_v45  ;;  %v2801_v10 = vsel %vm1107_vm2, %v2705_v61, 0 }
 0x496   : > { %v2291_v33 = vpack.c.bf16 %v2234_v12, %v2231_v31  ;;  %v18367_v31 = vld [vmem:[#allocation95_spill] sm:$0xff]  ;;  %v2290_v58 = vpack.c.bf16 %v2233_v41, %v2230_v42  ;;  %v18370_v42 = vld [vmem:[#allocation94_spill] sm:$0xff] }
 0x497   : > { %v2237_v25 = vmul.f32 %v12913_v8, %v18367_v31 }
 0x498   : > { %4410 = vrot.lane.b32.xlu1 %v18355_v32, %s10950_s20  ;;  %4414 = vrot.lane.b32.xlu0 %v18356_v34, %s10950_s20 }
 0x49a   : > { %2415 = vmatmul.mubr.bf16.gmra.mxu0 %v2284_v2  ;;  %v10857_v2 = vld [vmem:[%s17461_s2 + $0x20] ss:$8 sps:$4 sm:$0xff]  }
 0x49b   : > { %2422 = vmatprep.mubr.bf16.mxu0 %v2288_v49  ;;  %v18365_v49 = vld [vmem:[#allocation93_spill] sm:$0xff] }
 0x49c   : > { %4426 = vrot.lane.b32.xlu1 %v18357_v62, %s10950_s20  ;;  %4446 = vrot.lane.b32.xlu0 %v10855_v51, %s10950_s20  ;;  %v2240_v51 = vmul.f32 %v12919_v14, %v18365_v49 }
 0x49e   : > { %v2294_v12 = vpack.c.bf16 %v2240_v51, %v2237_v25 }
 0x4a0   : > { %4408 = vrot.lane.b32.xlu1 %v18362_v40, %s10950_s20  ;;  %4412 = vrot.lane.b32.xlu0 %v18363_v0, %s10950_s20 }
 0x4a2   : > { %2423 = vmatmul.mubr.bf16.gmra.mxu0 %v2287_v15 }
 0x4a3   : > { %2430 = vmatprep.mubr.bf16.mxu0 %v2291_v33  ;;  %v2117_v54 = vpop.xlane.xlu0 %2116 }
 0x4a4   : > { %4444 = vrot.lane.b32.xlu0 %v10856_v37, %s10950_s20  ;;  %4440 = vrot.lane.b32.xlu1 %v10857_v2, %s10950_s20  ;;  %10067 = vrcp.f32 %v2117_v54  ;;  %v18368_v54 = vld [vmem:[#allocation29_spill] sm:$0xff]  ;;  %v18369_v37 = vld [vmem:[#allocation96_spill] sm:$0xff]  ;;  %v2236_v2 = vmul.f32 %v12913_v8, %v18370_v42 }
 0x4a5   : > { %v2239_v4 = vmul.f32 %v12919_v14, %v18369_v37 }
 0x4a7   : > { %v2125_v57 = vpop.xlane.xlu0 %2124  ;;  %v2293_v45 = vpack.c.bf16 %v2239_v4, %v2236_v2 }
 0x4a8   : > { %v2113_v39 = vpop.xlane.xlu1 %2112  ;;  %4442 = vrot.lane.b32.xlu0 %v10858_v50, %s10950_s20 }
 0x4a9   : > { %10069 = vrcp.f32 %v2113_v39 }
 0x4aa   : > { %10071 = vrcp.f32 %v2125_v57  ;;  %2431 = vmatmul.mubr.bf16.gmra.mxu0 %v2290_v58 }
 0x4ab   : > { %2438 = vmatprep.mubr.bf16.mxu0 %v2294_v12  ;;  %v2721_v15 = vpop.permute.xlu0 %2720 }
 0x4ac   : > { %v2121_v33 = vpop.xlane.xlu1 %2120  ;;  %4424 = vrot.lane.b32.xlu0 %v18368_v54, %s10950_s20  ;;  %9643 = vmatprep.subr.msk.bf16.mxu1 %vm1107_vm2, %v2721_v15 }
 0x4ad   : > { %10073 = vrcp.f32 %v2121_v33  ;;  %8572 = vmatpush3.bf16.xpose.msra.mxu1 %v2801_v10 }
 0x4af   : > { %v2657_v49 = vpop.permute.xlu0 %2656 }
 0x4b0   : > { %v2737_v51 = vpop.permute.xlu1 %2736 }
 0x4b1   : > { %9651 = vmatprep.subr.msk.bf16.mxu0 %vm1107_vm2, %v2737_v51  ;;  %v2849_v61 = vsel %vm1107_vm2, %v2737_v51, 0  ;;  %v10068_v41 = vpop.eup %10067 }
 0x4b2   : > { %2439 = vmatmul.mubr.bf16.gmra.mxu0 %v2293_v45  ;;  %v2246_v14 = vmul.f32 %v10068_v41, %v12632_v11  ;;  %v2247_v39 = vmul.f32 %v10068_v41, %v12644_v44  ;;  %v2245_v10 = vmul.f32 %v10068_v41, %v12630_v60 }
 0x4b3   : > { %v2661_v57 = vpop.permute.xlu0 %2660  ;;  %9344 = vmatpush3.bf16.xpose.msra.mxu0 %v2849_v61 }
 0x4b4   : > { %v2659_v31 = vpop.permute.xlu1 %2658 }
 0x4b6   : > { %v10070_v25 = vpop.eup %10069 }
 0x4b7   : > { %v10072_v50 = vpop.eup %10071  ;;  %v13039_v58 = vpop.permute.xlu0 %2664  ;;  %v2243_v8 = vmul.f32 %v10070_v25, %v12642_v1  ;;  %v2244_v12 = vmul.f32 %v10070_v25, %v12651_v19  ;;  %v2242_v15 = vmul.f32 %v10070_v25, %v12634_v59 }
 0x4b8   : > { %v2663_v33 = vpop.permute.xlu1 %2662  ;;  %v2252_v11 = vmul.f32 %v10072_v50, %v12638_v27  ;;  %v2253_v19 = vmul.f32 %v10072_v50, %v12663_v9 }
 0x4b9   : > { %v2297_v37 = vpack.c.bf16 %v2246_v14, %v2243_v8  ;;  %v2298_v4 = vpack.c.bf16 %v2247_v39, %v2244_v12  ;;  %v2296_v42 = vpack.c.bf16 %v2245_v10, %v2242_v15 }
 0x4ba   : > { %v10074_v2 = vpop.eup %10073 }
 0x4bb   : > { %2446 = vmatprep.mubr.bf16.mxu0 %v2297_v37  ;;  %9325 = vmatprep.mubr.bf16.mxu1 %v2298_v4  ;;  %v13046_v44 = vpop.permute.xlu0 %2668  ;;  %v2249_v51 = vmul.f32 %v10074_v2, %v12661_v28  ;;  %v2250_v1 = vmul.f32 %v10074_v2, %v12675_v3  ;;  %v2248_v61 = vmul.f32 %v10074_v2, %v12657_v63 }
 0x4bc   : > { %v13051_v59 = vpop.permute.xlu1 %2666  ;;  %2447 = vmatmul.mubr.bf16.gmra.mxu0 %v2296_v42  ;;  %v2251_v28 = vmul.f32 %v10072_v50, %v12636_v53 }
 0x4bd   : > { %v2300_v60 = vpack.c.bf16 %v2252_v11, %v2249_v51  ;;  %v2301_v45 = vpack.c.bf16 %v2253_v19, %v2250_v1 }
 0x4be   : > { %v2299_v3 = vpack.c.bf16 %v2251_v28, %v2248_v61 }
 0x4bf   : > { %2454 = vmatprep.mubr.bf16.mxu0 %v2300_v60  ;;  %9326 = vmatmul.mubr.bf16.gmra.mxu1 %v2301_v45  ;;  %v13054_v27 = vpop.permute.xlu0 %2672 }
 0x4c0   : > { %v13056_v41 = vpop.permute.xlu1 %2670  ;;  %8573 = vmatprep.mubr.msk.bf16.mxu1 %vm1107_vm2, %v2657_v49 }
 0x4c3   : > { %v13060_v25 = vpop.permute.xlu0 %2676 }
 0x4c4   : > { %v13062_v9 = vpop.permute.xlu1 %2674  ;;  %2455 = vmatmul.mubr.bf16.gmra.mxu0 %v2299_v3 }
 0x4c5   : > { %9345 = vmatprep.mubr.msk.bf16.mxu0 %vm1107_vm2, %v2657_v49 }
 0x4c7   : > { %8574 = vmatmul.mubr.msk.bf16.vlgmr.msra.gmra.mxu1 %vm1107_vm2, %v2657_v49  ;;  %v13066_v63 = vpop.permute.xlu0 %2680 }
 0x4c8   : > { %v13068_v14 = vpop.permute.xlu1 %2678  ;;  %8575 = vmatprep.mubr.msk.bf16.mxu1 %vm1107_vm2, %v2659_v31 }
 0x4cb   : > { %v13071_v39 = vpop.permute.xlu0 %2684 }
 0x4cc   : > { %v13073_v8 = vpop.permute.xlu1 %2682  ;;  %9346 = vmatmul.mubr.msk.bf16.vlgmr.msra.gmra.mxu0 %vm1107_vm2, %v2659_v31 }
 0x4cd   : > { %9349 = vmatprep.mubr.msk.bf16.mxu0 %vm1107_vm2, %v2661_v57 }
 0x4cf   : > { %8576 = vmatmul.mubr.msk.bf16.gmra.mxu1 %vm1107_vm2, %v2659_v31  ;;  %v3993_v53 = vpop.permute.xlu0 %3992 }
 0x4d0   : > { %v13078_v50 = vpop.permute.xlu1 %2686  ;;  %8577 = vmatprep.mubr.msk.bf16.mxu1 %vm1107_vm2, %v2661_v57  ;;  %8629 = vmatprep.subr.bf16.mxu0 %v3993_v53 }
 0x4d3   : > { %v3991_v49 = vpop.permute.xlu0 %3990 }
 0x4d4   : > { %v3977_v12 = vpop.permute.xlu1 %3976  ;;  %9350 = vmatmul.mubr.msk.bf16.gmra.mxu0 %vm1107_vm2, %v2663_v33 }
 0x4d5   : > { %9353 = vmatprep.mubr.msk.bf16.mxu0 %vm1107_vm2, %v13039_v58  ;;  %8630 = vmatpush3.bf16.msra.mxu0 %v3977_v12 }
 0x4d6   : > { %8631 = vmatprep.subr.bf16.mxu0 %v3991_v49 }
 0x4d7   : > { %8578 = vmatmul.mubr.msk.bf16.gmra.mxu1 %vm1107_vm2, %v2661_v57  ;;  %v3975_v15 = vpop.permute.xlu0 %3974 }
 0x4d8   : > { %v3989_v10 = vpop.permute.xlu1 %3988  ;;  %8579 = vmatprep.mubr.msk.bf16.mxu1 %vm1107_vm2, %v2663_v33 }
 0x4d9   : > { %8632 = vmatpush3.bf16.msra.mxu0 %v3975_v15 }
 0x4da   : > { %8633 = vmatprep.subr.bf16.mxu0 %v3989_v10 }
 0x4db   : > { %v3973_v31 = vpop.permute.xlu0 %3972 }
 0x4dc   : > { %v3987_v37 = vpop.permute.xlu1 %3986  ;;  %9354 = vmatmul.mubr.msk.bf16.gmra.mxu0 %vm1107_vm2, %v13051_v59 }
 0x4dd   : > { %9357 = vmatprep.mubr.msk.bf16.mxu0 %vm1107_vm2, %v13046_v44  ;;  %8634 = vmatpush3.bf16.msra.mxu0 %v3973_v31  ;;  %v8437_v4 = vpop.f32.mrf.mxu0 }
 0x4de   : > { %8635 = vmatprep.subr.bf16.mxu0 %v3987_v37 }
 0x4df   : > { %8580 = vmatmul.mubr.msk.bf16.gmra.mxu1 %vm1107_vm2, %v2663_v33  ;;  %v8438_v57 = vpop.f32.mrf.mxu0  ;;  %v3971_v42 = vpop.permute.xlu0 %3970 }
 0x4e0   : > { %v3985_v2 = vpop.permute.xlu1 %3984  ;;  %v8439_v11 = vadd.f32 %v8438_v57, %v8437_v4  ;;  %8581 = vmatprep.mubr.msk.bf16.mxu1 %vm1107_vm2, %v13039_v58 }
 0x4e1   : > { %8636 = vmatpush3.bf16.msra.mxu0 %v3971_v42  ;;  %v8440_v51 = vpop.f32.mrf.mxu0 }
 0x4e2   : > { %8637 = vmatprep.subr.bf16.mxu0 %v3985_v2 }
 0x4e3   : > { %v8441_v1 = vpop.f32.mrf.mxu0  ;;  %v3969_v19 = vpop.permute.xlu0 %3968 }
 0x4e4   : > { %v3983_v60 = vpop.permute.xlu1 %3982  ;;  %9358 = vmatmul.mubr.msk.bf16.gmra.mxu0 %vm1107_vm2, %v13056_v41  ;;  %v9299_v45 = vpop.f32.mrf.mxu1  ;;  %v8442_v10 = vadd.f32 %v8441_v1, %v8440_v51 }
 0x4e5   : > { %9361 = vmatprep.mubr.msk.bf16.mxu0 %vm1107_vm2, %v13054_v27  ;;  %8638 = vmatpush3.bf16.msra.mxu0 %v3969_v19  ;;  %v8443_v33 = vpop.f32.mrf.mxu0 }
 0x4e6   : > { %8639 = vmatprep.subr.bf16.mxu0 %v3983_v60  ;;  %v2497_v61 = vpop.f32.mrf.mxu1 }
 0x4e7   : > { %v13097_v28 = vadd.f32 %v8439_v11, %v2497_v61  ;;  %8582 = vmatmul.mubr.msk.bf16.gmra.mxu1 %vm1107_vm2, %v13039_v58  ;;  %v8444_v3 = vpop.f32.mrf.mxu0  ;;  %v3967_v53 = vpop.permute.xlu0 %3966 }
 0x4e8   : > { %v3981_v49 = vpop.permute.xlu1 %3980  ;;  %v8445_v12 = vadd.f32 %v8444_v3, %v8443_v33  ;;  %8583 = vmatprep.mubr.msk.bf16.mxu1 %vm1107_vm2, %v13051_v59  ;;  %v9300_v15 = vpop.f32.mrf.mxu1 }
 0x4e9   : > { %18371 = vst [vmem:[#allocation98_spill] sm:$0xff] %v13097_v28  ;;  %8640 = vmatpush3.bf16.msra.mxu0 %v3967_v53  ;;  %v8446_v31 = vpop.f32.mrf.mxu0 }
 0x4ea   : > { %v13103_v37 = vadd.f32 %v9299_v45, %v8445_v12  ;;  %8641 = vmatprep.subr.bf16.mxu0 %v3981_v49  ;;  %v2500_v4 = vpop.f32.mrf.mxu1 }
 0x4eb   : > { %v13105_v57 = vadd.f32 %v8442_v10, %v2500_v4  ;;  %v8447_v42 = vpop.f32.mrf.mxu0  ;;  %v3965_v2 = vpop.permute.xlu0 %3964 }
 0x4ec   : > { %18372 = vst [vmem:[#allocation99_spill] sm:$0xff] %v13103_v37  ;;  %v3979_v58 = vpop.permute.xlu1 %3978  ;;  %v8448_v11 = vadd.f32 %v8447_v42, %v8446_v31  ;;  %9362 = vmatmul.mubr.msk.bf16.gmra.mxu0 %vm1107_vm2, %v13062_v9 }
 0x4ed   : > { %18373 = vst [vmem:[#allocation100_spill] sm:$0xff] %v13105_v57  ;;  %9365 = vmatprep.mubr.msk.bf16.mxu0 %vm1107_vm2, %v13060_v25  ;;  %8642 = vmatpush3.bf16.msra.mxu0 %v3965_v2 }
 0x4ee   : > { %v13113_v51 = vadd.f32 %v9300_v15, %v8448_v11  ;;  %8643 = vmatprep.subr.bf16.mxu0 %v3979_v58 }
 0x4ef   : > { %8584 = vmatmul.mubr.msk.bf16.gmra.mxu1 %vm1107_vm2, %v13051_v59  ;;  %v3963_v1 = vpop.permute.xlu0 %3962 }
 0x4f0   : > { %18374 = vst [vmem:[#allocation101_spill] sm:$0xff] %v13113_v51  ;;  %8585 = vmatprep.mubr.msk.bf16.mxu1 %vm1107_vm2, %v13046_v44  ;;  %v4007_v33 = vpop.permute.xlu1 %4006 }
 0x4f1   : > { %8644 = vmatpush3.bf16.msra.mxu0 %v3963_v1 }
 0x4f3   : > { %v4009_v45 = vpop.permute.xlu0 %4008 }
 0x4f4   : > { %9366 = vmatmul.mubr.msk.bf16.gmra.mxu0 %vm1107_vm2, %v13068_v14  ;;  %9377 = vmatprep.subr.bf16.mxu1 %v4009_v45  ;;  %v4001_v3 = vpop.permute.xlu1 %4000 }
 0x4f5   : > { %9369 = vmatprep.mubr.msk.bf16.mxu0 %vm1107_vm2, %v13066_v63  ;;  %9378 = vmatpush3.bf16.msra.mxu1 %v4009_v45 }
 0x4f6   : > { %9379 = vmatprep.subr.bf16.mxu1 %v4007_v33 }
 0x4f7   : > { %8586 = vmatmul.mubr.msk.bf16.gmra.mxu1 %vm1107_vm2, %v13046_v44  ;;  %v4005_v59 = vpop.permute.xlu0 %4004 }
 0x4f8   : > { %8587 = vmatprep.mubr.msk.bf16.mxu1 %vm1107_vm2, %v13056_v41  ;;  %v3997_v49 = vpop.permute.xlu1 %3996 }
 0x4f9   : > { %9380 = vmatpush3.bf16.msra.mxu1 %v4007_v33 }
 0x4fa   : > { %9381 = vmatprep.subr.bf16.mxu1 %v4005_v59 }
 0x4fb   : > { %v4003_v61 = vpop.permute.xlu0 %4002 }
 0x4fc   : > { %9370 = vmatmul.mubr.msk.bf16.gmra.mxu0 %vm1107_vm2, %v13073_v8 }
 0x4fd   : > { %9373 = vmatprep.mubr.msk.bf16.mxu0 %vm1107_vm2, %v13071_v39  ;;  %9382 = vmatpush3.bf16.msra.mxu1 %v4005_v59 }
 0x4fe   : > { %9383 = vmatprep.subr.bf16.mxu1 %v4003_v61 }
 0x4ff   : > { %8588 = vmatmul.mubr.msk.bf16.gmra.mxu1 %vm1107_vm2, %v13056_v41  ;;  %v3999_v44 = vpop.permute.xlu0 %3998  ;;  %v13147_v41 = vpop.permute.xlu1 %4418 }
 0x500   : > { %8589 = vmatprep.mubr.msk.bf16.mxu1 %vm1107_vm2, %v13054_v27  ;;  %18376 = vst [vmem:[#allocation107_spill] sm:$0xff] %v13147_v41 }
 0x501   : > { %9384 = vmatpush3.bf16.msra.mxu1 %v4003_v61 }
 0x502   : > { %9385 = vmatprep.subr.bf16.mxu1 %v4001_v3 }
 0x503   : > { %v3995_v53 = vpop.permute.xlu0 %3994 }
 0x504   : > { %9374 = vmatmul.mubr.msk.bf16.gmra.mxu0 %vm1107_vm2, %v13078_v50 }
 0x505   : > { %9386 = vmatpush3.bf16.msra.mxu1 %v4001_v3 }
 0x506   : > { %9387 = vmatprep.subr.bf16.mxu1 %v3999_v44 }
 0x507   : > { %8590 = vmatmul.mubr.msk.bf16.gmra.mxu1 %vm1107_vm2, %v13054_v27  ;;  %v13141_v12 = vpop.permute.xlu0 %4450  ;;  %v4435_v27 = vpop.permute.xlu1 %4434 }
 0x508   : > { %18375 = vst [vmem:[#allocation102_spill] sm:$0xff] %v13141_v12  ;;  %8591 = vmatprep.mubr.msk.bf16.mxu1 %vm1107_vm2, %v13062_v9  ;;  %9660 = vmatprep.subr.msk.bf16.mxu0 %vm1107_vm2, %v13141_v12 }
 0x509   : > { %9388 = vmatpush3.bf16.msra.mxu1 %v3999_v44 }
 0x50a   : > { %9389 = vmatprep.subr.bf16.mxu1 %v3997_v49 }
 0x50d   : > { %9390 = vmatpush3.bf16.msra.mxu1 %v3997_v49 }
 0x50e   : > { %9391 = vmatprep.subr.bf16.mxu1 %v3995_v53 }
 0x50f   : > { %8592 = vmatmul.mubr.msk.bf16.gmra.mxu1 %vm1107_vm2, %v13062_v9 }
 0x510   : > { %8593 = vmatprep.mubr.msk.bf16.mxu1 %vm1107_vm2, %v13060_v25 }
 0x511   : > { %9392 = vmatpush3.bf16.msra.mxu1 %v3995_v53 }
 0x512   : > { %9652 = vmatprep.subr.msk.bf16.mxu1 %vm1107_vm2, %v4435_v27 }
 0x517   : > { %8594 = vmatmul.mubr.msk.bf16.gmra.mxu1 %vm1107_vm2, %v13060_v25 }
 0x518   : > { %8595 = vmatprep.mubr.msk.bf16.mxu1 %vm1107_vm2, %v13068_v14 }
 0x51a   : > { %v8449_v15 = vpop.f32.mrf.mxu0 }
 0x51c   : > { %v8450_v10 = vpop.f32.mrf.mxu0 }
 0x51d   : > { %v8451_v31 = vadd.f32 %v8450_v10, %v8449_v15  ;;  %v9303_v4 = vpop.f32.mrf.mxu1 }
 0x51e   : > { %v8452_v42 = vpop.f32.mrf.mxu0 }
 0x51f   : > { %8596 = vmatmul.mubr.msk.bf16.gmra.mxu1 %vm1107_vm2, %v13068_v14  ;;  %v2513_v9 = vpop.f32.mrf.mxu1 }
 0x520   : > { %v13160_v2 = vadd.f32 %v8451_v31, %v2513_v9  ;;  %8597 = vmatprep.mubr.msk.bf16.mxu1 %vm1107_vm2, %v13066_v63  ;;  %v8453_v58 = vpop.f32.mrf.mxu0 }
 0x521   : > { %v8454_v11 = vadd.f32 %v8453_v58, %v8452_v42  ;;  %v9304_v25 = vpop.f32.mrf.mxu1 }
 0x522   : > { %18377 = vst [vmem:[#allocation104_spill] sm:$0xff] %v13160_v2  ;;  %v8455_v1 = vpop.f32.mrf.mxu0 }
 0x523   : > { %v2516_v45 = vpop.f32.mrf.mxu1 }
 0x524   : > { %v13164_v33 = vadd.f32 %v8454_v11, %v2516_v45  ;;  %v8456_v59 = vpop.f32.mrf.mxu0 }
 0x525   : > { %v8457_v61 = vadd.f32 %v8456_v59, %v8455_v1  ;;  %v9307_v44 = vpop.f32.mrf.mxu1 }
 0x526   : > { %18378 = vst [vmem:[#allocation105_spill] sm:$0xff] %v13164_v33  ;;  %v8458_v14 = vpop.f32.mrf.mxu0 }
 0x527   : > { %v13168_v53 = vadd.f32 %v9303_v4, %v8457_v61  ;;  %8598 = vmatmul.mubr.msk.bf16.gmra.mxu1 %vm1107_vm2, %v13066_v63  ;;  %v2529_v15 = vpop.f32.mrf.mxu1 }
 0x528   : > { %8599 = vmatprep.mubr.msk.bf16.mxu1 %vm1107_vm2, %v13073_v8  ;;  %v8459_v49 = vpop.f32.mrf.mxu0 }
 0x529   : > { %18379 = vst [vmem:[#allocation106_spill] sm:$0xff] %v13168_v53  ;;  %v8460_v27 = vadd.f32 %v8459_v49, %v8458_v14  ;;  %v9308_v11 = vpop.f32.mrf.mxu1 }
 0x52a   : > { %v8461_v10 = vpop.f32.mrf.mxu0 }
 0x52b   : > { %v13174_v31 = vadd.f32 %v9304_v25, %v8460_v27  ;;  %v2532_v59 = vpop.f32.mrf.mxu1 }
 0x52c   : > { %v8462_v42 = vpop.f32.mrf.mxu0 }
 0x52d   : > { %18380 = vst [vmem:[#allocation109_spill] sm:$0xff] %v13174_v31  ;;  %v8463_v58 = vadd.f32 %v8462_v42, %v8461_v10  ;;  %v9311_v10 = vpop.f32.mrf.mxu1 }
 0x52e   : > { %v8464_v4 = vpop.f32.mrf.mxu0 }
 0x52f   : > { %v13178_v1 = vadd.f32 %v8463_v58, %v2529_v15  ;;  %8600 = vmatmul.mubr.msk.bf16.gmra.mxu1 %vm1107_vm2, %v13073_v8 }
 0x530   : > { %8601 = vmatprep.mubr.msk.bf16.mxu1 %vm1107_vm2, %v13071_v39  ;;  %v8465_v63 = vpop.f32.mrf.mxu0 }
 0x531   : > { %18381 = vst [vmem:[#allocation112_spill] sm:$0xff] %v13178_v1  ;;  %v8466_v45 = vadd.f32 %v8465_v63, %v8464_v4  ;;  %v2545_v4 = vpop.f32.mrf.mxu1 }
 0x532   : > { %v8467_v25 = vpop.f32.mrf.mxu0 }
 0x533   : > { %v13184_v61 = vadd.f32 %v8466_v45, %v2532_v59  ;;  %v9312_v19 = vpop.f32.mrf.mxu1 }
 0x534   : > { %v8468_v14 = vpop.f32.mrf.mxu0 }
 0x535   : > { %18382 = vst [vmem:[#allocation110_spill] sm:$0xff] %v13184_v61  ;;  %v8469_v27 = vadd.f32 %v8468_v14, %v8467_v25  ;;  %v2548_v3 = vpop.f32.mrf.mxu1  ;;  %v18405_v61 = vld [vmem:[#allocation5_spill] sm:$0xff] }
 0x536   : > { %v8470_v15 = vpop.f32.mrf.mxu0 }
 0x537   : > { %v13188_v42 = vadd.f32 %v9307_v44, %v8469_v27  ;;  %8602 = vmatmul.mubr.msk.bf16.gmra.mxu1 %vm1107_vm2, %v13071_v39  ;;  %v9315_v49 = vpop.f32.mrf.mxu1 }
 0x538   : > { %8603 = vmatprep.mubr.msk.bf16.mxu1 %vm1107_vm2, %v13078_v50  ;;  %v8471_v8 = vpop.f32.mrf.mxu0 }
 0x539   : > { %18383 = vst [vmem:[#allocation54_spill] sm:$0xff] %v13188_v42  ;;  %v8472_v58 = vadd.f32 %v8471_v8, %v8470_v15  ;;  %v2561_v25 = vpop.f32.mrf.mxu1 }
 0x53a   : > { %v8473_v63 = vpop.f32.mrf.mxu0 }
 0x53b   : > { %v13194_v45 = vadd.f32 %v9308_v11, %v8472_v58 }
 0x53c   : > { %v8474_v59 = vpop.f32.mrf.mxu0 }
 0x53d   : > { %18384 = vst [vmem:[#allocation55_spill] sm:$0xff] %v13194_v45  ;;  %v8475_v14 = vadd.f32 %v8474_v59, %v8473_v63 }
 0x53e   : > { %v8476_v44 = vpop.f32.mrf.mxu0 }
 0x53f   : > { %v13198_v27 = vadd.f32 %v8475_v14, %v2545_v4  ;;  %8604 = vmatmul.mubr.msk.bf16.gmra.mxu1 %vm1107_vm2, %v13078_v50 }
 0x540   : > { %v8477_v39 = vpop.f32.mrf.mxu0 }
 0x541   : > { %18385 = vst [vmem:[#allocation121_spill] sm:$0xff] %v13198_v27  ;;  %v8478_v60 = vadd.f32 %v8477_v39, %v8476_v44  ;;  %v9316_v39 = vpop.f32.mrf.mxu1 }
 0x542   : > { %v8479_v15 = vpop.f32.mrf.mxu0 }
 0x543   : > { %v13202_v8 = vadd.f32 %v8478_v60, %v2548_v3  ;;  %v2564_v58 = vpop.f32.mrf.mxu1 }
 0x544   : > { %v8480_v11 = vpop.f32.mrf.mxu0 }
 0x545   : > { %18386 = vst [vmem:[#allocation117_spill] sm:$0xff] %v13202_v8  ;;  %v8481_v9 = vadd.f32 %v8480_v11, %v8479_v15 }
 0x546   : > { %v8482_v63 = vpop.f32.mrf.mxu0 }
 0x547   : > { %v13206_v59 = vadd.f32 %v9311_v10, %v8481_v9 }
 0x548   : > { %v8483_v4 = vpop.f32.mrf.mxu0 }
 0x549   : > { %18387 = vst [vmem:[#allocation58_spill] sm:$0xff] %v13206_v59  ;;  %v8484_v14 = vadd.f32 %v8483_v4, %v8482_v63 }
 0x54a   : > { %v8485_v28 = vpop.f32.mrf.mxu0 }
 0x54b   : > { %v13208_v50 = vadd.f32 %v9312_v19, %v8484_v14  ;;  %v9319_v14 = vpop.f32.mrf.mxu1 }
 0x54c   : > { %v8486_v44 = vpop.f32.mrf.mxu0 }
 0x54d   : > { %18388 = vst [vmem:[#allocation97_spill] sm:$0xff] %v13208_v50  ;;  %v8487_v3 = vadd.f32 %v8486_v44, %v8485_v28  ;;  %v2577_v60 = vpop.f32.mrf.mxu1 }
 0x54e   : > { %v8488_v57 = vpop.f32.mrf.mxu0 }
 0x54f   : > { %v13212_v37 = vadd.f32 %v8487_v3, %v2561_v25 }
 0x550   : > { %v8489_v15 = vpop.f32.mrf.mxu0 }
 0x551   : > { %18389 = vst [vmem:[#allocation115_spill] sm:$0xff] %v13212_v37  ;;  %v8490_v11 = vadd.f32 %v8489_v15, %v8488_v57 }
 0x552   : > { %v8491_v9 = vpop.f32.mrf.mxu0 }
 0x553   : > { %v13214_v10 = vadd.f32 %v8490_v11, %v2564_v58  ;;  %v9320_v11 = vpop.f32.mrf.mxu1 }
 0x554   : > { %v8492_v63 = vpop.f32.mrf.mxu0 }
 0x555   : > { %18390 = vst [vmem:[#allocation57_spill] sm:$0xff] %v13214_v10  ;;  %v8493_v4 = vadd.f32 %v8492_v63, %v8491_v9  ;;  %v2580_v19 = vpop.f32.mrf.mxu1 }
 0x556   : > { %v8494_v51 = vpop.f32.mrf.mxu0 }
 0x557   : > { %v13218_v2 = vadd.f32 %v9315_v49, %v8493_v4 }
 0x558   : > { %v8495_v28 = vpop.f32.mrf.mxu0 }
 0x559   : > { %18391 = vst [vmem:[#allocation103_spill] sm:$0xff] %v13218_v2  ;;  %v8496_v44 = vadd.f32 %v8495_v28, %v8494_v51 }
 0x55a   : > { %v8497_v25 = vpop.f32.mrf.mxu0 }
 0x55b   : > { %v13220_v3 = vadd.f32 %v9316_v39, %v8496_v44  ;;  %v9323_v44 = vpop.f32.mrf.mxu1 }
 0x55c   : > { %v8498_v57 = vpop.f32.mrf.mxu0 }
 0x55d   : > { %18392 = vst [vmem:[#allocation113_spill] sm:$0xff] %v13220_v3  ;;  %v8499_v15 = vadd.f32 %v8498_v57, %v8497_v25  ;;  %v2593_v58 = vpop.f32.mrf.mxu1 }
 0x55e   : > { %v8500_v33 = vpop.f32.mrf.mxu0 }
 0x55f   : > { %v13224_v53 = vadd.f32 %v8499_v15, %v2577_v60 }
 0x560   : > { %v8501_v9 = vpop.f32.mrf.mxu0 }
 0x561   : > { %18393 = vst [vmem:[#allocation120_spill] sm:$0xff] %v13224_v53  ;;  %v8502_v63 = vadd.f32 %v8501_v9, %v8500_v33 }
 0x562   : > { %v8503_v49 = vpop.f32.mrf.mxu0 }
 0x563   : > { %v13226_v4 = vadd.f32 %v8502_v63, %v2580_v19  ;;  %v9324_v63 = vpop.f32.mrf.mxu1 }
 0x564   : > { %v8504_v51 = vpop.f32.mrf.mxu0 }
 0x565   : > { %18394 = vst [vmem:[#allocation108_spill] sm:$0xff] %v13226_v4  ;;  %v8505_v28 = vadd.f32 %v8504_v51, %v8503_v49  ;;  %v2596_v39 = vpop.f32.mrf.mxu1 }
 0x566   : > { %v8506_v37 = vpop.f32.mrf.mxu0 }
 0x567   : > { %v13230_v10 = vadd.f32 %v9319_v14, %v8505_v28 }
 0x568   : > { %v8507_v25 = vpop.f32.mrf.mxu0 }
 0x569   : > { %18395 = vst [vmem:[#allocation111_spill] sm:$0xff] %v13230_v10  ;;  %v8508_v57 = vadd.f32 %v8507_v25, %v8506_v37 }
 0x56a   : > { %v8509_v60 = vpop.f32.mrf.mxu0 }
 0x56b   : > { %v13232_v15 = vadd.f32 %v9320_v11, %v8508_v57 }
 0x56c   : > { %v8510_v33 = vpop.f32.mrf.mxu0 }
 0x56d   : > { %18396 = vst [vmem:[#allocation119_spill] sm:$0xff] %v13232_v15  ;;  %v8511_v9 = vadd.f32 %v8510_v33, %v8509_v60 }
 0x56e   : > { %v8512_v2 = vpop.f32.mrf.mxu0 }
 0x56f   : > { %v13236_v3 = vadd.f32 %v8511_v9, %v2593_v58 }
 0x570   : > { %v8513_v49 = vpop.f32.mrf.mxu0 }
 0x571   : > { %18397 = vst [vmem:[#allocation56_spill] sm:$0xff] %v13236_v3  ;;  %v8514_v51 = vadd.f32 %v8513_v49, %v8512_v2 }
 0x572   : > { %v8515_v14 = vpop.f32.mrf.mxu0 }
 0x573   : > { %v13238_v28 = vadd.f32 %v8514_v51, %v2596_v39 }
 0x574   : > { %v8516_v37 = vpop.f32.mrf.mxu0 }
 0x575   : > { %18398 = vst [vmem:[#allocation116_spill] sm:$0xff] %v13238_v28  ;;  %v8517_v25 = vadd.f32 %v8516_v37, %v8515_v14 }
 0x576   : > { %v8518_v57 = vpop.f32.mrf.mxu0 }
 0x577   : > { %v13242_v53 = vadd.f32 %v9323_v44, %v8517_v25 }
 0x578   : > { %v8519_v19 = vpop.f32.mrf.mxu0 }
 0x579   : > { %18399 = vst [vmem:[#allocation118_spill] sm:$0xff] %v13242_v53  ;;  %v8520_v60 = vadd.f32 %v8519_v19, %v8518_v57 }
 0x57b   : > { %v13244_v33 = vadd.f32 %v9324_v63, %v8520_v60 }
 0x57c   : > { %v8521_v58 = vpop.f32.mrf.mxu0 }
 0x57d   : > { %18400 = vst [vmem:[#allocation114_spill] sm:$0xff] %v13244_v33 }
 0x57e   : > { %v8522_v9 = vpop.f32.mrf.mxu0 }
 0x57f   : > { %v8523_v49 = vadd.f32 %v8522_v9, %v8521_v58  ;;  %v9327_v39 = vpop.f32.mrf.mxu1 }
 0x580   : > { %v8524_v51 = vpop.f32.mrf.mxu0 }
 0x581   : > { %v2609_v4 = vpop.f32.mrf.mxu1 }
 0x582   : > { %v13248_v31 = vadd.f32 %v8523_v49, %v2609_v4  ;;  %v8525_v11 = vpop.f32.mrf.mxu0  ;;  %v18404_v4 = vld [vmem:[#allocation59_spill] sm:$0xff] }
 0x583   : > { %v8526_v14 = vadd.f32 %v8525_v11, %v8524_v51  ;;  %v9328_v37 = vpop.f32.mrf.mxu1 }
 0x584   : > { %18401 = vst [vmem:[#allocation123_spill] sm:$0xff] %v13248_v31  ;;  %v8527_v44 = vpop.f32.mrf.mxu0 }
 0x585   : > { %v2612_v25 = vpop.f32.mrf.mxu1 }
 0x586   : > { %v13250_v10 = vadd.f32 %v8526_v14, %v2612_v25  ;;  %v8528_v19 = vpop.f32.mrf.mxu0 }
 0x587   : > { %v8529_v63 = vadd.f32 %v8528_v19, %v8527_v44  ;;  %v2906_v57 = vpop.f32.mrf.mxu1 }
 0x588   : > { %18402 = vst [vmem:[#allocation122_spill] sm:$0xff] %v13250_v10  ;;  %v8530_v2 = vpop.f32.mrf.mxu0  ;;  %v13260_v14 = vadd.f32 %v2906_v57, %v18405_v61 }
 0x589   : > { %v13254_v58 = vadd.f32 %v9327_v39, %v8529_v63  ;;  %v2908_v9 = vpop.f32.mrf.mxu1 }
 0x58a   : > { %v8531_v15 = vpop.f32.mrf.mxu0  ;;  %v13257_v49 = vadd.f32 %v2908_v9, %v18404_v4  ;;  %v18407_v9 = vld [vmem:[#allocation60_spill] sm:$0xff] }
 0x58b   : > { %18403 = vst [vmem:[#allocation125_spill] sm:$0xff] %v13254_v58  ;;  %v8532_v11 = vadd.f32 %v8531_v15, %v8530_v2  ;;  %v2910_v51 = vpop.f32.mrf.mxu1 }
 0x58c   : > { %v9347_v1 = vpop.f32.mrf.mxu0  ;;  %v3226_v60 = vmax.f32 %v13260_v14, %v13257_v49  ;;  %v13275_v57 = vadd.f32 %v2910_v51, %v18405_v61 }
 0x58d   : > { %v13262_v25 = vadd.f32 %v9328_v37, %v8532_v11  ;;  %v2912_v44 = vpop.f32.mrf.mxu1  ;;  %v13290_v51 = vadd.f32 %v9347_v1, %v18407_v9 }
 0x58e   : > { %v3099_v19 = vpop.f32.mrf.mxu0  ;;  %v13269_v63 = vadd.f32 %v2912_v44, %v18404_v4 }
 0x58f   : > { %18406 = vst [vmem:[#allocation124_spill] sm:$0xff] %v13262_v25  ;;  %v13272_v15 = vadd.f32 %v3099_v19, %v18407_v9  ;;  %v2916_v2 = vpop.f32.mrf.mxu1 }
 0x590   : > { %v9348_v3 = vpop.f32.mrf.mxu0  ;;  %v13279_v28 = vadd.f32 %v2916_v2, %v18405_v61  ;;  %v3230_v44 = vmax.f32 %v13275_v57, %v13269_v63 }
 0x591   : > { %v3227_v37 = vmax.f32 %v3226_v60, %v13272_v15  ;;  %v2918_v11 = vpop.f32.mrf.mxu1  ;;  %v13303_v1 = vadd.f32 %v9348_v3, %v18407_v9 }
 0x592   : > { %v13282_v42 = vadd.f32 %v2918_v11, %v18404_v4  ;;  %v3102_v39 = vpop.f32.mrf.mxu0 }
 0x593   : > { %v13287_v19 = vadd.f32 %v3102_v39, %v18407_v9  ;;  %v2920_v45 = vpop.f32.mrf.mxu1  ;;  %3228 = vmax.xlane.f32.xlu0 %v3227_v37 }
 0x594   : > { %v3234_v60 = vmax.f32 %v13279_v28, %v13282_v42  ;;  %v9351_v2 = vpop.f32.mrf.mxu0  ;;  %v13296_v33 = vadd.f32 %v2920_v45, %v18405_v61 }
 0x595   : > { %v3231_v53 = vmax.f32 %v3230_v44, %v13287_v19  ;;  %v2922_v11 = vpop.f32.mrf.mxu1 }
 0x596   : > { %v13299_v27 = vadd.f32 %v2922_v11, %v18404_v4  ;;  %v3115_v39 = vpop.f32.mrf.mxu0  ;;  %v3235_v8 = vmax.f32 %v3234_v60, %v13290_v51 }
 0x597   : > { %3232 = vmax.xlane.f32.xlu1 %v3231_v53  ;;  %v2926_v37 = vpop.f32.mrf.mxu1  ;;  %v13315_v53 = vadd.f32 %v3115_v39, %v18407_v9 }
 0x598   : > { %v3238_v31 = vmax.f32 %v13296_v33, %v13299_v27  ;;  %3236 = vmax.xlane.f32.xlu0 %v3235_v8  ;;  %v9352_v44 = vpop.f32.mrf.mxu0  ;;  %v13308_v45 = vadd.f32 %v2926_v37, %v18405_v61 }
 0x599   : > { %v2928_v10 = vpop.f32.mrf.mxu1 }
 0x59a   : > { %v13311_v11 = vadd.f32 %v2928_v10, %v18404_v4  ;;  %v3239_v58 = vmax.f32 %v3238_v31, %v13303_v1  ;;  %v3118_v25 = vpop.f32.mrf.mxu0 }
 0x59b   : > { %v2930_v60 = vpop.f32.mrf.mxu1  ;;  %v13327_v31 = vadd.f32 %v3118_v25, %v18407_v9 }
 0x59c   : > { %v3242_v3 = vmax.f32 %v13308_v45, %v13311_v11  ;;  %3240 = vmax.xlane.f32.xlu0 %v3239_v58  ;;  %v13320_v59 = vadd.f32 %v2930_v60, %v18405_v61  ;;  %v9355_v54 = vpop.f32.mrf.mxu0 }
 0x59d   : > { %v2932_v8 = vpop.f32.mrf.mxu1 }
 0x59e   : > { %v13323_v37 = vadd.f32 %v2932_v8, %v18404_v4  ;;  %v3243_v10 = vmax.f32 %v3242_v3, %v13315_v53  ;;  %v13339_v3 = vadd.f32 %v9351_v2, %v18407_v9  ;;  %v3131_v34 = vpop.f32.mrf.mxu0 }
 0x59f   : > { %v2936_v50 = vpop.f32.mrf.mxu1 }
 0x5a0   : > { %v3246_v39 = vmax.f32 %v13320_v59, %v13323_v37  ;;  %3244 = vmax.xlane.f32.xlu0 %v3243_v10  ;;  %v13332_v40 = vadd.f32 %v2936_v50, %v18405_v61  ;;  %v9356_v32 = vpop.f32.mrf.mxu0 }
 0x5a1   : > { %v2938_v58 = vpop.f32.mrf.mxu1 }
 0x5a2   : > { %v13335_v60 = vadd.f32 %v2938_v58, %v18404_v4  ;;  %v3247_v8 = vmax.f32 %v3246_v39, %v13327_v31  ;;  %v13351_v39 = vadd.f32 %v9352_v44, %v18407_v9  ;;  %v3134_v36 = vpop.f32.mrf.mxu0 }
 0x5a3   : > { %v2940_v0 = vpop.f32.mrf.mxu1 }
 0x5a4   : > { %v3250_v25 = vmax.f32 %v13332_v40, %v13335_v60  ;;  %3248 = vmax.xlane.f32.xlu1 %v3247_v8  ;;  %v13344_v55 = vadd.f32 %v2940_v0, %v18405_v61  ;;  %v9359_v30 = vpop.f32.mrf.mxu0 }
 0x5a5   : > { %v2942_v10 = vpop.f32.mrf.mxu1 }
 0x5a6   : > { %v13347_v50 = vadd.f32 %v2942_v10, %v18404_v4  ;;  %v3251_v58 = vmax.f32 %v3250_v25, %v13339_v3  ;;  %v13363_v25 = vadd.f32 %v3131_v34, %v18407_v9  ;;  %v3147_v5 = vpop.f32.mrf.mxu0 }
 0x5a7   : > { %v2946_v62 = vpop.f32.mrf.mxu1 }
 0x5a8   : > { %v3254_v2 = vmax.f32 %v13344_v55, %v13347_v50  ;;  %3252 = vmax.xlane.f32.xlu0 %v3251_v58  ;;  %v13356_v46 = vadd.f32 %v2946_v62, %v18405_v61  ;;  %v9360_v52 = vpop.f32.mrf.mxu0 }
 0x5a9   : > { %v2948_v8 = vpop.f32.mrf.mxu1 }
 0x5aa   : > { %v13359_v0 = vadd.f32 %v2948_v8, %v18404_v4  ;;  %v3255_v10 = vmax.f32 %v3254_v2, %v13351_v39  ;;  %v13375_v2 = vadd.f32 %v3134_v36, %v18407_v9  ;;  %v3150_v48 = vpop.f32.mrf.mxu0 }
 0x5ab   : > { %v2950_v47 = vpop.f32.mrf.mxu1 }
 0x5ac   : > { %v3258_v44 = vmax.f32 %v13356_v46, %v13359_v0  ;;  %3256 = vmax.xlane.f32.xlu1 %v3255_v10  ;;  %v13368_v6 = vadd.f32 %v2950_v47, %v18405_v61  ;;  %v9363_v23 = vpop.f32.mrf.mxu0 }
 0x5ad   : > { %v2952_v58 = vpop.f32.mrf.mxu1 }
 0x5ae   : > { %v13371_v62 = vadd.f32 %v2952_v58, %v18404_v4  ;;  %v3259_v8 = vmax.f32 %v3258_v44, %v13363_v25  ;;  %v13387_v44 = vadd.f32 %v9355_v54, %v18407_v9  ;;  %v3163_v20 = vpop.f32.mrf.mxu0 }
 0x5af   : > { %v2956_v13 = vpop.f32.mrf.mxu1 }
 0x5b0   : > { %v3262_v34 = vmax.f32 %v13368_v6, %v13371_v62  ;;  %3260 = vmax.xlane.f32.xlu0 %v3259_v8  ;;  %v13380_v56 = vadd.f32 %v2956_v13, %v18405_v61  ;;  %v9364_v21 = vpop.f32.mrf.mxu0 }
 0x5b1   : > { %v2958_v10 = vpop.f32.mrf.mxu1 }
 0x5b2   : > { %v13383_v47 = vadd.f32 %v2958_v10, %v18404_v4  ;;  %v3263_v58 = vmax.f32 %v3262_v34, %v13375_v2  ;;  %v13399_v34 = vadd.f32 %v9356_v32, %v18407_v9 }
 0x5b3   : > { %v2960_v7 = vpop.f32.mrf.mxu1 }
 0x5b4   : > { %v3266_v36 = vmax.f32 %v13380_v56, %v13383_v47  ;;  %3264 = vmax.xlane.f32.xlu1 %v3263_v58  ;;  %v13392_v16 = vadd.f32 %v2960_v7, %v18405_v61 }
 0x5b5   : > { %v2962_v8 = vpop.f32.mrf.mxu1 }
 0x5b6   : > { %v13395_v13 = vadd.f32 %v2962_v8, %v18404_v4  ;;  %v3267_v10 = vmax.f32 %v3266_v36, %v13387_v44  ;;  %v13411_v36 = vadd.f32 %v3147_v5, %v18407_v9 }
 0x5b7   : > { %v2966_v29 = vpop.f32.mrf.mxu1 }
 0x5b8   : > { %v3270_v54 = vmax.f32 %v13392_v16, %v13395_v13  ;;  %3268 = vmax.xlane.f32.xlu0 %v3267_v10  ;;  %v13404_v35 = vadd.f32 %v2966_v29, %v18405_v61 }
 0x5b9   : > { %v2968_v58 = vpop.f32.mrf.mxu1 }
 0x5ba   : > { %v13407_v7 = vadd.f32 %v2968_v58, %v18404_v4  ;;  %v3271_v8 = vmax.f32 %v3270_v54, %v13399_v34  ;;  %v13423_v54 = vadd.f32 %v3150_v48, %v18407_v9 }
 0x5bb   : > { %v2970_v38 = vpop.f32.mrf.mxu1 }
 0x5bc   : > { %v3274_v32 = vmax.f32 %v13404_v35, %v13407_v7  ;;  %3272 = vmax.xlane.f32.xlu1 %v3271_v8  ;;  %v13416_v18 = vadd.f32 %v2970_v38, %v18405_v61 }
 0x5bd   : > { %v2972_v10 = vpop.f32.mrf.mxu1 }
 0x5be   : > { %v13419_v29 = vadd.f32 %v2972_v10, %v18404_v4  ;;  %v3275_v58 = vmax.f32 %v3274_v32, %v13411_v36  ;;  %v13435_v32 = vadd.f32 %v9359_v30, %v18407_v9 }
 0x5bf   : > { %v2976_v17 = vpop.f32.mrf.mxu1 }
 0x5c0   : > { %v3278_v5 = vmax.f32 %v13416_v18, %v13419_v29  ;;  %3276 = vmax.xlane.f32.xlu0 %v3275_v58  ;;  %v13428_v22 = vadd.f32 %v2976_v17, %v18405_v61  ;;  %18408 = vst [vmem:[#allocation127_spill] sm:$0xff] %v13435_v32 }
 0x5c1   : > { %v2978_v8 = vpop.f32.mrf.mxu1 }
 0x5c2   : > { %v13431_v38 = vadd.f32 %v2978_v8, %v18404_v4  ;;  %v3279_v10 = vmax.f32 %v3278_v5, %v13423_v54  ;;  %v13447_v5 = vadd.f32 %v9360_v52, %v18407_v9 }
 0x5c3   : > { %v2980_v43 = vpop.f32.mrf.mxu1 }
 0x5c4   : > { %v3282_v48 = vmax.f32 %v13428_v22, %v13431_v38  ;;  %3280 = vmax.xlane.f32.xlu1 %v3279_v10  ;;  %v13440_v26 = vadd.f32 %v2980_v43, %v18405_v61  ;;  %18411 = vst [vmem:[#allocation64_spill] sm:$0xff] %v13447_v5 }
 0x5c5   : > { %v2982_v58 = vpop.f32.mrf.mxu1 }
 0x5c6   : > { %18409 = vst [vmem:[#allocation128_spill] sm:$0xff] %v13440_v26  ;;  %v13443_v17 = vadd.f32 %v2982_v58, %v18404_v4  ;;  %v3283_v8 = vmax.f32 %v3282_v48, %v13435_v32  ;;  %v13459_v48 = vadd.f32 %v3163_v20, %v18407_v9 }
 0x5c7   : > { %v2986_v24 = vpop.f32.mrf.mxu1 }
 0x5c8   : > { %18410 = vst [vmem:[#allocation129_spill] sm:$0xff] %v13443_v17  ;;  %v3286_v30 = vmax.f32 %v13440_v26, %v13443_v17  ;;  %3284 = vmax.xlane.f32.xlu0 %v3283_v8  ;;  %v13452_v41 = vadd.f32 %v2986_v24, %v18405_v61  ;;  %18414 = vst [vmem:[#allocation63_spill] sm:$0xff] %v13459_v48  ;;  %v3166_v17 = vpop.f32.mrf.mxu0 }
 0x5c9   : > { %v2988_v10 = vpop.f32.mrf.mxu1 }
 0x5ca   : > { %18412 = vst [vmem:[#allocation126_spill] sm:$0xff] %v13452_v41  ;;  %v13455_v43 = vadd.f32 %v2988_v10, %v18404_v4  ;;  %v3287_v58 = vmax.f32 %v3286_v30, %v13447_v5  ;;  %v13471_v30 = vadd.f32 %v3166_v17, %v18407_v9 }
 0x5cb   : > { %v2990_v12 = vpop.f32.mrf.mxu1 }
 0x5cc   : > { %18413 = vst [vmem:[#allocation62_spill] sm:$0xff] %v13455_v43  ;;  %v3290_v52 = vmax.f32 %v13452_v41, %v13455_v43  ;;  %3288 = vmax.xlane.f32.xlu1 %v3287_v58  ;;  %v13464_v26 = vadd.f32 %v2990_v12, %v18405_v61  ;;  %18417 = vst [vmem:[#allocation70_spill] sm:$0xff] %v13471_v30  ;;  %v9367_v43 = vpop.f32.mrf.mxu0 }
 0x5cd   : > { %v2992_v8 = vpop.f32.mrf.mxu1 }
 0x5ce   : > { %18415 = vst [vmem:[#allocation61_spill] sm:$0xff] %v13464_v26  ;;  %v13467_v24 = vadd.f32 %v2992_v8, %v18404_v4  ;;  %v3291_v10 = vmax.f32 %v3290_v52, %v13459_v48  ;;  %v13483_v52 = vadd.f32 %v9363_v23, %v18407_v9 }
 0x5cf   : > { %v2996_v32 = vpop.f32.mrf.mxu1 }
 0x5d0   : > { %18416 = vst [vmem:[#allocation66_spill] sm:$0xff] %v13467_v24  ;;  %v3294_v20 = vmax.f32 %v13464_v26, %v13467_v24  ;;  %3292 = vmax.xlane.f32.xlu0 %v3291_v10  ;;  %v13476_v41 = vadd.f32 %v2996_v32, %v18405_v61  ;;  %18420 = vst [vmem:[#allocation69_spill] sm:$0xff] %v13483_v52  ;;  %v3179_v24 = vpop.f32.mrf.mxu0 }
 0x5d1   : > { %v2998_v58 = vpop.f32.mrf.mxu1 }
 0x5d2   : > { %18418 = vst [vmem:[#allocation65_spill] sm:$0xff] %v13476_v41  ;;  %v13479_v12 = vadd.f32 %v2998_v58, %v18404_v4  ;;  %v3295_v8 = vmax.f32 %v3294_v20, %v13471_v30  ;;  %v13495_v20 = vadd.f32 %v9364_v21, %v18407_v9 }
 0x5d3   : > { %v3000_v5 = vpop.f32.mrf.mxu1 }
 0x5d4   : > { %18419 = vst [vmem:[#allocation68_spill] sm:$0xff] %v13479_v12  ;;  %v3298_v17 = vmax.f32 %v13476_v41, %v13479_v12  ;;  %3296 = vmax.xlane.f32.xlu1 %v3295_v8  ;;  %v13488_v26 = vadd.f32 %v3000_v5, %v18405_v61  ;;  %18423 = vst [vmem:[#allocation72_spill] sm:$0xff] %v13495_v20  ;;  %v9368_v12 = vpop.f32.mrf.mxu0 }
 0x5d5   : > { %v3002_v10 = vpop.f32.mrf.mxu1 }
 0x5d6   : > { %18421 = vst [vmem:[#allocation74_spill] sm:$0xff] %v13488_v26  ;;  %v13491_v32 = vadd.f32 %v3002_v10, %v18404_v4  ;;  %v3299_v58 = vmax.f32 %v3298_v17, %v13483_v52  ;;  %v13507_v17 = vadd.f32 %v3179_v24, %v18407_v9 }
 0x5d7   : > { %v3006_v48 = vpop.f32.mrf.mxu1 }
 0x5d8   : > { %18422 = vst [vmem:[#allocation67_spill] sm:$0xff] %v13491_v32  ;;  %v3302_v23 = vmax.f32 %v13488_v26, %v13491_v32  ;;  %3300 = vmax.xlane.f32.xlu0 %v3299_v58  ;;  %v13500_v41 = vadd.f32 %v3006_v48, %v18405_v61  ;;  %18426 = vst [vmem:[#allocation76_spill] sm:$0xff] %v13507_v17  ;;  %v3182_v32 = vpop.f32.mrf.mxu0 }
 0x5d9   : > { %v3008_v8 = vpop.f32.mrf.mxu1 }
 0x5da   : > { %18424 = vst [vmem:[#allocation73_spill] sm:$0xff] %v13500_v41  ;;  %v13503_v5 = vadd.f32 %v3008_v8, %v18404_v4  ;;  %v3303_v10 = vmax.f32 %v3302_v23, %v13495_v20  ;;  %v13519_v23 = vadd.f32 %v3182_v32, %v18407_v9 }
 0x5db   : > { %v3010_v30 = vpop.f32.mrf.mxu1 }
 0x5dc   : > { %18425 = vst [vmem:[#allocation71_spill] sm:$0xff] %v13503_v5  ;;  %v3306_v21 = vmax.f32 %v13500_v41, %v13503_v5  ;;  %3304 = vmax.xlane.f32.xlu1 %v3303_v10  ;;  %v13512_v26 = vadd.f32 %v3010_v30, %v18405_v61  ;;  %18429 = vst [vmem:[#allocation79_spill] sm:$0xff] %v13519_v23  ;;  %v9371_v5 = vpop.f32.mrf.mxu0 }
 0x5dd   : > { %v3012_v58 = vpop.f32.mrf.mxu1 }
 0x5de   : > { %18427 = vst [vmem:[#allocation77_spill] sm:$0xff] %v13512_v26  ;;  %v13515_v48 = vadd.f32 %v3012_v58, %v18404_v4  ;;  %v3307_v8 = vmax.f32 %v3306_v21, %v13507_v17  ;;  %v13531_v21 = vadd.f32 %v9367_v43, %v18407_v9 }
 0x5df   : > { %v3016_v52 = vpop.f32.mrf.mxu1 }
 0x5e0   : > { %18428 = vst [vmem:[#allocation75_spill] sm:$0xff] %v13515_v48  ;;  %v3310_v24 = vmax.f32 %v13512_v26, %v13515_v48  ;;  %3308 = vmax.xlane.f32.xlu0 %v3307_v8  ;;  %v13524_v41 = vadd.f32 %v3016_v52, %v18405_v61  ;;  %18432 = vst [vmem:[#allocation78_spill] sm:$0xff] %v13531_v21  ;;  %v3195_v48 = vpop.f32.mrf.mxu0 }
 0x5e1   : > { %v3018_v10 = vpop.f32.mrf.mxu1 }
 0x5e2   : > { %18430 = vst [vmem:[#allocation80_spill] sm:$0xff] %v13524_v41  ;;  %v13527_v30 = vadd.f32 %v3018_v10, %v18404_v4  ;;  %v3311_v58 = vmax.f32 %v3310_v24, %v13519_v23  ;;  %v13543_v24 = vadd.f32 %v9368_v12, %v18407_v9 }
 0x5e3   : > { %v3020_v20 = vpop.f32.mrf.mxu1 }
 0x5e4   : > { %18431 = vst [vmem:[#allocation84_spill] sm:$0xff] %v13527_v30  ;;  %v3314_v32 = vmax.f32 %v13524_v41, %v13527_v30  ;;  %3312 = vmax.xlane.f32.xlu1 %v3311_v58  ;;  %v13536_v26 = vadd.f32 %v3020_v20, %v18405_v61  ;;  %18435 = vst [vmem:[#allocation88_spill] sm:$0xff] %v13543_v24  ;;  %v9372_v30 = vpop.f32.mrf.mxu0 }
 0x5e5   : > { %v3022_v8 = vpop.f32.mrf.mxu1 }
 0x5e6   : > { %18433 = vst [vmem:[#allocation82_spill] sm:$0xff] %v13536_v26  ;;  %v13539_v52 = vadd.f32 %v3022_v8, %v18404_v4  ;;  %v3315_v10 = vmax.f32 %v3314_v32, %v13531_v21  ;;  %v13555_v32 = vadd.f32 %v3195_v48, %v18407_v9 }
 0x5e7   : > { %v3026_v17 = vpop.f32.mrf.mxu1 }
 0x5e8   : > { %18434 = vst [vmem:[#allocation83_spill] sm:$0xff] %v13539_v52  ;;  %v3318_v43 = vmax.f32 %v13536_v26, %v13539_v52  ;;  %3316 = vmax.xlane.f32.xlu0 %v3315_v10  ;;  %v13548_v41 = vadd.f32 %v3026_v17, %v18405_v61  ;;  %18438 = vst [vmem:[#allocation87_spill] sm:$0xff] %v13555_v32  ;;  %v3198_v52 = vpop.f32.mrf.mxu0 }
 0x5e9   : > { %v3028_v58 = vpop.f32.mrf.mxu1 }
 0x5ea   : > { %18436 = vst [vmem:[#allocation81_spill] sm:$0xff] %v13548_v41  ;;  %v13551_v20 = vadd.f32 %v3028_v58, %v18404_v4  ;;  %v3319_v8 = vmax.f32 %v3318_v43, %v13543_v24  ;;  %v13567_v43 = vadd.f32 %v3198_v52, %v18407_v9  ;;  %v13583_v52 = vadd.f32 %v9371_v5, %v18407_v9 }
 0x5eb   : > { %v3030_v23 = vpop.f32.mrf.mxu1 }
 0x5ec   : > { %18437 = vst [vmem:[#allocation86_spill] sm:$0xff] %v13551_v20  ;;  %v3322_v12 = vmax.f32 %v13548_v41, %v13551_v20  ;;  %3320 = vmax.xlane.f32.xlu1 %v3319_v8  ;;  %v13560_v26 = vadd.f32 %v3030_v23, %v18405_v61  ;;  %18441 = vst [vmem:[#allocation91_spill] sm:$0xff] %v13567_v43  ;;  %v9375_v20 = vpop.f32.mrf.mxu0 }
 0x5ed   : > { %v3032_v10 = vpop.f32.mrf.mxu1  ;;  %18446 = vst [vmem:[#allocation96_spill] sm:$0xff] %v13583_v52 }
 0x5ee   : > { %18439 = vst [vmem:[#allocation92_spill] sm:$0xff] %v13560_v26  ;;  %v13563_v17 = vadd.f32 %v3032_v10, %v18404_v4  ;;  %v3323_v58 = vmax.f32 %v3322_v12, %v13555_v32  ;;  %v13578_v12 = vpop.permute.xlu1 %4432  ;;  %v13580_v32 = vpop.permute.xlu0 %4416 }
 0x5ef   : > { %v3036_v21 = vpop.f32.mrf.mxu1  ;;  %18444 = vst [vmem:[#allocation90_spill] sm:$0xff] %v13578_v12  ;;  %18445 = vst [vmem:[#allocation95_spill] sm:$0xff] %v13580_v32  ;;  %v13595_v32 = vadd.f32 %v9372_v30, %v18407_v9 }
 0x5f0   : > { %18440 = vst [vmem:[#allocation85_spill] sm:$0xff] %v13563_v17  ;;  %v3326_v48 = vmax.f32 %v13560_v26, %v13563_v17  ;;  %3324 = vmax.xlane.f32.xlu1 %v3323_v58  ;;  %v13572_v41 = vadd.f32 %v3036_v21, %v18405_v61  ;;  %v3211_v17 = vpop.f32.mrf.mxu0 }
 0x5f1   : > { %v3038_v8 = vpop.f32.mrf.mxu1  ;;  %18449 = vst [vmem:[#allocation131_spill] sm:$0xff] %v13595_v32 }
 0x5f2   : > { %18442 = vst [vmem:[#allocation89_spill] sm:$0xff] %v13572_v41  ;;  %v13575_v23 = vadd.f32 %v3038_v8, %v18404_v4  ;;  %v3327_v10 = vmax.f32 %v3326_v48, %v13567_v43  ;;  %v9376_v43 = vpop.f32.mrf.mxu0 }
 0x5f3   : > { %v3040_v24 = vpop.f32.mrf.mxu1 }
 0x5f4   : > { %18443 = vst [vmem:[#allocation93_spill] sm:$0xff] %v13575_v23  ;;  %v3330_v58 = vmax.f32 %v13572_v41, %v13575_v23  ;;  %3328 = vmax.xlane.f32.xlu0 %v3327_v10  ;;  %v13588_v26 = vadd.f32 %v3040_v24, %v18405_v61  ;;  %v13599_v23 = vpop.permute.xlu1 %4448  ;;  %v13601_v41 = vpop.permute.xlu0 %4414 }
 0x5f5   : > { %v3042_v21 = vpop.f32.mrf.mxu1  ;;  %18450 = vst [vmem:[#allocation132_spill] sm:$0xff] %v13599_v23  ;;  %18451 = vst [vmem:[#allocation133_spill] sm:$0xff] %v13601_v41 }
 0x5f6   : > { %18447 = vst [vmem:[#allocation94_spill] sm:$0xff] %v13588_v26  ;;  %v13591_v8 = vadd.f32 %v3042_v21, %v18404_v4  ;;  %v3331_v48 = vmax.f32 %v3330_v58, %v13583_v52  ;;  %v13611_v52 = vadd.f32 %v3211_v17, %v18407_v9 }
 0x5f7   : > { %v3046_v12 = vpop.f32.mrf.mxu1 }
 0x5f8   : > { %18448 = vst [vmem:[#allocation130_spill] sm:$0xff] %v13591_v8  ;;  %v3334_v5 = vmax.f32 %v13588_v26, %v13591_v8  ;;  %3332 = vmax.xlane.f32.xlu1 %v3331_v48  ;;  %v13604_v24 = vadd.f32 %v3046_v12, %v18405_v61  ;;  %18453 = vst [vmem:[#allocation135_spill] sm:$0xff] %v13611_v52  ;;  %v3214_v8 = vpop.f32.mrf.mxu0 }
 0x5f9   : > { %v3048_v10 = vpop.f32.mrf.mxu1  ;;  %v13627_v17 = vadd.f32 %v3214_v8, %v18407_v9 }
 0x5fa   : > { %v13607_v21 = vadd.f32 %v3048_v10, %v18404_v4  ;;  %v3335_v58 = vmax.f32 %v3334_v5, %v13595_v32  ;;  %v13622_v5 = vpop.permute.xlu1 %4430  ;;  %v13624_v32 = vpop.permute.xlu0 %4446 }
 0x5fb   : > { %v3050_v30 = vpop.f32.mrf.mxu1  ;;  %18455 = vst [vmem:[#allocation137_spill] sm:$0xff] %v13622_v5  ;;  %18456 = vst [vmem:[#allocation138_spill] sm:$0xff] %v13624_v32  ;;  %v13639_v5 = vadd.f32 %v9375_v20, %v18407_v9  ;;  %v13655_v20 = vadd.f32 %v9376_v43, %v18407_v9 }
 0x5fc   : > { %18452 = vst [vmem:[#allocation134_spill] sm:$0xff] %v13607_v21  ;;  %v3338_v48 = vmax.f32 %v13604_v24, %v13607_v21  ;;  %3336 = vmax.xlane.f32.xlu0 %v3335_v58  ;;  %v13616_v41 = vadd.f32 %v3050_v30, %v18405_v61 }
 0x5fd   : > { %v3052_v23 = vpop.f32.mrf.mxu1  ;;  %18458 = vst [vmem:[#allocation140_spill] sm:$0xff] %v13639_v5  ;;  %18461 = vst [vmem:[#allocation143_spill] sm:$0xff] %v13655_v20 }
 0x5fe   : > { %v13619_v12 = vadd.f32 %v3052_v23, %v18404_v4  ;;  %v3339_v10 = vmax.f32 %v3338_v48, %v13611_v52 }
 0x5ff   : > { %v3056_v26 = vpop.f32.mrf.mxu1 }
 0x600   : > { %18454 = vst [vmem:[#allocation136_spill] sm:$0xff] %v13619_v12  ;;  %v3342_v58 = vmax.f32 %v13616_v41, %v13619_v12  ;;  %3340 = vmax.xlane.f32.xlu1 %v3339_v10  ;;  %v13632_v30 = vadd.f32 %v3056_v26, %v18405_v61  ;;  %v13643_v12 = vpop.permute.xlu1 %4428  ;;  %v13645_v10 = vpop.permute.xlu0 %4412 }
 0x601   : > { %v3058_v21 = vpop.f32.mrf.mxu1  ;;  %18459 = vst [vmem:[#allocation141_spill] sm:$0xff] %v13643_v12  ;;  %18460 = vst [vmem:[#allocation142_spill] sm:$0xff] %v13645_v10 }
 0x602   : > { %v13635_v23 = vadd.f32 %v3058_v21, %v18404_v4  ;;  %v3343_v48 = vmax.f32 %v3342_v58, %v13627_v17 }
 0x603   : > { %v3060_v52 = vpop.f32.mrf.mxu1 }
 0x604   : > { %18457 = vst [vmem:[#allocation139_spill] sm:$0xff] %v13635_v23  ;;  %v3346_v8 = vmax.f32 %v13632_v30, %v13635_v23  ;;  %3344 = vmax.xlane.f32.xlu0 %v3343_v48  ;;  %v13648_v26 = vadd.f32 %v3060_v52, %v18405_v61  ;;  %v13660_v12 = vpop.permute.xlu1 %4410  ;;  %v13662_v10 = vpop.permute.xlu0 %4444 }
 0x605   : > { %v3062_v32 = vpop.f32.mrf.mxu1  ;;  %18462 = vst [vmem:[#allocation144_spill] sm:$0xff] %v13660_v12  ;;  %18463 = vst [vmem:[#allocation145_spill] sm:$0xff] %v13662_v10 }
 0x606   : > { %v13651_v21 = vadd.f32 %v3062_v32, %v18404_v4  ;;  %v3347_v58 = vmax.f32 %v3346_v8, %v13639_v5 }
 0x608   : > { %v3350_v23 = vmax.f32 %v13648_v26, %v13651_v21  ;;  %3348 = vmax.xlane.f32.xlu1 %v3347_v58  ;;  %v13664_v52 = vpop.permute.xlu1 %4426  ;;  %v13666_v32 = vpop.permute.xlu0 %4442 }
 0x609   : > { %18464 = vst [vmem:[#allocation146_spill] sm:$0xff] %v13664_v52  ;;  %18465 = vst [vmem:[#allocation147_spill] sm:$0xff] %v13666_v32 }
 0x60a   : > { %v3351_v48 = vmax.f32 %v3350_v23, %v13655_v20 }
 0x60c   : > { %3352 = vmax.xlane.f32.xlu1 %v3351_v48  ;;  %v13668_v4 = vpop.permute.xlu1 %4408  ;;  %v13670_v8 = vpop.permute.xlu0 %4424 }
 0x60d   : > { %18466 = vst [vmem:[#allocation148_spill] sm:$0xff] %v13668_v4  ;;  %18467 = vst [vmem:[#allocation149_spill] sm:$0xff] %v13670_v8 }
 0x610   : > { %v13672_v43 = vpop.permute.xlu1 %4440 }
 0x611   : > { %18468 = vst [vmem:[#allocation150_spill] sm:$0xff] %v13672_v43 }
 0x61c   : > { %v3229_v9 = vpop.xlane.xlu0 %3228 }
 0x61d   : > { %v3354_v58 = vsub.f32 %v13260_v14, %v3229_v9  ;;  %v3355_v23 = vsub.f32 %v13257_v49, %v3229_v9  ;;  %v3356_v61 = vsub.f32 %v13272_v15, %v3229_v9 }
 0x61f   : > { %v3450_v12 = vmul.f32 1.442695, %v3354_v58  ;;  %v3452_v10 = vmul.f32 1.442695, %v3355_v23  ;;  %v3454_v48 = vmul.f32 1.442695, %v3356_v61 }
 0x620   : > { %v3233_v20 = vpop.xlane.xlu1 %3232 }
 0x621   : > { %10075 = vpow2.f32 %v3450_v12  ;;  %v3357_v52 = vsub.f32 %v13275_v57, %v3233_v20  ;;  %v3358_v4 = vsub.f32 %v13269_v63, %v3233_v20  ;;  %v3359_v8 = vsub.f32 %v13287_v19, %v3233_v20  ;;  %v3237_v32 = vpop.xlane.xlu0 %3236 }
 0x622   : > { %10077 = vpow2.f32 %v3452_v10  ;;  %v3360_v43 = vsub.f32 %v13279_v28, %v3237_v32  ;;  %v3361_v14 = vsub.f32 %v13282_v42, %v3237_v32  ;;  %v3362_v61 = vsub.f32 %v13290_v51, %v3237_v32 }
 0x623   : > { %v3456_v49 = vmul.f32 1.442695, %v3357_v52  ;;  %v3458_v5 = vmul.f32 1.442695, %v3358_v4  ;;  %v3460_v9 = vmul.f32 1.442695, %v3359_v8  ;;  %10079 = vpow2.f32 %v3454_v48 }
 0x624   : > { %v3462_v15 = vmul.f32 1.442695, %v3360_v43  ;;  %v3464_v12 = vmul.f32 1.442695, %v3361_v14  ;;  %v3466_v4 = vmul.f32 1.442695, %v3362_v61 }
 0x625   : > { %10081 = vpow2.f32 %v3456_v49  ;;  %v3241_v57 = vpop.xlane.xlu0 %3240 }
 0x626   : > { %10083 = vpow2.f32 %v3458_v5  ;;  %v3363_v63 = vsub.f32 %v13296_v33, %v3241_v57  ;;  %v3364_v19 = vsub.f32 %v13299_v27, %v3241_v57  ;;  %v3365_v28 = vsub.f32 %v13303_v1, %v3241_v57 }
 0x627   : > { %10085 = vpow2.f32 %v3460_v9 }
 0x628   : > { %10087 = vpow2.f32 %v3462_v15  ;;  %v3468_v42 = vmul.f32 1.442695, %v3363_v63  ;;  %v3470_v10 = vmul.f32 1.442695, %v3364_v19  ;;  %v3472_v20 = vmul.f32 1.442695, %v3365_v28 }
 0x629   : > { %10089 = vpow2.f32 %v3464_v12  ;;  %v3245_v63 = vpop.xlane.xlu0 %3244 }
 0x62a   : > { %10091 = vpow2.f32 %v3468_v42  ;;  %v3366_v28 = vsub.f32 %v13308_v45, %v3245_v63 }
 0x62b   : > { %10093 = vpow2.f32 %v3470_v10  ;;  %v3367_v10 = vsub.f32 %v13311_v11, %v3245_v63 }
 0x62c   : > { %10095 = vpow2.f32 %v3466_v4  ;;  %v3368_v4 = vsub.f32 %v13315_v53, %v3245_v63 }
 0x62d   : > { %10097 = vpow2.f32 %v3472_v20  ;;  %v3249_v42 = vpop.xlane.xlu1 %3248 }
 0x62e   : > { %v13686_v51 = vpop.eup %10075  ;;  %v3369_v20 = vsub.f32 %v13320_v59, %v3249_v42 }
 0x62f   : > { %v13688_v52 = vpop.eup %10077 }
 0x630   : > { %v13690_v33 = vpop.eup %10079  ;;  %v3642_v27 = vadd.f32 %v13688_v52, %v13686_v51  ;;  %v3480_v45 = vmul.f32 1.442695, %v3369_v20 }
 0x632   : > { %v13694_v1 = vpop.eup %10081  ;;  %v3643_v32 = vadd.f32 %v13690_v33, %v3642_v27  ;;  %v3253_v27 = vpop.xlane.xlu0 %3252 }
 0x633   : > { %v13696_v5 = vpop.eup %10083  ;;  %v3374_v53 = vsub.f32 %v13339_v3, %v3253_v27 }
 0x634   : > { %v13699_v8 = vpop.eup %10085  ;;  %3644 = vadd.xlane.f32.xlu1 %v3643_v32  ;;  %v3646_v58 = vadd.f32 %v13696_v5, %v13694_v1  ;;  %v3474_v32 = vmul.f32 1.442695, %v3366_v28 }
 0x635   : > { %v13701_v43 = vpop.eup %10087 }
 0x636   : > { %18469 = vst [vmem:[#allocation151_spill] sm:$0xff] %v13701_v43  ;;  %v13705_v23 = vpop.eup %10089  ;;  %v3647_v48 = vadd.f32 %v13699_v8, %v3646_v58  ;;  %v3370_v58 = vsub.f32 %v13323_v37, %v3249_v42  ;;  %10099 = vpow2.f32 %v3474_v32 }
 0x637   : > { %v3650_v14 = vadd.f32 %v13705_v23, %v13701_v43  ;;  %v13710_v49 = vpop.eup %10091 }
 0x638   : > { %18470 = vst [vmem:[#allocation152_spill] sm:$0xff] %v13710_v49  ;;  %v13712_v9 = vpop.eup %10093  ;;  %3648 = vadd.xlane.f32.xlu1 %v3647_v48  ;;  %v3476_v48 = vmul.f32 1.442695, %v3367_v10  ;;  %v3482_v11 = vmul.f32 1.442695, %v3370_v58 }
 0x639   : > { %v13714_v15 = vpop.eup %10095  ;;  %v3654_v12 = vadd.f32 %v13712_v9, %v13710_v49  ;;  %v3257_v49 = vpop.xlane.xlu1 %3256  ;;  %v3490_v10 = vmul.f32 1.442695, %v3374_v53 }
 0x63a   : > { %v3651_v61 = vadd.f32 %v13714_v15, %v3650_v14  ;;  %v13719_v57 = vpop.eup %10097  ;;  %v3371_v14 = vsub.f32 %v13327_v31, %v3249_v42  ;;  %10101 = vpow2.f32 %v3476_v48  ;;  %v3375_v63 = vsub.f32 %v13344_v55, %v3257_v49  ;;  %v3261_v28 = vpop.xlane.xlu0 %3260 }
 0x63b   : > { %v3655_v19 = vadd.f32 %v13719_v57, %v3654_v12  ;;  %v3372_v12 = vsub.f32 %v13332_v40, %v3253_v27  ;;  %v3376_v31 = vsub.f32 %v13347_v50, %v3257_v49  ;;  %v3377_v40 = vsub.f32 %v13351_v39, %v3257_v49  ;;  %v18471_v39 = vld [vmem:[#allocation42_spill] sm:$0xff] }
 0x63c   : > { %3652 = vadd.xlane.f32.xlu1 %v3651_v61  ;;  %v3478_v61 = vmul.f32 1.442695, %v3368_v4  ;;  %v3484_v59 = vmul.f32 1.442695, %v3371_v14  ;;  %v3492_v3 = vmul.f32 1.442695, %v3375_v63  ;;  %v3379_v20 = vsub.f32 %v13359_v0, %v3261_v28 }
 0x63d   : > { %3656 = vadd.xlane.f32.xlu0 %v3655_v19  ;;  %v3373_v19 = vsub.f32 %v13335_v60, %v3253_v27  ;;  %v3486_v37 = vmul.f32 1.442695, %v3372_v12  ;;  %v3378_v60 = vsub.f32 %v13356_v46, %v3261_v28  ;;  %v3265_v4 = vpop.xlane.xlu1 %3264  ;;  %v3494_v55 = vmul.f32 1.442695, %v3376_v31 }
 0x63e   : > { %10103 = vpow2.f32 %v3478_v61  ;;  %v3380_v27 = vsub.f32 %v13363_v25, %v3261_v28  ;;  %v3496_v32 = vmul.f32 1.442695, %v3377_v40  ;;  %v3381_v50 = vsub.f32 %v13368_v6, %v3265_v4  ;;  %v18474_v28 = vld [vmem:[#allocation44_spill] sm:$0xff] }
 0x63f   : > { %10105 = vpow2.f32 %v3480_v45  ;;  %v3488_v42 = vmul.f32 1.442695, %v3373_v19  ;;  %v3498_v49 = vmul.f32 1.442695, %v3378_v60  ;;  %v3382_v46 = vsub.f32 %v13371_v62, %v3265_v4 }
 0x640   : > { %10107 = vpow2.f32 %v3482_v11  ;;  %v3500_v48 = vmul.f32 1.442695, %v3379_v20  ;;  %v3383_v0 = vsub.f32 %v13375_v2, %v3265_v4  ;;  %v3502_v14 = vmul.f32 1.442695, %v3380_v27 }
 0x641   : > { %10109 = vpow2.f32 %v3484_v59  ;;  %v3269_v58 = vpop.xlane.xlu0 %3268  ;;  %v3504_v12 = vmul.f32 1.442695, %v3381_v50  ;;  %v3506_v45 = vmul.f32 1.442695, %v3382_v46 }
 0x642   : > { %10111 = vpow2.f32 %v3486_v37  ;;  %v3384_v25 = vsub.f32 %v13380_v56, %v3269_v58  ;;  %v3385_v6 = vsub.f32 %v13383_v47, %v3269_v58  ;;  %v3386_v19 = vsub.f32 %v13387_v44, %v3269_v58 }
 0x643   : > { %10113 = vpow2.f32 %v3488_v42  ;;  %v13745_v11 = vpop.eup %10099  ;;  %v3508_v62 = vmul.f32 1.442695, %v3383_v0 }
 0x644   : > { %10115 = vpow2.f32 %v3490_v10  ;;  %18472 = vst [vmem:[#allocation153_spill] sm:$0xff] %v13745_v11  ;;  %v3510_v56 = vmul.f32 1.442695, %v3384_v25  ;;  %v3512_v44 = vmul.f32 1.442695, %v3385_v6  ;;  %v18483_v6 = vld [vmem:[#allocation127_spill] sm:$0xff] }
 0x645   : > { %10117 = vpow2.f32 %v3492_v3  ;;  %v3273_v61 = vpop.xlane.xlu1 %3272 }
 0x646   : > { %10119 = vpow2.f32 %v3494_v55  ;;  %v3387_v53 = vsub.f32 %v13392_v16, %v3273_v61  ;;  %v3388_v63 = vsub.f32 %v13395_v13, %v3273_v61  ;;  %v3389_v37 = vsub.f32 %v13399_v34, %v3273_v61 }
 0x647   : > { %10121 = vpow2.f32 %v3496_v32  ;;  %v13748_v59 = vpop.eup %10101  ;;  %v3514_v16 = vmul.f32 1.442695, %v3386_v19 }
 0x648   : > { %10123 = vpow2.f32 %v3498_v49  ;;  %18473 = vst [vmem:[#allocation154_spill] sm:$0xff] %v13748_v59  ;;  %v3516_v13 = vmul.f32 1.442695, %v3387_v53  ;;  %v3518_v3 = vmul.f32 1.442695, %v3388_v63  ;;  %v18486_v63 = vld [vmem:[#allocation129_spill] sm:$0xff] }
 0x649   : > { %10125 = vpow2.f32 %v3500_v48  ;;  %v3277_v2 = vpop.xlane.xlu0 %3276  ;;  %v3520_v55 = vmul.f32 1.442695, %v3389_v37 }
 0x64a   : > { %10127 = vpow2.f32 %v3502_v14  ;;  %v3390_v42 = vsub.f32 %v13404_v35, %v3277_v2  ;;  %v3391_v60 = vsub.f32 %v13407_v7, %v3277_v2  ;;  %v3392_v20 = vsub.f32 %v13411_v36, %v3277_v2 }
 0x64b   : > { %v13753_v47 = vpop.eup %10103  ;;  %10129 = vpow2.f32 %v3504_v12 }
 0x64c   : > { %18475 = vst [vmem:[#allocation155_spill] sm:$0xff] %v13753_v47  ;;  %v13756_v31 = vpop.eup %10105  ;;  %10131 = vpow2.f32 %v3506_v45  ;;  %v3522_v50 = vmul.f32 1.442695, %v3390_v42  ;;  %v3524_v49 = vmul.f32 1.442695, %v3391_v60  ;;  %v18489_v60 = vld [vmem:[#allocation126_spill] sm:$0xff] }
 0x64d   : > { %4422 = vrot.lane.b32.xlu1 %v18471_v39, %s10950_s20  ;;  %18476 = vst [vmem:[#allocation156_spill] sm:$0xff] %v13756_v31  ;;  %v3281_v40 = vpop.xlane.xlu1 %3280  ;;  %v13759_v10 = vpop.eup %10107  ;;  %10133 = vpow2.f32 %v3508_v62  ;;  %v3526_v48 = vmul.f32 1.442695, %v3392_v20  ;;  %v18485_v62 = vld [vmem:[#allocation128_spill] sm:$0xff]  ;;  %v3658_v39 = vadd.f32 %v13748_v59, %v13745_v11  ;;  %v18507_v11 = vld [vmem:[#allocation73_spill] sm:$0xff] }
 0x64e   : > { %18477 = vst [vmem:[#allocation157_spill] sm:$0xff] %v13759_v10  ;;  %v13762_v4 = vpop.eup %10109  ;;  %10135 = vpow2.f32 %v3510_v56  ;;  %v3393_v27 = vsub.f32 %v13416_v18, %v3281_v40  ;;  %v3394_v58 = vsub.f32 %v13419_v29, %v3281_v40  ;;  %v3395_v46 = vsub.f32 %v13423_v54, %v3281_v40 }
 0x64f   : > { %v13765_v34 = vpop.eup %10111  ;;  %10137 = vpow2.f32 %v3512_v44 }
 0x650   : > { %18478 = vst [vmem:[#allocation158_spill] sm:$0xff] %v13765_v34  ;;  %v13768_v32 = vpop.eup %10113  ;;  %10139 = vpow2.f32 %v3514_v16  ;;  %v3528_v25 = vmul.f32 1.442695, %v3393_v27  ;;  %v3530_v12 = vmul.f32 1.442695, %v3394_v58  ;;  %v18487_v16 = vld [vmem:[#allocation64_spill] sm:$0xff] }
 0x651   : > { %v3285_v35 = vpop.xlane.xlu0 %3284  ;;  %18479 = vst [vmem:[#allocation159_spill] sm:$0xff] %v13768_v32  ;;  %v13771_v7 = vpop.eup %10115  ;;  %10141 = vpow2.f32 %v3516_v13  ;;  %v3532_v19 = vmul.f32 1.442695, %v3395_v46  ;;  %v18492_v46 = vld [vmem:[#allocation63_spill] sm:$0xff] }
 0x652   : > { %18480 = vst [vmem:[#allocation160_spill] sm:$0xff] %v13771_v7  ;;  %v13774_v36 = vpop.eup %10117  ;;  %10143 = vpow2.f32 %v3518_v3  ;;  %v3396_v0 = vsub.f32 %v13428_v22, %v3285_v35  ;;  %v3397_v61 = vsub.f32 %v13431_v38, %v3285_v35  ;;  %v3398_v45 = vsub.f32 %v18483_v6, %v3285_v35  ;;  %v18491_v35 = vld [vmem:[#allocation62_spill] sm:$0xff] }
 0x653   : > { %4406 = vrot.lane.b32.xlu0 %v18474_v28, %s10950_s20  ;;  %18481 = vst [vmem:[#allocation161_spill] sm:$0xff] %v13774_v36  ;;  %v13777_v14 = vpop.eup %10119  ;;  %10145 = vpow2.f32 %v3520_v55 }
 0x654   : > { %18482 = vst [vmem:[#allocation162_spill] sm:$0xff] %v13777_v14  ;;  %v13780_v29 = vpop.eup %10121  ;;  %10147 = vpow2.f32 %v3522_v50  ;;  %v3534_v56 = vmul.f32 1.442695, %v3396_v0  ;;  %v3536_v37 = vmul.f32 1.442695, %v3397_v61 }
 0x655   : > { %v3289_v18 = vpop.xlane.xlu1 %3288  ;;  %v13783_v54 = vpop.eup %10123  ;;  %10149 = vpow2.f32 %v3524_v49  ;;  %v3538_v13 = vmul.f32 1.442695, %v3398_v45 }
 0x656   : > { %18484 = vst [vmem:[#allocation127_spill] sm:$0xff] %v13783_v54  ;;  %v3399_v53 = vsub.f32 %v18485_v62, %v3289_v18  ;;  %v13786_v2 = vpop.eup %10125  ;;  %10151 = vpow2.f32 %v3526_v48  ;;  %v3400_v44 = vsub.f32 %v18486_v63, %v3289_v18  ;;  %v3401_v42 = vsub.f32 %v18487_v16, %v3289_v18  ;;  %v18497_v63 = vld [vmem:[#allocation70_spill] sm:$0xff]  ;;  %v18499_v16 = vld [vmem:[#allocation65_spill] sm:$0xff] }
 0x657   : > { %v13789_v38 = vpop.eup %10127  ;;  %10153 = vpow2.f32 %v3528_v25  ;;  %v18494_v25 = vld [vmem:[#allocation61_spill] sm:$0xff] }
 0x658   : > { %v13792_v40 = vpop.eup %10129  ;;  %10155 = vpow2.f32 %v3530_v12  ;;  %v3540_v27 = vmul.f32 1.442695, %v3399_v53  ;;  %v3542_v49 = vmul.f32 1.442695, %v3400_v44  ;;  %v3544_v18 = vmul.f32 1.442695, %v3401_v42 }
 0x659   : > { %v3293_v22 = vpop.xlane.xlu0 %3292  ;;  %18488 = vst [vmem:[#allocation128_spill] sm:$0xff] %v13792_v40  ;;  %v13795_v55 = vpop.eup %10131  ;;  %10157 = vpow2.f32 %v3532_v19  ;;  %v18496_v19 = vld [vmem:[#allocation66_spill] sm:$0xff] }
 0x65a   : > { %v3402_v3 = vsub.f32 %v18489_v60, %v3293_v22  ;;  %18490 = vst [vmem:[#allocation129_spill] sm:$0xff] %v13795_v55  ;;  %v3403_v50 = vsub.f32 %v18491_v35, %v3293_v22  ;;  %v13798_v58 = vpop.eup %10133  ;;  %10159 = vpow2.f32 %v3534_v56  ;;  %v3404_v48 = vsub.f32 %v18492_v46, %v3293_v22 }
 0x65b   : > { %v13801_v0 = vpop.eup %10135  ;;  %10161 = vpow2.f32 %v3536_v37 }
 0x65c   : > { %18493 = vst [vmem:[#allocation64_spill] sm:$0xff] %v13801_v0  ;;  %v13804_v6 = vpop.eup %10137  ;;  %10163 = vpow2.f32 %v3538_v13  ;;  %v3546_v45 = vmul.f32 1.442695, %v3402_v3  ;;  %v3548_v56 = vmul.f32 1.442695, %v3403_v50  ;;  %v18500_v3 = vld [vmem:[#allocation68_spill] sm:$0xff] }
 0x65d   : > { %v3297_v20 = vpop.xlane.xlu1 %3296  ;;  %18495 = vst [vmem:[#allocation126_spill] sm:$0xff] %v13804_v6  ;;  %v13807_v53 = vpop.eup %10139  ;;  %10165 = vpow2.f32 %v3540_v27  ;;  %v3550_v37 = vmul.f32 1.442695, %v3404_v48  ;;  %v18501_v50 = vld [vmem:[#allocation69_spill] sm:$0xff]  ;;  %v18503_v48 = vld [vmem:[#allocation74_spill] sm:$0xff] }
 0x65e   : > { %v3405_v61 = vsub.f32 %v18494_v25, %v3297_v20  ;;  %v3406_v62 = vsub.f32 %v18496_v19, %v3297_v20  ;;  %v3407_v44 = vsub.f32 %v18497_v63, %v3297_v20  ;;  %v13810_v22 = vpop.eup %10141  ;;  %10167 = vpow2.f32 %v3542_v49 }
 0x65f   : > { %18498 = vst [vmem:[#allocation62_spill] sm:$0xff] %v13810_v22  ;;  %v13813_v35 = vpop.eup %10143  ;;  %10169 = vpow2.f32 %v3544_v18 }
 0x660   : > { %v3552_v13 = vmul.f32 1.442695, %v3405_v61  ;;  %v13816_v25 = vpop.eup %10145  ;;  %10171 = vpow2.f32 %v3546_v45  ;;  %v3554_v27 = vmul.f32 1.442695, %v3406_v62  ;;  %v3556_v49 = vmul.f32 1.442695, %v3407_v44 }
 0x661   : > { %v3301_v12 = vpop.xlane.xlu0 %3300  ;;  %v13819_v20 = vpop.eup %10147  ;;  %10173 = vpow2.f32 %v3548_v56  ;;  %v18505_v62 = vld [vmem:[#allocation72_spill] sm:$0xff]  ;;  %v3662_v56 = vadd.f32 %v13759_v10, %v13756_v31 }
 0x662   : > { %v3408_v42 = vsub.f32 %v18499_v16, %v3301_v12  ;;  %v3409_v46 = vsub.f32 %v18500_v3, %v3301_v12  ;;  %v3410_v19 = vsub.f32 %v18501_v50, %v3301_v12  ;;  %18502 = vst [vmem:[#allocation63_spill] sm:$0xff] %v13819_v20  ;;  %v13824_v18 = vpop.eup %10149  ;;  %10175 = vpow2.f32 %v3550_v37  ;;  %v18504_v3 = vld [vmem:[#allocation67_spill] sm:$0xff] }
 0x663   : > { %v13827_v45 = vpop.eup %10151  ;;  %10177 = vpow2.f32 %v3552_v13  ;;  %v3666_v37 = vadd.f32 %v13768_v32, %v13765_v34  ;;  %v18512_v32 = vld [vmem:[#allocation77_spill] sm:$0xff] }
 0x664   : > { %v3558_v61 = vmul.f32 1.442695, %v3408_v42  ;;  %v3560_v12 = vmul.f32 1.442695, %v3409_v46  ;;  %v13832_v44 = vpop.eup %10153  ;;  %10179 = vpow2.f32 %v3554_v27  ;;  %v18509_v46 = vld [vmem:[#allocation71_spill] sm:$0xff]  ;;  %v18510_v27 = vld [vmem:[#allocation76_spill] sm:$0xff] }
 0x665   : > { %v3305_v60 = vpop.xlane.xlu1 %3304  ;;  %18506 = vst [vmem:[#allocation61_spill] sm:$0xff] %v13832_v44  ;;  %v13837_v42 = vpop.eup %10155  ;;  %10181 = vpow2.f32 %v3556_v49 }
 0x666   : > { %v3411_v63 = vsub.f32 %v18503_v48, %v3305_v60  ;;  %v3412_v28 = vsub.f32 %v18504_v3, %v3305_v60  ;;  %v3413_v50 = vsub.f32 %v18505_v62, %v3305_v60  ;;  %v3562_v48 = vmul.f32 1.442695, %v3410_v19  ;;  %18508 = vst [vmem:[#allocation66_spill] sm:$0xff] %v13837_v42  ;;  %v13841_v62 = vpop.eup %10157 }
 0x667   : > { %v3659_v60 = vadd.f32 %v13753_v47, %v3658_v39  ;;  %10183 = vpow2.f32 %v3558_v61  ;;  %v13846_v10 = vpop.eup %10159 }
 0x668   : > { %v3564_v13 = vmul.f32 1.442695, %v3411_v63  ;;  %v3566_v31 = vmul.f32 1.442695, %v3412_v28  ;;  %18511 = vst [vmem:[#allocation70_spill] sm:$0xff] %v13846_v10  ;;  %10185 = vpow2.f32 %v3560_v12  ;;  %v3663_v63 = vadd.f32 %v13762_v4, %v3662_v56  ;;  %v13850_v39 = vpop.eup %10161  ;;  %v18513_v28 = vld [vmem:[#allocation75_spill] sm:$0xff] }
 0x669   : > { %v3309_v16 = vpop.xlane.xlu0 %3308  ;;  %v3568_v34 = vmul.f32 1.442695, %v3413_v50  ;;  %10187 = vpow2.f32 %v3562_v48  ;;  %v18514_v12 = vld [vmem:[#allocation79_spill] sm:$0xff]  ;;  %v18516_v48 = vld [vmem:[#allocation80_spill] sm:$0xff] }
 0x66a   : > { %v3414_v59 = vsub.f32 %v18507_v11, %v3309_v16  ;;  %v3415_v3 = vsub.f32 %v18509_v46, %v3309_v16  ;;  %v3416_v19 = vsub.f32 %v18510_v27, %v3309_v16  ;;  %v3670_v11 = vadd.f32 %v13777_v14, %v13774_v36  ;;  %v13854_v27 = vpop.eup %10163 }
 0x66b   : > { %v3667_v16 = vadd.f32 %v13771_v7, %v3666_v37  ;;  %10189 = vpow2.f32 %v3564_v13  ;;  %v13859_v56 = vpop.eup %10165 }
 0x66c   : > { %v3570_v61 = vmul.f32 1.442695, %v3414_v59  ;;  %v3572_v36 = vmul.f32 1.442695, %v3415_v3  ;;  %18515 = vst [vmem:[#allocation65_spill] sm:$0xff] %v13859_v56  ;;  %10191 = vpow2.f32 %v3566_v31  ;;  %v13863_v37 = vpop.eup %10167  ;;  %v18518_v3 = vld [vmem:[#allocation84_spill] sm:$0xff] }
 0x66d   : > { %v3313_v43 = vpop.xlane.xlu1 %3312  ;;  %18517 = vst [vmem:[#allocation68_spill] sm:$0xff] %v13863_v37  ;;  %10193 = vpow2.f32 %v3568_v34 }
 0x66e   : > { %v3417_v49 = vsub.f32 %v18512_v32, %v3313_v43  ;;  %v3418_v47 = vsub.f32 %v18513_v28, %v3313_v43  ;;  %v3419_v50 = vsub.f32 %v18514_v12, %v3313_v43  ;;  %v3678_v32 = vadd.f32 %v13795_v55, %v13792_v40 }
 0x66f   : > { %v3671_v28 = vadd.f32 %v13780_v29, %v3670_v11  ;;  %v3674_v43 = vadd.f32 %v13786_v2, %v13783_v54  ;;  %10195 = vpow2.f32 %v3570_v61  ;;  %v18523_v61 = vld [vmem:[#allocation83_spill] sm:$0xff] }
 0x670   : > { %v3576_v13 = vmul.f32 1.442695, %v3417_v49  ;;  %v3578_v31 = vmul.f32 1.442695, %v3418_v47  ;;  %10197 = vpow2.f32 %v3572_v36  ;;  %v3580_v34 = vmul.f32 1.442695, %v3419_v50 }
 0x671   : > { %3660 = vadd.xlane.f32.xlu1 %v3659_v60  ;;  %v3317_v46 = vpop.xlane.xlu0 %3316  ;;  %v3574_v60 = vmul.f32 1.442695, %v3416_v19  ;;  %v18519_v19 = vld [vmem:[#allocation78_spill] sm:$0xff]  ;;  %v18524_v50 = vld [vmem:[#allocation88_spill] sm:$0xff] }
 0x672   : > { %3664 = vadd.xlane.f32.xlu0 %v3663_v63  ;;  %v3420_v59 = vsub.f32 %v18516_v48, %v3317_v46  ;;  %v3421_v7 = vsub.f32 %v18518_v3, %v3317_v46  ;;  %v13868_v63 = vpop.eup %10169  ;;  %v3422_v12 = vsub.f32 %v18519_v19, %v3317_v46  ;;  %v3694_v48 = vadd.f32 %v13837_v42, %v13832_v44  ;;  %v18521_v49 = vld [vmem:[#allocation82_spill] sm:$0xff] }
 0x673   : > { %v13873_v11 = vpop.eup %10171  ;;  %10199 = vpow2.f32 %v3574_v60  ;;  %v3682_v46 = vadd.f32 %v13804_v6, %v13801_v0  ;;  %v18528_v6 = vld [vmem:[#allocation86_spill] sm:$0xff] }
 0x674   : > { %18520 = vst [vmem:[#allocation69_spill] sm:$0xff] %v13873_v11  ;;  %v13877_v3 = vpop.eup %10173  ;;  %v3582_v54 = vmul.f32 1.442695, %v3420_v59  ;;  %10201 = vpow2.f32 %v3576_v13  ;;  %v3584_v36 = vmul.f32 1.442695, %v3421_v7  ;;  %v18526_v59 = vld [vmem:[#allocation81_spill] sm:$0xff]  ;;  %v3702_v7 = vadd.f32 %v13863_v37, %v13859_v56 }
 0x675   : > { %v3321_v14 = vpop.xlane.xlu1 %3320  ;;  %3668 = vadd.xlane.f32.xlu1 %v3667_v16  ;;  %v3679_v16 = vadd.f32 %v13798_v58, %v3678_v32  ;;  %18522 = vst [vmem:[#allocation74_spill] sm:$0xff] %v13877_v3  ;;  %v13882_v19 = vpop.eup %10175  ;;  %10203 = vpow2.f32 %v3578_v31  ;;  %v3586_v60 = vmul.f32 1.442695, %v3422_v12  ;;  %v3683_v31 = vadd.f32 %v13807_v53, %v3682_v46 }
 0x676   : > { %v3423_v40 = vsub.f32 %v18521_v49, %v3321_v14  ;;  %3672 = vadd.xlane.f32.xlu0 %v3671_v28  ;;  %v3424_v47 = vsub.f32 %v18523_v61, %v3321_v14  ;;  %v3425_v44 = vsub.f32 %v18524_v50, %v3321_v14  ;;  %v3675_v28 = vadd.f32 %v13789_v38, %v3674_v43  ;;  %v13886_v32 = vpop.eup %10177  ;;  %v18530_v50 = vld [vmem:[#allocation85_spill] sm:$0xff] }
 0x677   : > { %18525 = vst [vmem:[#allocation67_spill] sm:$0xff] %v13886_v32  ;;  %v3695_v61 = vadd.f32 %v13841_v62, %v3694_v48  ;;  %v13890_v42 = vpop.eup %10179  ;;  %10205 = vpow2.f32 %v3580_v34  ;;  %v3686_v48 = vadd.f32 %v13813_v35, %v13810_v22  ;;  %v3703_v22 = vadd.f32 %v13868_v63, %v3702_v7 }
 0x678   : > { %18527 = vst [vmem:[#allocation72_spill] sm:$0xff] %v13890_v42  ;;  %v3588_v0 = vmul.f32 1.442695, %v3423_v40  ;;  %v13895_v14 = vpop.eup %10181  ;;  %10207 = vpow2.f32 %v3582_v54  ;;  %v3590_v43 = vmul.f32 1.442695, %v3424_v47  ;;  %v18531_v54 = vld [vmem:[#allocation87_spill] sm:$0xff] }
 0x679   : > { %v3325_v55 = vpop.xlane.xlu1 %3324  ;;  %3680 = vadd.xlane.f32.xlu1 %v3679_v16  ;;  %v13900_v16 = vpop.eup %10183  ;;  %10209 = vpow2.f32 %v3584_v36  ;;  %v3592_v40 = vmul.f32 1.442695, %v3425_v44  ;;  %v3706_v44 = vadd.f32 %v13877_v3, %v13873_v11 }
 0x67a   : > { %v3426_v49 = vsub.f32 %v18526_v59, %v3325_v55  ;;  %v3427_v13 = vsub.f32 %v18528_v6, %v3325_v55  ;;  %3676 = vadd.xlane.f32.xlu0 %v3675_v28  ;;  %v18529_v6 = vld [vmem:[#allocation92_spill] sm:$0xff]  ;;  %v13904_v59 = vpop.eup %10185  ;;  %10211 = vpow2.f32 %v3586_v60  ;;  %v3428_v47 = vsub.f32 %v18531_v54, %v3325_v55 }
 0x67b   : > { %v13907_v46 = vpop.eup %10187  ;;  %10213 = vpow2.f32 %v3588_v0  ;;  %v3687_v60 = vadd.f32 %v13816_v25, %v3686_v48  ;;  %v3690_v55 = vadd.f32 %v13824_v18, %v13819_v20  ;;  %v3710_v48 = vadd.f32 %v13890_v42, %v13886_v32 }
 0x67c   : > { %v3594_v56 = vmul.f32 1.442695, %v3426_v49  ;;  %v3596_v37 = vmul.f32 1.442695, %v3427_v13  ;;  %v13912_v36 = vpop.eup %10189  ;;  %10215 = vpow2.f32 %v3590_v43  ;;  %v18533_v13 = vld [vmem:[#allocation89_spill] sm:$0xff] }
 0x67d   : > { %v3329_v12 = vpop.xlane.xlu0 %3328  ;;  %3696 = vadd.xlane.f32.xlu1 %v3695_v61  ;;  %18532 = vst [vmem:[#allocation73_spill] sm:$0xff] %v13912_v36  ;;  %v13917_v49 = vpop.eup %10191  ;;  %10217 = vpow2.f32 %v3592_v40  ;;  %v3598_v43 = vmul.f32 1.442695, %v3428_v47 }
 0x67e   : > { %v3429_v34 = vsub.f32 %v18529_v6, %v3329_v12  ;;  %v3430_v28 = vsub.f32 %v18530_v50, %v3329_v12  ;;  %3684 = vadd.xlane.f32.xlu0 %v3683_v31  ;;  %v18534_v31 = vld [vmem:[#allocation93_spill] sm:$0xff]  ;;  %v13921_v54 = vpop.eup %10193  ;;  %10219 = vpow2.f32 %v3594_v56 }
 0x67f   : > { %v13926_v3 = vpop.eup %10195  ;;  %10221 = vpow2.f32 %v3596_v37 }
 0x680   : > { %v3600_v61 = vmul.f32 1.442695, %v3429_v34  ;;  %v3602_v0 = vmul.f32 1.442695, %v3430_v28  ;;  %v18535_v34 = vld [vmem:[#allocation91_spill] sm:$0xff]  ;;  %v13929_v40 = vpop.eup %10197 }
 0x681   : > { %v3333_v6 = vpop.xlane.xlu1 %3332  ;;  %3704 = vadd.xlane.f32.xlu1 %v3703_v22  ;;  %v3431_v11 = vsub.f32 %v18535_v34, %v3329_v12  ;;  %v3707_v22 = vadd.f32 %v13882_v19, %v3706_v44  ;;  %v3698_v12 = vadd.f32 %v13850_v39, %v13846_v10  ;;  %v13934_v47 = vpop.eup %10199  ;;  %v18538_v34 = vld [vmem:[#allocation131_spill] sm:$0xff]  ;;  %v18540_v10 = vld [vmem:[#allocation96_spill] sm:$0xff] }
 0x682   : > { %v3432_v7 = vsub.f32 %v18533_v13, %v3333_v6  ;;  %v3433_v50 = vsub.f32 %v18534_v31, %v3333_v6  ;;  %3688 = vadd.xlane.f32.xlu0 %v3687_v60  ;;  %10223 = vpow2.f32 %v3600_v61  ;;  %v3691_v13 = vadd.f32 %v13827_v45, %v3690_v55  ;;  %v18536_v31 = vld [vmem:[#allocation94_spill] sm:$0xff]  ;;  %v13939_v32 = vpop.eup %10201 }
 0x683   : > { %10225 = vpow2.f32 %v3602_v0  ;;  %18539 = vst [vmem:[#allocation71_spill] sm:$0xff] %v13939_v32  ;;  %v3604_v61 = vmul.f32 1.442695, %v3431_v11  ;;  %v3711_v55 = vadd.f32 %v13895_v14, %v3710_v48  ;;  %v13944_v42 = vpop.eup %10203  ;;  %v3434_v0 = vsub.f32 %v18540_v10, %v3333_v6 }
 0x684   : > { %v3606_v20 = vmul.f32 1.442695, %v3432_v7  ;;  %v3608_v28 = vmul.f32 1.442695, %v3433_v50  ;;  %v18537_v7 = vld [vmem:[#allocation130_spill] sm:$0xff]  ;;  %10227 = vpow2.f32 %v3598_v43  ;;  %v3714_v50 = vadd.f32 %v13904_v59, %v13900_v16 }
 0x685   : > { %v3337_v56 = vpop.xlane.xlu0 %3336  ;;  %3708 = vadd.xlane.f32.xlu1 %v3707_v22  ;;  %v3699_v11 = vadd.f32 %v13854_v27, %v3698_v12  ;;  %v3718_v43 = vadd.f32 %v13917_v49, %v13912_v36  ;;  %v3722_v12 = vadd.f32 %v13929_v40, %v13926_v3  ;;  %v3610_v36 = vmul.f32 1.442695, %v3434_v0  ;;  %v18545_v0 = vld [vmem:[#allocation136_spill] sm:$0xff] }
 0x686   : > { %v3435_v37 = vsub.f32 %v18536_v31, %v3337_v56  ;;  %v3436_v60 = vsub.f32 %v18537_v7, %v3337_v56  ;;  %v3437_v44 = vsub.f32 %v18538_v34, %v3337_v56  ;;  %10229 = vpow2.f32 %v3606_v20  ;;  %3692 = vadd.xlane.f32.xlu0 %v3691_v13  ;;  %v13947_v7 = vpop.eup %10205  ;;  %v18542_v20 = vld [vmem:[#allocation134_spill] sm:$0xff]  ;;  %v18543_v13 = vld [vmem:[#allocation135_spill] sm:$0xff] }
 0x687   : > { %10231 = vpow2.f32 %v3608_v28  ;;  %v13952_v48 = vpop.eup %10207  ;;  %v3715_v28 = vadd.f32 %v13907_v46, %v3714_v50  ;;  %v3726_v50 = vadd.f32 %v13944_v42, %v13939_v32 }
 0x688   : > { %v3612_v22 = vmul.f32 1.442695, %v3435_v37  ;;  %v3614_v31 = vmul.f32 1.442695, %v3436_v60  ;;  %v3616_v56 = vmul.f32 1.442695, %v3437_v44  ;;  %v13957_v60 = vpop.eup %10209 }
 0x689   : > { %v3341_v34 = vpop.xlane.xlu1 %3340  ;;  %18541 = vst [vmem:[#allocation76_spill] sm:$0xff] %v13952_v48  ;;  %3712 = vadd.xlane.f32.xlu1 %v3711_v55  ;;  %v13962_v44 = vpop.eup %10211 }
 0x68a   : > { %10233 = vpow2.f32 %v3612_v22  ;;  %v3438_v10 = vsub.f32 %v13604_v24, %v3341_v34  ;;  %v3439_v6 = vsub.f32 %v18542_v20, %v3341_v34  ;;  %v3440_v37 = vsub.f32 %v18543_v13, %v3341_v34  ;;  %3700 = vadd.xlane.f32.xlu0 %v3699_v11  ;;  %v13964_v24 = vpop.eup %10213 }
 0x68b   : > { %10235 = vpow2.f32 %v3614_v31  ;;  %18544 = vst [vmem:[#allocation77_spill] sm:$0xff] %v13964_v24  ;;  %v3719_v34 = vadd.f32 %v13921_v54, %v3718_v43  ;;  %v13969_v31 = vpop.eup %10215 }
 0x68c   : > { %10237 = vpow2.f32 %v3604_v61  ;;  %v3618_v22 = vmul.f32 1.442695, %v3438_v10  ;;  %v3620_v55 = vmul.f32 1.442695, %v3439_v6  ;;  %v3622_v20 = vmul.f32 1.442695, %v3440_v37  ;;  %v13974_v6 = vpop.eup %10217 }
 0x68d   : > { %10239 = vpow2.f32 %v3616_v56  ;;  %v3345_v13 = vpop.xlane.xlu0 %3344  ;;  %3716 = vadd.xlane.f32.xlu1 %v3715_v28  ;;  %v3723_v56 = vadd.f32 %v13934_v47, %v3722_v12  ;;  %v13977_v43 = vpop.eup %10219  ;;  %v3730_v28 = vadd.f32 %v13957_v60, %v13952_v48  ;;  %v3734_v12 = vadd.f32 %v13969_v31, %v13964_v24 }
 0x68e   : > { %10241 = vpow2.f32 %v3618_v22  ;;  %v3441_v61 = vsub.f32 %v13616_v41, %v3345_v13  ;;  %v3442_v10 = vsub.f32 %v18545_v0, %v3345_v13  ;;  %v3443_v11 = vsub.f32 %v13627_v17, %v3345_v13  ;;  %18546 = vst [vmem:[#allocation75_spill] sm:$0xff] %v13977_v43  ;;  %3720 = vadd.xlane.f32.xlu0 %v3719_v34  ;;  %v13981_v22 = vpop.eup %10221 }
 0x68f   : > { %10243 = vpow2.f32 %v3620_v55  ;;  %18547 = vst [vmem:[#allocation79_spill] sm:$0xff] %v13981_v22  ;;  %v13983_v0 = vpop.eup %10223  ;;  %v3727_v17 = vadd.f32 %v13947_v7, %v3726_v50  ;;  %v3731_v34 = vadd.f32 %v13962_v44, %v3730_v28  ;;  %v3735_v50 = vadd.f32 %v13974_v6, %v3734_v12 }
 0x690   : > { %10245 = vpow2.f32 %v3610_v36  ;;  %v3624_v37 = vmul.f32 1.442695, %v3441_v61  ;;  %v3626_v32 = vmul.f32 1.442695, %v3442_v10  ;;  %v3628_v41 = vmul.f32 1.442695, %v3443_v11  ;;  %v13988_v36 = vpop.eup %10225 }
 0x691   : > { %10247 = vpow2.f32 %v3622_v20  ;;  %18548 = vst [vmem:[#allocation80_spill] sm:$0xff] %v13983_v0  ;;  %3724 = vadd.xlane.f32.xlu1 %v3723_v56  ;;  %18549 = vst [vmem:[#allocation84_spill] sm:$0xff] %v13988_v36  ;;  %v13990_v55 = vpop.eup %10227  ;;  %v3738_v20 = vadd.f32 %v13981_v22, %v13977_v43  ;;  %v3742_v10 = vadd.f32 %v13988_v36, %v13983_v0  ;;  %v18559_v43 = vld [vmem:[#allocation139_spill] sm:$0xff] }
 0x692   : > { %10249 = vpow2.f32 %v3624_v37  ;;  %3728 = vadd.xlane.f32.xlu0 %v3727_v17 }
 0x693   : > { %10251 = vpow2.f32 %v3626_v32  ;;  %v13995_v13 = vpop.eup %10229  ;;  %v3739_v56 = vadd.f32 %v13990_v55, %v3738_v20 }
 0x694   : > { %18550 = vst [vmem:[#allocation78_spill] sm:$0xff] %v13995_v13  ;;  %10253 = vpow2.f32 %v3628_v41  ;;  %v13997_v61 = vpop.eup %10231 }
 0x695   : > { %18551 = vst [vmem:[#allocation82_spill] sm:$0xff] %v13997_v61  ;;  %3732 = vadd.xlane.f32.xlu1 %v3731_v34  ;;  %v3746_v12 = vadd.f32 %v13997_v61, %v13995_v13 }
 0x696   : > { %3736 = vadd.xlane.f32.xlu0 %v3735_v50 }
 0x697   : > { %v14002_v32 = vpop.eup %10233 }
 0x698   : > { %18552 = vst [vmem:[#allocation83_spill] sm:$0xff] %v14002_v32  ;;  %v14004_v11 = vpop.eup %10235 }
 0x699   : > { %18553 = vst [vmem:[#allocation88_spill] sm:$0xff] %v14004_v11  ;;  %v14007_v37 = vpop.eup %10237  ;;  %v3750_v28 = vadd.f32 %v14004_v11, %v14002_v32  ;;  %3740 = vadd.xlane.f32.xlu1 %v3739_v56 }
 0x69a   : > { %v14011_v41 = vpop.eup %10239  ;;  %v3743_v17 = vadd.f32 %v14007_v37, %v3742_v10 }
 0x69b   : > { %v14016_v34 = vpop.eup %10241  ;;  %v3751_v0 = vadd.f32 %v14011_v41, %v3750_v28 }
 0x69c   : > { %18554 = vst [vmem:[#allocation81_spill] sm:$0xff] %v14016_v34  ;;  %v14019_v50 = vpop.eup %10243  ;;  %3744 = vadd.xlane.f32.xlu0 %v3743_v17 }
 0x69d   : > { %18555 = vst [vmem:[#allocation86_spill] sm:$0xff] %v14019_v50  ;;  %v14021_v20 = vpop.eup %10245  ;;  %v3754_v32 = vadd.f32 %v14019_v50, %v14016_v34  ;;  %3752 = vadd.xlane.f32.xlu1 %v3751_v0  ;;  %v3349_v50 = vpop.xlane.xlu1 %3348  ;;  %v18558_v0 = vld [vmem:[#allocation49_spill] sm:$0xff] }
 0x69e   : > { %v14025_v11 = vpop.eup %10247  ;;  %v3747_v10 = vadd.f32 %v14021_v20, %v3746_v12  ;;  %v3444_v12 = vsub.f32 %v13632_v30, %v3349_v50 }
 0x69f   : > { %v14028_v56 = vpop.eup %10249  ;;  %v3755_v13 = vadd.f32 %v14025_v11, %v3754_v32  ;;  %v3445_v32 = vsub.f32 %v18559_v43, %v3349_v50 }
 0x6a0   : > { %18556 = vst [vmem:[#allocation92_spill] sm:$0xff] %v14028_v56  ;;  %v14031_v61 = vpop.eup %10251  ;;  %3748 = vadd.xlane.f32.xlu0 %v3747_v10  ;;  %v3630_v22 = vmul.f32 1.442695, %v3444_v12 }
 0x6a1   : > { %18557 = vst [vmem:[#allocation85_spill] sm:$0xff] %v14031_v61  ;;  %v3758_v28 = vadd.f32 %v14031_v61, %v14028_v56  ;;  %v14035_v17 = vpop.eup %10253  ;;  %3756 = vadd.xlane.f32.xlu1 %v3755_v13  ;;  %v3353_v36 = vpop.xlane.xlu1 %3352  ;;  %v3632_v24 = vmul.f32 1.442695, %v3445_v32  ;;  %v10859_v13 = vld [vmem:[%s17461_s2 + $0x10] ss:$8 sps:$4 sm:$0xff]   ;;  %v18561_v61 = vld [vmem:[#allocation143_spill] sm:$0xff] }
 0x6a2   : > { %v3447_v10 = vsub.f32 %v13648_v26, %v3353_v36  ;;  %10255 = vpow2.f32 %v3630_v22  ;;  %v3449_v26 = vsub.f32 %v18561_v61, %v3353_v36 }
 0x6a3   : > { %v3759_v34 = vadd.f32 %v14035_v17, %v3758_v28  ;;  %v18560_v28 = vld [vmem:[#allocation140_spill] sm:$0xff]  ;;  %10257 = vpow2.f32 %v3632_v24 }
 0x6a4   : > { %v3446_v56 = vsub.f32 %v18560_v28, %v3349_v50  ;;  %v3640_v48 = vmul.f32 1.442695, %v3449_v26 }
 0x6a5   : > { %3760 = vadd.xlane.f32.xlu0 %v3759_v34  ;;  %v3448_v34 = vsub.f32 %v13651_v21, %v3353_v36 }
 0x6a6   : > { %v3634_v12 = vmul.f32 1.442695, %v3446_v56 }
 0x6a7   : > { %v3638_v43 = vmul.f32 1.442695, %v3448_v34 }
 0x6af   : > { %v14050_v22 = vpop.eup %10255 }
 0x6b0   : > { %18562 = vst [vmem:[#allocation87_spill] sm:$0xff] %v14050_v22  ;;  %v14052_v50 = vpop.eup %10257 }
 0x6b2   : > { %4404 = vrot.lane.b32.xlu1 %v18558_v0, %s10950_s20  ;;  %v3636_v0 = vmul.f32 1.442695, %v3447_v10 }
 0x6bb   : > { %4438 = vrot.lane.b32.xlu0 %v10859_v13, %s10950_s20 }
 0x6bd   : > { %v3645_v30 = vpop.xlane.xlu1 %3644 }
 0x6be   : > { %10259 = vrcp.f32 %v3645_v30 }
 0x6bf   : > { %10261 = vpow2.f32 %v3636_v0  ;;  %v3762_v0 = vadd.f32 %v14052_v50, %v14050_v22 }
 0x6c1   : > { %v3649_v32 = vpop.xlane.xlu1 %3648 }
 0x6c2   : > { %10263 = vrcp.f32 %v3649_v32 }
 0x6c3   : > { %10265 = vpow2.f32 %v3638_v43 }
 0x6c4   : > { %10267 = vpow2.f32 %v3634_v12 }
 0x6c5   : > { %v3653_v13 = vpop.xlane.xlu1 %3652 }
 0x6c6   : > { %10269 = vrcp.f32 %v3653_v13  ;;  %v3657_v21 = vpop.xlane.xlu0 %3656 }
 0x6c7   : > { %10271 = vrcp.f32 %v3657_v21 }
 0x6c8   : > { %10273 = vpow2.f32 %v3640_v48 }
 0x6cb   : > { %v10260_v24 = vpop.eup %10259 }
 0x6cc   : > { %v14054_v10 = vpop.eup %10261  ;;  %v3803_v36 = vmul.f32 %v10260_v24, %v13688_v52  ;;  %v3804_v61 = vmul.f32 %v10260_v24, %v13690_v33  ;;  %v3802_v30 = vmul.f32 %v10260_v24, %v13686_v51 }
 0x6cf   : > { %v10264_v56 = vpop.eup %10263 }
 0x6d0   : > { %v14060_v34 = vpop.eup %10265  ;;  %v3806_v28 = vmul.f32 %v10264_v56, %v13696_v5  ;;  %v3807_v48 = vmul.f32 %v10264_v56, %v13699_v8  ;;  %v3805_v43 = vmul.f32 %v10264_v56, %v13694_v1  ;;  %v18563_v1 = vld [vmem:[#allocation102_spill] sm:$0xff] }
 0x6d1   : > { %v14066_v12 = vpop.eup %10267  ;;  %v3766_v33 = vadd.f32 %v14060_v34, %v14054_v10  ;;  %v4570_v24 = vsel %vm1107_vm2, %v18563_v1, 0  ;;  %v18572_v1 = vld [vmem:[#allocation145_spill] sm:$0xff] }
 0x6d2   : > { %v3899_v26 = vpack.c.bf16 %v3806_v28, %v3803_v36  ;;  %v3900_v32 = vpack.c.bf16 %v3807_v48, %v3804_v61  ;;  %v3898_v52 = vpack.c.bf16 %v3805_v43, %v3802_v30  ;;  %v3763_v21 = vadd.f32 %v14066_v12, %v3762_v0  ;;  %v18564_v28 = vld [vmem:[#allocation132_spill] sm:$0xff]  ;;  %v18565_v0 = vld [vmem:[#allocation151_spill] sm:$0xff] }
 0x6d3   : > { %v10270_v13 = vpop.eup %10269  ;;  %v18566_v48 = vld [vmem:[#allocation152_spill] sm:$0xff] }
 0x6d4   : > { %4066 = vmatprep.mubr.bf16.mxu0 %v3899_v26  ;;  %9393 = vmatprep.mubr.bf16.mxu1 %v3900_v32  ;;  %v3809_v5 = vmul.f32 %v10270_v13, %v13705_v23  ;;  %v3810_v8 = vmul.f32 %v10270_v13, %v13714_v15  ;;  %v10272_v51 = vpop.eup %10271  ;;  %v3808_v15 = vmul.f32 %v10270_v13, %v18565_v0  ;;  %v18567_v32 = vld [vmem:[#allocation107_spill] sm:$0xff]  ;;  %v18569_v13 = vld [vmem:[#allocation138_spill] sm:$0xff]  ;;  %v4561_v0 = vsel %vm1107_vm2, %v18572_v1, 0 }
 0x6d5   : > { %4067 = vmatmul.mubr.bf16.vlgmr.msra.gmra.mxu0 %v3898_v52  ;;  %v14075_v56 = vpop.eup %10273  ;;  %v3812_v36 = vmul.f32 %v10272_v51, %v13712_v9  ;;  %v3813_v61 = vmul.f32 %v10272_v51, %v13719_v57  ;;  %v3811_v30 = vmul.f32 %v10272_v51, %v18566_v48  ;;  %v4522_v52 = vsel %vm1107_vm2, %v18567_v32, 0  ;;  %v18568_v57 = vld [vmem:[#allocation90_spill] sm:$0xff]  ;;  %v18577_v48 = vld [vmem:[#allocation9_spill] sm:$0xff]  ;;  %v18580_v32 = vld [vmem:[#allocation15_spill] sm:$0xff] }
 0x6d6   : > { %9426 = vmatpush3.bf16.xpose.msra.mxu0 %v4570_v24  ;;  %3764 = vadd.xlane.f32.xlu1 %v3763_v21  ;;  %v3767_v23 = vadd.f32 %v14075_v56, %v3766_v33  ;;  %v4567_v33 = vsel %vm1107_vm2, %v18564_v28, 0  ;;  %v18570_v21 = vld [vmem:[#allocation95_spill] sm:$0xff]  ;;  %v4564_v51 = vsel %vm1107_vm2, %v18569_v13, 0 }
 0x6d7   : > { %9661 = vmatprep.subr.msk.bf16.mxu0 %vm1107_vm2, %v18564_v28  ;;  %v3902_v43 = vpack.c.bf16 %v3812_v36, %v3809_v5  ;;  %v3903_v26 = vpack.c.bf16 %v3813_v61, %v3810_v8  ;;  %v3901_v9 = vpack.c.bf16 %v3811_v30, %v3808_v15  ;;  %v4519_v5 = vsel %vm1107_vm2, %v18570_v21, 0  ;;  %v18571_v8 = vld [vmem:[#allocation137_spill] sm:$0xff]  ;;  %v10860_v24 = vld [vmem:[%s17461_s2] ss:$8 sps:$4 sm:$0xff]  }
 0x6d8   : > { %v18573_v36 = vld [vmem:[#allocation133_spill] sm:$0xff]  ;;  %v18574_v28 = vld [vmem:[#allocation7_spill] sm:$0xff] }
 0x6d9   : > { %4074 = vmatprep.mubr.bf16.mxu0 %v3902_v43  ;;  %9394 = vmatmul.mubr.bf16.vlgmr.msra.gmra.mxu1 %v3903_v26  ;;  %v4516_v61 = vsel %vm1107_vm2, %v18573_v36, 0  ;;  %v18576_v15 = vld [vmem:[#allocation147_spill] sm:$0xff]  ;;  %v18579_v43 = vld [vmem:[#allocation142_spill] sm:$0xff] }
 0x6da   : > { %3768 = vadd.xlane.f32.xlu0 %v3767_v23  ;;  %8766 = vmatpush3.bf16.xpose.msra.mxu1 %v4522_v52  ;;  %v18575_v23 = vld [vmem:[#allocation141_spill] sm:$0xff]  ;;  %v18578_v30 = vld [vmem:[#allocation47_spill] sm:$0xff]  ;;  %v4513_v26 = vsel %vm1107_vm2, %v18579_v43, 0  ;;  %v18581_v52 = vld [vmem:[#allocation146_spill] sm:$0xff] }
 0x6db   : > { %9653 = vmatprep.subr.msk.bf16.mxu1 %vm1107_vm2, %v18568_v57  ;;  %v4558_v57 = vsel %vm1107_vm2, %v18576_v15, 0  ;;  %v18584_v21 = vld [vmem:[#allocation23_spill] sm:$0xff] }
 0x6dc   : > { %v18587_v36 = vld [vmem:[#allocation27_spill] sm:$0xff] }
 0x6dd   : > { %4075 = vmatmul.mubr.bf16.gmra.mxu0 %v3901_v9  ;;  %v18582_v9 = vld [vmem:[#allocation6_spill] sm:$0xff] }
 0x6de   : > { %9428 = vmatpush3.bf16.xpose.msra.mxu0 %v4567_v33  ;;  %v4423_v33 = vpop.permute.xlu1 %4422 }
 0x6df   : > { %9662 = vmatprep.subr.msk.bf16.mxu0 %vm1107_vm2, %v18569_v13  ;;  %v18583_v13 = vld [vmem:[#allocation150_spill] sm:$0xff] }
 0x6e2   : > { %8768 = vmatpush3.bf16.xpose.msra.mxu1 %v4519_v5  ;;  %v4407_v5 = vpop.permute.xlu0 %4406 }
 0x6e3   : > { %9654 = vmatprep.subr.msk.bf16.mxu1 %vm1107_vm2, %v18571_v8  ;;  %v18585_v8 = vld [vmem:[#allocation8_spill] sm:$0xff] }
 0x6e6   : > { %9430 = vmatpush3.bf16.xpose.msra.mxu0 %v4564_v51  ;;  %v18586_v51 = vld [vmem:[#allocation144_spill] sm:$0xff] }
 0x6e7   : > { %9663 = vmatprep.subr.msk.bf16.mxu0 %vm1107_vm2, %v18572_v1  ;;  %4436 = vrot.lane.b32.xlu1 %v10860_v24, %s10950_s20  ;;  %v4510_v1 = vsel %vm1107_vm2, %v18586_v51, 0  ;;  %v18592_v51 = vld [vmem:[#allocation148_spill] sm:$0xff] }
 0x6ea   : > { %8770 = vmatpush3.bf16.xpose.msra.mxu1 %v4516_v61  ;;  %v18588_v61 = vld [vmem:[#allocation149_spill] sm:$0xff] }
 0x6eb   : > { %4374 = vrot.lane.b32.xlu1 %v18574_v28, %s10950_s20  ;;  %9655 = vmatprep.subr.msk.bf16.mxu1 %vm1107_vm2, %v18575_v23 }
 0x6ee   : > { %9432 = vmatpush3.bf16.xpose.msra.mxu0 %v4561_v0  ;;  %v18589_v0 = vld [vmem:[#allocation12_spill] sm:$0xff] }
 0x6ef   : > { %9664 = vmatprep.subr.msk.bf16.mxu0 %vm1107_vm2, %v18576_v15  ;;  %4378 = vrot.lane.b32.xlu1 %v18577_v48, %s10950_s20  ;;  %v4555_v15 = vsel %vm1107_vm2, %v18583_v13, 0  ;;  %v18604_v48 = vld [vmem:[#allocation159_spill] sm:$0xff] }
 0x6f0   : > { %4420 = vrot.lane.b32.xlu0 %v18578_v30, %s10950_s20 }
 0x6f2   : > { %8772 = vmatpush3.bf16.xpose.msra.mxu1 %v4513_v26  ;;  %v18590_v26 = vld [vmem:[#allocation30_spill] sm:$0xff] }
 0x6f3   : > { %4382 = vrot.lane.b32.xlu1 %v18580_v32, %s10950_s20  ;;  %9656 = vmatprep.subr.msk.bf16.mxu1 %vm1107_vm2, %v18581_v52 }
 0x6f4   : > { %4372 = vrot.lane.b32.xlu0 %v18582_v9, %s10950_s20  ;;  %v18599_v9 = vld [vmem:[#allocation153_spill] sm:$0xff] }
 0x6f6   : > { %9434 = vmatpush3.bf16.xpose.msra.mxu0 %v4558_v57  ;;  %v18591_v57 = vld [vmem:[#allocation18_spill] sm:$0xff] }
 0x6f7   : > { %9665 = vmatprep.subr.msk.bf16.mxu0 %vm1107_vm2, %v18583_v13  ;;  %4386 = vrot.lane.b32.xlu1 %v18584_v21, %s10950_s20 }
 0x6f8   : > { %4376 = vrot.lane.b32.xlu0 %v18585_v8, %s10950_s20 }
 0x6fa   : > { %v3661_v24 = vpop.xlane.xlu1 %3660  ;;  %8774 = vmatpush3.bf16.xpose.msra.mxu1 %v4510_v1  ;;  %v4507_v1 = vsel %vm1107_vm2, %v18592_v51, 0  ;;  %v18596_v51 = vld [vmem:[#allocation28_spill] sm:$0xff] }
 0x6fb   : > { %10275 = vrcp.f32 %v3661_v24  ;;  %4390 = vrot.lane.b32.xlu1 %v18587_v36, %s10950_s20  ;;  %9657 = vmatprep.subr.msk.bf16.mxu1 %vm1107_vm2, %v18588_v61  ;;  %v3665_v23 = vpop.xlane.xlu0 %3664  ;;  %v18593_v61 = vld [vmem:[#allocation10_spill] sm:$0xff] }
 0x6fc   : > { %4380 = vrot.lane.b32.xlu0 %v18589_v0, %s10950_s20  ;;  %10277 = vrcp.f32 %v3665_v23  ;;  %v18594_v23 = vld [vmem:[#allocation26_spill] sm:$0xff]  ;;  %v18598_v0 = vld [vmem:[#allocation155_spill] sm:$0xff] }
 0x6fe   : > { %9436 = vmatpush3.bf16.xpose.msra.mxu0 %v4555_v15  ;;  %v3669_v43 = vpop.xlane.xlu1 %3668 }
 0x6ff   : > { %10279 = vrcp.f32 %v3669_v43  ;;  %4394 = vrot.lane.b32.xlu1 %v18590_v26, %s10950_s20  ;;  %v3673_v52 = vpop.xlane.xlu0 %3672  ;;  %v18595_v43 = vld [vmem:[#allocation35_spill] sm:$0xff] }
 0x700   : > { %4384 = vrot.lane.b32.xlu0 %v18591_v57, %s10950_s20  ;;  %10281 = vrcp.f32 %v3673_v52 }
 0x702   : > { %v3681_v24 = vpop.xlane.xlu1 %3680  ;;  %8776 = vmatpush3.bf16.xpose.msra.mxu1 %v4507_v1  ;;  %v18597_v1 = vld [vmem:[#allocation154_spill] sm:$0xff] }
 0x703   : > { %10283 = vrcp.f32 %v3681_v24  ;;  %4398 = vrot.lane.b32.xlu1 %v18593_v61, %s10950_s20  ;;  %9658 = vmatprep.subr.msk.bf16.mxu1 %vm1107_vm2, %v4423_v33  ;;  %v3677_v13 = vpop.xlane.xlu0 %3676  ;;  %v4504_v61 = vsel %vm1107_vm2, %v4407_v5, 0 }
 0x704   : > { %4388 = vrot.lane.b32.xlu0 %v18594_v23, %s10950_s20  ;;  %10285 = vrcp.f32 %v3677_v13  ;;  %v18600_v13 = vld [vmem:[#allocation37_spill] sm:$0xff] }
 0x706   : > { %v3697_v15 = vpop.xlane.xlu1 %3696 }
 0x707   : > { %4402 = vrot.lane.b32.xlu1 %v18595_v43, %s10950_s20  ;;  %v3685_v57 = vpop.xlane.xlu0 %3684  ;;  %v18601_v43 = vld [vmem:[#allocation157_spill] sm:$0xff] }
 0x708   : > { %v10276_v52 = vpop.eup %10275  ;;  %4392 = vrot.lane.b32.xlu0 %v18596_v51, %s10950_s20  ;;  %10287 = vrcp.f32 %v3685_v57  ;;  %v18602_v51 = vld [vmem:[#allocation156_spill] sm:$0xff] }
 0x709   : > { %v3815_v24 = vmul.f32 %v10276_v52, %v18597_v1  ;;  %v3816_v8 = vmul.f32 %v10276_v52, %v18598_v0  ;;  %v3814_v33 = vmul.f32 %v10276_v52, %v18599_v9  ;;  %v10278_v30 = vpop.eup %10277  ;;  %v18603_v0 = vld [vmem:[#allocation32_spill] sm:$0xff] }
 0x70a   : > { %v3705_v23 = vpop.xlane.xlu1 %3704  ;;  %8778 = vmatpush3.bf16.xpose.msra.mxu1 %v4504_v61  ;;  %v3818_v26 = vmul.f32 %v10278_v30, %v18601_v43  ;;  %v3819_v36 = vmul.f32 %v10278_v30, %v13762_v4  ;;  %v3817_v21 = vmul.f32 %v10278_v30, %v18602_v51  ;;  %v18606_v4 = vld [vmem:[#allocation162_spill] sm:$0xff] }
 0x70b   : > { %5660 = vrot.lane.b32.xlu1 %v18600_v13, %s10950_s20  ;;  %v3689_v32 = vpop.xlane.xlu0 %3688  ;;  %v18605_v13 = vld [vmem:[#allocation160_spill] sm:$0xff] }
 0x70c   : > { %v10280_v1 = vpop.eup %10279  ;;  %4396 = vrot.lane.b32.xlu0 %v18603_v0, %s10950_s20  ;;  %10289 = vrcp.f32 %v3689_v32  ;;  %v3905_v9 = vpack.c.bf16 %v3818_v26, %v3815_v24  ;;  %v3906_v5 = vpack.c.bf16 %v3819_v36, %v3816_v8  ;;  %v3904_v52 = vpack.c.bf16 %v3817_v21, %v3814_v33  ;;  %v18607_v0 = vld [vmem:[#allocation40_spill] sm:$0xff]  ;;  %v18608_v21 = vld [vmem:[#allocation33_spill] sm:$0xff]  ;;  %v18609_v24 = vld [vmem:[#allocation158_spill] sm:$0xff] }
 0x70d   : > { %v10282_v57 = vpop.eup %10281  ;;  %v3821_v28 = vmul.f32 %v10280_v1, %v18604_v48  ;;  %v3822_v22 = vmul.f32 %v10280_v1, %v18605_v13  ;;  %10291 = vrcp.f32 %v3697_v15  ;;  %v3820_v33 = vmul.f32 %v10280_v1, %v18609_v24 }
 0x70e   : > { %v3709_v61 = vpop.xlane.xlu1 %3708  ;;  %4082 = vmatprep.mubr.bf16.mxu0 %v3905_v9  ;;  %9397 = vmatprep.mubr.bf16.mxu1 %v3906_v5  ;;  %v3824_v30 = vmul.f32 %v10282_v57, %v18606_v4  ;;  %v3825_v43 = vmul.f32 %v10282_v57, %v13780_v29  ;;  %v18610_v29 = vld [vmem:[#allocation161_spill] sm:$0xff] }
 0x70f   : > { %5672 = vrot.lane.b32.xlu1 %v18607_v0, %s10950_s20  ;;  %4083 = vmatmul.mubr.bf16.gmra.mxu0 %v3904_v52  ;;  %v3693_v32 = vpop.xlane.xlu0 %3692  ;;  %v3823_v13 = vmul.f32 %v10282_v57, %v18610_v29  ;;  %v18611_v52 = vld [vmem:[#allocation129_spill] sm:$0xff] }
 0x710   : > { %v10284_v51 = vpop.eup %10283  ;;  %10293 = vrcp.f32 %v3693_v32  ;;  %4400 = vrot.lane.b32.xlu0 %v18608_v21, %s10950_s20  ;;  %v3908_v48 = vpack.c.bf16 %v3824_v30, %v3821_v28  ;;  %v3909_v8 = vpack.c.bf16 %v3825_v43, %v3822_v22  ;;  %v18612_v22 = vld [vmem:[#allocation43_spill] sm:$0xff]  ;;  %v18613_v28 = vld [vmem:[#allocation36_spill] sm:$0xff] }
 0x711   : > { %v3831_v36 = vmul.f32 %v10284_v51, %v13798_v58  ;;  %v10286_v26 = vpop.eup %10285  ;;  %10295 = vrcp.f32 %v3705_v23  ;;  %v3830_v4 = vmul.f32 %v10284_v51, %v18611_v52  ;;  %v3907_v57 = vpack.c.bf16 %v3823_v13, %v3820_v33 }
 0x712   : > { %v3713_v15 = vpop.xlane.xlu1 %3712  ;;  %4090 = vmatprep.mubr.bf16.mxu0 %v3908_v48  ;;  %9398 = vmatmul.mubr.bf16.gmra.mxu1 %v3909_v8  ;;  %v3828_v9 = vmul.f32 %v10286_v26, %v13789_v38  ;;  %v3827_v5 = vmul.f32 %v10286_v26, %v13786_v2  ;;  %v18614_v2 = vld [vmem:[#allocation46_spill] sm:$0xff]  ;;  %v18616_v8 = vld [vmem:[#allocation127_spill] sm:$0xff] }
 0x713   : > { %10297 = vrcp.f32 %v3713_v15  ;;  %5670 = vrot.lane.b32.xlu1 %v18612_v22, %s10950_s20  ;;  %v3701_v58 = vpop.xlane.xlu0 %3700  ;;  %v18617_v15 = vld [vmem:[#allocation128_spill] sm:$0xff] }
 0x714   : > { %10299 = vrcp.f32 %v3709_v61  ;;  %5676 = vrot.lane.b32.xlu0 %v18613_v28, %s10950_s20  ;;  %v3912_v23 = vpack.c.bf16 %v3831_v36, %v3828_v9  ;;  %v3911_v30 = vpack.c.bf16 %v3830_v4, %v3827_v5  ;;  %v18615_v61 = vld [vmem:[#allocation38_spill] sm:$0xff]  ;;  %v3826_v36 = vmul.f32 %v10286_v26, %v18616_v8  ;;  %v18618_v5 = vld [vmem:[#allocation48_spill] sm:$0xff]  ;;  %v18619_v4 = vld [vmem:[#allocation39_spill] sm:$0xff] }
 0x715   : > { %10301 = vrcp.f32 %v3701_v58  ;;  %v10288_v43 = vpop.eup %10287  ;;  %v3829_v24 = vmul.f32 %v10284_v51, %v18617_v15  ;;  %v18620_v58 = vld [vmem:[#allocation126_spill] sm:$0xff] }
 0x716   : > { %v3717_v1 = vpop.xlane.xlu1 %3716  ;;  %9401 = vmatprep.mubr.bf16.mxu1 %v3912_v23  ;;  %v3834_v33 = vmul.f32 %v10288_v43, %v13807_v53  ;;  %v3833_v51 = vmul.f32 %v10288_v43, %v18620_v58  ;;  %v18624_v58 = vld [vmem:[#allocation52_spill] sm:$0xff] }
 0x717   : > { %10303 = vrcp.f32 %v3717_v1  ;;  %5668 = vrot.lane.b32.xlu1 %v18614_v2, %s10950_s20  ;;  %4091 = vmatmul.mubr.bf16.gmra.mxu0 %v3907_v57  ;;  %v3721_v38 = vpop.xlane.xlu0 %3720  ;;  %v3910_v53 = vpack.c.bf16 %v3829_v24, %v3826_v36  ;;  %v18622_v36 = vld [vmem:[#allocation41_spill] sm:$0xff] }
 0x718   : > { %10305 = vrcp.f32 %v3721_v38  ;;  %5674 = vrot.lane.b32.xlu0 %v18615_v61, %s10950_s20  ;;  %4098 = vmatprep.mubr.bf16.mxu0 %v3911_v30 }
 0x719   : > { %v10290_v32 = vpop.eup %10289 }
 0x71a   : > { %v3725_v48 = vpop.xlane.xlu1 %3724  ;;  %v3837_v29 = vmul.f32 %v10290_v32, %v13816_v25  ;;  %v3836_v13 = vmul.f32 %v10290_v32, %v13813_v35  ;;  %v14197_v9 = vpop.eup %10291 }
 0x71b   : > { %10307 = vrcp.f32 %v3725_v48  ;;  %5666 = vrot.lane.b32.xlu1 %v18618_v5, %s10950_s20  ;;  %v3729_v52 = vpop.xlane.xlu0 %3728  ;;  %v3843_v30 = vmul.f32 %v14197_v9, %v13841_v62  ;;  %v18621_v48 = vld [vmem:[#allocation51_spill] sm:$0xff]  ;;  %v18623_v62 = vld [vmem:[#allocation62_spill] sm:$0xff] }
 0x71c   : > { %10309 = vrcp.f32 %v3729_v52  ;;  %5658 = vrot.lane.b32.xlu0 %v18619_v4, %s10950_s20  ;;  %v3915_v26 = vpack.c.bf16 %v3837_v29, %v3834_v33  ;;  %v3914_v35 = vpack.c.bf16 %v3836_v13, %v3833_v51  ;;  %v3835_v29 = vmul.f32 %v10290_v32, %v18623_v62  ;;  %v10861_v62 = vld [vmem:[%s17461_s2 + $0x64] ss:$8 sps:$4 sm:$0xff]  }
 0x71d   : > { %v10294_v23 = vpop.eup %10293 }
 0x71e   : > { %v3733_v1 = vpop.xlane.xlu1 %3732  ;;  %v14204_v57 = vpop.eup %10295  ;;  %9402 = vmatmul.mubr.bf16.gmra.mxu1 %v3915_v26  ;;  %v3840_v25 = vmul.f32 %v10294_v23, %v13827_v45 }
 0x71f   : > { %10311 = vrcp.f32 %v3733_v1  ;;  %5664 = vrot.lane.b32.xlu1 %v18621_v48, %s10950_s20  ;;  %4099 = vmatmul.mubr.bf16.gmra.mxu0 %v3910_v53  ;;  %v3737_v8 = vpop.xlane.xlu0 %3736  ;;  %v3849_v52 = vmul.f32 %v14204_v57, %v13868_v63  ;;  %v18625_v1 = vld [vmem:[#allocation64_spill] sm:$0xff] }
 0x720   : > { %v14209_v38 = vpop.eup %10297  ;;  %10313 = vrcp.f32 %v3737_v8  ;;  %5656 = vrot.lane.b32.xlu0 %v18622_v36, %s10950_s20  ;;  %4106 = vmatprep.mubr.bf16.mxu0 %v3914_v35  ;;  %v3918_v24 = vpack.c.bf16 %v3843_v30, %v3840_v25  ;;  %v3832_v53 = vmul.f32 %v10288_v43, %v18625_v1  ;;  %v3839_v35 = vmul.f32 %v10294_v23, %v13824_v18  ;;  %v18626_v25 = vld [vmem:[#allocation45_spill] sm:$0xff] }
 0x721   : > { %v14213_v15 = vpop.eup %10299  ;;  %v3855_v26 = vmul.f32 %v14209_v38, %v13895_v14 }
 0x722   : > { %v14217_v45 = vpop.eup %10301  ;;  %v3741_v33 = vpop.xlane.xlu1 %3740  ;;  %9405 = vmatprep.mubr.bf16.mxu1 %v3918_v24  ;;  %v3852_v63 = vmul.f32 %v14213_v15, %v13882_v19  ;;  %v3913_v8 = vpack.c.bf16 %v3835_v29, %v3832_v53  ;;  %v18627_v24 = vld [vmem:[#allocation66_spill] sm:$0xff]  ;;  %v18628_v29 = vld [vmem:[#allocation25_spill] sm:$0xff] }
 0x723   : > { %10315 = vrcp.f32 %v3741_v33  ;;  %v3846_v13 = vmul.f32 %v14217_v45, %v13854_v27  ;;  %5662 = vrot.lane.b32.xlu1 %v18624_v58, %s10950_s20  ;;  %v3842_v33 = vmul.f32 %v14197_v9, %v18627_v24 }
 0x724   : > { %v14230_v32 = vpop.eup %10303  ;;  %5654 = vrot.lane.b32.xlu0 %v18626_v25, %s10950_s20  ;;  %v3924_v43 = vpack.c.bf16 %v3855_v26, %v3852_v63 }
 0x725   : > { %v3745_v51 = vpop.xlane.xlu0 %3744  ;;  %v3921_v27 = vpack.c.bf16 %v3849_v52, %v3846_v13  ;;  %v14236_v30 = vpop.eup %10305  ;;  %v3917_v13 = vpack.c.bf16 %v3842_v33, %v3839_v35  ;;  %v3858_v52 = vmul.f32 %v14230_v32, %v13907_v46  ;;  %v10862_v46 = vld [vmem:[%s17461_s2 + $0x34] ss:$8 sps:$4 sm:$0xff]  }
 0x726   : > { %10317 = vrcp.f32 %v3745_v51  ;;  %v3753_v14 = vpop.xlane.xlu1 %3752  ;;  %v3861_v26 = vmul.f32 %v14236_v30, %v13921_v54  ;;  %v18630_v54 = vld [vmem:[#allocation61_spill] sm:$0xff] }
 0x727   : > { %9406 = vmatmul.mubr.bf16.gmra.mxu1 %v3921_v27  ;;  %10319 = vrcp.f32 %v3753_v14  ;;  %5690 = vrot.lane.b32.xlu1 %v10861_v62, %s10950_s20  ;;  %v18629_v27 = vld [vmem:[#allocation63_spill] sm:$0xff]  ;;  %v3841_v14 = vmul.f32 %v14197_v9, %v18630_v54  ;;  %v18634_v54 = vld [vmem:[#allocation70_spill] sm:$0xff] }
 0x728   : > { %v14240_v18 = vpop.eup %10307  ;;  %4107 = vmatmul.mubr.bf16.gmra.mxu0 %v3913_v8  ;;  %9409 = vmatprep.mubr.bf16.mxu1 %v3924_v43  ;;  %v3838_v35 = vmul.f32 %v10294_v23, %v18629_v27  ;;  %v18631_v23 = vld [vmem:[#allocation50_spill] sm:$0xff]  ;;  %v3927_v24 = vpack.c.bf16 %v3861_v26, %v3858_v52  ;;  %v18633_v26 = vld [vmem:[#allocation21_spill] sm:$0xff] }
 0x729   : > { %v3749_v19 = vpop.xlane.xlu0 %3748  ;;  %5652 = vrot.lane.b32.xlu0 %v18628_v29, %s10950_s20  ;;  %v3864_v51 = vmul.f32 %v14240_v18, %v13934_v47  ;;  %v14254_v1 = vpop.eup %10309  ;;  %4114 = vmatprep.mubr.bf16.mxu0 %v3917_v13  ;;  %v3845_v47 = vmul.f32 %v14217_v45, %v13850_v39  ;;  %v10863_v39 = vld [vmem:[%s17461_s2 + $0x14] ss:$8 sps:$4 sm:$0xff]  }
 0x72a   : > { %10321 = vrcp.f32 %v3749_v19  ;;  %v3757_v53 = vpop.xlane.xlu1 %3756  ;;  %v3867_v63 = vmul.f32 %v14254_v1, %v13947_v7  ;;  %v3916_v62 = vpack.c.bf16 %v3841_v14, %v3838_v35  ;;  %v18632_v19 = vld [vmem:[#allocation68_spill] sm:$0xff]  ;;  %v3844_v14 = vmul.f32 %v14217_v45, %v18634_v54  ;;  %v18641_v54 = vld [vmem:[#allocation67_spill] sm:$0xff] }
 0x72b   : > { %10323 = vrcp.f32 %v3757_v53  ;;  %5684 = vrot.lane.b32.xlu1 %v10862_v46, %s10950_s20  ;;  %v3848_v13 = vmul.f32 %v14204_v57, %v18632_v19 }
 0x72c   : > { %v14267_v8 = vpop.eup %10311  ;;  %v3930_v33 = vpack.c.bf16 %v3867_v63, %v3864_v51 }
 0x72d   : > { %5650 = vrot.lane.b32.xlu0 %v18631_v23, %s10950_s20  ;;  %v14271_v43 = vpop.eup %10313  ;;  %v3920_v52 = vpack.c.bf16 %v3848_v13, %v3845_v47  ;;  %v3870_v53 = vmul.f32 %v14267_v8, %v13962_v44  ;;  %v18636_v47 = vld [vmem:[#allocation65_spill] sm:$0xff] }
 0x72e   : > { %v3761_v7 = vpop.xlane.xlu0 %3760  ;;  %v3873_v27 = vmul.f32 %v14271_v43, %v13974_v6  ;;  %v18635_v6 = vld [vmem:[#allocation24_spill] sm:$0xff]  ;;  %v18717_v23 = vld [vmem:[#allocation29_spill] sm:$0xff] }
 0x72f   : > { %10325 = vrcp.f32 %v3761_v7  ;;  %9410 = vmatmul.mubr.bf16.gmra.mxu1 %v3927_v24  ;;  %5680 = vrot.lane.b32.xlu1 %v10863_v39, %s10950_s20  ;;  %v18637_v24 = vld [vmem:[#allocation72_spill] sm:$0xff]  ;;  %v18639_v39 = vld [vmem:[#allocation74_spill] sm:$0xff] }
 0x730   : > { %v14275_v9 = vpop.eup %10315  ;;  %4115 = vmatmul.mubr.bf16.gmra.mxu0 %v3916_v62  ;;  %9413 = vmatprep.mubr.bf16.mxu1 %v3930_v33  ;;  %v3854_v7 = vmul.f32 %v14209_v38, %v18637_v24  ;;  %v18638_v62 = vld [vmem:[#allocation53_spill] sm:$0xff]  ;;  %v3933_v45 = vpack.c.bf16 %v3873_v27, %v3870_v53 }
 0x731   : > { %5648 = vrot.lane.b32.xlu0 %v18633_v26, %s10950_s20  ;;  %v3876_v35 = vmul.f32 %v14275_v9, %v13990_v55  ;;  %4122 = vmatprep.mubr.bf16.mxu0 %v3920_v52  ;;  %v3847_v55 = vmul.f32 %v14204_v57, %v18636_v47  ;;  %v3851_v52 = vmul.f32 %v14213_v15, %v18639_v39  ;;  %v10864_v53 = vld [vmem:[%s17461_s2 + $0x74] ss:$8 sps:$4 sm:$0xff]  }
 0x732   : > { %v4439_v51 = vpop.permute.xlu0 %4438  ;;  %v3860_v47 = vmul.f32 %v14236_v30, %v13917_v49  ;;  %v18643_v24 = vld [vmem:[#allocation69_spill] sm:$0xff] }
 0x733   : > { %v14289_v63 = vpop.eup %10317  ;;  %9666 = vmatprep.subr.msk.bf16.mxu0 %vm1107_vm2, %v4439_v51  ;;  %v4552_v46 = vsel %vm1107_vm2, %v4439_v51, 0  ;;  %6102 = vrot.lane.b32.xlu1 %v18635_v6, %s10951_s10  ;;  %v18640_v51 = vld [vmem:[#allocation17_spill] sm:$0xff]  ;;  %v3923_v57 = vpack.c.bf16 %v3854_v7, %v3851_v52  ;;  %v3857_v6 = vmul.f32 %v14230_v32, %v13904_v59  ;;  %v3863_v52 = vmul.f32 %v14240_v18, %v13929_v40  ;;  %v10869_v40 = vld [vmem:[%s17461_s2 + $0x4] ss:$8 sps:$4 sm:$0xff]  }
 0x734   : > { %9438 = vmatpush3.bf16.xpose.msra.mxu0 %v4552_v46  ;;  %v3879_v44 = vmul.f32 %v14289_v63, %v14007_v37  ;;  %v14303_v33 = vpop.eup %10319  ;;  %v3919_v37 = vpack.c.bf16 %v3847_v55, %v3844_v14  ;;  %v3853_v14 = vmul.f32 %v14209_v38, %v18641_v54  ;;  %v18642_v55 = vld [vmem:[#allocation14_spill] sm:$0xff]  ;;  %v3869_v54 = vmul.f32 %v14267_v8, %v13957_v60  ;;  %v18650_v60 = vld [vmem:[#allocation20_spill] sm:$0xff] }
 0x735   : > { %5646 = vrot.lane.b32.xlu0 %v18638_v62, %s10950_s20  ;;  %v10865_v7 = vld [vmem:[%s17461_s2 + $0x54] ss:$8 sps:$4 sm:$0xff]  }
 0x736   : > { %v3936_v19 = vpack.c.bf16 %v3879_v44, %v3876_v35  ;;  %v3885_v35 = vmul.f32 %v14303_v33, %v14011_v41 }
 0x737   : > { %v14307_v13 = vpop.eup %10321  ;;  %9414 = vmatmul.mubr.bf16.gmra.mxu1 %v3933_v45  ;;  %6118 = vrot.lane.b32.xlu1 %v18640_v51, %s10951_s10  ;;  %v3866_v51 = vmul.f32 %v14254_v1, %v13944_v42  ;;  %v3862_v42 = vmul.f32 %v14240_v18, %v13926_v3  ;;  %v18649_v18 = vld [vmem:[#allocation31_spill] sm:$0xff] }
 0x738   : > { %4123 = vmatmul.mubr.bf16.gmra.mxu0 %v3919_v37  ;;  %v14313_v46 = vpop.eup %10323  ;;  %9417 = vmatprep.mubr.bf16.mxu1 %v3936_v19  ;;  %v3882_v27 = vmul.f32 %v14307_v13, %v14021_v20  ;;  %v3850_v20 = vmul.f32 %v14213_v15, %v18643_v24  ;;  %v3926_v19 = vpack.c.bf16 %v3860_v47, %v3857_v6  ;;  %v10866_v15 = vld [vmem:[%s17461_s2 + $0x60] ss:$8 sps:$4 sm:$0xff]   ;;  %v18644_v37 = vld [vmem:[#allocation73_spill] sm:$0xff]  ;;  %v18648_v6 = vld [vmem:[#allocation22_spill] sm:$0xff] }
 0x739   : > { %5692 = vrot.lane.b32.xlu0 %v10864_v53, %s10950_s20  ;;  %4130 = vmatprep.mubr.bf16.mxu0 %v3923_v57  ;;  %v3888_v41 = vmul.f32 %v14313_v46, %v14025_v11  ;;  %v10867_v11 = vld [vmem:[%s17461_s2 + $0x44] ss:$8 sps:$4 sm:$0xff]   ;;  %v3859_v39 = vmul.f32 %v14236_v30, %v18644_v37  ;;  %v10870_v47 = vld [vmem:[%s17461_s2 + $0x70] ss:$8 sps:$4 sm:$0xff]   ;;  %v4405_v37 = vpop.permute.xlu1 %4404 }
 0x73a   : > { %v3939_v59 = vpack.c.bf16 %v3885_v35, %v3882_v27  ;;  %v3922_v49 = vpack.c.bf16 %v3853_v14, %v3850_v20  ;;  %v18645_v57 = vld [vmem:[#allocation11_spill] sm:$0xff]  ;;  %v3872_v14 = vmul.f32 %v14271_v43, %v13969_v31  ;;  %v18651_v31 = vld [vmem:[#allocation76_spill] sm:$0xff]  ;;  %v18652_v24 = vld [vmem:[#allocation77_spill] sm:$0xff] }
 0x73b   : > { %6116 = vrot.lane.b32.xlu1 %v18642_v55, %s10951_s10  ;;  %v10868_v53 = vld [vmem:[%s17461_s2 + $0x24] ss:$8 sps:$4 sm:$0xff]   ;;  %v3871_v20 = vmul.f32 %v14271_v43, %v18652_v24 }
 0x73c   : > { %v14325_v44 = vpop.eup %10325  ;;  %v18647_v30 = vld [vmem:[#allocation71_spill] sm:$0xff]  ;;  %v3932_v3 = vpack.c.bf16 %v3872_v14, %v3869_v54  ;;  %v18663_v14 = vld [vmem:[#allocation85_spill] sm:$0xff] }
 0x73d   : > { %v3891_v38 = vmul.f32 %v14325_v44, %v14035_v17  ;;  %5688 = vrot.lane.b32.xlu0 %v10865_v7, %s10950_s20  ;;  %v3856_v17 = vmul.f32 %v14230_v32, %v13900_v16  ;;  %v3929_v16 = vpack.c.bf16 %v3866_v51, %v3863_v52  ;;  %v18646_v32 = vld [vmem:[#allocation34_spill] sm:$0xff]  ;;  %v3865_v35 = vmul.f32 %v14254_v1, %v18647_v30  ;;  %v18654_v7 = vld [vmem:[#allocation84_spill] sm:$0xff]  ;;  %v18662_v30 = vld [vmem:[#allocation83_spill] sm:$0xff] }
 0x73e   : > { %v3868_v1 = vmul.f32 %v14267_v8, %v18651_v31  ;;  %v18656_v8 = vld [vmem:[#allocation75_spill] sm:$0xff]  ;;  %v18659_v51 = vld [vmem:[#allocation88_spill] sm:$0xff] }
 0x73f   : > { %v3942_v45 = vpack.c.bf16 %v3891_v38, %v3888_v41  ;;  %9418 = vmatmul.mubr.bf16.gmra.mxu1 %v3939_v59  ;;  %6132 = vrot.lane.b32.xlu1 %v10866_v15, %s10951_s10  ;;  %v3925_v27 = vpack.c.bf16 %v3859_v39, %v3856_v17  ;;  %v3928_v55 = vpack.c.bf16 %v3865_v35, %v3862_v42  ;;  %v18653_v41 = vld [vmem:[#allocation79_spill] sm:$0xff]  ;;  %v10871_v15 = vld [vmem:[%s17461_s2 + $0x50] ss:$8 sps:$4 sm:$0xff]  }
 0x740   : > { %4131 = vmatmul.mubr.bf16.gmra.mxu0 %v3922_v49  ;;  %v3875_v38 = vmul.f32 %v14275_v9, %v18653_v41  ;;  %v3878_v59 = vmul.f32 %v14289_v63, %v18654_v7  ;;  %v18655_v49 = vld [vmem:[#allocation16_spill] sm:$0xff]  ;;  %v3874_v43 = vmul.f32 %v14275_v9, %v18656_v8  ;;  %v18658_v39 = vld [vmem:[#allocation82_spill] sm:$0xff]  ;;  %v3883_v35 = vmul.f32 %v14303_v33, %v18662_v30  ;;  %v18666_v7 = vld [vmem:[#allocation81_spill] sm:$0xff] }
 0x741   : > { %5686 = vrot.lane.b32.xlu0 %v10867_v11, %s10950_s20  ;;  %4138 = vmatprep.mubr.bf16.mxu0 %v3926_v19  ;;  %v18657_v11 = vld [vmem:[#allocation80_spill] sm:$0xff]  ;;  %v3881_v52 = vmul.f32 %v14307_v13, %v18658_v39 }
 0x742   : > { %9421 = vmatprep.mubr.bf16.mxu1 %v3942_v45  ;;  %v3931_v45 = vpack.c.bf16 %v3871_v20, %v3868_v1  ;;  %v3935_v19 = vpack.c.bf16 %v3878_v59, %v3875_v38  ;;  %v3877_v17 = vmul.f32 %v14289_v63, %v18657_v11  ;;  %v10872_v9 = vld [vmem:[%s17461_s2 + $0x40] ss:$8 sps:$4 sm:$0xff]   ;;  %v3886_v59 = vmul.f32 %v14313_v46, %v18666_v7 }
 0x743   : > { %6114 = vrot.lane.b32.xlu1 %v18645_v57, %s10951_s10  ;;  %v3884_v57 = vmul.f32 %v14303_v33, %v18659_v51  ;;  %v18665_v20 = vld [vmem:[#allocation92_spill] sm:$0xff] }
 0x744   : > { %v3889_v41 = vmul.f32 %v14325_v44, %v18665_v20 }
 0x745   : > { %5682 = vrot.lane.b32.xlu0 %v10868_v53, %s10950_s20  ;;  %v18660_v53 = vld [vmem:[#allocation13_spill] sm:$0xff] }
 0x747   : > { %6112 = vrot.lane.b32.xlu1 %v18646_v32, %s10951_s10  ;;  %v3938_v32 = vpack.c.bf16 %v3884_v57, %v3881_v52 }
 0x748   : > { %4139 = vmatmul.mubr.bf16.gmra.mxu0 %v3925_v27  ;;  %v3934_v27 = vpack.c.bf16 %v3877_v17, %v3874_v43 }
 0x749   : > { %5678 = vrot.lane.b32.xlu0 %v10869_v40, %s10950_s20  ;;  %4146 = vmatprep.mubr.bf16.mxu0 %v3929_v16  ;;  %v18661_v40 = vld [vmem:[#allocation78_spill] sm:$0xff] }
 0x74a   : > { %v3880_v42 = vmul.f32 %v14307_v13, %v18661_v40  ;;  %v10873_v13 = vld [vmem:[%s17461_s2 + $0x30] ss:$8 sps:$4 sm:$0xff]  }
 0x74b   : > { %6094 = vrot.lane.b32.xlu1 %v18648_v6, %s10951_s10  ;;  %v3890_v6 = vmul.f32 %v14325_v44, %v18663_v14 }
 0x74c   : > { %v3937_v33 = vpack.c.bf16 %v3883_v35, %v3880_v42 }
 0x74d   : > { %6134 = vrot.lane.b32.xlu0 %v10870_v47, %s10951_s10 }
 0x74f   : > { %6110 = vrot.lane.b32.xlu1 %v18649_v18, %s10951_s10 }
 0x750   : > { %4147 = vmatmul.mubr.bf16.gmra.mxu0 %v3928_v55  ;;  %v18664_v55 = vld [vmem:[#allocation86_spill] sm:$0xff] }
 0x751   : > { %6100 = vrot.lane.b32.xlu0 %v18650_v60, %s10951_s10  ;;  %4154 = vmatprep.mubr.bf16.mxu0 %v3932_v3  ;;  %v3887_v3 = vmul.f32 %v14313_v46, %v18664_v55  ;;  %v4501_v60 = vsel %vm1107_vm2, %v4405_v37, 0  ;;  %v18667_v46 = vld [vmem:[#allocation87_spill] sm:$0xff] }
 0x753   : > { %v3941_v1 = vpack.c.bf16 %v3890_v6, %v3887_v3 }
 0x755   : > { %6098 = vrot.lane.b32.xlu0 %v18655_v49, %s10951_s10 }
 0x758   : > { %4155 = vmatmul.mubr.bf16.gmra.mxu0 %v3931_v45  ;;  %v3940_v45 = vpack.c.bf16 %v3889_v41, %v3886_v59 }
 0x759   : > { %6130 = vrot.lane.b32.xlu0 %v10871_v15, %s10951_s10  ;;  %4162 = vmatprep.mubr.bf16.mxu0 %v3935_v19 }
 0x75d   : > { %6096 = vrot.lane.b32.xlu0 %v18660_v53, %s10951_s10 }
 0x75f   : > { %v3765_v16 = vpop.xlane.xlu1 %3764 }
 0x760   : > { %10327 = vrcp.f32 %v3765_v16  ;;  %4163 = vmatmul.mubr.bf16.gmra.mxu0 %v3934_v27 }
 0x761   : > { %4170 = vmatprep.mubr.bf16.mxu0 %v3938_v32  ;;  %6128 = vrot.lane.b32.xlu0 %v10872_v9, %s10951_s10 }
 0x763   : > { %v3769_v63 = vpop.xlane.xlu0 %3768  ;;  %v4437_v54 = vpop.permute.xlu1 %4436 }
 0x764   : > { %10329 = vrcp.f32 %v3769_v63  ;;  %9667 = vmatprep.subr.msk.bf16.mxu0 %vm1107_vm2, %v4437_v54  ;;  %v4549_v47 = vsel %vm1107_vm2, %v4437_v54, 0 }
 0x765   : > { %9440 = vmatpush3.bf16.xpose.msra.mxu0 %v4549_v47  ;;  %6126 = vrot.lane.b32.xlu0 %v10873_v13, %s10951_s10 }
 0x767   : > { %v4421_v18 = vpop.permute.xlu0 %4420  ;;  %v4375_v31 = vpop.permute.xlu1 %4374 }
 0x768   : > { %9659 = vmatprep.subr.msk.bf16.mxu1 %vm1107_vm2, %v4421_v18  ;;  %4171 = vmatmul.mubr.bf16.gmra.mxu0 %v3937_v33 }
 0x769   : > { %8780 = vmatpush3.bf16.xpose.msra.mxu1 %v4501_v60  ;;  %4178 = vmatprep.mubr.bf16.mxu0 %v3941_v1 }
 0x76b   : > { %v4373_v24 = vpop.permute.xlu0 %4372  ;;  %v4379_v38 = vpop.permute.xlu1 %4378 }
 0x76d   : > { %v10328_v49 = vpop.eup %10327 }
 0x76e   : > { %v3893_v43 = vmul.f32 %v10328_v49, %v14052_v50  ;;  %v3894_v17 = vmul.f32 %v10328_v49, %v14066_v12  ;;  %v3892_v52 = vmul.f32 %v10328_v49, %v18667_v46 }
 0x76f   : > { %v4377_v19 = vpop.permute.xlu0 %4376  ;;  %v14437_v15 = vpop.permute.xlu1 %4382 }
 0x770   : > { %4179 = vmatmul.mubr.bf16.gmra.mxu0 %v3940_v45 }
 0x771   : > { %v10330_v8 = vpop.eup %10329 }
 0x772   : > { %v3896_v11 = vmul.f32 %v10330_v8, %v14060_v34  ;;  %v3897_v37 = vmul.f32 %v10330_v8, %v14075_v56  ;;  %v3895_v44 = vmul.f32 %v10330_v8, %v14054_v10 }
 0x773   : > { %v14444_v39 = vpop.permute.xlu0 %4380  ;;  %v14447_v51 = vpop.permute.xlu1 %4386 }
 0x774   : > { %v3944_v57 = vpack.c.bf16 %v3896_v11, %v3893_v43  ;;  %v3945_v53 = vpack.c.bf16 %v3897_v37, %v3894_v17  ;;  %v3943_v27 = vpack.c.bf16 %v3895_v44, %v3892_v52 }
 0x776   : > { %4186 = vmatprep.mubr.bf16.mxu0 %v3944_v57  ;;  %9422 = vmatmul.mubr.bf16.gmra.mxu1 %v3945_v53 }
 0x777   : > { %8781 = vmatprep.mubr.msk.bf16.mxu1 %vm1107_vm2, %v4373_v24  ;;  %v14450_v50 = vpop.permute.xlu0 %4384  ;;  %v14452_v34 = vpop.permute.xlu1 %4390 }
 0x778   : > { %4187 = vmatmul.mubr.bf16.gmra.mxu0 %v3943_v27 }
 0x779   : > { %9441 = vmatprep.mubr.msk.bf16.mxu0 %vm1107_vm2, %v4373_v24 }
 0x77b   : > { %v14455_v10 = vpop.permute.xlu0 %4388  ;;  %v14457_v12 = vpop.permute.xlu1 %4394 }
 0x77e   : > { %8782 = vmatmul.mubr.msk.bf16.vlgmr.msra.gmra.mxu1 %vm1107_vm2, %v4373_v24 }
 0x77f   : > { %8783 = vmatprep.mubr.msk.bf16.mxu1 %vm1107_vm2, %v4375_v31  ;;  %v14461_v56 = vpop.permute.xlu0 %4392  ;;  %v14463_v16 = vpop.permute.xlu1 %4398 }
 0x780   : > { %9442 = vmatmul.mubr.msk.bf16.vlgmr.msra.gmra.mxu0 %vm1107_vm2, %v4375_v31 }
 0x781   : > { %9445 = vmatprep.mubr.msk.bf16.mxu0 %vm1107_vm2, %v4377_v19 }
 0x783   : > { %v14467_v32 = vpop.permute.xlu0 %4396  ;;  %v14469_v9 = vpop.permute.xlu1 %4402 }
 0x786   : > { %8784 = vmatmul.mubr.msk.bf16.gmra.mxu1 %vm1107_vm2, %v4375_v31 }
 0x787   : > { %8785 = vmatprep.mubr.msk.bf16.mxu1 %vm1107_vm2, %v4377_v19  ;;  %v14473_v63 = vpop.permute.xlu0 %4400  ;;  %v5661_v40 = vpop.permute.xlu1 %5660 }
 0x788   : > { %9446 = vmatmul.mubr.msk.bf16.gmra.mxu0 %vm1107_vm2, %v4379_v38 }
 0x789   : > { %9449 = vmatprep.mubr.msk.bf16.mxu0 %vm1107_vm2, %v14444_v39 }
 0x78b   : > { %v5677_v42 = vpop.permute.xlu0 %5676  ;;  %v5673_v30 = vpop.permute.xlu1 %5672 }
 0x78c   : > { %8837 = vmatprep.subr.bf16.mxu0 %v5677_v42 }
 0x78d   : > { %8838 = vmatpush3.bf16.msra.mxu0 %v5661_v40 }
 0x78e   : > { %8786 = vmatmul.mubr.msk.bf16.gmra.mxu1 %vm1107_vm2, %v4377_v19 }
 0x78f   : > { %8787 = vmatprep.mubr.msk.bf16.mxu1 %vm1107_vm2, %v4379_v38  ;;  %v5675_v35 = vpop.permute.xlu0 %5674  ;;  %v5671_v54 = vpop.permute.xlu1 %5670 }
 0x790   : > { %8839 = vmatprep.subr.bf16.mxu0 %v5675_v35  ;;  %9450 = vmatmul.mubr.msk.bf16.gmra.mxu0 %vm1107_vm2, %v14437_v15 }
 0x791   : > { %9453 = vmatprep.mubr.msk.bf16.mxu0 %vm1107_vm2, %v14450_v50 }
 0x793   : > { %v5659_v14 = vpop.permute.xlu0 %5658  ;;  %v5669_v6 = vpop.permute.xlu1 %5668 }
 0x794   : > { %8840 = vmatpush3.bf16.msra.mxu0 %v5659_v14 }
 0x795   : > { %8841 = vmatprep.subr.bf16.mxu0 %v5673_v30  ;;  %v8645_v47 = vpop.f32.mrf.mxu0 }
 0x796   : > { %8788 = vmatmul.mubr.msk.bf16.gmra.mxu1 %vm1107_vm2, %v4379_v38 }
 0x797   : > { %8789 = vmatprep.mubr.msk.bf16.mxu1 %vm1107_vm2, %v14444_v39  ;;  %v5657_v55 = vpop.permute.xlu0 %5656  ;;  %v8646_v3 = vpop.f32.mrf.mxu0 }
 0x798   : > { %8842 = vmatpush3.bf16.msra.mxu0 %v5657_v55  ;;  %v8647_v13 = vadd.f32 %v8646_v3, %v8645_v47  ;;  %v5667_v31 = vpop.permute.xlu1 %5666 }
 0x799   : > { %9454 = vmatmul.mubr.msk.bf16.gmra.mxu0 %vm1107_vm2, %v14447_v51  ;;  %8843 = vmatprep.subr.bf16.mxu0 %v5671_v54  ;;  %v8648_v33 = vpop.f32.mrf.mxu0  ;;  %v9395_v18 = vpop.f32.mrf.mxu1 }
 0x79a   : > { %9457 = vmatprep.mubr.msk.bf16.mxu0 %vm1107_vm2, %v14455_v10 }
 0x79b   : > { %v5655_v60 = vpop.permute.xlu0 %5654  ;;  %v8649_v1 = vpop.f32.mrf.mxu0 }
 0x79c   : > { %8844 = vmatpush3.bf16.msra.mxu0 %v5655_v60  ;;  %v4229_v24 = vpop.f32.mrf.mxu1  ;;  %v8650_v59 = vadd.f32 %v8649_v1, %v8648_v33  ;;  %v5665_v8 = vpop.permute.xlu1 %5664 }
 0x79d   : > { %8845 = vmatprep.subr.bf16.mxu0 %v5669_v6  ;;  %v14491_v20 = vadd.f32 %v8647_v13, %v4229_v24  ;;  %v8651_v41 = vpop.f32.mrf.mxu0 }
 0x79e   : > { %8790 = vmatmul.mubr.msk.bf16.gmra.mxu1 %vm1107_vm2, %v14444_v39  ;;  %v9396_v38 = vpop.f32.mrf.mxu1 }
 0x79f   : > { %18668 = vst [vmem:[#allocation89_spill] sm:$0xff] %v14491_v20  ;;  %8791 = vmatprep.mubr.msk.bf16.mxu1 %vm1107_vm2, %v14437_v15  ;;  %v5653_v7 = vpop.permute.xlu0 %5652  ;;  %v8652_v49 = vpop.f32.mrf.mxu0 }
 0x7a0   : > { %8846 = vmatpush3.bf16.msra.mxu0 %v5653_v7  ;;  %v8653_v45 = vadd.f32 %v8652_v49, %v8651_v41  ;;  %v4232_v19 = vpop.f32.mrf.mxu1  ;;  %v5663_v53 = vpop.permute.xlu1 %5662 }
 0x7a1   : > { %9458 = vmatmul.mubr.msk.bf16.gmra.mxu0 %vm1107_vm2, %v14452_v34  ;;  %8847 = vmatprep.subr.bf16.mxu0 %v5667_v31  ;;  %v14499_v43 = vadd.f32 %v8650_v59, %v4232_v19  ;;  %v8654_v11 = vpop.f32.mrf.mxu0 }
 0x7a2   : > { %9461 = vmatprep.mubr.msk.bf16.mxu0 %vm1107_vm2, %v14461_v56  ;;  %v14503_v17 = vadd.f32 %v9395_v18, %v8653_v45 }
 0x7a3   : > { %18669 = vst [vmem:[#allocation93_spill] sm:$0xff] %v14499_v43  ;;  %v5651_v37 = vpop.permute.xlu0 %5650  ;;  %v8655_v39 = vpop.f32.mrf.mxu0 }
 0x7a4   : > { %18670 = vst [vmem:[#allocation91_spill] sm:$0xff] %v14503_v17  ;;  %8848 = vmatpush3.bf16.msra.mxu0 %v5651_v37  ;;  %v8656_v46 = vadd.f32 %v8655_v39, %v8654_v11  ;;  %v5691_v42 = vpop.permute.xlu1 %5690 }
 0x7a5   : > { %8849 = vmatprep.subr.bf16.mxu0 %v5665_v8 }
 0x7a6   : > { %8792 = vmatmul.mubr.msk.bf16.gmra.mxu1 %vm1107_vm2, %v14437_v15  ;;  %v14509_v52 = vadd.f32 %v9396_v38, %v8656_v46 }
 0x7a7   : > { %8793 = vmatprep.mubr.msk.bf16.mxu1 %vm1107_vm2, %v14450_v50  ;;  %v5649_v57 = vpop.permute.xlu0 %5648 }
 0x7a8   : > { %18671 = vst [vmem:[#allocation94_spill] sm:$0xff] %v14509_v52  ;;  %8850 = vmatpush3.bf16.msra.mxu0 %v5649_v57  ;;  %v5685_v35 = vpop.permute.xlu1 %5684 }
 0x7a9   : > { %9462 = vmatmul.mubr.msk.bf16.gmra.mxu0 %vm1107_vm2, %v14457_v12  ;;  %8851 = vmatprep.subr.bf16.mxu0 %v5663_v53 }
 0x7aa   : > { %9465 = vmatprep.mubr.msk.bf16.mxu0 %vm1107_vm2, %v14467_v32 }
 0x7ab   : > { %v5647_v40 = vpop.permute.xlu0 %5646 }
 0x7ac   : > { %8852 = vmatpush3.bf16.msra.mxu0 %v5647_v40  ;;  %v5681_v14 = vpop.permute.xlu1 %5680 }
 0x7ae   : > { %8794 = vmatmul.mubr.msk.bf16.gmra.mxu1 %vm1107_vm2, %v14450_v50 }
 0x7af   : > { %8795 = vmatprep.mubr.msk.bf16.mxu1 %vm1107_vm2, %v14447_v51  ;;  %v5693_v15 = vpop.permute.xlu0 %5692 }
 0x7b0   : > { %9473 = vmatprep.subr.bf16.mxu1 %v5693_v15  ;;  %v14543_v47 = vpop.permute.xlu1 %6102 }
 0x7b1   : > { %9466 = vmatmul.mubr.msk.bf16.gmra.mxu0 %vm1107_vm2, %v14463_v16  ;;  %9474 = vmatpush3.bf16.msra.mxu1 %v5693_v15  ;;  %18673 = vst [vmem:[#allocation131_spill] sm:$0xff] %v14543_v47 }
 0x7b2   : > { %9469 = vmatprep.mubr.msk.bf16.mxu0 %vm1107_vm2, %v14473_v63  ;;  %9475 = vmatprep.subr.bf16.mxu1 %v5691_v42 }
 0x7b3   : > { %v5689_v30 = vpop.permute.xlu0 %5688 }
 0x7b5   : > { %9476 = vmatpush3.bf16.msra.mxu1 %v5691_v42 }
 0x7b6   : > { %8796 = vmatmul.mubr.msk.bf16.gmra.mxu1 %vm1107_vm2, %v14447_v51  ;;  %9477 = vmatprep.subr.bf16.mxu1 %v5689_v30 }
 0x7b7   : > { %8797 = vmatprep.mubr.msk.bf16.mxu1 %vm1107_vm2, %v14455_v10  ;;  %v5687_v50 = vpop.permute.xlu0 %5686 }
 0x7b9   : > { %9470 = vmatmul.mubr.msk.bf16.gmra.mxu0 %vm1107_vm2, %v14469_v9  ;;  %9478 = vmatpush3.bf16.msra.mxu1 %v5689_v30 }
 0x7ba   : > { %9479 = vmatprep.subr.bf16.mxu1 %v5687_v50 }
 0x7bb   : > { %v5683_v54 = vpop.permute.xlu0 %5682 }
 0x7bd   : > { %9480 = vmatpush3.bf16.msra.mxu1 %v5687_v50 }
 0x7be   : > { %8798 = vmatmul.mubr.msk.bf16.gmra.mxu1 %vm1107_vm2, %v14455_v10  ;;  %9481 = vmatprep.subr.bf16.mxu1 %v5685_v35  ;;  %v6119_v10 = vpop.permute.xlu1 %6118 }
 0x7bf   : > { %8799 = vmatprep.mubr.msk.bf16.mxu1 %vm1107_vm2, %v14452_v34  ;;  %v5679_v51 = vpop.permute.xlu0 %5678 }
 0x7c1   : > { %9482 = vmatpush3.bf16.msra.mxu1 %v5685_v35 }
 0x7c2   : > { %9483 = vmatprep.subr.bf16.mxu1 %v5683_v54 }
 0x7c3   : > { %v14537_v6 = vpop.permute.xlu0 %6134 }
 0x7c4   : > { %18672 = vst [vmem:[#allocation130_spill] sm:$0xff] %v14537_v6  ;;  %9676 = vmatprep.subr.msk.bf16.mxu0 %vm1107_vm2, %v14537_v6 }
 0x7c5   : > { %9484 = vmatpush3.bf16.msra.mxu1 %v5683_v54 }
 0x7c6   : > { %8800 = vmatmul.mubr.msk.bf16.gmra.mxu1 %vm1107_vm2, %v14452_v34  ;;  %9485 = vmatprep.subr.bf16.mxu1 %v5681_v14 }
 0x7c7   : > { %8801 = vmatprep.mubr.msk.bf16.mxu1 %vm1107_vm2, %v14461_v56 }
 0x7c9   : > { %9486 = vmatpush3.bf16.msra.mxu1 %v5681_v14 }
 0x7ca   : > { %9487 = vmatprep.subr.bf16.mxu1 %v5679_v51 }
 0x7cd   : > { %9488 = vmatpush3.bf16.msra.mxu1 %v5679_v51 }
 0x7ce   : > { %8802 = vmatmul.mubr.msk.bf16.gmra.mxu1 %vm1107_vm2, %v14461_v56  ;;  %9668 = vmatprep.subr.msk.bf16.mxu1 %vm1107_vm2, %v6119_v10 }
 0x7cf   : > { %8803 = vmatprep.mubr.msk.bf16.mxu1 %vm1107_vm2, %v14457_v12  ;;  %v8657_v55 = vpop.f32.mrf.mxu0 }
 0x7d1   : > { %v8658_v34 = vpop.f32.mrf.mxu0 }
 0x7d2   : > { %v8659_v3 = vadd.f32 %v8658_v34, %v8657_v55  ;;  %v9399_v13 = vpop.f32.mrf.mxu1 }
 0x7d3   : > { %v8660_v33 = vpop.f32.mrf.mxu0 }
 0x7d4   : > { %v4245_v18 = vpop.f32.mrf.mxu1 }
 0x7d5   : > { %v14554_v60 = vadd.f32 %v8659_v3, %v4245_v18  ;;  %v8661_v31 = vpop.f32.mrf.mxu0 }
 0x7d6   : > { %8804 = vmatmul.mubr.msk.bf16.gmra.mxu1 %vm1107_vm2, %v14457_v12  ;;  %v8662_v56 = vadd.f32 %v8661_v31, %v8660_v33  ;;  %v9400_v1 = vpop.f32.mrf.mxu1 }
 0x7d7   : > { %18674 = vst [vmem:[#allocation96_spill] sm:$0xff] %v14554_v60  ;;  %8805 = vmatprep.mubr.msk.bf16.mxu1 %vm1107_vm2, %v14467_v32  ;;  %v8663_v24 = vpop.f32.mrf.mxu0 }
 0x7d8   : > { %v4248_v41 = vpop.f32.mrf.mxu1 }
 0x7d9   : > { %v14558_v38 = vadd.f32 %v8662_v56, %v4248_v41  ;;  %v8664_v7 = vpop.f32.mrf.mxu0 }
 0x7da   : > { %v8665_v59 = vadd.f32 %v8664_v7, %v8663_v24 }
 0x7db   : > { %18675 = vst [vmem:[#allocation134_spill] sm:$0xff] %v14558_v38  ;;  %v8666_v45 = vpop.f32.mrf.mxu0 }
 0x7dc   : > { %v14562_v19 = vadd.f32 %v9399_v13, %v8665_v59 }
 0x7dd   : > { %v8667_v12 = vpop.f32.mrf.mxu0 }
 0x7de   : > { %18676 = vst [vmem:[#allocation135_spill] sm:$0xff] %v14562_v19  ;;  %8806 = vmatmul.mubr.msk.bf16.gmra.mxu1 %vm1107_vm2, %v14467_v32  ;;  %v8668_v8 = vadd.f32 %v8667_v12, %v8666_v45  ;;  %v9403_v11 = vpop.f32.mrf.mxu1 }
 0x7df   : > { %8807 = vmatprep.mubr.msk.bf16.mxu1 %vm1107_vm2, %v14463_v16  ;;  %v8669_v37 = vpop.f32.mrf.mxu0 }
 0x7e0   : > { %v14568_v39 = vadd.f32 %v9400_v1, %v8668_v8  ;;  %v4261_v46 = vpop.f32.mrf.mxu1 }
 0x7e1   : > { %v8670_v57 = vpop.f32.mrf.mxu0 }
 0x7e2   : > { %18677 = vst [vmem:[#allocation136_spill] sm:$0xff] %v14568_v39  ;;  %v8671_v40 = vadd.f32 %v8670_v57, %v8669_v37  ;;  %v9404_v15 = vpop.f32.mrf.mxu1 }
 0x7e3   : > { %v8672_v42 = vpop.f32.mrf.mxu0 }
 0x7e4   : > { %v14572_v30 = vadd.f32 %v8671_v40, %v4261_v46  ;;  %v4264_v35 = vpop.f32.mrf.mxu1 }
 0x7e5   : > { %v8673_v32 = vpop.f32.mrf.mxu0 }
 0x7e6   : > { %18678 = vst [vmem:[#allocation139_spill] sm:$0xff] %v14572_v30  ;;  %8808 = vmatmul.mubr.msk.bf16.gmra.mxu1 %vm1107_vm2, %v14463_v16  ;;  %v8674_v50 = vadd.f32 %v8673_v32, %v8672_v42 }
 0x7e7   : > { %8809 = vmatprep.mubr.msk.bf16.mxu1 %vm1107_vm2, %v14473_v63  ;;  %v9407_v34 = vpop.f32.mrf.mxu1 }
 0x7e8   : > { %v8675_v54 = vpop.f32.mrf.mxu0  ;;  %v14578_v51 = vadd.f32 %v8674_v50, %v4264_v35 }
 0x7e9   : > { %v4277_v18 = vpop.f32.mrf.mxu1 }
 0x7ea   : > { %18679 = vst [vmem:[#allocation140_spill] sm:$0xff] %v14578_v51  ;;  %v8676_v14 = vpop.f32.mrf.mxu0 }
 0x7eb   : > { %v8677_v55 = vadd.f32 %v8676_v14, %v8675_v54  ;;  %v9408_v7 = vpop.f32.mrf.mxu1 }
 0x7ec   : > { %v8678_v3 = vpop.f32.mrf.mxu0 }
 0x7ed   : > { %v14582_v13 = vadd.f32 %v9403_v11, %v8677_v55  ;;  %v4280_v8 = vpop.f32.mrf.mxu1 }
 0x7ee   : > { %8810 = vmatmul.mubr.msk.bf16.gmra.mxu1 %vm1107_vm2, %v14473_v63  ;;  %v8679_v16 = vpop.f32.mrf.mxu0 }
 0x7ef   : > { %18680 = vst [vmem:[#allocation143_spill] sm:$0xff] %v14582_v13  ;;  %8811 = vmatprep.mubr.msk.bf16.mxu1 %vm1107_vm2, %v14469_v9  ;;  %v8680_v33 = vadd.f32 %v8679_v16, %v8678_v3 }
 0x7f0   : > { %v8681_v31 = vpop.f32.mrf.mxu0 }
 0x7f1   : > { %v14588_v56 = vadd.f32 %v9404_v15, %v8680_v33  ;;  %v9411_v15 = vpop.f32.mrf.mxu1 }
 0x7f2   : > { %v8682_v1 = vpop.f32.mrf.mxu0 }
 0x7f3   : > { %18681 = vst [vmem:[#allocation102_spill] sm:$0xff] %v14588_v56  ;;  %v8683_v41 = vadd.f32 %v8682_v1, %v8681_v31  ;;  %v4293_v54 = vpop.f32.mrf.mxu1 }
 0x7f4   : > { %v8684_v59 = vpop.f32.mrf.mxu0 }
 0x7f5   : > { %v14592_v45 = vadd.f32 %v8683_v41, %v4277_v18  ;;  %v9412_v33 = vpop.f32.mrf.mxu1 }
 0x7f6   : > { %8812 = vmatmul.mubr.msk.bf16.gmra.mxu1 %vm1107_vm2, %v14469_v9  ;;  %v8685_v63 = vpop.f32.mrf.mxu0 }
 0x7f7   : > { %18682 = vst [vmem:[#allocation132_spill] sm:$0xff] %v14592_v45  ;;  %v8686_v12 = vadd.f32 %v8685_v63, %v8684_v59  ;;  %v4296_v59 = vpop.f32.mrf.mxu1 }
 0x7f8   : > { %v8687_v11 = vpop.f32.mrf.mxu0 }
 0x7f9   : > { %v14596_v37 = vadd.f32 %v8686_v12, %v4280_v8 }
 0x7fa   : > { %v8688_v46 = vpop.f32.mrf.mxu0 }
 0x7fb   : > { %18683 = vst [vmem:[#allocation151_spill] sm:$0xff] %v14596_v37  ;;  %v8689_v40 = vadd.f32 %v8688_v46, %v8687_v11  ;;  %v9415_v11 = vpop.f32.mrf.mxu1 }
 0x7fc   : > { %v8690_v42 = vpop.f32.mrf.mxu0 }
 0x7fd   : > { %v14600_v32 = vadd.f32 %v9407_v34, %v8689_v40 }
 0x7fe   : > { %v8691_v50 = vpop.f32.mrf.mxu0 }
 0x7ff   : > { %18684 = vst [vmem:[#allocation152_spill] sm:$0xff] %v14600_v32  ;;  %v8692_v35 = vadd.f32 %v8691_v50, %v8690_v42 }
 0x800   : > { %v8693_v14 = vpop.f32.mrf.mxu0 }
 0x801   : > { %v14602_v9 = vadd.f32 %v9408_v7, %v8692_v35  ;;  %v4309_v35 = vpop.f32.mrf.mxu1 }
 0x802   : > { %v8694_v55 = vpop.f32.mrf.mxu0 }
 0x803   : > { %18685 = vst [vmem:[#allocation107_spill] sm:$0xff] %v14602_v9  ;;  %v8695_v16 = vadd.f32 %v8694_v55, %v8693_v14 }
 0x804   : > { %v8696_v18 = vpop.f32.mrf.mxu0 }
 0x805   : > { %v14606_v31 = vadd.f32 %v8695_v16, %v4293_v54 }
 0x806   : > { %v8697_v1 = vpop.f32.mrf.mxu0 }
 0x807   : > { %18686 = vst [vmem:[#allocation90_spill] sm:$0xff] %v14606_v31  ;;  %v8698_v41 = vadd.f32 %v8697_v1, %v8696_v18  ;;  %v9416_v1 = vpop.f32.mrf.mxu1 }
 0x808   : > { %v8699_v34 = vpop.f32.mrf.mxu0 }
 0x809   : > { %v14608_v63 = vadd.f32 %v8698_v41, %v4296_v59  ;;  %v4312_v7 = vpop.f32.mrf.mxu1 }
 0x80a   : > { %v8700_v12 = vpop.f32.mrf.mxu0 }
 0x80b   : > { %18687 = vst [vmem:[#allocation138_spill] sm:$0xff] %v14608_v63  ;;  %v8701_v8 = vadd.f32 %v8700_v12, %v8699_v34 }
 0x80c   : > { %v8702_v46 = vpop.f32.mrf.mxu0 }
 0x80d   : > { %v14612_v40 = vadd.f32 %v9411_v15, %v8701_v8 }
 0x80e   : > { %v8703_v42 = vpop.f32.mrf.mxu0 }
 0x80f   : > { %18688 = vst [vmem:[#allocation95_spill] sm:$0xff] %v14612_v40  ;;  %v8704_v50 = vadd.f32 %v8703_v42, %v8702_v46  ;;  %v18701_v40 = vld [vmem:[#allocation5_spill] sm:$0xff] }
 0x810   : > { %v8705_v54 = vpop.f32.mrf.mxu0 }
 0x811   : > { %v14614_v14 = vadd.f32 %v9412_v33, %v8704_v50  ;;  %v9419_v50 = vpop.f32.mrf.mxu1 }
 0x812   : > { %v8706_v55 = vpop.f32.mrf.mxu0 }
 0x813   : > { %18689 = vst [vmem:[#allocation137_spill] sm:$0xff] %v14614_v14  ;;  %v8707_v18 = vadd.f32 %v8706_v55, %v8705_v54  ;;  %v4325_v16 = vpop.f32.mrf.mxu1 }
 0x814   : > { %v8708_v41 = vpop.f32.mrf.mxu0 }
 0x815   : > { %v14618_v59 = vadd.f32 %v8707_v18, %v4309_v35 }
 0x816   : > { %v8709_v34 = vpop.f32.mrf.mxu0 }
 0x817   : > { %18690 = vst [vmem:[#allocation145_spill] sm:$0xff] %v14618_v59  ;;  %v8710_v12 = vadd.f32 %v8709_v34, %v8708_v41 }
 0x818   : > { %v8711_v15 = vpop.f32.mrf.mxu0 }
 0x819   : > { %v14620_v8 = vadd.f32 %v8710_v12, %v4312_v7  ;;  %v9420_v12 = vpop.f32.mrf.mxu1 }
 0x81a   : > { %v8712_v46 = vpop.f32.mrf.mxu0 }
 0x81b   : > { %18691 = vst [vmem:[#allocation133_spill] sm:$0xff] %v14620_v8  ;;  %v8713_v42 = vadd.f32 %v8712_v46, %v8711_v15  ;;  %v4328_v33 = vpop.f32.mrf.mxu1 }
 0x81c   : > { %v8714_v44 = vpop.f32.mrf.mxu0 }
 0x81d   : > { %v14624_v27 = vadd.f32 %v9415_v11, %v8713_v42 }
 0x81e   : > { %v8715_v54 = vpop.f32.mrf.mxu0 }
 0x81f   : > { %18692 = vst [vmem:[#allocation141_spill] sm:$0xff] %v14624_v27  ;;  %v8716_v55 = vadd.f32 %v8715_v54, %v8714_v44 }
 0x820   : > { %v8717_v35 = vpop.f32.mrf.mxu0 }
 0x821   : > { %v14626_v18 = vadd.f32 %v9416_v1, %v8716_v55 }
 0x822   : > { %v8718_v41 = vpop.f32.mrf.mxu0 }
 0x823   : > { %18693 = vst [vmem:[#allocation147_spill] sm:$0xff] %v14626_v18  ;;  %v8719_v34 = vadd.f32 %v8718_v41, %v8717_v35 }
 0x824   : > { %v8720_v49 = vpop.f32.mrf.mxu0 }
 0x825   : > { %v14630_v53 = vadd.f32 %v8719_v34, %v4325_v16 }
 0x826   : > { %v8721_v15 = vpop.f32.mrf.mxu0 }
 0x827   : > { %18694 = vst [vmem:[#allocation142_spill] sm:$0xff] %v14630_v53  ;;  %v8722_v46 = vadd.f32 %v8721_v15, %v8720_v49 }
 0x828   : > { %v8723_v11 = vpop.f32.mrf.mxu0 }
 0x829   : > { %v14632_v42 = vadd.f32 %v8722_v46, %v4328_v33 }
 0x82a   : > { %v8724_v44 = vpop.f32.mrf.mxu0 }
 0x82b   : > { %18695 = vst [vmem:[#allocation146_spill] sm:$0xff] %v14632_v42  ;;  %v8725_v54 = vadd.f32 %v8724_v44, %v8723_v11 }
 0x82c   : > { %v8726_v55 = vpop.f32.mrf.mxu0 }
 0x82d   : > { %v14636_v10 = vadd.f32 %v9419_v50, %v8725_v54 }
 0x82e   : > { %v8727_v7 = vpop.f32.mrf.mxu0 }
 0x82f   : > { %18696 = vst [vmem:[#allocation150_spill] sm:$0xff] %v14636_v10  ;;  %v8728_v35 = vadd.f32 %v8727_v7, %v8726_v55 }
 0x830   : > { %v8729_v41 = vpop.f32.mrf.mxu0 }
 0x831   : > { %v14638_v24 = vadd.f32 %v9420_v12, %v8728_v35 }
 0x832   : > { %v8730_v16 = vpop.f32.mrf.mxu0 }
 0x833   : > { %18697 = vst [vmem:[#allocation144_spill] sm:$0xff] %v14638_v24  ;;  %v8731_v34 = vadd.f32 %v8730_v16, %v8729_v41 }
 0x834   : > { %v8732_v33 = vpop.f32.mrf.mxu0 }
 0x836   : > { %v9423_v15 = vpop.f32.mrf.mxu1  ;;  %v8733_v46 = vpop.f32.mrf.mxu0 }
 0x837   : > { %v8734_v50 = vadd.f32 %v8733_v46, %v8732_v33  ;;  %v18702_v33 = vld [vmem:[#allocation59_spill] sm:$0xff] }
 0x838   : > { %v4341_v57 = vpop.f32.mrf.mxu1  ;;  %v8735_v3 = vpop.f32.mrf.mxu0 }
 0x839   : > { %v14642_v1 = vadd.f32 %v8731_v34, %v4341_v57 }
 0x83a   : > { %v9424_v11 = vpop.f32.mrf.mxu1  ;;  %v8736_v44 = vpop.f32.mrf.mxu0 }
 0x83b   : > { %18698 = vst [vmem:[#allocation149_spill] sm:$0xff] %v14642_v1  ;;  %v8737_v54 = vadd.f32 %v8736_v44, %v8735_v3 }
 0x83c   : > { %v4344_v7 = vpop.f32.mrf.mxu1  ;;  %v8738_v55 = vpop.f32.mrf.mxu0 }
 0x83d   : > { %v14644_v12 = vadd.f32 %v8734_v50, %v4344_v7  ;;  %v14646_v35 = vadd.f32 %v9423_v15, %v8737_v54  ;;  %v18704_v7 = vld [vmem:[#allocation60_spill] sm:$0xff] }
 0x83e   : > { %v4606_v31 = vpop.f32.mrf.mxu1  ;;  %v8739_v16 = vpop.f32.mrf.mxu0 }
 0x83f   : > { %18699 = vst [vmem:[#allocation148_spill] sm:$0xff] %v14644_v12  ;;  %18700 = vst [vmem:[#allocation154_spill] sm:$0xff] %v14646_v35  ;;  %v8740_v49 = vadd.f32 %v8739_v16, %v8738_v55  ;;  %v14651_v57 = vadd.f32 %v4606_v31, %v18701_v40 }
 0x840   : > { %v4608_v63 = vpop.f32.mrf.mxu1  ;;  %v9443_v34 = vpop.f32.mrf.mxu0 }
 0x841   : > { %v14654_v46 = vadd.f32 %v4608_v63, %v18702_v33  ;;  %v14656_v3 = vadd.f32 %v9424_v11, %v8740_v49  ;;  %v14685_v18 = vadd.f32 %v9443_v34, %v18704_v7 }
 0x842   : > { %v4610_v50 = vpop.f32.mrf.mxu1  ;;  %v4799_v44 = vpop.f32.mrf.mxu0 }
 0x843   : > { %18703 = vst [vmem:[#allocation155_spill] sm:$0xff] %v14656_v3  ;;  %v4926_v15 = vmax.f32 %v14651_v57, %v14654_v46  ;;  %v14663_v55 = vadd.f32 %v4799_v44, %v18704_v7  ;;  %v14666_v31 = vadd.f32 %v4610_v50, %v18701_v40 }
 0x844   : > { %v4612_v16 = vpop.f32.mrf.mxu1  ;;  %v9444_v41 = vpop.f32.mrf.mxu0 }
 0x845   : > { %v14669_v63 = vadd.f32 %v4612_v16, %v18702_v33  ;;  %v4927_v49 = vmax.f32 %v4926_v15, %v14663_v55 }
 0x846   : > { %v4616_v11 = vpop.f32.mrf.mxu1  ;;  %v4802_v59 = vpop.f32.mrf.mxu0 }
 0x847   : > { %v4930_v14 = vmax.f32 %v14666_v31, %v14669_v63  ;;  %v14675_v54 = vadd.f32 %v4802_v59, %v18704_v7  ;;  %4928 = vmax.xlane.f32.xlu0 %v4927_v49  ;;  %v14678_v8 = vadd.f32 %v4616_v11, %v18701_v40 }
 0x848   : > { %v4618_v44 = vpop.f32.mrf.mxu1  ;;  %v9447_v50 = vpop.f32.mrf.mxu0 }
 0x849   : > { %v14681_v27 = vadd.f32 %v4618_v44, %v18702_v33  ;;  %v4931_v16 = vmax.f32 %v4930_v14, %v14675_v54  ;;  %v14697_v14 = vadd.f32 %v9444_v41, %v18704_v7  ;;  %v14735_v51 = vadd.f32 %v9447_v50, %v18704_v7 }
 0x84a   : > { %v4620_v15 = vpop.f32.mrf.mxu1  ;;  %v4815_v59 = vpop.f32.mrf.mxu0 }
 0x84b   : > { %v4934_v20 = vmax.f32 %v14678_v8, %v14681_v27  ;;  %4932 = vmax.xlane.f32.xlu1 %v4931_v16  ;;  %v14690_v43 = vadd.f32 %v4620_v15, %v18701_v40  ;;  %18712 = vst [vmem:[#allocation161_spill] sm:$0xff] %v14735_v51 }
 0x84c   : > { %v4622_v49 = vpop.f32.mrf.mxu1  ;;  %v9448_v52 = vpop.f32.mrf.mxu0 }
 0x84d   : > { %v14693_v11 = vadd.f32 %v4622_v49, %v18702_v33  ;;  %v4935_v44 = vmax.f32 %v4934_v20, %v14685_v18  ;;  %v14709_v20 = vadd.f32 %v4815_v59, %v18704_v7 }
 0x84e   : > { %v4626_v17 = vpop.f32.mrf.mxu1  ;;  %v4818_v19 = vpop.f32.mrf.mxu0 }
 0x84f   : > { %v4938_v34 = vmax.f32 %v14690_v43, %v14693_v11  ;;  %4936 = vmax.xlane.f32.xlu0 %v4935_v44  ;;  %v14702_v16 = vadd.f32 %v4626_v17, %v18701_v40  ;;  %18706 = vst [vmem:[#allocation157_spill] sm:$0xff] %v14709_v20 }
 0x850   : > { %v4628_v60 = vpop.f32.mrf.mxu1  ;;  %v14725_v42 = vpop.f32.mrf.mxu0 }
 0x851   : > { %v14705_v15 = vadd.f32 %v4628_v60, %v18702_v33  ;;  %v4939_v49 = vmax.f32 %v4938_v34, %v14697_v14  ;;  %v14721_v34 = vadd.f32 %v4818_v19, %v18704_v7 }
 0x852   : > { %v4630_v38 = vpop.f32.mrf.mxu1 }
 0x853   : > { %18705 = vst [vmem:[#allocation153_spill] sm:$0xff] %v14705_v15  ;;  %v4942_v41 = vmax.f32 %v14702_v16, %v14705_v15  ;;  %4940 = vmax.xlane.f32.xlu0 %v4939_v49  ;;  %v14714_v39 = vadd.f32 %v4630_v38, %v18701_v40  ;;  %18709 = vst [vmem:[#allocation160_spill] sm:$0xff] %v14721_v34 }
 0x854   : > { %v4632_v44 = vpop.f32.mrf.mxu1 }
 0x855   : > { %18707 = vst [vmem:[#allocation156_spill] sm:$0xff] %v14714_v39  ;;  %v14717_v17 = vadd.f32 %v4632_v44, %v18702_v33  ;;  %v4943_v60 = vmax.f32 %v4942_v41, %v14709_v20 }
 0x856   : > { %v4636_v53 = vpop.f32.mrf.mxu1 }
 0x857   : > { %18708 = vst [vmem:[#allocation159_spill] sm:$0xff] %v14717_v17  ;;  %v4946_v59 = vmax.f32 %v14714_v39, %v14717_v17  ;;  %4944 = vmax.xlane.f32.xlu0 %v4943_v60  ;;  %v14728_v30 = vadd.f32 %v4636_v53, %v18701_v40  ;;  %v4831_v60 = vpop.f32.mrf.mxu0 }
 0x858   : > { %v4638_v49 = vpop.f32.mrf.mxu1 }
 0x859   : > { %18710 = vst [vmem:[#allocation162_spill] sm:$0xff] %v14728_v30  ;;  %v14731_v38 = vadd.f32 %v4638_v49, %v18702_v33  ;;  %v4947_v44 = vmax.f32 %v4946_v59, %v14721_v34  ;;  %v14747_v59 = vadd.f32 %v9448_v52, %v18704_v7  ;;  %v14751_v56 = vpop.f32.mrf.mxu0 }
 0x85a   : > { %v4640_v41 = vpop.f32.mrf.mxu1 }
 0x85b   : > { %18711 = vst [vmem:[#allocation158_spill] sm:$0xff] %v14731_v38  ;;  %v4950_v19 = vmax.f32 %v14728_v30, %v14731_v38  ;;  %4948 = vmax.xlane.f32.xlu1 %v4947_v44  ;;  %v14740_v24 = vadd.f32 %v4640_v41, %v18701_v40  ;;  %18715 = vst [vmem:[#allocation128_spill] sm:$0xff] %v14747_v59  ;;  %v4834_v12 = vpop.f32.mrf.mxu0 }
 0x85c   : > { %v4642_v10 = vpop.f32.mrf.mxu1  ;;  %v14827_v20 = vadd.f32 %v4834_v12, %v18704_v7 }
 0x85d   : > { %18713 = vst [vmem:[#allocation129_spill] sm:$0xff] %v14740_v24  ;;  %v14743_v53 = vadd.f32 %v4642_v10, %v18702_v33  ;;  %v4951_v49 = vmax.f32 %v4950_v19, %v14735_v51  ;;  %v14754_v37 = vpop.f32.mrf.mxu0 }
 0x85e   : > { %v4646_v13 = vpop.f32.mrf.mxu1 }
 0x85f   : > { %18714 = vst [vmem:[#allocation127_spill] sm:$0xff] %v14743_v53  ;;  %v4954_v50 = vmax.f32 %v14740_v24, %v14743_v53  ;;  %4952 = vmax.xlane.f32.xlu0 %v4951_v49  ;;  %v4847_v52 = vpop.f32.mrf.mxu0 }
 0x860   : > { %v4648_v44 = vpop.f32.mrf.mxu1 }
 0x861   : > { %v4955_v1 = vmax.f32 %v4954_v50, %v14747_v59  ;;  %v14756_v3 = vpop.f32.mrf.mxu0  ;;  %v18716_v50 = vld [vmem:[#allocation19_spill] sm:$0xff]  ;;  %v14779_v47 = vadd.f32 %v4648_v44, %v18702_v33  ;;  %v14784_v59 = vadd.f32 %v4646_v13, %v18701_v40  ;;  %v14804_v13 = vadd.f32 %v4831_v60, %v18704_v7 }
 0x862   : > { %v4650_v41 = vpop.f32.mrf.mxu1 }
 0x863   : > { %4956 = vmax.xlane.f32.xlu1 %v4955_v1  ;;  %v14758_v26 = vpop.f32.mrf.mxu0  ;;  %18718 = vst [vmem:[#allocation126_spill] sm:$0xff] %v14779_v47  ;;  %18719 = vst [vmem:[#allocation62_spill] sm:$0xff] %v14784_v59  ;;  %v4958_v38 = vmax.f32 %v14784_v59, %v14779_v47  ;;  %v14801_v34 = vadd.f32 %v4650_v41, %v18701_v40 }
 0x864   : > { %v4652_v10 = vpop.f32.mrf.mxu1 }
 0x865   : > { %v14764_v25 = vpop.f32.mrf.mxu0  ;;  %v14791_v51 = vadd.f32 %v4652_v10, %v18702_v33  ;;  %18722 = vst [vmem:[#allocation63_spill] sm:$0xff] %v14801_v34 }
 0x866   : > { %v4656_v45 = vpop.f32.mrf.mxu1 }
 0x867   : > { %v14766_v61 = vpop.f32.mrf.mxu0  ;;  %18720 = vst [vmem:[#allocation64_spill] sm:$0xff] %v14791_v51  ;;  %v14807_v17 = vadd.f32 %v4656_v45, %v18701_v40  ;;  %v4962_v47 = vmax.f32 %v14801_v34, %v14791_v51  ;;  %v4959_v45 = vmax.f32 %v4958_v38, %v14804_v13 }
 0x868   : > { %v4658_v19 = vpop.f32.mrf.mxu1 }
 0x869   : > { %v14768_v58 = vpop.f32.mrf.mxu0  ;;  %v14796_v30 = vadd.f32 %v4658_v19, %v18702_v33  ;;  %18723 = vst [vmem:[#allocation61_spill] sm:$0xff] %v14807_v17  ;;  %v4963_v12 = vmax.f32 %v4962_v47, %v14827_v20 }
 0x86a   : > { %v4660_v32 = vpop.f32.mrf.mxu1 }
 0x86b   : > { %v14772_v2 = vpop.f32.mrf.mxu0  ;;  %18721 = vst [vmem:[#allocation66_spill] sm:$0xff] %v14796_v30  ;;  %v4966_v41 = vmax.f32 %v14807_v17, %v14796_v30  ;;  %v14830_v15 = vadd.f32 %v4660_v32, %v18701_v40 }
 0x86c   : > { %v4662_v9 = vpop.f32.mrf.mxu1 }
 0x86d   : > { %v14816_v19 = vadd.f32 %v4662_v9, %v18702_v33  ;;  %18726 = vst [vmem:[#allocation24_spill] sm:$0xff] %v14830_v15  ;;  %v14834_v9 = vadd.f32 %v14725_v42, %v18704_v7 }
 0x86e   : > { %v4666_v35 = vpop.f32.mrf.mxu1 }
 0x86f   : > { %18724 = vst [vmem:[#allocation68_spill] sm:$0xff] %v14816_v19  ;;  %v14839_v30 = vadd.f32 %v4666_v35, %v18701_v40  ;;  %v4970_v38 = vmax.f32 %v14830_v15, %v14816_v19  ;;  %v4967_v35 = vmax.f32 %v4966_v41, %v14834_v9  ;;  %v14860_v19 = vadd.f32 %v4847_v52, %v18704_v7 }
 0x870   : > { %v4668_v49 = vpop.f32.mrf.mxu1 }
 0x871   : > { %v14821_v59 = vadd.f32 %v4668_v49, %v18702_v33  ;;  %18727 = vst [vmem:[#allocation65_spill] sm:$0xff] %v14839_v30 }
 0x872   : > { %v4670_v62 = vpop.f32.mrf.mxu1 }
 0x873   : > { %18725 = vst [vmem:[#allocation70_spill] sm:$0xff] %v14821_v59  ;;  %v4974_v32 = vmax.f32 %v14839_v30, %v14821_v59  ;;  %v14865_v59 = vadd.f32 %v4670_v62, %v18701_v40 }
 0x874   : > { %6092 = vrot.lane.b32.xlu1 %v18716_v50, %s10951_s10  ;;  %v4672_v1 = vpop.f32.mrf.mxu1 }
 0x875   : > { %6108 = vrot.lane.b32.xlu0 %v18717_v23, %s10951_s10  ;;  %v14776_v23 = vpop.f32.mrf.mxu0  ;;  %v14847_v17 = vadd.f32 %v4672_v1, %v18702_v33 }
 0x876   : > { %v4676_v29 = vpop.f32.mrf.mxu1 }
 0x877   : > { %v14786_v53 = vpop.f32.mrf.mxu0  ;;  %v14868_v1 = vadd.f32 %v4676_v29, %v18701_v40  ;;  %v4978_v52 = vmax.f32 %v14865_v59, %v14847_v17  ;;  %v4975_v29 = vmax.f32 %v4974_v32, %v14860_v19 }
 0x878   : > { %v4678_v36 = vpop.f32.mrf.mxu1 }
 0x879   : > { %v14809_v39 = vpop.f32.mrf.mxu0  ;;  %v14850_v42 = vadd.f32 %v4678_v36, %v18702_v33  ;;  %18729 = vst [vmem:[#allocation74_spill] sm:$0xff] %v14868_v1 }
 0x87a   : > { %v4680_v4 = vpop.f32.mrf.mxu1 }
 0x87b   : > { %v14836_v51 = vpop.f32.mrf.mxu0  ;;  %18728 = vst [vmem:[#allocation72_spill] sm:$0xff] %v14850_v42  ;;  %v4982_v30 = vmax.f32 %v14868_v1, %v14850_v42 }
 0x87c   : > { %v4682_v28 = vpop.f32.mrf.mxu1 }
 0x87d   : > { %v14862_v47 = vpop.f32.mrf.mxu0  ;;  %v14871_v41 = vadd.f32 %v4682_v28, %v18702_v33  ;;  %v14889_v28 = vadd.f32 %v14754_v37, %v18704_v7 }
 0x87e   : > { %v4686_v21 = vpop.f32.mrf.mxu1 }
 0x87f   : > { %18730 = vst [vmem:[#allocation17_spill] sm:$0xff] %v14871_v41 }
 0x880   : > { %v4688_v48 = vpop.f32.mrf.mxu1 }
 0x881   : > { %v14879_v62 = vadd.f32 %v4688_v48, %v18702_v33  ;;  %v14898_v48 = vadd.f32 %v4686_v21, %v18701_v40 }
 0x882   : > { %v14770_v5 = vpop.f32.mrf.mxu1 }
 0x883   : > { %18731 = vst [vmem:[#allocation67_spill] sm:$0xff] %v14879_v62  ;;  %18732 = vst [vmem:[#allocation14_spill] sm:$0xff] %v14898_v48  ;;  %v4990_v37 = vmax.f32 %v14898_v48, %v14879_v62  ;;  %v14924_v62 = vadd.f32 %v14766_v61, %v18704_v7 }
 0x884   : > { %v4692_v50 = vpop.f32.mrf.mxu1 }
 0x885   : > { %v14903_v32 = vadd.f32 %v4692_v50, %v18702_v33  ;;  %v14920_v50 = vadd.f32 %v14770_v5, %v18701_v40 }
 0x886   : > { %v14774_v22 = vpop.f32.mrf.mxu1 }
 0x887   : > { %18733 = vst [vmem:[#allocation69_spill] sm:$0xff] %v14903_v32  ;;  %18735 = vst [vmem:[#allocation11_spill] sm:$0xff] %v14920_v50  ;;  %v14930_v48 = vadd.f32 %v14774_v22, %v18701_v40 }
 0x888   : > { %v4698_v0 = vpop.f32.mrf.mxu1 }
 0x889   : > { %18736 = vst [vmem:[#allocation34_spill] sm:$0xff] %v14930_v48 }
 0x88a   : > { %v14781_v6 = vpop.f32.mrf.mxu1 }
 0x88c   : > { %v14788_v24 = vpop.f32.mrf.mxu1 }
 0x88d   : > { %v14939_v61 = vadd.f32 %v14788_v24, %v18702_v33  ;;  %v14956_v24 = vadd.f32 %v14781_v6, %v18701_v40 }
 0x88e   : > { %v14798_v44 = vpop.f32.mrf.mxu1 }
 0x88f   : > { %18737 = vst [vmem:[#allocation71_spill] sm:$0xff] %v14939_v61 }
 0x890   : > { %v14811_v10 = vpop.f32.mrf.mxu1 }
 0x892   : > { %v14823_v60 = vpop.f32.mrf.mxu1 }
 0x894   : > { %4960 = vmax.xlane.f32.xlu0 %v4959_v45  ;;  %v4712_v49 = vpop.f32.mrf.mxu1  ;;  %v14857_v45 = vadd.f32 %v14751_v56, %v18704_v7 }
 0x896   : > { %v14852_v34 = vpop.f32.mrf.mxu1  ;;  %v4971_v56 = vmax.f32 %v4970_v38, %v14857_v45  ;;  %v14893_v38 = vadd.f32 %v14758_v26, %v18704_v7  ;;  %v14908_v26 = vadd.f32 %v4698_v0, %v18702_v33 }
 0x898   : > { %4964 = vmax.xlane.f32.xlu1 %v4963_v12  ;;  %4968 = vmax.xlane.f32.xlu0 %v4967_v35  ;;  %v4718_v36 = vpop.f32.mrf.mxu1  ;;  %v14885_v12 = vadd.f32 %v4680_v4, %v18701_v40  ;;  %v14895_v35 = vpop.f32.mrf.mxu0  ;;  %18734 = vst [vmem:[#allocation73_spill] sm:$0xff] %v14908_v26  ;;  %v4979_v21 = vmax.f32 %v4978_v52, %v14893_v38 }
 0x899   : > { %v4998_v5 = vmax.f32 %v14930_v48, %v14908_v26  ;;  %v14963_v48 = vadd.f32 %v4712_v49, %v18702_v33  ;;  %v14971_v6 = vadd.f32 %v4718_v36, %v18702_v33  ;;  %v14980_v49 = vadd.f32 %v14768_v58, %v18704_v7 }
 0x89a   : > { %v14881_v15 = vpop.f32.mrf.mxu1  ;;  %v4986_v4 = vmax.f32 %v14885_v12, %v14871_v41  ;;  %v14926_v0 = vpop.f32.mrf.mxu0  ;;  %v14943_v41 = vadd.f32 %v14811_v10, %v18702_v33  ;;  %v14960_v10 = vadd.f32 %v14798_v44, %v18701_v40  ;;  %v14990_v36 = vadd.f32 %v14852_v34, %v18701_v40 }
 0x89b   : > { %18740 = vst [vmem:[#allocation20_spill] sm:$0xff] %v14963_v48  ;;  %18741 = vst [vmem:[#allocation76_spill] sm:$0xff] %v14971_v6 }
 0x89c   : > { %4972 = vmax.xlane.f32.xlu1 %v4971_v56  ;;  %4976 = vmax.xlane.f32.xlu0 %v4975_v29  ;;  %v4722_v42 = vpop.f32.mrf.mxu1  ;;  %v4983_v56 = vmax.f32 %v4982_v30, %v14889_v28  ;;  %v14916_v29 = vadd.f32 %v14756_v3, %v18704_v7  ;;  %v4994_v3 = vmax.f32 %v14920_v50, %v14903_v32  ;;  %v4898_v26 = vpop.f32.mrf.mxu0 }
 0x89d   : > { %18738 = vst [vmem:[#allocation22_spill] sm:$0xff] %v14943_v41  ;;  %18739 = vst [vmem:[#allocation31_spill] sm:$0xff] %v14960_v10  ;;  %v5006_v32 = vmax.f32 %v14960_v10, %v14943_v41  ;;  %v14995_v41 = vadd.f32 %v4722_v42, %v18702_v33  ;;  %v5014_v58 = vmax.f32 %v14990_v36, %v14971_v6 }
 0x89e   : > { %v14910_v1 = vpop.f32.mrf.mxu1  ;;  %v4987_v52 = vmax.f32 %v4986_v4, %v14916_v29  ;;  %v14952_v4 = vadd.f32 %v14764_v25, %v18704_v7  ;;  %v5002_v25 = vmax.f32 %v14956_v24, %v14939_v61  ;;  %18742 = vst [vmem:[#allocation77_spill] sm:$0xff] %v14990_v36  ;;  %v15014_v42 = vadd.f32 %v14776_v23, %v18704_v7 }
 0x89f   : > { %18743 = vst [vmem:[#allocation79_spill] sm:$0xff] %v14995_v41 }
 0x8a0   : > { %4980 = vmax.xlane.f32.xlu1 %v4979_v21  ;;  %4984 = vmax.xlane.f32.xlu0 %v4983_v56  ;;  %v4728_v30 = vpop.f32.mrf.mxu1  ;;  %v4991_v21 = vmax.f32 %v4990_v37, %v14924_v62  ;;  %v14948_v56 = vadd.f32 %v14772_v2, %v18704_v7  ;;  %v4999_v44 = vmax.f32 %v4998_v5, %v14952_v4 }
 0x8a1   : > { %v5003_v61 = vmax.f32 %v5002_v25, %v14980_v49  ;;  %v15023_v36 = vadd.f32 %v4728_v30, %v18702_v33  ;;  %v15040_v30 = vadd.f32 %v14910_v1, %v18701_v40 }
 0x8a2   : > { %v4730_v22 = vpop.f32.mrf.mxu1  ;;  %v4995_v2 = vmax.f32 %v4994_v3, %v14948_v56  ;;  %v14984_v3 = vadd.f32 %v14786_v53, %v18704_v7 }
 0x8a4   : > { %4988 = vmax.xlane.f32.xlu1 %v4987_v52  ;;  %4992 = vmax.xlane.f32.xlu0 %v4991_v21  ;;  %v4732_v37 = vpop.f32.mrf.mxu1  ;;  %v14976_v52 = vadd.f32 %v14823_v60, %v18701_v40  ;;  %v14986_v21 = vpop.f32.mrf.mxu0  ;;  %v5007_v34 = vmax.f32 %v5006_v32, %v14984_v3 }
 0x8a5   : > { %v15000_v53 = vadd.f32 %v4732_v37, %v18702_v33  ;;  %v15017_v37 = vadd.f32 %v4730_v22, %v18701_v40  ;;  %v5015_v22 = vmax.f32 %v5014_v58, %v15014_v42 }
 0x8a6   : > { %v4736_v50 = vpop.f32.mrf.mxu1  ;;  %v5010_v60 = vmax.f32 %v14976_v52, %v14963_v48  ;;  %v4911_v6 = vpop.f32.mrf.mxu0 }
 0x8a7   : > { %18744 = vst [vmem:[#allocation84_spill] sm:$0xff] %v15000_v53  ;;  %18746 = vst [vmem:[#allocation75_spill] sm:$0xff] %v15017_v37 }
 0x8a8   : > { %4996 = vmax.xlane.f32.xlu1 %v4995_v2  ;;  %5000 = vmax.xlane.f32.xlu0 %v4999_v44  ;;  %v4738_v5 = vpop.f32.mrf.mxu1  ;;  %v15006_v2 = vadd.f32 %v14836_v51, %v18704_v7  ;;  %v15010_v44 = vadd.f32 %v14881_v15, %v18701_v40  ;;  %v5026_v15 = vmax.f32 %v15017_v37, %v15000_v53  ;;  %v15045_v37 = vpop.permute.xlu0 %6100 }
 0x8a9   : > { %18749 = vst [vmem:[#allocation88_spill] sm:$0xff] %v15045_v37 }
 0x8aa   : > { %v4740_v10 = vpop.f32.mrf.mxu1  ;;  %18745 = vst [vmem:[#allocation16_spill] sm:$0xff] %v15010_v44  ;;  %v5018_v32 = vmax.f32 %v15010_v44, %v14995_v41  ;;  %v5011_v51 = vmax.f32 %v5010_v60, %v15006_v2  ;;  %v9472_v60 = vpop.f32.mrf.mxu0 }
 0x8ab   : > { %v15043_v53 = vadd.f32 %v4740_v10, %v18701_v40  ;;  %v15056_v44 = vpop.permute.xlu1 %6116 }
 0x8ac   : > { %5004 = vmax.xlane.f32.xlu1 %v5003_v61  ;;  %5008 = vmax.xlane.f32.xlu0 %v5007_v34  ;;  %v4742_v25 = vpop.f32.mrf.mxu1  ;;  %v15033_v61 = vadd.f32 %v14809_v39, %v18704_v7  ;;  %v15036_v34 = vadd.f32 %v4898_v26, %v18704_v7  ;;  %v5022_v39 = vmax.f32 %v15040_v30, %v15023_v36 }
 0x8ad   : > { %v15028_v23 = vadd.f32 %v4742_v25, %v18702_v33  ;;  %18748 = vst [vmem:[#allocation82_spill] sm:$0xff] %v15043_v53  ;;  %v15051_v26 = vadd.f32 %v4738_v5, %v18702_v33  ;;  %18751 = vst [vmem:[#allocation78_spill] sm:$0xff] %v15056_v44  ;;  %v15067_v5 = vadd.f32 %v4736_v50, %v18701_v40 }
 0x8ae   : > { %v4746_v48 = vpop.f32.mrf.mxu1  ;;  %v5019_v58 = vmax.f32 %v5018_v32, %v15033_v61  ;;  %v5027_v10 = vmax.f32 %v5026_v15, %v15036_v34  ;;  %v15064_v32 = vadd.f32 %v14926_v0, %v18704_v7 }
 0x8af   : > { %18747 = vst [vmem:[#allocation80_spill] sm:$0xff] %v15028_v23  ;;  %18750 = vst [vmem:[#allocation13_spill] sm:$0xff] %v15051_v26  ;;  %v5034_v1 = vmax.f32 %v15043_v53, %v15028_v23 }
 0x8b0   : > { %5012 = vmax.xlane.f32.xlu1 %v5011_v51  ;;  %5016 = vmax.xlane.f32.xlu0 %v5015_v22  ;;  %v4748_v25 = vpop.f32.mrf.mxu1  ;;  %v15060_v51 = vadd.f32 %v14895_v35, %v18704_v7  ;;  %v4914_v22 = vpop.f32.mrf.mxu0  ;;  %v5030_v35 = vmax.f32 %v15067_v5, %v15051_v26 }
 0x8b1   : > { %v15078_v44 = vadd.f32 %v4748_v25, %v18702_v33  ;;  %v5035_v53 = vmax.f32 %v5034_v1, %v15064_v32  ;;  %v15094_v25 = vadd.f32 %v4746_v48, %v18701_v40  ;;  %v15096_v26 = vpop.permute.xlu1 %6132 }
 0x8b2   : > { %v4750_v41 = vpop.f32.mrf.mxu1  ;;  %v5023_v50 = vmax.f32 %v5022_v39, %v15060_v51  ;;  %18755 = vst [vmem:[#allocation92_spill] sm:$0xff] %v15096_v26 }
 0x8b3   : > { %v15070_v23 = vadd.f32 %v4750_v41, %v18701_v40 }
 0x8b4   : > { %5020 = vmax.xlane.f32.xlu1 %v5019_v58  ;;  %5028 = vmax.xlane.f32.xlu0 %v5027_v10  ;;  %v4752_v37 = vpop.f32.mrf.mxu1  ;;  %v15082_v58 = vpop.permute.xlu0 %6098  ;;  %v15085_v10 = vadd.f32 %v4914_v22, %v18704_v7  ;;  %v5038_v22 = vmax.f32 %v15094_v25, %v15078_v44 }
 0x8b5   : > { %18752 = vst [vmem:[#allocation83_spill] sm:$0xff] %v15070_v23  ;;  %v15073_v15 = vadd.f32 %v4752_v37, %v18702_v33  ;;  %18754 = vst [vmem:[#allocation86_spill] sm:$0xff] %v15082_v58  ;;  %v15091_v37 = vadd.f32 %v14862_v47, %v18704_v7 }
 0x8b6   : > { %v4756_v0 = vpop.f32.mrf.mxu1 }
 0x8b7   : > { %18753 = vst [vmem:[#allocation85_spill] sm:$0xff] %v15073_v15  ;;  %v5042_v41 = vmax.f32 %v15070_v23, %v15073_v15  ;;  %v5031_v47 = vmax.f32 %v5030_v35, %v15091_v37  ;;  %v15106_v23 = vadd.f32 %v4911_v6, %v18704_v7  ;;  %v15109_v48 = vadd.f32 %v4756_v0, %v18701_v40  ;;  %v15119_v35 = vpop.permute.xlu1 %6114 }
 0x8b8   : > { %5036 = vmax.xlane.f32.xlu0 %v5035_v53  ;;  %5024 = vmax.xlane.f32.xlu1 %v5023_v50  ;;  %v4758_v1 = vpop.f32.mrf.mxu1  ;;  %v15111_v50 = vpop.permute.xlu0 %6130  ;;  %18758 = vst [vmem:[#allocation19_spill] sm:$0xff] %v15119_v35  ;;  %v15123_v6 = vadd.f32 %v14986_v21, %v18704_v7 }
 0x8b9   : > { %v5043_v39 = vmax.f32 %v5042_v41, %v15085_v10  ;;  %v15102_v58 = vadd.f32 %v4758_v1, %v18702_v33  ;;  %18756 = vst [vmem:[#allocation81_spill] sm:$0xff] %v15111_v50  ;;  %v5039_v26 = vmax.f32 %v5038_v22, %v15106_v23 }
 0x8ba   : > { %v4760_v15 = vpop.f32.mrf.mxu1 }
 0x8bb   : > { %v5046_v41 = vmax.f32 %v15109_v48, %v15102_v58  ;;  %v15126_v0 = vadd.f32 %v4760_v15, %v18701_v40  ;;  %v15136_v22 = vpop.permute.xlu1 %6112 }
 0x8bc   : > { %5032 = vmax.xlane.f32.xlu1 %v5031_v47  ;;  %v4762_v53 = vpop.f32.mrf.mxu1  ;;  %5044 = vmax.xlane.f32.xlu0 %v5043_v39  ;;  %v15131_v50 = vpop.permute.xlu0 %6096  ;;  %18762 = vst [vmem:[#allocation165_spill] sm:$0xff] %v15136_v22 }
 0x8bd   : > { %v15116_v1 = vadd.f32 %v4762_v53, %v18702_v33  ;;  %18759 = vst [vmem:[#allocation29_spill] sm:$0xff] %v15126_v0  ;;  %v5047_v47 = vmax.f32 %v5046_v41, %v15123_v6  ;;  %18760 = vst [vmem:[#allocation163_spill] sm:$0xff] %v15131_v50  ;;  %v15134_v53 = vadd.f32 %v9472_v60, %v18704_v7 }
 0x8bf   : > { %18757 = vst [vmem:[#allocation87_spill] sm:$0xff] %v15116_v1  ;;  %v5050_v39 = vmax.f32 %v15126_v0, %v15116_v1  ;;  %18761 = vst [vmem:[#allocation164_spill] sm:$0xff] %v15134_v53  ;;  %v15141_v15 = vpop.permute.xlu1 %6094 }
 0x8c0   : > { %5040 = vmax.xlane.f32.xlu1 %v5039_v26  ;;  %v15139_v33 = vpop.permute.xlu0 %6128  ;;  %18764 = vst [vmem:[#allocation167_spill] sm:$0xff] %v15141_v15 }
 0x8c1   : > { %v5051_v21 = vmax.f32 %v5050_v39, %v15134_v53  ;;  %18763 = vst [vmem:[#allocation166_spill] sm:$0xff] %v15139_v33 }
 0x8c3   : > { %v15145_v40 = vpop.permute.xlu1 %6110 }
 0x8c4   : > { %5048 = vmax.xlane.f32.xlu1 %v5047_v47  ;;  %v15143_v26 = vpop.permute.xlu0 %6126  ;;  %18766 = vst [vmem:[#allocation169_spill] sm:$0xff] %v15145_v40 }
 0x8c5   : > { %18765 = vst [vmem:[#allocation168_spill] sm:$0xff] %v15143_v26 }
 0x8c8   : > { %5052 = vmax.xlane.f32.xlu1 %v5051_v21 }
 0x8d0   : > { %v4929_v41 = vpop.xlane.xlu0 %4928 }
 0x8d1   : > { %v5054_v1 = vsub.f32 %v14651_v57, %v4929_v41  ;;  %v5055_v60 = vsub.f32 %v14654_v46, %v4929_v41  ;;  %v5056_v47 = vsub.f32 %v14663_v55, %v4929_v41 }
 0x8d3   : > { %v5150_v7 = vmul.f32 1.442695, %v5054_v1  ;;  %v5152_v0 = vmul.f32 1.442695, %v5055_v60  ;;  %v5154_v50 = vmul.f32 1.442695, %v5056_v47 }
 0x8d4   : > { %v4933_v39 = vpop.xlane.xlu1 %4932 }
 0x8d5   : > { %10331 = vpow2.f32 %v5150_v7  ;;  %v5057_v21 = vsub.f32 %v14666_v31, %v4933_v39  ;;  %v5058_v53 = vsub.f32 %v14669_v63, %v4933_v39  ;;  %v5059_v15 = vsub.f32 %v14675_v54, %v4933_v39 }
 0x8d6   : > { %10333 = vpow2.f32 %v5152_v0 }
 0x8d7   : > { %v5156_v40 = vmul.f32 1.442695, %v5057_v21  ;;  %v5158_v26 = vmul.f32 1.442695, %v5058_v53  ;;  %v5160_v22 = vmul.f32 1.442695, %v5059_v15  ;;  %10335 = vpow2.f32 %v5154_v50 }
 0x8d8   : > { %v4937_v57 = vpop.xlane.xlu0 %4936  ;;  %v18767_v15 = vld [vmem:[#allocation153_spill] sm:$0xff] }
 0x8d9   : > { %v5060_v46 = vsub.f32 %v14678_v8, %v4937_v57  ;;  %v5061_v55 = vsub.f32 %v14681_v27, %v4937_v57  ;;  %v5062_v1 = vsub.f32 %v14685_v18, %v4937_v57  ;;  %10337 = vpow2.f32 %v5156_v40  ;;  %v18769_v57 = vld [vmem:[#allocation156_spill] sm:$0xff] }
 0x8da   : > { %10339 = vpow2.f32 %v5158_v26  ;;  %v18768_v26 = vld [vmem:[#allocation157_spill] sm:$0xff] }
 0x8db   : > { %v5162_v7 = vmul.f32 1.442695, %v5060_v46  ;;  %v5164_v31 = vmul.f32 1.442695, %v5061_v55  ;;  %10341 = vpow2.f32 %v5160_v22  ;;  %v5166_v63 = vmul.f32 1.442695, %v5062_v1 }
 0x8dc   : > { %v4941_v41 = vpop.xlane.xlu0 %4940  ;;  %v18770_v55 = vld [vmem:[#allocation159_spill] sm:$0xff] }
 0x8dd   : > { %10343 = vpow2.f32 %v5162_v7  ;;  %v5063_v54 = vsub.f32 %v14690_v43, %v4941_v41  ;;  %v5064_v0 = vsub.f32 %v14693_v11, %v4941_v41  ;;  %v5065_v50 = vsub.f32 %v14697_v14, %v4941_v41 }
 0x8de   : > { %10345 = vpow2.f32 %v5164_v31 }
 0x8df   : > { %v5168_v8 = vmul.f32 1.442695, %v5063_v54  ;;  %v5170_v53 = vmul.f32 1.442695, %v5064_v0  ;;  %10347 = vpow2.f32 %v5166_v63  ;;  %v5172_v27 = vmul.f32 1.442695, %v5065_v50 }
 0x8e0   : > { %v4945_v18 = vpop.xlane.xlu0 %4944 }
 0x8e1   : > { %10349 = vpow2.f32 %v5168_v8  ;;  %v5066_v40 = vsub.f32 %v14702_v16, %v4945_v18  ;;  %v5067_v22 = vsub.f32 %v18767_v15, %v4945_v18  ;;  %v5068_v60 = vsub.f32 %v18768_v26, %v4945_v18  ;;  %v18771_v16 = vld [vmem:[#allocation160_spill] sm:$0xff] }
 0x8e2   : > { %10351 = vpow2.f32 %v5170_v53  ;;  %v15162_v47 = vpop.eup %10331 }
 0x8e3   : > { %v5174_v43 = vmul.f32 1.442695, %v5066_v40  ;;  %v5176_v11 = vmul.f32 1.442695, %v5067_v22  ;;  %v15164_v39 = vpop.eup %10333  ;;  %10353 = vpow2.f32 %v5172_v27  ;;  %v5178_v14 = vmul.f32 1.442695, %v5068_v60 }
 0x8e4   : > { %v4949_v21 = vpop.xlane.xlu1 %4948  ;;  %v15169_v31 = vpop.eup %10335  ;;  %v5342_v63 = vadd.f32 %v15164_v39, %v15162_v47  ;;  %v18772_v40 = vld [vmem:[#allocation162_spill] sm:$0xff]  ;;  %v18774_v60 = vld [vmem:[#allocation161_spill] sm:$0xff] }
 0x8e5   : > { %10355 = vpow2.f32 %v5174_v43  ;;  %v5069_v46 = vsub.f32 %v18769_v57, %v4949_v21  ;;  %v5070_v1 = vsub.f32 %v18770_v55, %v4949_v21  ;;  %v5071_v7 = vsub.f32 %v18771_v16, %v4949_v21  ;;  %v18773_v22 = vld [vmem:[#allocation158_spill] sm:$0xff] }
 0x8e6   : > { %10357 = vpow2.f32 %v5176_v11  ;;  %v15173_v41 = vpop.eup %10337  ;;  %v5343_v53 = vadd.f32 %v15169_v31, %v5342_v63 }
 0x8e7   : > { %v5180_v54 = vmul.f32 1.442695, %v5069_v46  ;;  %v5182_v0 = vmul.f32 1.442695, %v5070_v1  ;;  %v15175_v50 = vpop.eup %10339  ;;  %10359 = vpow2.f32 %v5178_v14  ;;  %v5184_v8 = vmul.f32 1.442695, %v5071_v7 }
 0x8e8   : > { %v4953_v27 = vpop.xlane.xlu0 %4952  ;;  %v15178_v18 = vpop.eup %10341  ;;  %5344 = vadd.xlane.f32.xlu1 %v5343_v53  ;;  %v5346_v14 = vadd.f32 %v15175_v50, %v15173_v41  ;;  %v18778_v53 = vld [vmem:[#allocation127_spill] sm:$0xff] }
 0x8e9   : > { %10361 = vpow2.f32 %v5180_v54  ;;  %v5072_v15 = vsub.f32 %v18772_v40, %v4953_v27  ;;  %v5073_v26 = vsub.f32 %v18773_v22, %v4953_v27  ;;  %v5074_v43 = vsub.f32 %v18774_v60, %v4953_v27  ;;  %v18777_v54 = vld [vmem:[#allocation129_spill] sm:$0xff]  ;;  %v18779_v40 = vld [vmem:[#allocation128_spill] sm:$0xff] }
 0x8ea   : > { %v15183_v11 = vpop.eup %10343  ;;  %10363 = vpow2.f32 %v5182_v0  ;;  %v5347_v1 = vadd.f32 %v15178_v18, %v5346_v14 }
 0x8eb   : > { %18775 = vst [vmem:[#allocation153_spill] sm:$0xff] %v15183_v11  ;;  %v15187_v21 = vpop.eup %10345  ;;  %v5186_v57 = vmul.f32 1.442695, %v5072_v15  ;;  %v5188_v46 = vmul.f32 1.442695, %v5073_v26  ;;  %10365 = vpow2.f32 %v5184_v8 }
 0x8ec   : > { %v5190_v55 = vmul.f32 1.442695, %v5074_v43  ;;  %v4957_v16 = vpop.xlane.xlu1 %4956  ;;  %v5350_v7 = vadd.f32 %v15187_v21, %v15183_v11  ;;  %v15192_v63 = vpop.eup %10347  ;;  %5348 = vadd.xlane.f32.xlu1 %v5347_v1 }
 0x8ed   : > { %18776 = vst [vmem:[#allocation157_spill] sm:$0xff] %v15192_v63  ;;  %10367 = vpow2.f32 %v5186_v57  ;;  %v5075_v0 = vsub.f32 %v18777_v54, %v4957_v16  ;;  %v5076_v27 = vsub.f32 %v18778_v53, %v4957_v16  ;;  %v5077_v22 = vsub.f32 %v18779_v40, %v4957_v16 }
 0x8ee   : > { %v15197_v60 = vpop.eup %10349  ;;  %10369 = vpow2.f32 %v5188_v46  ;;  %v5351_v8 = vadd.f32 %v15192_v63, %v5350_v7 }
 0x8ef   : > { %18780 = vst [vmem:[#allocation156_spill] sm:$0xff] %v15197_v60  ;;  %v15200_v15 = vpop.eup %10351  ;;  %v5192_v26 = vmul.f32 1.442695, %v5075_v0  ;;  %v5194_v43 = vmul.f32 1.442695, %v5076_v27  ;;  %10371 = vpow2.f32 %v5190_v55 }
 0x8f0   : > { %v5196_v14 = vmul.f32 1.442695, %v5077_v22  ;;  %v5354_v57 = vadd.f32 %v15200_v15, %v15197_v60  ;;  %v15204_v54 = vpop.eup %10353  ;;  %5352 = vadd.xlane.f32.xlu1 %v5351_v8  ;;  %v18801_v60 = vld [vmem:[#allocation66_spill] sm:$0xff] }
 0x8f1   : > { %18781 = vst [vmem:[#allocation159_spill] sm:$0xff] %v15204_v54  ;;  %10373 = vpow2.f32 %v5192_v26 }
 0x8f2   : > { %v15206_v53 = vpop.eup %10355  ;;  %10375 = vpow2.f32 %v5194_v43  ;;  %v5355_v46 = vadd.f32 %v15204_v54, %v5354_v57 }
 0x8f3   : > { %18782 = vst [vmem:[#allocation160_spill] sm:$0xff] %v15206_v53  ;;  %v15209_v1 = vpop.eup %10357  ;;  %10377 = vpow2.f32 %v5196_v14 }
 0x8f4   : > { %18783 = vst [vmem:[#allocation162_spill] sm:$0xff] %v15209_v1  ;;  %5356 = vadd.xlane.f32.xlu0 %v5355_v46  ;;  %v5358_v55 = vadd.f32 %v15209_v1, %v15206_v53  ;;  %v15213_v16 = vpop.eup %10359  ;;  %v18796_v53 = vld [vmem:[#allocation62_spill] sm:$0xff]  ;;  %v18798_v1 = vld [vmem:[#allocation63_spill] sm:$0xff] }
 0x8f5   : > { %18784 = vst [vmem:[#allocation158_spill] sm:$0xff] %v15213_v16 }
 0x8f6   : > { %v15215_v7 = vpop.eup %10361  ;;  %v5359_v0 = vadd.f32 %v15213_v16, %v5358_v55 }
 0x8f7   : > { %18785 = vst [vmem:[#allocation161_spill] sm:$0xff] %v15215_v7  ;;  %v15218_v27 = vpop.eup %10363 }
 0x8f8   : > { %18786 = vst [vmem:[#allocation129_spill] sm:$0xff] %v15218_v27  ;;  %5360 = vadd.xlane.f32.xlu1 %v5359_v0  ;;  %v5362_v40 = vadd.f32 %v15218_v27, %v15215_v7  ;;  %v15222_v22 = vpop.eup %10365 }
 0x8f9   : > { %18787 = vst [vmem:[#allocation127_spill] sm:$0xff] %v15222_v22 }
 0x8fa   : > { %v15224_v8 = vpop.eup %10367  ;;  %v5363_v26 = vadd.f32 %v15222_v22, %v5362_v40  ;;  %v18797_v22 = vld [vmem:[#allocation126_spill] sm:$0xff] }
 0x8fb   : > { %18788 = vst [vmem:[#allocation128_spill] sm:$0xff] %v15224_v8  ;;  %v15227_v43 = vpop.eup %10369 }
 0x8fc   : > { %18789 = vst [vmem:[#allocation170_spill] sm:$0xff] %v15227_v43  ;;  %5364 = vadd.xlane.f32.xlu0 %v5363_v26  ;;  %v5366_v14 = vadd.f32 %v15227_v43, %v15224_v8  ;;  %v15231_v57 = vpop.eup %10371  ;;  %v15243_v26 = vpop.permute.xlu0 %6108 }
 0x8fd   : > { %18790 = vst [vmem:[#allocation171_spill] sm:$0xff] %v15231_v57  ;;  %18794 = vst [vmem:[#allocation175_spill] sm:$0xff] %v15243_v26  ;;  %v15245_v8 = vpop.permute.xlu1 %6092 }
 0x8fe   : > { %v15233_v46 = vpop.eup %10373  ;;  %v5367_v55 = vadd.f32 %v15231_v57, %v5366_v14  ;;  %18795 = vst [vmem:[#allocation176_spill] sm:$0xff] %v15245_v8  ;;  %v18800_v8 = vld [vmem:[#allocation61_spill] sm:$0xff] }
 0x8ff   : > { %18791 = vst [vmem:[#allocation172_spill] sm:$0xff] %v15233_v46  ;;  %v15236_v0 = vpop.eup %10375 }
 0x900   : > { %18792 = vst [vmem:[#allocation173_spill] sm:$0xff] %v15236_v0  ;;  %5368 = vadd.xlane.f32.xlu1 %v5367_v55  ;;  %v5370_v33 = vadd.f32 %v15236_v0, %v15233_v46  ;;  %v15240_v35 = vpop.eup %10377 }
 0x901   : > { %18793 = vst [vmem:[#allocation174_spill] sm:$0xff] %v15240_v35 }
 0x902   : > { %v5371_v40 = vadd.f32 %v15240_v35, %v5370_v33  ;;  %v18799_v33 = vld [vmem:[#allocation64_spill] sm:$0xff] }
 0x904   : > { %5372 = vadd.xlane.f32.xlu0 %v5371_v40 }
 0x91d   : > { %v4961_v43 = vpop.xlane.xlu0 %4960 }
 0x91e   : > { %v5078_v7 = vsub.f32 %v18796_v53, %v4961_v43  ;;  %v5079_v14 = vsub.f32 %v18797_v22, %v4961_v43  ;;  %v5080_v57 = vsub.f32 %v14804_v13, %v4961_v43 }
 0x920   : > { %v5198_v55 = vmul.f32 1.442695, %v5078_v7  ;;  %v5200_v16 = vmul.f32 1.442695, %v5079_v14  ;;  %v5202_v27 = vmul.f32 1.442695, %v5080_v57 }
 0x921   : > { %v4965_v46 = vpop.xlane.xlu1 %4964  ;;  %v4969_v0 = vpop.xlane.xlu0 %4968 }
 0x922   : > { %v5081_v11 = vsub.f32 %v18798_v1, %v4965_v46  ;;  %v5082_v40 = vsub.f32 %v18799_v33, %v4965_v46  ;;  %v5083_v26 = vsub.f32 %v14827_v20, %v4965_v46  ;;  %10379 = vpow2.f32 %v5198_v55  ;;  %v18802_v33 = vld [vmem:[#allocation24_spill] sm:$0xff]  ;;  %v18804_v55 = vld [vmem:[#allocation65_spill] sm:$0xff] }
 0x923   : > { %v5084_v35 = vsub.f32 %v18800_v8, %v4969_v0  ;;  %v5085_v53 = vsub.f32 %v18801_v60, %v4969_v0  ;;  %v5086_v22 = vsub.f32 %v14834_v9, %v4969_v0  ;;  %10381 = vpow2.f32 %v5200_v16  ;;  %v18803_v20 = vld [vmem:[#allocation68_spill] sm:$0xff]  ;;  %v18805_v16 = vld [vmem:[#allocation70_spill] sm:$0xff] }
 0x924   : > { %v5204_v13 = vmul.f32 1.442695, %v5081_v11  ;;  %v5206_v7 = vmul.f32 1.442695, %v5082_v40  ;;  %v5208_v43 = vmul.f32 1.442695, %v5083_v26  ;;  %10383 = vpow2.f32 %v5202_v27 }
 0x925   : > { %v5210_v57 = vmul.f32 1.442695, %v5084_v35  ;;  %v5212_v14 = vmul.f32 1.442695, %v5085_v53  ;;  %v4973_v54 = vpop.xlane.xlu1 %4972  ;;  %v4977_v1 = vpop.xlane.xlu0 %4976  ;;  %v5214_v60 = vmul.f32 1.442695, %v5086_v22 }
 0x926   : > { %10385 = vpow2.f32 %v5204_v13  ;;  %v5087_v63 = vsub.f32 %v18802_v33, %v4973_v54  ;;  %v5088_v46 = vsub.f32 %v18803_v20, %v4973_v54  ;;  %v5089_v8 = vsub.f32 %v14857_v45, %v4973_v54 }
 0x927   : > { %10387 = vpow2.f32 %v5206_v7  ;;  %v5090_v9 = vsub.f32 %v18804_v55, %v4977_v1  ;;  %v5091_v0 = vsub.f32 %v18805_v16, %v4977_v1  ;;  %v5092_v27 = vsub.f32 %v14860_v19, %v4977_v1 }
 0x928   : > { %10389 = vpow2.f32 %v5208_v43  ;;  %v5216_v11 = vmul.f32 1.442695, %v5087_v63  ;;  %v5218_v35 = vmul.f32 1.442695, %v5088_v46  ;;  %v5220_v40 = vmul.f32 1.442695, %v5089_v8 }
 0x929   : > { %10391 = vpow2.f32 %v5210_v57  ;;  %v4981_v26 = vpop.xlane.xlu1 %4980  ;;  %v4985_v13 = vpop.xlane.xlu0 %4984  ;;  %v5222_v45 = vmul.f32 1.442695, %v5090_v9  ;;  %v5224_v22 = vmul.f32 1.442695, %v5091_v0  ;;  %v5226_v7 = vmul.f32 1.442695, %v5092_v27 }
 0x92a   : > { %10393 = vpow2.f32 %v5212_v14  ;;  %v5093_v53 = vsub.f32 %v14865_v59, %v4981_v26  ;;  %v5094_v54 = vsub.f32 %v14847_v17, %v4981_v26  ;;  %v5095_v63 = vsub.f32 %v14893_v38, %v4981_v26  ;;  %v18806_v43 = vld [vmem:[#allocation74_spill] sm:$0xff]  ;;  %v18807_v14 = vld [vmem:[#allocation72_spill] sm:$0xff]  ;;  %v18808_v9 = vld [vmem:[#allocation17_spill] sm:$0xff] }
 0x92b   : > { %10395 = vpow2.f32 %v5214_v60  ;;  %v5096_v57 = vsub.f32 %v18806_v43, %v4985_v13  ;;  %v5097_v1 = vsub.f32 %v18807_v14, %v4985_v13  ;;  %v5098_v20 = vsub.f32 %v14889_v28, %v4985_v13  ;;  %v18809_v26 = vld [vmem:[#allocation14_spill] sm:$0xff] }
 0x92c   : > { %10397 = vpow2.f32 %v5216_v11  ;;  %v5228_v19 = vmul.f32 1.442695, %v5093_v53  ;;  %v5230_v59 = vmul.f32 1.442695, %v5094_v54  ;;  %v5232_v17 = vmul.f32 1.442695, %v5095_v63 }
 0x92d   : > { %10399 = vpow2.f32 %v5218_v35  ;;  %v4989_v33 = vpop.xlane.xlu1 %4988  ;;  %v4993_v38 = vpop.xlane.xlu0 %4992  ;;  %v5234_v55 = vmul.f32 1.442695, %v5096_v57  ;;  %v5236_v0 = vmul.f32 1.442695, %v5097_v1  ;;  %v5238_v27 = vmul.f32 1.442695, %v5098_v20 }
 0x92e   : > { %10401 = vpow2.f32 %v5220_v40  ;;  %v5099_v8 = vsub.f32 %v14885_v12, %v4989_v33  ;;  %v5100_v11 = vsub.f32 %v18808_v9, %v4989_v33  ;;  %v5101_v35 = vsub.f32 %v14916_v29, %v4989_v33  ;;  %v18812_v57 = vld [vmem:[#allocation11_spill] sm:$0xff]  ;;  %v18813_v20 = vld [vmem:[#allocation69_spill] sm:$0xff] }
 0x92f   : > { %10403 = vpow2.f32 %v5222_v45  ;;  %v15268_v46 = vpop.eup %10379  ;;  %v5102_v40 = vsub.f32 %v18809_v26, %v4993_v38  ;;  %v18810_v45 = vld [vmem:[#allocation67_spill] sm:$0xff]  ;;  %v18817_v26 = vld [vmem:[#allocation73_spill] sm:$0xff] }
 0x930   : > { %10405 = vpow2.f32 %v5224_v22  ;;  %v15271_v60 = vpop.eup %10381  ;;  %v5240_v13 = vmul.f32 1.442695, %v5099_v8  ;;  %v5103_v54 = vsub.f32 %v18810_v45, %v4993_v38  ;;  %v5242_v63 = vmul.f32 1.442695, %v5100_v11 }
 0x931   : > { %10407 = vpow2.f32 %v5226_v7  ;;  %v15274_v16 = vpop.eup %10383  ;;  %v4997_v12 = vpop.xlane.xlu1 %4996  ;;  %v5104_v7 = vsub.f32 %v14924_v62, %v4993_v38  ;;  %v5244_v43 = vmul.f32 1.442695, %v5101_v35  ;;  %v5374_v14 = vadd.f32 %v15271_v60, %v15268_v46 }
 0x932   : > { %10409 = vpow2.f32 %v5228_v19  ;;  %v5105_v33 = vsub.f32 %v18812_v57, %v4997_v12  ;;  %v5001_v19 = vpop.xlane.xlu0 %5000  ;;  %v5107_v8 = vsub.f32 %v14948_v56, %v4997_v12  ;;  %v5248_v62 = vmul.f32 1.442695, %v5103_v54 }
 0x933   : > { %v15277_v28 = vpop.eup %10385  ;;  %10411 = vpow2.f32 %v5230_v59  ;;  %v5246_v59 = vmul.f32 1.442695, %v5102_v40  ;;  %v5375_v38 = vadd.f32 %v15274_v16, %v5374_v14  ;;  %v5250_v11 = vmul.f32 1.442695, %v5104_v7 }
 0x934   : > { %v15280_v53 = vpop.eup %10387  ;;  %10413 = vpow2.f32 %v5232_v17  ;;  %v5106_v17 = vsub.f32 %v18813_v20, %v4997_v12  ;;  %v5109_v45 = vsub.f32 %v18817_v26, %v5001_v19  ;;  %v5252_v57 = vmul.f32 1.442695, %v5105_v33 }
 0x935   : > { %v15283_v22 = vpop.eup %10389  ;;  %10415 = vpow2.f32 %v5234_v55  ;;  %5376 = vadd.xlane.f32.xlu0 %v5375_v38  ;;  %v5378_v56 = vadd.f32 %v15280_v53, %v15277_v28  ;;  %v5110_v7 = vsub.f32 %v14952_v4, %v5001_v19 }
 0x936   : > { %v15286_v29 = vpop.eup %10391  ;;  %10417 = vpow2.f32 %v5236_v0  ;;  %v18816_v0 = vld [vmem:[#allocation34_spill] sm:$0xff]  ;;  %v5254_v54 = vmul.f32 1.442695, %v5106_v17  ;;  %v5009_v33 = vpop.xlane.xlu0 %5008  ;;  %v5260_v4 = vmul.f32 1.442695, %v5109_v45 }
 0x937   : > { %18811 = vst [vmem:[#allocation62_spill] sm:$0xff] %v15286_v29  ;;  %v15291_v1 = vpop.eup %10393  ;;  %10419 = vpow2.f32 %v5238_v27  ;;  %v5108_v35 = vsub.f32 %v18816_v0, %v5001_v19  ;;  %v5005_v27 = vpop.xlane.xlu1 %5004  ;;  %v5379_v20 = vadd.f32 %v15283_v22, %v5378_v56 }
 0x938   : > { %v15295_v55 = vpop.eup %10395  ;;  %10421 = vpow2.f32 %v5240_v13  ;;  %v5382_v12 = vadd.f32 %v15291_v1, %v15286_v29  ;;  %v18819_v29 = vld [vmem:[#allocation71_spill] sm:$0xff]  ;;  %v5113_v19 = vsub.f32 %v14980_v49, %v5005_v27 }
 0x939   : > { %18814 = vst [vmem:[#allocation126_spill] sm:$0xff] %v15295_v55  ;;  %v15298_v9 = vpop.eup %10397  ;;  %10423 = vpow2.f32 %v5242_v63  ;;  %v5256_v63 = vmul.f32 1.442695, %v5107_v8  ;;  %v5258_v26 = vmul.f32 1.442695, %v5108_v35  ;;  %5380 = vadd.xlane.f32.xlu1 %v5379_v20 }
 0x93a   : > { %18815 = vst [vmem:[#allocation63_spill] sm:$0xff] %v15298_v9  ;;  %v15302_v40 = vpop.eup %10399  ;;  %10425 = vpow2.f32 %v5244_v43  ;;  %v5111_v43 = vsub.f32 %v14956_v24, %v5005_v27  ;;  %v5383_v38 = vadd.f32 %v15295_v55, %v5382_v12  ;;  %v5262_v8 = vmul.f32 1.442695, %v5110_v7 }
 0x93b   : > { %v15308_v13 = vpop.eup %10401  ;;  %10427 = vpow2.f32 %v5246_v59  ;;  %v5112_v59 = vsub.f32 %v18819_v29, %v5005_v27  ;;  %v5013_v12 = vpop.xlane.xlu1 %5012  ;;  %v5116_v27 = vsub.f32 %v14984_v3, %v5009_v33  ;;  %v5268_v20 = vmul.f32 1.442695, %v5113_v19 }
 0x93c   : > { %v15311_v14 = vpop.eup %10403  ;;  %10429 = vpow2.f32 %v5248_v62  ;;  %5384 = vadd.xlane.f32.xlu0 %v5383_v38  ;;  %v18821_v62 = vld [vmem:[#allocation31_spill] sm:$0xff]  ;;  %v5264_v29 = vmul.f32 1.442695, %v5111_v43  ;;  %v5117_v38 = vsub.f32 %v14976_v52, %v5013_v12  ;;  %v18823_v43 = vld [vmem:[#allocation20_spill] sm:$0xff] }
 0x93d   : > { %18818 = vst [vmem:[#allocation64_spill] sm:$0xff] %v15311_v14  ;;  %v15316_v0 = vpop.eup %10405  ;;  %10431 = vpow2.f32 %v5250_v11  ;;  %v5114_v56 = vsub.f32 %v18821_v62, %v5009_v33  ;;  %v5386_v11 = vadd.f32 %v15302_v40, %v15298_v9  ;;  %v5266_v49 = vmul.f32 1.442695, %v5112_v59  ;;  %v5017_v62 = vpop.xlane.xlu0 %5016 }
 0x93e   : > { %v15319_v17 = vpop.eup %10407  ;;  %10433 = vpow2.f32 %v5252_v57  ;;  %v18822_v57 = vld [vmem:[#allocation22_spill] sm:$0xff]  ;;  %v5119_v59 = vsub.f32 %v15006_v2, %v5013_v12  ;;  %v5390_v52 = vadd.f32 %v15316_v0, %v15311_v14  ;;  %v5274_v19 = vmul.f32 1.442695, %v5116_v27 }
 0x93f   : > { %v15322_v24 = vpop.eup %10409  ;;  %10435 = vpow2.f32 %v5254_v54  ;;  %v5115_v45 = vsub.f32 %v18822_v57, %v5009_v33  ;;  %v5387_v54 = vadd.f32 %v15308_v13, %v5386_v11  ;;  %v5118_v57 = vsub.f32 %v18823_v43, %v5013_v12 }
 0x940   : > { %18820 = vst [vmem:[#allocation61_spill] sm:$0xff] %v15322_v24  ;;  %v15327_v35 = vpop.eup %10411  ;;  %10437 = vpow2.f32 %v5256_v63  ;;  %v5270_v63 = vmul.f32 1.442695, %v5114_v56  ;;  %v5276_v43 = vmul.f32 1.442695, %v5117_v38  ;;  %v5122_v38 = vsub.f32 %v15014_v42, %v5017_v62 }
 0x941   : > { %v15330_v55 = vpop.eup %10413  ;;  %10439 = vpow2.f32 %v5258_v26  ;;  %5388 = vadd.xlane.f32.xlu0 %v5387_v54  ;;  %v5394_v26 = vadd.f32 %v15327_v35, %v15322_v24  ;;  %v5272_v33 = vmul.f32 1.442695, %v5115_v45  ;;  %v18825_v24 = vld [vmem:[#allocation76_spill] sm:$0xff]  ;;  %v5391_v45 = vadd.f32 %v15319_v17, %v5390_v52 }
 0x942   : > { %v15334_v7 = vpop.eup %10415  ;;  %10441 = vpow2.f32 %v5260_v4  ;;  %v5278_v12 = vmul.f32 1.442695, %v5118_v57  ;;  %v5286_v42 = vmul.f32 1.442695, %v5122_v38 }
 0x943   : > { %v15337_v9 = vpop.eup %10417  ;;  %10443 = vpow2.f32 %v5262_v8  ;;  %v18824_v8 = vld [vmem:[#allocation77_spill] sm:$0xff]  ;;  %v5395_v11 = vadd.f32 %v15330_v55, %v5394_v26 }
 0x944   : > { %v15342_v3 = vpop.eup %10419  ;;  %10445 = vpow2.f32 %v5264_v29  ;;  %v5120_v56 = vsub.f32 %v18824_v8, %v5017_v62  ;;  %v5121_v29 = vsub.f32 %v18825_v24, %v5017_v62  ;;  %v5398_v57 = vadd.f32 %v15337_v9, %v15334_v7 }
 0x945   : > { %v15347_v4 = vpop.eup %10421  ;;  %10447 = vpow2.f32 %v5266_v49  ;;  %5396 = vadd.xlane.f32.xlu1 %v5395_v11  ;;  %v5280_v49 = vmul.f32 1.442695, %v5119_v59  ;;  %5392 = vadd.xlane.f32.xlu0 %v5391_v45 }
 0x946   : > { %v15351_v54 = vpop.eup %10423  ;;  %10449 = vpow2.f32 %v5268_v20  ;;  %v5282_v26 = vmul.f32 1.442695, %v5120_v56 }
 0x947   : > { %v15355_v2 = vpop.eup %10425  ;;  %10451 = vpow2.f32 %v5270_v63  ;;  %v5402_v20 = vadd.f32 %v15351_v54, %v15347_v4  ;;  %v5284_v63 = vmul.f32 1.442695, %v5121_v29 }
 0x948   : > { %v15357_v14 = vpop.eup %10427  ;;  %10453 = vpow2.f32 %v5272_v33 }
 0x949   : > { %18826 = vst [vmem:[#allocation66_spill] sm:$0xff] %v15357_v14  ;;  %v15359_v27 = vpop.eup %10429  ;;  %10455 = vpow2.f32 %v5274_v19  ;;  %v5403_v33 = vadd.f32 %v15355_v2, %v5402_v20  ;;  %v5399_v19 = vadd.f32 %v15342_v3, %v5398_v57 }
 0x94a   : > { %18827 = vst [vmem:[#allocation24_spill] sm:$0xff] %v15359_v27  ;;  %v15363_v24 = vpop.eup %10431  ;;  %10457 = vpow2.f32 %v5276_v43  ;;  %v5406_v62 = vadd.f32 %v15359_v27, %v15357_v14 }
 0x94b   : > { %18828 = vst [vmem:[#allocation68_spill] sm:$0xff] %v15363_v24  ;;  %v15368_v52 = vpop.eup %10433  ;;  %10459 = vpow2.f32 %v5278_v12  ;;  %5404 = vadd.xlane.f32.xlu1 %v5403_v33  ;;  %5400 = vadd.xlane.f32.xlu0 %v5399_v19  ;;  %v5021_v12 = vpop.xlane.xlu1 %5020 }
 0x94c   : > { %18829 = vst [vmem:[#allocation65_spill] sm:$0xff] %v15368_v52  ;;  %v15371_v59 = vpop.eup %10435  ;;  %10461 = vpow2.f32 %v5280_v49  ;;  %v5407_v29 = vadd.f32 %v15363_v24, %v5406_v62 }
 0x94d   : > { %18830 = vst [vmem:[#allocation70_spill] sm:$0xff] %v15371_v59  ;;  %v15374_v8 = vpop.eup %10437  ;;  %10463 = vpow2.f32 %v5282_v26  ;;  %v5410_v49 = vadd.f32 %v15371_v59, %v15368_v52 }
 0x94e   : > { %18831 = vst [vmem:[#allocation74_spill] sm:$0xff] %v15374_v8  ;;  %v15376_v56 = vpop.eup %10439  ;;  %10465 = vpow2.f32 %v5284_v63 }
 0x94f   : > { %18832 = vst [vmem:[#allocation72_spill] sm:$0xff] %v15376_v56  ;;  %v15380_v11 = vpop.eup %10441  ;;  %10467 = vpow2.f32 %v5286_v42  ;;  %5408 = vadd.xlane.f32.xlu1 %v5407_v29  ;;  %v5411_v57 = vadd.f32 %v15374_v8, %v5410_v49  ;;  %v5025_v29 = vpop.xlane.xlu1 %5024 }
 0x950   : > { %18833 = vst [vmem:[#allocation17_spill] sm:$0xff] %v15380_v11  ;;  %v15382_v43 = vpop.eup %10443  ;;  %v5414_v33 = vadd.f32 %v15380_v11, %v15376_v56 }
 0x951   : > { %18834 = vst [vmem:[#allocation14_spill] sm:$0xff] %v15382_v43  ;;  %v15385_v45 = vpop.eup %10445 }
 0x952   : > { %18835 = vst [vmem:[#allocation67_spill] sm:$0xff] %v15385_v45  ;;  %v15389_v26 = vpop.eup %10447 }
 0x953   : > { %18836 = vst [vmem:[#allocation11_spill] sm:$0xff] %v15389_v26  ;;  %v15391_v20 = vpop.eup %10449  ;;  %v5418_v38 = vadd.f32 %v15389_v26, %v15385_v45  ;;  %5412 = vadd.xlane.f32.xlu1 %v5411_v57  ;;  %v5415_v45 = vadd.f32 %v15382_v43, %v5414_v33  ;;  %v5029_v43 = vpop.xlane.xlu0 %5028 }
 0x954   : > { %18837 = vst [vmem:[#allocation69_spill] sm:$0xff] %v15391_v20  ;;  %v15395_v63 = vpop.eup %10451 }
 0x955   : > { %18838 = vst [vmem:[#allocation34_spill] sm:$0xff] %v15395_v63  ;;  %v15400_v19 = vpop.eup %10453  ;;  %v5419_v62 = vadd.f32 %v15391_v20, %v5418_v38  ;;  %v15424_v20 = vpop.xlane.xlu1 %5032 }
 0x956   : > { %18839 = vst [vmem:[#allocation73_spill] sm:$0xff] %v15400_v19  ;;  %v15403_v14 = vpop.eup %10455  ;;  %v5422_v49 = vadd.f32 %v15400_v19, %v15395_v63 }
 0x957   : > { %18840 = vst [vmem:[#allocation71_spill] sm:$0xff] %v15403_v14  ;;  %v15405_v42 = vpop.eup %10457  ;;  %5420 = vadd.xlane.f32.xlu0 %v5419_v62  ;;  %5416 = vadd.xlane.f32.xlu1 %v5415_v45  ;;  %v18847_v45 = vld [vmem:[#allocation16_spill] sm:$0xff]  ;;  %v5037_v24 = vpop.xlane.xlu0 %5036 }
 0x958   : > { %18841 = vst [vmem:[#allocation31_spill] sm:$0xff] %v15405_v42  ;;  %v15407_v52 = vpop.eup %10459  ;;  %v5423_v62 = vadd.f32 %v15403_v14, %v5422_v49  ;;  %v5123_v19 = vsub.f32 %v18847_v45, %v5021_v12 }
 0x959   : > { %18842 = vst [vmem:[#allocation22_spill] sm:$0xff] %v15407_v52  ;;  %v15412_v26 = vpop.eup %10461  ;;  %v5426_v56 = vadd.f32 %v15407_v52, %v15405_v42  ;;  %v15429_v52 = vpop.xlane.xlu1 %5040 }
 0x95a   : > { %18843 = vst [vmem:[#allocation20_spill] sm:$0xff] %v15412_v26  ;;  %v15416_v38 = vpop.eup %10463 }
 0x95b   : > { %18844 = vst [vmem:[#allocation77_spill] sm:$0xff] %v15416_v38  ;;  %v15418_v57 = vpop.eup %10465  ;;  %v5427_v11 = vadd.f32 %v15412_v26, %v5426_v56  ;;  %5424 = vadd.xlane.f32.xlu1 %v5423_v62  ;;  %v18848_v56 = vld [vmem:[#allocation79_spill] sm:$0xff]  ;;  %v18850_v62 = vld [vmem:[#allocation84_spill] sm:$0xff] }
 0x95c   : > { %18845 = vst [vmem:[#allocation76_spill] sm:$0xff] %v15418_v57  ;;  %v5430_v33 = vadd.f32 %v15418_v57, %v15416_v38  ;;  %v15426_v63 = vpop.eup %10467  ;;  %v5124_v26 = vsub.f32 %v18848_v56, %v5021_v12  ;;  %v5125_v38 = vsub.f32 %v15033_v61, %v5021_v12  ;;  %v18849_v57 = vld [vmem:[#allocation75_spill] sm:$0xff]  ;;  %v5130_v27 = vsub.f32 %v18850_v62, %v5029_v43  ;;  %v18854_v62 = vld [vmem:[#allocation13_spill] sm:$0xff] }
 0x95d   : > { %5428 = vadd.xlane.f32.xlu0 %v5427_v11  ;;  %18846 = vst [vmem:[#allocation177_spill] sm:$0xff] %v15426_v63  ;;  %v15433_v49 = vpop.xlane.xlu1 %5048  ;;  %v5129_v14 = vsub.f32 %v18849_v57, %v5029_v43  ;;  %v5288_v11 = vmul.f32 1.442695, %v5123_v19  ;;  %v5127_v61 = vsub.f32 %v15023_v36, %v5025_v29  ;;  %v5128_v19 = vsub.f32 %v15060_v51, %v5025_v29 }
 0x95e   : > { %v5431_v42 = vadd.f32 %v15426_v63, %v5430_v33  ;;  %v5290_v59 = vmul.f32 1.442695, %v5124_v26  ;;  %v5292_v8 = vmul.f32 1.442695, %v5125_v38  ;;  %v5126_v63 = vsub.f32 %v15040_v30, %v5025_v29  ;;  %v18851_v38 = vld [vmem:[#allocation82_spill] sm:$0xff] }
 0x95f   : > { %v5300_v33 = vmul.f32 1.442695, %v5129_v14  ;;  %10469 = vpow2.f32 %v5288_v11  ;;  %v5302_v56 = vmul.f32 1.442695, %v5130_v27  ;;  %v5135_v57 = vsub.f32 %v18851_v38, %v5037_v24  ;;  %v10874_v30 = vld [vmem:[%s17461_s2 + $0x20] ss:$8 sps:$4 sm:$0xff]  }
 0x960   : > { %5432 = vadd.xlane.f32.xlu1 %v5431_v42  ;;  %v5131_v42 = vsub.f32 %v15036_v34, %v5029_v43  ;;  %10471 = vpow2.f32 %v5290_v59  ;;  %v5294_v26 = vmul.f32 1.442695, %v5126_v63  ;;  %v18852_v34 = vld [vmem:[#allocation44_spill] sm:$0xff]  ;;  %v5296_v36 = vmul.f32 1.442695, %v5127_v61  ;;  %v18856_v38 = vld [vmem:[#allocation85_spill] sm:$0xff] }
 0x961   : > { %v15440_v45 = vpop.xlane.xlu1 %5052  ;;  %10473 = vpow2.f32 %v5292_v8  ;;  %v18853_v27 = vld [vmem:[#allocation80_spill] sm:$0xff]  ;;  %v5298_v51 = vmul.f32 1.442695, %v5128_v19  ;;  %v5137_v8 = vsub.f32 %v15064_v32, %v5037_v24  ;;  %v5312_v43 = vmul.f32 1.442695, %v5135_v57 }
 0x962   : > { %v5304_v12 = vmul.f32 1.442695, %v5131_v42  ;;  %10475 = vpow2.f32 %v5300_v33  ;;  %v5136_v59 = vsub.f32 %v18853_v27, %v5037_v24  ;;  %v5132_v29 = vsub.f32 %v15067_v5, %v15424_v20  ;;  %v5045_v33 = vpop.xlane.xlu0 %5044  ;;  %v18855_v24 = vld [vmem:[#allocation83_spill] sm:$0xff] }
 0x963   : > { %10477 = vpow2.f32 %v5302_v56  ;;  %v5133_v42 = vsub.f32 %v18854_v62, %v15424_v20  ;;  %v5134_v56 = vsub.f32 %v15091_v37, %v15424_v20  ;;  %v5316_v61 = vmul.f32 1.442695, %v5137_v8 }
 0x964   : > { %v5314_v11 = vmul.f32 1.442695, %v5136_v59  ;;  %v5306_v32 = vmul.f32 1.442695, %v5132_v29  ;;  %v5141_v19 = vsub.f32 %v18855_v24, %v5045_v33  ;;  %v5142_v57 = vsub.f32 %v18856_v38, %v5045_v33 }
 0x965   : > { %v5308_v5 = vmul.f32 1.442695, %v5133_v42  ;;  %v5143_v37 = vsub.f32 %v15085_v10, %v5045_v33  ;;  %v5138_v20 = vsub.f32 %v15094_v25, %v15429_v52  ;;  %v5144_v8 = vsub.f32 %v15109_v48, %v15433_v49 }
 0x966   : > { %v5324_v59 = vmul.f32 1.442695, %v5141_v19  ;;  %v5140_v62 = vsub.f32 %v15106_v23, %v15429_v52  ;;  %v5145_v48 = vsub.f32 %v15102_v58, %v15433_v49 }
 0x967   : > { %v5328_v25 = vmul.f32 1.442695, %v5143_v37  ;;  %v5318_v42 = vmul.f32 1.442695, %v5138_v20 }
 0x971   : > { %6124 = vrot.lane.b32.xlu1 %v10874_v30, %s10951_s10  ;;  %v5345_v14 = vpop.xlane.xlu1 %5344 }
 0x972   : > { %10479 = vrcp.f32 %v5345_v14  ;;  %v5310_v14 = vmul.f32 1.442695, %v5134_v56  ;;  %v5330_v56 = vmul.f32 1.442695, %v5144_v8 }
 0x973   : > { %6090 = vrot.lane.b32.xlu0 %v18852_v34, %s10951_s10  ;;  %10481 = vpow2.f32 %v5304_v12 }
 0x974   : > { %10483 = vpow2.f32 %v5294_v26  ;;  %v15460_v26 = vpop.eup %10469 }
 0x975   : > { %v5349_v63 = vpop.xlane.xlu1 %5348  ;;  %v15463_v30 = vpop.eup %10471 }
 0x976   : > { %10485 = vrcp.f32 %v5349_v63  ;;  %v5326_v63 = vmul.f32 1.442695, %v5142_v57  ;;  %v5434_v8 = vadd.f32 %v15463_v30, %v15460_v26 }
 0x977   : > { %10487 = vpow2.f32 %v5296_v36  ;;  %v15465_v36 = vpop.eup %10473 }
 0x978   : > { %10489 = vpow2.f32 %v5298_v51  ;;  %v15470_v27 = vpop.eup %10475  ;;  %v5139_v51 = vsub.f32 %v15078_v44, %v15429_v52 }
 0x979   : > { %10491 = vpow2.f32 %v5312_v43  ;;  %v5353_v12 = vpop.xlane.xlu1 %5352  ;;  %v15476_v43 = vpop.eup %10477 }
 0x97a   : > { %10493 = vrcp.f32 %v5353_v12  ;;  %v5320_v44 = vmul.f32 1.442695, %v5139_v51  ;;  %v5146_v51 = vsub.f32 %v15123_v6, %v15433_v49  ;;  %v18861_v6 = vld [vmem:[#allocation92_spill] sm:$0xff] }
 0x97b   : > { %10495 = vpow2.f32 %v5314_v11 }
 0x97d   : > { %v5357_v34 = vpop.xlane.xlu0 %5356 }
 0x97e   : > { %10497 = vrcp.f32 %v5357_v34 }
 0x97f   : > { %10499 = vpow2.f32 %v5316_v61  ;;  %v10480_v11 = vpop.eup %10479 }
 0x980   : > { %10501 = vpow2.f32 %v5306_v32  ;;  %v15478_v10 = vpop.eup %10481  ;;  %v5503_v32 = vmul.f32 %v10480_v11, %v15164_v39  ;;  %v5504_v24 = vmul.f32 %v10480_v11, %v15169_v31  ;;  %v5502_v19 = vmul.f32 %v10480_v11, %v15162_v47 }
 0x981   : > { %10503 = vpow2.f32 %v5308_v5  ;;  %v5361_v29 = vpop.xlane.xlu1 %5360  ;;  %v15482_v33 = vpop.eup %10483  ;;  %v5332_v47 = vmul.f32 1.442695, %v5145_v48  ;;  %v18860_v48 = vld [vmem:[#allocation156_spill] sm:$0xff] }
 0x982   : > { %10505 = vpow2.f32 %v5310_v14 }
 0x983   : > { %10507 = vrcp.f32 %v5361_v29  ;;  %v10486_v61 = vpop.eup %10485 }
 0x984   : > { %10509 = vpow2.f32 %v5324_v59  ;;  %v15489_v23 = vpop.eup %10487  ;;  %v5506_v52 = vmul.f32 %v10486_v61, %v15175_v50  ;;  %v5507_v5 = vmul.f32 %v10486_v61, %v15178_v18  ;;  %v5505_v38 = vmul.f32 %v10486_v61, %v15173_v41  ;;  %v18857_v41 = vld [vmem:[#allocation130_spill] sm:$0xff] }
 0x985   : > { %10511 = vpow2.f32 %v5326_v63  ;;  %v5365_v12 = vpop.xlane.xlu0 %5364  ;;  %v15494_v58 = vpop.eup %10489  ;;  %v5322_v50 = vmul.f32 1.442695, %v5140_v62  ;;  %v6254_v18 = vsel %vm1107_vm2, %v18857_v41, 0  ;;  %v18864_v41 = vld [vmem:[#allocation78_spill] sm:$0xff] }
 0x986   : > { %10513 = vrcp.f32 %v5365_v12  ;;  %v15496_v57 = vpop.eup %10491  ;;  %v5599_v39 = vpack.c.bf16 %v5506_v52, %v5503_v32  ;;  %v5600_v34 = vpack.c.bf16 %v5507_v5, %v5504_v24  ;;  %v5598_v31 = vpack.c.bf16 %v5505_v38, %v5502_v19  ;;  %v18862_v12 = vld [vmem:[#allocation153_spill] sm:$0xff] }
 0x987   : > { %10515 = vpow2.f32 %v5328_v25  ;;  %v10494_v14 = vpop.eup %10493  ;;  %v18858_v25 = vld [vmem:[#allocation157_spill] sm:$0xff]  ;;  %v5334_v52 = vmul.f32 1.442695, %v5146_v51  ;;  %v5442_v5 = vadd.f32 %v15476_v43, %v15470_v27 }
 0x988   : > { %10517 = vpow2.f32 %v5318_v42  ;;  %v15498_v20 = vpop.eup %10495  ;;  %5750 = vmatprep.mubr.bf16.mxu0 %v5599_v39  ;;  %9489 = vmatprep.mubr.bf16.mxu1 %v5600_v34  ;;  %v5509_v63 = vmul.f32 %v10494_v14, %v15187_v21  ;;  %v5510_v62 = vmul.f32 %v10494_v14, %v18858_v25  ;;  %v18859_v42 = vld [vmem:[#allocation159_spill] sm:$0xff]  ;;  %v5508_v21 = vmul.f32 %v10494_v14, %v18862_v12 }
 0x989   : > { %10519 = vpow2.f32 %v5320_v44  ;;  %v5369_v37 = vpop.xlane.xlu1 %5368  ;;  %5751 = vmatmul.mubr.bf16.vlgmr.msra.gmra.mxu0 %v5598_v31  ;;  %v18863_v34 = vld [vmem:[#allocation131_spill] sm:$0xff]  ;;  %v5443_v51 = vadd.f32 %v15478_v10, %v5442_v5  ;;  %v18871_v5 = vld [vmem:[#allocation160_spill] sm:$0xff] }
 0x98a   : > { %10521 = vpow2.f32 %v5330_v56  ;;  %9522 = vmatpush3.bf16.xpose.msra.mxu0 %v6254_v18  ;;  %v6206_v31 = vsel %vm1107_vm2, %v18863_v34, 0  ;;  %v6251_v18 = vsel %vm1107_vm2, %v18861_v6, 0 }
 0x98b   : > { %v10498_v59 = vpop.eup %10497  ;;  %10523 = vrcp.f32 %v5369_v37  ;;  %9677 = vmatprep.subr.msk.bf16.mxu0 %vm1107_vm2, %v18861_v6  ;;  %v5438_v37 = vadd.f32 %v15489_v23, %v15482_v33  ;;  %v18869_v6 = vld [vmem:[#allocation161_spill] sm:$0xff] }
 0x98c   : > { %v15507_v29 = vpop.eup %10499  ;;  %v5512_v11 = vmul.f32 %v10498_v59, %v15200_v15  ;;  %v5513_v44 = vmul.f32 %v10498_v59, %v18859_v42  ;;  %v5511_v56 = vmul.f32 %v10498_v59, %v18860_v48  ;;  %10525 = vpow2.f32 %v5332_v47 }
 0x98d   : > { %v15513_v61 = vpop.eup %10501  ;;  %v5373_v49 = vpop.xlane.xlu0 %5372  ;;  %v5435_v47 = vadd.f32 %v15465_v36, %v5434_v8 }
 0x98e   : > { %v15518_v32 = vpop.eup %10503  ;;  %10527 = vrcp.f32 %v5373_v49  ;;  %v5602_v24 = vpack.c.bf16 %v5512_v11, %v5509_v63  ;;  %v5603_v15 = vpack.c.bf16 %v5513_v44, %v5510_v62  ;;  %v5601_v38 = vpack.c.bf16 %v5511_v56, %v5508_v21  ;;  %v18865_v63 = vld [vmem:[#allocation162_spill] sm:$0xff]  ;;  %v18866_v62 = vld [vmem:[#allocation129_spill] sm:$0xff]  ;;  %v18868_v56 = vld [vmem:[#allocation127_spill] sm:$0xff] }
 0x98f   : > { %v15520_v19 = vpop.eup %10505  ;;  %10529 = vpow2.f32 %v5322_v50  ;;  %v5446_v8 = vadd.f32 %v15518_v32, %v15513_v61  ;;  %v18867_v44 = vld [vmem:[#allocation158_spill] sm:$0xff] }
 0x990   : > { %v10508_v39 = vpop.eup %10507  ;;  %5758 = vmatprep.mubr.bf16.mxu0 %v5602_v24  ;;  %9490 = vmatmul.mubr.bf16.vlgmr.msra.gmra.mxu1 %v5603_v15  ;;  %10531 = vpow2.f32 %v5334_v52  ;;  %v5439_v24 = vadd.f32 %v15494_v58, %v5438_v37  ;;  %v18870_v15 = vld [vmem:[#allocation81_spill] sm:$0xff]  ;;  %v5450_v52 = vadd.f32 %v15498_v20, %v15496_v57 }
 0x991   : > { %v15527_v14 = vpop.eup %10509  ;;  %8974 = vmatpush3.bf16.xpose.msra.mxu1 %v6206_v31  ;;  %5759 = vmatmul.mubr.bf16.gmra.mxu0 %v5601_v38  ;;  %v5515_v11 = vmul.f32 %v10508_v39, %v18865_v63  ;;  %v5516_v48 = vmul.f32 %v10508_v39, %v18867_v44  ;;  %v5514_v38 = vmul.f32 %v10508_v39, %v18871_v5  ;;  %v18872_v63 = vld [vmem:[#allocation88_spill] sm:$0xff]  ;;  %v18876_v5 = vld [vmem:[#allocation171_spill] sm:$0xff] }
 0x992   : > { %v15531_v50 = vpop.eup %10511  ;;  %5436 = vadd.xlane.f32.xlu0 %v5435_v47  ;;  %9669 = vmatprep.subr.msk.bf16.mxu1 %vm1107_vm2, %v18864_v41  ;;  %v5447_v44 = vadd.f32 %v15520_v19, %v5446_v8  ;;  %v5451_v39 = vadd.f32 %v15507_v29, %v5450_v52  ;;  %v6248_v8 = vsel %vm1107_vm2, %v18870_v15, 0 }
 0x993   : > { %v10514_v59 = vpop.eup %10513  ;;  %9524 = vmatpush3.bf16.xpose.msra.mxu0 %v6251_v18  ;;  %v5458_v18 = vadd.f32 %v15531_v50, %v15527_v14 }
 0x994   : > { %v15541_v25 = vpop.eup %10515  ;;  %v5518_v42 = vmul.f32 %v10514_v59, %v18866_v62  ;;  %v5519_v49 = vmul.f32 %v10514_v59, %v18868_v56  ;;  %v5517_v12 = vmul.f32 %v10514_v59, %v18869_v6  ;;  %9678 = vmatprep.subr.msk.bf16.mxu0 %vm1107_vm2, %v18870_v15  ;;  %v6203_v62 = vsel %vm1107_vm2, %v18872_v63, 0  ;;  %v18878_v63 = vld [vmem:[#allocation172_spill] sm:$0xff] }
 0x995   : > { %v15547_v21 = vpop.eup %10517  ;;  %5440 = vadd.xlane.f32.xlu1 %v5439_v24  ;;  %v5459_v56 = vadd.f32 %v15541_v25, %v5458_v18  ;;  %v18875_v24 = vld [vmem:[#allocation173_spill] sm:$0xff]  ;;  %v18879_v18 = vld [vmem:[#allocation166_spill] sm:$0xff] }
 0x996   : > { %v15555_v34 = vpop.eup %10519  ;;  %5444 = vadd.xlane.f32.xlu0 %v5443_v51  ;;  %v5605_v31 = vpack.c.bf16 %v5518_v42, %v5515_v11  ;;  %v5606_v47 = vpack.c.bf16 %v5519_v49, %v5516_v48  ;;  %v5604_v37 = vpack.c.bf16 %v5517_v12, %v5514_v38  ;;  %v18873_v42 = vld [vmem:[#allocation19_spill] sm:$0xff]  ;;  %v18874_v49 = vld [vmem:[#allocation170_spill] sm:$0xff] }
 0x997   : > { %v15557_v41 = vpop.eup %10521  ;;  %v5454_v51 = vadd.f32 %v15555_v34, %v15547_v21 }
 0x998   : > { %v10524_v59 = vpop.eup %10523  ;;  %5766 = vmatprep.mubr.bf16.mxu0 %v5605_v31  ;;  %9493 = vmatprep.mubr.bf16.mxu1 %v5606_v47  ;;  %v18877_v31 = vld [vmem:[#allocation174_spill] sm:$0xff] }
 0x999   : > { %8976 = vmatpush3.bf16.xpose.msra.mxu1 %v6203_v62  ;;  %v15567_v11 = vpop.eup %10525  ;;  %5452 = vadd.xlane.f32.xlu1 %v5451_v39  ;;  %v5521_v6 = vmul.f32 %v10524_v59, %v18874_v49  ;;  %v5522_v38 = vmul.f32 %v10524_v59, %v18876_v5  ;;  %v18881_v5 = vld [vmem:[#allocation86_spill] sm:$0xff] }
 0x99a   : > { %5448 = vadd.xlane.f32.xlu0 %v5447_v44  ;;  %9670 = vmatprep.subr.msk.bf16.mxu1 %vm1107_vm2, %v18873_v42  ;;  %v5462_v15 = vadd.f32 %v15567_v11, %v15557_v41 }
 0x99b   : > { %v10528_v48 = vpop.eup %10527  ;;  %5767 = vmatmul.mubr.bf16.gmra.mxu0 %v5604_v37  ;;  %v18880_v37 = vld [vmem:[#allocation128_spill] sm:$0xff] }
 0x99c   : > { %v15575_v12 = vpop.eup %10529  ;;  %9526 = vmatpush3.bf16.xpose.msra.mxu0 %v6248_v8  ;;  %v5524_v52 = vmul.f32 %v10528_v48, %v18875_v24  ;;  %v5525_v47 = vmul.f32 %v10528_v48, %v18877_v31  ;;  %v5523_v62 = vmul.f32 %v10528_v48, %v18878_v63  ;;  %v5520_v39 = vmul.f32 %v10524_v59, %v18880_v37  ;;  %v18882_v31 = vld [vmem:[#allocation165_spill] sm:$0xff]  ;;  %v18886_v63 = vld [vmem:[#allocation167_spill] sm:$0xff] }
 0x99d   : > { %v5455_v44 = vadd.f32 %v15575_v12, %v5454_v51  ;;  %9679 = vmatprep.subr.msk.bf16.mxu0 %vm1107_vm2, %v18879_v18  ;;  %v15587_v24 = vpop.eup %10531  ;;  %v6200_v48 = vsel %vm1107_vm2, %v18881_v5, 0  ;;  %v6245_v59 = vsel %vm1107_vm2, %v18879_v18, 0  ;;  %v18888_v18 = vld [vmem:[#allocation29_spill] sm:$0xff] }
 0x99e   : > { %5460 = vadd.xlane.f32.xlu0 %v5459_v56  ;;  %v5608_v42 = vpack.c.bf16 %v5524_v52, %v5521_v6  ;;  %v5609_v8 = vpack.c.bf16 %v5525_v47, %v5522_v38  ;;  %v5607_v49 = vpack.c.bf16 %v5523_v62, %v5520_v39  ;;  %v5463_v51 = vadd.f32 %v15587_v24, %v5462_v15  ;;  %v18883_v56 = vld [vmem:[#allocation168_spill] sm:$0xff]  ;;  %v18884_v6 = vld [vmem:[#allocation163_spill] sm:$0xff]  ;;  %v18885_v38 = vld [vmem:[#allocation169_spill] sm:$0xff] }
 0x99f   : > { %5456 = vadd.xlane.f32.xlu1 %v5455_v44  ;;  %v6197_v52 = vsel %vm1107_vm2, %v18884_v6, 0  ;;  %v6242_v47 = vsel %vm1107_vm2, %v18883_v56, 0  ;;  %v6194_v62 = vsel %vm1107_vm2, %v18886_v63, 0  ;;  %v18887_v44 = vld [vmem:[#allocation175_spill] sm:$0xff]  ;;  %v5147_v15 = vsub.f32 %v18888_v18, %v15440_v45  ;;  %v10875_v37 = vld [vmem:[%s17461_s2 + $0x10] ss:$8 sps:$4 sm:$0xff]  }
 0x9a0   : > { %5774 = vmatprep.mubr.bf16.mxu0 %v5608_v42  ;;  %9494 = vmatmul.mubr.bf16.gmra.mxu1 %v5609_v8  ;;  %v18889_v39 = vld [vmem:[#allocation42_spill] sm:$0xff]  ;;  %v18890_v42 = vld [vmem:[#allocation87_spill] sm:$0xff]  ;;  %v18895_v63 = vld [vmem:[#allocation9_spill] sm:$0xff] }
 0x9a1   : > { %8978 = vmatpush3.bf16.xpose.msra.mxu1 %v6200_v48  ;;  %v5148_v8 = vsub.f32 %v18890_v42, %v15440_v45  ;;  %v5336_v48 = vmul.f32 1.442695, %v5147_v15  ;;  %v10876_v6 = vld [vmem:[%s17461_s2] ss:$8 sps:$4 sm:$0xff]  }
 0x9a2   : > { %9671 = vmatprep.subr.msk.bf16.mxu1 %vm1107_vm2, %v18882_v31 }
 0x9a3   : > { %5464 = vadd.xlane.f32.xlu1 %v5463_v51  ;;  %5775 = vmatmul.mubr.bf16.gmra.mxu0 %v5607_v49  ;;  %v18891_v49 = vld [vmem:[#allocation176_spill] sm:$0xff]  ;;  %v18892_v51 = vld [vmem:[#allocation49_spill] sm:$0xff]  ;;  %v5338_v31 = vmul.f32 1.442695, %v5148_v8  ;;  %10533 = vpow2.f32 %v5336_v48 }
 0x9a4   : > { %9528 = vmatpush3.bf16.xpose.msra.mxu0 %v6245_v59  ;;  %v6191_v5 = vsel %vm1107_vm2, %v18891_v49, 0  ;;  %v18893_v59 = vld [vmem:[#allocation164_spill] sm:$0xff]  ;;  %v18898_v49 = vld [vmem:[#allocation27_spill] sm:$0xff] }
 0x9a5   : > { %9680 = vmatprep.subr.msk.bf16.mxu0 %vm1107_vm2, %v18883_v56  ;;  %v5149_v56 = vsub.f32 %v18893_v59, %v15440_v45  ;;  %10535 = vpow2.f32 %v5338_v31  ;;  %v18899_v59 = vld [vmem:[#allocation30_spill] sm:$0xff] }
 0x9a9   : > { %8980 = vmatpush3.bf16.xpose.msra.mxu1 %v6197_v52  ;;  %v5340_v52 = vmul.f32 1.442695, %v5149_v56 }
 0x9aa   : > { %9672 = vmatprep.subr.msk.bf16.mxu1 %vm1107_vm2, %v18885_v38  ;;  %v18894_v38 = vld [vmem:[#allocation7_spill] sm:$0xff] }
 0x9ab   : > { %10537 = vpow2.f32 %v5340_v52 }
 0x9ac   : > { %9530 = vmatpush3.bf16.xpose.msra.mxu0 %v6242_v47 }
 0x9b0   : > { %v15634_v18 = vpop.eup %10533 }
 0x9b1   : > { %8982 = vmatpush3.bf16.xpose.msra.mxu1 %v6194_v62 }
 0x9b2   : > { %9673 = vmatprep.subr.msk.bf16.mxu1 %vm1107_vm2, %v18887_v44  ;;  %v18896_v44 = vld [vmem:[#allocation15_spill] sm:$0xff]  ;;  %v15636_v15 = vpop.eup %10535 }
 0x9b3   : > { %v5466_v42 = vadd.f32 %v15636_v15, %v15634_v18 }
 0x9b4   : > { %6122 = vrot.lane.b32.xlu0 %v10875_v37, %s10951_s10  ;;  %6106 = vrot.lane.b32.xlu1 %v18889_v39, %s10951_s10  ;;  %v18897_v37 = vld [vmem:[#allocation23_spill] sm:$0xff] }
 0x9b8   : > { %6088 = vrot.lane.b32.xlu1 %v18892_v51, %s10951_s10  ;;  %v15642_v8 = vpop.eup %10537 }
 0x9b9   : > { %8984 = vmatpush3.bf16.xpose.msra.mxu1 %v6191_v5  ;;  %v5467_v48 = vadd.f32 %v15642_v8, %v5466_v42 }
 0x9bc   : > { %6120 = vrot.lane.b32.xlu1 %v10876_v6, %s10951_s10 }
 0x9be   : > { %v5377_v47 = vpop.xlane.xlu0 %5376 }
 0x9bf   : > { %10539 = vrcp.f32 %v5377_v47 }
 0x9c0   : > { %6058 = vrot.lane.b32.xlu1 %v18894_v38, %s10951_s10 }
 0x9c2   : > { %v5381_v62 = vpop.xlane.xlu1 %5380 }
 0x9c3   : > { %10541 = vrcp.f32 %v5381_v62 }
 0x9c4   : > { %6062 = vrot.lane.b32.xlu1 %v18895_v63, %s10951_s10 }
 0x9c5   : > { %v5385_v45 = vpop.xlane.xlu0 %5384 }
 0x9c6   : > { %10543 = vrcp.f32 %v5385_v45 }
 0x9c8   : > { %6066 = vrot.lane.b32.xlu1 %v18896_v44, %s10951_s10 }
 0x9ca   : > { %v5389_v39 = vpop.xlane.xlu0 %5388 }
 0x9cb   : > { %10545 = vrcp.f32 %v5389_v39  ;;  %v18900_v39 = vld [vmem:[#allocation10_spill] sm:$0xff] }
 0x9cc   : > { %6070 = vrot.lane.b32.xlu1 %v18897_v37, %s10951_s10  ;;  %v10540_v31 = vpop.eup %10539 }
 0x9cd   : > { %v5527_v6 = vmul.f32 %v10540_v31, %v15271_v60  ;;  %v5528_v52 = vmul.f32 %v10540_v31, %v15274_v16  ;;  %v5526_v62 = vmul.f32 %v10540_v31, %v15268_v46 }
 0x9ce   : > { %v5397_v5 = vpop.xlane.xlu1 %5396  ;;  %v5393_v51 = vpop.xlane.xlu0 %5392 }
 0x9cf   : > { %10547 = vrcp.f32 %v5397_v5 }
 0x9d0   : > { %6074 = vrot.lane.b32.xlu1 %v18898_v49, %s10951_s10  ;;  %10549 = vrcp.f32 %v5393_v51  ;;  %v10542_v56 = vpop.eup %10541  ;;  %v18902_v51 = vld [vmem:[#allocation35_spill] sm:$0xff] }
 0x9d1   : > { %v5530_v47 = vmul.f32 %v10542_v56, %v15280_v53  ;;  %v5531_v63 = vmul.f32 %v10542_v56, %v15283_v22  ;;  %v5529_v45 = vmul.f32 %v10542_v56, %v15277_v28  ;;  %v18901_v28 = vld [vmem:[#allocation126_spill] sm:$0xff]  ;;  %v18903_v56 = vld [vmem:[#allocation63_spill] sm:$0xff] }
 0x9d3   : > { %5468 = vadd.xlane.f32.xlu0 %v5467_v48  ;;  %v10544_v37 = vpop.eup %10543  ;;  %v5611_v42 = vpack.c.bf16 %v5530_v47, %v5527_v6  ;;  %v5612_v60 = vpack.c.bf16 %v5531_v63, %v5528_v52  ;;  %v5610_v49 = vpack.c.bf16 %v5529_v45, %v5526_v62  ;;  %v18905_v45 = vld [vmem:[#allocation37_spill] sm:$0xff] }
 0x9d4   : > { %6078 = vrot.lane.b32.xlu1 %v18899_v59, %s10951_s10  ;;  %v5405_v38 = vpop.xlane.xlu1 %5404  ;;  %v5401_v44 = vpop.xlane.xlu0 %5400  ;;  %v5533_v22 = vmul.f32 %v10544_v37, %v15291_v1  ;;  %v5534_v5 = vmul.f32 %v10544_v37, %v18901_v28 }
 0x9d5   : > { %10551 = vrcp.f32 %v5405_v38  ;;  %5782 = vmatprep.mubr.bf16.mxu0 %v5611_v42  ;;  %9497 = vmatprep.mubr.bf16.mxu1 %v5612_v60 }
 0x9d6   : > { %10553 = vrcp.f32 %v5401_v44  ;;  %5783 = vmatmul.mubr.bf16.gmra.mxu0 %v5610_v49 }
 0x9d8   : > { %6082 = vrot.lane.b32.xlu1 %v18900_v39, %s10951_s10  ;;  %v10546_v16 = vpop.eup %10545  ;;  %v5409_v53 = vpop.xlane.xlu1 %5408 }
 0x9d9   : > { %v5536_v46 = vmul.f32 %v10546_v16, %v15302_v40  ;;  %v5537_v48 = vmul.f32 %v10546_v16, %v15308_v13  ;;  %v5535_v6 = vmul.f32 %v10546_v16, %v18903_v56  ;;  %10555 = vrcp.f32 %v5409_v53  ;;  %v18904_v40 = vld [vmem:[#allocation62_spill] sm:$0xff] }
 0x9da   : > { %v5532_v63 = vmul.f32 %v10544_v37, %v18904_v40  ;;  %v18906_v37 = vld [vmem:[#allocation40_spill] sm:$0xff] }
 0x9db   : > { %v5614_v31 = vpack.c.bf16 %v5536_v46, %v5533_v22  ;;  %v5615_v59 = vpack.c.bf16 %v5537_v48, %v5534_v5  ;;  %v18907_v22 = vld [vmem:[#allocation64_spill] sm:$0xff]  ;;  %v18908_v46 = vld [vmem:[#allocation61_spill] sm:$0xff] }
 0x9dc   : > { %6086 = vrot.lane.b32.xlu1 %v18902_v51, %s10951_s10  ;;  %v10548_v52 = vpop.eup %10547  ;;  %v5413_v47 = vpop.xlane.xlu1 %5412  ;;  %v5613_v42 = vpack.c.bf16 %v5535_v6, %v5532_v63  ;;  %v18913_v63 = vld [vmem:[#allocation68_spill] sm:$0xff] }
 0x9dd   : > { %v10550_v38 = vpop.eup %10549  ;;  %5790 = vmatprep.mubr.bf16.mxu0 %v5614_v31  ;;  %9498 = vmatmul.mubr.bf16.gmra.mxu1 %v5615_v59  ;;  %v5543_v1 = vmul.f32 %v10548_v52, %v15330_v55  ;;  %v5542_v62 = vmul.f32 %v10548_v52, %v15327_v35  ;;  %10557 = vrcp.f32 %v5413_v47  ;;  %v18909_v59 = vld [vmem:[#allocation43_spill] sm:$0xff] }
 0x9de   : > { %v5540_v44 = vmul.f32 %v10550_v38, %v15319_v17  ;;  %v5539_v39 = vmul.f32 %v10550_v38, %v15316_v0  ;;  %5791 = vmatmul.mubr.bf16.gmra.mxu0 %v5613_v42  ;;  %v5538_v17 = vmul.f32 %v10550_v38, %v18907_v22  ;;  %v5541_v0 = vmul.f32 %v10548_v52, %v18908_v46  ;;  %v18919_v22 = vld [vmem:[#allocation14_spill] sm:$0xff]  ;;  %v18920_v46 = vld [vmem:[#allocation69_spill] sm:$0xff] }
 0x9e0   : > { %v5421_v13 = vpop.xlane.xlu0 %5420  ;;  %7344 = vrot.lane.b32.xlu1 %v18905_v45, %s10951_s10  ;;  %v5618_v60 = vpack.c.bf16 %v5543_v1, %v5540_v44  ;;  %v5417_v49 = vpop.xlane.xlu1 %5416  ;;  %v5617_v16 = vpack.c.bf16 %v5542_v62, %v5539_v39  ;;  %v5616_v6 = vpack.c.bf16 %v5541_v0, %v5538_v17  ;;  %v18915_v44 = vld [vmem:[#allocation70_spill] sm:$0xff] }
 0x9e1   : > { %10559 = vrcp.f32 %v5421_v13  ;;  %v18914_v13 = vld [vmem:[#allocation74_spill] sm:$0xff] }
 0x9e2   : > { %v10552_v55 = vpop.eup %10551  ;;  %10561 = vrcp.f32 %v5417_v49  ;;  %9501 = vmatprep.mubr.bf16.mxu1 %v5618_v60  ;;  %5798 = vmatprep.mubr.bf16.mxu0 %v5617_v16  ;;  %v18916_v49 = vld [vmem:[#allocation48_spill] sm:$0xff] }
 0x9e3   : > { %v10554_v35 = vpop.eup %10553  ;;  %v5549_v53 = vmul.f32 %v10552_v55, %v15355_v2  ;;  %v5548_v51 = vmul.f32 %v10552_v55, %v15351_v54  ;;  %v18910_v2 = vld [vmem:[#allocation47_spill] sm:$0xff]  ;;  %v18912_v54 = vld [vmem:[#allocation6_spill] sm:$0xff]  ;;  %v5547_v40 = vmul.f32 %v10552_v55, %v15347_v4  ;;  %v18918_v4 = vld [vmem:[#allocation8_spill] sm:$0xff] }
 0x9e4   : > { %7356 = vrot.lane.b32.xlu1 %v18906_v37, %s10951_s10  ;;  %v5546_v5 = vmul.f32 %v10554_v35, %v15342_v3  ;;  %v5545_v48 = vmul.f32 %v10554_v35, %v15337_v9  ;;  %v5425_v31 = vpop.xlane.xlu1 %5424  ;;  %v18911_v9 = vld [vmem:[#allocation46_spill] sm:$0xff]  ;;  %v5544_v1 = vmul.f32 %v10554_v35, %v15334_v7  ;;  %v18917_v37 = vld [vmem:[#allocation24_spill] sm:$0xff] }
 0x9e6   : > { %v5429_v28 = vpop.xlane.xlu0 %5428  ;;  %v5621_v56 = vpack.c.bf16 %v5549_v53, %v5546_v5  ;;  %v5620_v52 = vpack.c.bf16 %v5548_v51, %v5545_v48  ;;  %v10556_v38 = vpop.eup %10555  ;;  %5799 = vmatmul.mubr.bf16.gmra.mxu0 %v5616_v6  ;;  %v5619_v55 = vpack.c.bf16 %v5547_v40, %v5544_v1  ;;  %v18921_v48 = vld [vmem:[#allocation51_spill] sm:$0xff]  ;;  %v18926_v1 = vld [vmem:[#allocation17_spill] sm:$0xff] }
 0x9e7   : > { %10563 = vrcp.f32 %v5429_v28  ;;  %v5552_v62 = vmul.f32 %v10556_v38, %v18913_v63  ;;  %v5551_v53 = vmul.f32 %v10556_v38, %v18917_v37  ;;  %v18924_v6 = vld [vmem:[#allocation71_spill] sm:$0xff]  ;;  %v18927_v63 = vld [vmem:[#allocation66_spill] sm:$0xff]  ;;  %v18932_v37 = vld [vmem:[#allocation72_spill] sm:$0xff] }
 0x9e8   : > { %10565 = vrcp.f32 %v5425_v31  ;;  %7354 = vrot.lane.b32.xlu1 %v18909_v59, %s10951_s10  ;;  %9502 = vmatmul.mubr.bf16.gmra.mxu1 %v5621_v56  ;;  %v18922_v59 = vld [vmem:[#allocation12_spill] sm:$0xff]  ;;  %v18923_v56 = vld [vmem:[#allocation65_spill] sm:$0xff] }
 0x9e9   : > { %6104 = vrot.lane.b32.xlu0 %v18910_v2, %s10951_s10  ;;  %v15683_v47 = vpop.xlane.xlu1 %5432  ;;  %5806 = vmatprep.mubr.bf16.mxu0 %v5620_v52 }
 0x9ea   : > { %v10558_v3 = vpop.eup %10557  ;;  %10567 = vrcp.f32 %v15683_v47  ;;  %v18947_v47 = vld [vmem:[#allocation50_spill] sm:$0xff] }
 0x9eb   : > { %v5555_v45 = vmul.f32 %v10558_v3, %v18914_v13  ;;  %v5554_v39 = vmul.f32 %v10558_v3, %v18915_v44  ;;  %v5553_v2 = vmul.f32 %v10558_v3, %v18923_v56  ;;  %v18928_v13 = vld [vmem:[#allocation52_spill] sm:$0xff]  ;;  %v18929_v44 = vld [vmem:[#allocation11_spill] sm:$0xff] }
 0x9ec   : > { %7352 = vrot.lane.b32.xlu1 %v18911_v9, %s10951_s10  ;;  %v18925_v9 = vld [vmem:[#allocation20_spill] sm:$0xff] }
 0x9ed   : > { %6056 = vrot.lane.b32.xlu0 %v18912_v54, %s10951_s10  ;;  %v6125_v60 = vpop.permute.xlu1 %6124  ;;  %v5624_v16 = vpack.c.bf16 %v5555_v45, %v5552_v62  ;;  %v5623_v28 = vpack.c.bf16 %v5554_v39, %v5551_v53  ;;  %v5550_v62 = vmul.f32 %v10556_v38, %v18927_v63  ;;  %v18931_v38 = vld [vmem:[#allocation26_spill] sm:$0xff] }
 0x9ee   : > { %v10560_v42 = vpop.eup %10559  ;;  %9681 = vmatprep.subr.msk.bf16.mxu0 %vm1107_vm2, %v6125_v60  ;;  %v6239_v7 = vsel %vm1107_vm2, %v6125_v60, 0  ;;  %5807 = vmatmul.mubr.bf16.gmra.mxu0 %v5619_v55  ;;  %v18930_v60 = vld [vmem:[#allocation18_spill] sm:$0xff]  ;;  %v18934_v55 = vld [vmem:[#allocation67_spill] sm:$0xff] }
 0x9ef   : > { %v10562_v35 = vpop.eup %10561  ;;  %9532 = vmatpush3.bf16.xpose.msra.mxu0 %v6239_v7  ;;  %9505 = vmatprep.mubr.bf16.mxu1 %v5624_v16  ;;  %v5561_v0 = vmul.f32 %v10560_v42, %v18920_v46  ;;  %v5560_v39 = vmul.f32 %v10560_v42, %v18929_v44  ;;  %v10877_v16 = vld [vmem:[%s17461_s2 + $0x74] ss:$8 sps:$4 sm:$0xff]  }
 0x9f0   : > { %7350 = vrot.lane.b32.xlu1 %v18916_v49, %s10951_s10  ;;  %v5558_v17 = vmul.f32 %v10562_v35, %v18919_v22  ;;  %5814 = vmatprep.mubr.bf16.mxu0 %v5623_v28  ;;  %v5557_v40 = vmul.f32 %v10562_v35, %v18926_v1  ;;  %v5622_v49 = vpack.c.bf16 %v5553_v2, %v5550_v62  ;;  %v18933_v7 = vld [vmem:[#allocation73_spill] sm:$0xff]  ;;  %v18939_v2 = vld [vmem:[#allocation31_spill] sm:$0xff]  ;;  %v6091_v1 = vpop.permute.xlu0 %6090 }
 0x9f1   : > { %6060 = vrot.lane.b32.xlu0 %v18918_v4, %s10951_s10  ;;  %v5556_v53 = vmul.f32 %v10562_v35, %v18932_v37  ;;  %v5559_v22 = vmul.f32 %v10560_v42, %v18934_v55 }
 0x9f2   : > { %v5627_v51 = vpack.c.bf16 %v5561_v0, %v5558_v17  ;;  %v5626_v3 = vpack.c.bf16 %v5560_v39, %v5557_v40  ;;  %v18935_v17 = vld [vmem:[#allocation22_spill] sm:$0xff]  ;;  %v18936_v0 = vld [vmem:[#allocation28_spill] sm:$0xff]  ;;  %v18945_v40 = vld [vmem:[#allocation45_spill] sm:$0xff] }
 0x9f3   : > { %v5625_v28 = vpack.c.bf16 %v5559_v22, %v5556_v53  ;;  %v18950_v53 = vld [vmem:[#allocation177_spill] sm:$0xff] }
 0x9f4   : > { %v10564_v5 = vpop.eup %10563  ;;  %7348 = vrot.lane.b32.xlu1 %v18921_v48, %s10951_s10  ;;  %9506 = vmatmul.mubr.bf16.gmra.mxu1 %v5627_v51  ;;  %v18937_v51 = vld [vmem:[#allocation32_spill] sm:$0xff]  ;;  %v18951_v22 = vld [vmem:[#allocation77_spill] sm:$0xff] }
 0x9f5   : > { %v10566_v31 = vpop.eup %10565  ;;  %6064 = vrot.lane.b32.xlu0 %v18922_v59, %s10951_s10  ;;  %v5567_v54 = vmul.f32 %v10564_v5, %v18925_v9  ;;  %v5566_v46 = vmul.f32 %v10564_v5, %v18935_v17  ;;  %v18938_v59 = vld [vmem:[#allocation34_spill] sm:$0xff]  ;;  %v5565_v35 = vmul.f32 %v10564_v5, %v18939_v2 }
 0x9f6   : > { %v5564_v52 = vmul.f32 %v10566_v31, %v18924_v6  ;;  %5815 = vmatmul.mubr.bf16.gmra.mxu0 %v5622_v49  ;;  %v5563_v4 = vmul.f32 %v10566_v31, %v18933_v7  ;;  %v5562_v56 = vmul.f32 %v10566_v31, %v18938_v59  ;;  %v18940_v6 = vld [vmem:[#allocation33_spill] sm:$0xff]  ;;  %v18942_v9 = vld [vmem:[#allocation38_spill] sm:$0xff] }
 0x9f7   : > { %5822 = vmatprep.mubr.bf16.mxu0 %v5626_v3  ;;  %v18944_v31 = vld [vmem:[#allocation41_spill] sm:$0xff]  ;;  %v10568_v39 = vpop.eup %10567 }
 0x9f8   : > { %7346 = vrot.lane.b32.xlu1 %v18928_v13, %s10951_s10  ;;  %v5630_v45 = vpack.c.bf16 %v5567_v54, %v5564_v52  ;;  %v5629_v48 = vpack.c.bf16 %v5566_v46, %v5563_v4  ;;  %v5628_v42 = vpack.c.bf16 %v5565_v35, %v5562_v56  ;;  %v18941_v52 = vld [vmem:[#allocation36_spill] sm:$0xff]  ;;  %v18943_v54 = vld [vmem:[#allocation39_spill] sm:$0xff]  ;;  %v18946_v13 = vld [vmem:[#allocation25_spill] sm:$0xff]  ;;  %v5570_v7 = vmul.f32 %v10568_v39, %v18950_v53 }
 0x9f9   : > { %6068 = vrot.lane.b32.xlu0 %v18930_v60, %s10951_s10  ;;  %v5568_v17 = vmul.f32 %v10568_v39, %v18951_v22  ;;  %v18952_v35 = vld [vmem:[#allocation53_spill] sm:$0xff] }
 0x9fa   : > { %9509 = vmatprep.mubr.bf16.mxu1 %v5630_v45 }
 0x9fc   : > { %7376 = vrot.lane.b32.xlu1 %v10877_v16, %s10951_s10  ;;  %v18948_v16 = vld [vmem:[#allocation21_spill] sm:$0xff] }
 0x9fd   : > { %6072 = vrot.lane.b32.xlu0 %v18931_v38, %s10951_s10  ;;  %v18949_v38 = vld [vmem:[#allocation76_spill] sm:$0xff] }
 0x9fe   : > { %5823 = vmatmul.mubr.bf16.gmra.mxu0 %v5625_v28  ;;  %v5569_v37 = vmul.f32 %v10568_v39, %v18949_v38 }
 0x9ff   : > { %5830 = vmatprep.mubr.bf16.mxu0 %v5629_v48 }
 0xa01   : > { %6076 = vrot.lane.b32.xlu0 %v18936_v0, %s10951_s10 }
 0xa05   : > { %6080 = vrot.lane.b32.xlu0 %v18937_v51, %s10951_s10 }
 0xa06   : > { %5831 = vmatmul.mubr.bf16.gmra.mxu0 %v5628_v42 }
 0xa09   : > { %6084 = vrot.lane.b32.xlu0 %v18940_v6, %s10951_s10 }
 0xa0d   : > { %7360 = vrot.lane.b32.xlu0 %v18941_v52, %s10951_s10 }
 0xa11   : > { %7358 = vrot.lane.b32.xlu0 %v18942_v9, %s10951_s10 }
 0xa15   : > { %7342 = vrot.lane.b32.xlu0 %v18943_v54, %s10951_s10 }
 0xa19   : > { %7340 = vrot.lane.b32.xlu0 %v18944_v31, %s10951_s10 }
 0xa1b   : > { %v5437_v5 = vpop.xlane.xlu0 %5436 }
 0xa1c   : > { %10569 = vrcp.f32 %v5437_v5  ;;  %v6188_v5 = vsel %vm1107_vm2, %v6091_v1, 0 }
 0xa1d   : > { %7338 = vrot.lane.b32.xlu0 %v18945_v40, %s10951_s10 }
 0xa1e   : > { %v5441_v62 = vpop.xlane.xlu1 %5440 }
 0xa1f   : > { %v5445_v63 = vpop.xlane.xlu0 %5444 }
 0xa20   : > { %10571 = vrcp.f32 %v5445_v63 }
 0xa21   : > { %7336 = vrot.lane.b32.xlu0 %v18946_v13, %s10951_s10  ;;  %10573 = vrcp.f32 %v5441_v62 }
 0xa22   : > { %v5453_v44 = vpop.xlane.xlu1 %5452 }
 0xa23   : > { %v5449_v45 = vpop.xlane.xlu0 %5448 }
 0xa24   : > { %10575 = vrcp.f32 %v5449_v45 }
 0xa25   : > { %7334 = vrot.lane.b32.xlu0 %v18947_v47, %s10951_s10  ;;  %10577 = vrcp.f32 %v5453_v44 }
 0xa27   : > { %v5461_v60 = vpop.xlane.xlu0 %5460 }
 0xa28   : > { %10579 = vrcp.f32 %v5461_v60  ;;  %v5457_v49 = vpop.xlane.xlu1 %5456 }
 0xa29   : > { %v10570_v3 = vpop.eup %10569  ;;  %7332 = vrot.lane.b32.xlu0 %v18948_v16, %s10951_s10  ;;  %10581 = vrcp.f32 %v5457_v49 }
 0xa2a   : > { %v5572_v4 = vmul.f32 %v10570_v3, %v15463_v30  ;;  %v5573_v55 = vmul.f32 %v10570_v3, %v15465_v36  ;;  %v5571_v46 = vmul.f32 %v10570_v3, %v15460_v26 }
 0xa2b   : > { %v6123_v0 = vpop.permute.xlu0 %6122 }
 0xa2c   : > { %9682 = vmatprep.subr.msk.bf16.mxu0 %vm1107_vm2, %v6123_v0  ;;  %v6236_v28 = vsel %vm1107_vm2, %v6123_v0, 0  ;;  %v5632_v48 = vpack.c.bf16 %v5572_v4, %v5569_v37  ;;  %v5633_v51 = vpack.c.bf16 %v5573_v55, %v5570_v7  ;;  %v15760_v59 = vpop.xlane.xlu1 %5464  ;;  %v5631_v56 = vpack.c.bf16 %v5571_v46, %v5568_v17 }
 0xa2d   : > { %v10572_v2 = vpop.eup %10571  ;;  %7330 = vrot.lane.b32.xlu0 %v18952_v35, %s10951_s10  ;;  %9534 = vmatpush3.bf16.xpose.msra.mxu0 %v6236_v28  ;;  %10583 = vrcp.f32 %v15760_v59 }
 0xa2e   : > { %v10574_v30 = vpop.eup %10573  ;;  %5838 = vmatprep.mubr.bf16.mxu0 %v5632_v48  ;;  %9510 = vmatmul.mubr.bf16.gmra.mxu1 %v5633_v51  ;;  %v5578_v26 = vmul.f32 %v10572_v2, %v15476_v43  ;;  %v5579_v42 = vmul.f32 %v10572_v2, %v15478_v10  ;;  %v5577_v54 = vmul.f32 %v10572_v2, %v15470_v27  ;;  %v10878_v43 = vld [vmem:[%s17461_s2 + $0x64] ss:$8 sps:$4 sm:$0xff]  }
 0xa2f   : > { %5839 = vmatmul.mubr.bf16.gmra.mxu0 %v5631_v56  ;;  %v5575_v36 = vmul.f32 %v10574_v30, %v15489_v23  ;;  %v5576_v6 = vmul.f32 %v10574_v30, %v15494_v58  ;;  %v5574_v52 = vmul.f32 %v10574_v30, %v15482_v33 }
 0xa30   : > { %v6107_v9 = vpop.permute.xlu1 %6106 }
 0xa31   : > { %v10576_v31 = vpop.eup %10575  ;;  %9674 = vmatprep.subr.msk.bf16.mxu1 %vm1107_vm2, %v6107_v9  ;;  %v5635_v40 = vpack.c.bf16 %v5578_v26, %v5575_v36  ;;  %v5636_v63 = vpack.c.bf16 %v5579_v42, %v5576_v6  ;;  %7374 = vrot.lane.b32.xlu0 %v10878_v43, %s10951_s10  ;;  %v5634_v10 = vpack.c.bf16 %v5577_v54, %v5574_v52 }
 0xa32   : > { %v10578_v23 = vpop.eup %10577  ;;  %8986 = vmatpush3.bf16.xpose.msra.mxu1 %v6188_v5  ;;  %v5581_v33 = vmul.f32 %v10576_v31, %v15518_v32  ;;  %v5582_v58 = vmul.f32 %v10576_v31, %v15520_v19  ;;  %v5580_v3 = vmul.f32 %v10576_v31, %v15513_v61 }
 0xa33   : > { %5846 = vmatprep.mubr.bf16.mxu0 %v5635_v40  ;;  %9513 = vmatprep.mubr.bf16.mxu1 %v5636_v63  ;;  %v5584_v27 = vmul.f32 %v10578_v23, %v15498_v20  ;;  %v5585_v1 = vmul.f32 %v10578_v23, %v15507_v29  ;;  %v5583_v20 = vmul.f32 %v10578_v23, %v15496_v57 }
 0xa34   : > { %v6089_v62 = vpop.permute.xlu1 %6088 }
 0xa35   : > { %v10580_v13 = vpop.eup %10579  ;;  %v5638_v45 = vpack.c.bf16 %v5584_v27, %v5581_v33  ;;  %v5639_v44 = vpack.c.bf16 %v5585_v1, %v5582_v58  ;;  %v6185_v23 = vsel %vm1107_vm2, %v6089_v62, 0 }
 0xa36   : > { %v10582_v47 = vpop.eup %10581  ;;  %v5591_v60 = vmul.f32 %v10580_v13, %v15541_v25  ;;  %v5590_v16 = vmul.f32 %v10580_v13, %v15531_v50  ;;  %v5589_v57 = vmul.f32 %v10580_v13, %v15527_v14 }
 0xa37   : > { %5847 = vmatmul.mubr.bf16.gmra.mxu0 %v5634_v10  ;;  %9514 = vmatmul.mubr.bf16.gmra.mxu1 %v5639_v44  ;;  %v5588_v39 = vmul.f32 %v10582_v47, %v15575_v12  ;;  %v5587_v19 = vmul.f32 %v10582_v47, %v15555_v34  ;;  %v5637_v12 = vpack.c.bf16 %v5583_v20, %v5580_v3 }
 0xa38   : > { %5854 = vmatprep.mubr.bf16.mxu0 %v5638_v45  ;;  %v6121_v32 = vpop.permute.xlu1 %6120  ;;  %v5586_v25 = vmul.f32 %v10582_v47, %v15547_v21 }
 0xa39   : > { %v5642_v49 = vpack.c.bf16 %v5591_v60, %v5588_v39  ;;  %9683 = vmatprep.subr.msk.bf16.mxu0 %vm1107_vm2, %v6121_v32  ;;  %v6233_v29 = vsel %vm1107_vm2, %v6121_v32, 0  ;;  %v5641_v38 = vpack.c.bf16 %v5590_v16, %v5587_v19 }
 0xa3a   : > { %9536 = vmatpush3.bf16.xpose.msra.mxu0 %v6233_v29  ;;  %v5640_v37 = vpack.c.bf16 %v5589_v57, %v5586_v25  ;;  %v10584_v60 = vpop.eup %10583 }
 0xa3b   : > { %9517 = vmatprep.mubr.bf16.mxu1 %v5642_v49 }
 0xa3c   : > { %v15790_v7 = vpop.permute.xlu1 %6058 }
 0xa3f   : > { %5855 = vmatmul.mubr.bf16.gmra.mxu0 %v5637_v12  ;;  %v5593_v12 = vmul.f32 %v10584_v60, %v15567_v11 }
 0xa40   : > { %5862 = vmatprep.mubr.bf16.mxu0 %v5641_v38  ;;  %v15792_v17 = vpop.permute.xlu1 %6062  ;;  %v5594_v38 = vmul.f32 %v10584_v60, %v15587_v24 }
 0xa44   : > { %v15798_v35 = vpop.permute.xlu1 %6066 }
 0xa47   : > { %5863 = vmatmul.mubr.bf16.gmra.mxu0 %v5640_v37 }
 0xa48   : > { %v15807_v31 = vpop.permute.xlu1 %6070 }
 0xa49   : > { %v8853_v53 = vpop.f32.mrf.mxu0 }
 0xa4b   : > { %v8854_v34 = vpop.f32.mrf.mxu0 }
 0xa4c   : > { %v8855_v4 = vadd.f32 %v8854_v34, %v8853_v53  ;;  %v15813_v58 = vpop.permute.xlu1 %6074  ;;  %v5592_v34 = vmul.f32 %v10584_v60, %v15557_v41 }
 0xa4d   : > { %v8856_v55 = vpop.f32.mrf.mxu0 }
 0xa4f   : > { %v8857_v61 = vpop.f32.mrf.mxu0 }
 0xa50   : > { %v9491_v22 = vpop.f32.mrf.mxu1  ;;  %v8858_v21 = vadd.f32 %v8857_v61, %v8856_v55  ;;  %v15821_v16 = vpop.permute.xlu1 %6078 }
 0xa51   : > { %v8859_v46 = vpop.f32.mrf.mxu0 }
 0xa52   : > { %v5913_v50 = vpop.f32.mrf.mxu1 }
 0xa53   : > { %v15794_v0 = vadd.f32 %v8855_v4, %v5913_v50  ;;  %v8860_v48 = vpop.f32.mrf.mxu0 }
 0xa54   : > { %v9492_v28 = vpop.f32.mrf.mxu1  ;;  %v8861_v14 = vadd.f32 %v8860_v48, %v8859_v46  ;;  %v15835_v46 = vpop.permute.xlu1 %6082 }
 0xa55   : > { %18953 = vst [vmem:[#allocation16_spill] sm:$0xff] %v15794_v0  ;;  %v8862_v56 = vpop.f32.mrf.mxu0 }
 0xa56   : > { %v5916_v51 = vpop.f32.mrf.mxu1  ;;  %v15800_v30 = vadd.f32 %v9491_v22, %v8861_v14 }
 0xa57   : > { %v15796_v2 = vadd.f32 %v8858_v21, %v5916_v51  ;;  %v8863_v36 = vpop.f32.mrf.mxu0 }
 0xa58   : > { %18955 = vst [vmem:[#allocation75_spill] sm:$0xff] %v15800_v30  ;;  %v8864_v6 = vadd.f32 %v8863_v36, %v8862_v56 }
 0xa59   : > { %18954 = vst [vmem:[#allocation79_spill] sm:$0xff] %v15796_v2 }
 0xa5a   : > { %v15805_v9 = vadd.f32 %v9492_v28, %v8864_v6 }
 0xa5b   : > { %v8865_v42 = vpop.f32.mrf.mxu0 }
 0xa5c   : > { %v5469_v52 = vpop.xlane.xlu0 %5468  ;;  %18956 = vst [vmem:[#allocation84_spill] sm:$0xff] %v15805_v9 }
 0xa5d   : > { %10585 = vrcp.f32 %v5469_v52  ;;  %v8866_v54 = vpop.f32.mrf.mxu0 }
 0xa5e   : > { %v8867_v40 = vadd.f32 %v8866_v54, %v8865_v42 }
 0xa5f   : > { %v8868_v63 = vpop.f32.mrf.mxu0 }
 0xa60   : > { %v6105_v43 = vpop.permute.xlu0 %6104  ;;  %v9495_v10 = vpop.f32.mrf.mxu1 }
 0xa61   : > { %9675 = vmatprep.subr.msk.bf16.mxu1 %vm1107_vm2, %v6105_v43  ;;  %v8869_v59 = vpop.f32.mrf.mxu0 }
 0xa62   : > { %8988 = vmatpush3.bf16.xpose.msra.mxu1 %v6185_v23  ;;  %v5929_v27 = vpop.f32.mrf.mxu1  ;;  %v8870_v47 = vadd.f32 %v8869_v59, %v8868_v63 }
 0xa63   : > { %v8871_v33 = vpop.f32.mrf.mxu0  ;;  %v15815_v13 = vadd.f32 %v8867_v40, %v5929_v27 }
 0xa64   : > { %v6057_v1 = vpop.permute.xlu0 %6056  ;;  %v9496_v44 = vpop.f32.mrf.mxu1 }
 0xa65   : > { %18957 = vst [vmem:[#allocation82_spill] sm:$0xff] %v15815_v13  ;;  %v8872_v45 = vpop.f32.mrf.mxu0 }
 0xa66   : > { %v8873_v39 = vadd.f32 %v8872_v45, %v8871_v33  ;;  %v5932_v49 = vpop.f32.mrf.mxu1 }
 0xa67   : > { %v8874_v32 = vpop.f32.mrf.mxu0  ;;  %v15819_v29 = vadd.f32 %v8870_v47, %v5932_v49 }
 0xa68   : > { %v6061_v62 = vpop.permute.xlu0 %6060  ;;  %v15817_v20 = vadd.f32 %v9495_v10, %v8873_v39 }
 0xa69   : > { %18959 = vst [vmem:[#allocation80_spill] sm:$0xff] %v15819_v29  ;;  %v8875_v19 = vpop.f32.mrf.mxu0 }
 0xa6a   : > { %18958 = vst [vmem:[#allocation44_spill] sm:$0xff] %v15817_v20  ;;  %v10586_v3 = vpop.eup %10585  ;;  %v8876_v57 = vadd.f32 %v8875_v19, %v8874_v32 }
 0xa6b   : > { %v5596_v37 = vmul.f32 %v10586_v3, %v15636_v15  ;;  %v5597_v53 = vmul.f32 %v10586_v3, %v15642_v8  ;;  %v5595_v4 = vmul.f32 %v10586_v3, %v15634_v18  ;;  %v15843_v18 = vpop.permute.xlu1 %6086 }
 0xa6c   : > { %v6065_v55 = vpop.permute.xlu0 %6064  ;;  %v15831_v22 = vadd.f32 %v9496_v44, %v8876_v57 }
 0xa6d   : > { %v5644_v61 = vpack.c.bf16 %v5596_v37, %v5593_v12  ;;  %v5645_v50 = vpack.c.bf16 %v5597_v53, %v5594_v38  ;;  %v5643_v11 = vpack.c.bf16 %v5595_v4, %v5592_v34 }
 0xa6e   : > { %18960 = vst [vmem:[#allocation13_spill] sm:$0xff] %v15831_v22 }
 0xa6f   : > { %5870 = vmatprep.mubr.bf16.mxu0 %v5644_v61  ;;  %9518 = vmatmul.mubr.bf16.gmra.mxu1 %v5645_v50  ;;  %v7345_v28 = vpop.permute.xlu1 %7344 }
 0xa70   : > { %5871 = vmatmul.mubr.bf16.gmra.mxu0 %v5643_v11  ;;  %8989 = vmatprep.mubr.msk.bf16.mxu1 %vm1107_vm2, %v6057_v1  ;;  %v15838_v15 = vpop.permute.xlu0 %6068 }
 0xa71   : > { %9537 = vmatprep.mubr.msk.bf16.mxu0 %vm1107_vm2, %v6057_v1 }
 0xa73   : > { %v7357_v14 = vpop.permute.xlu1 %7356 }
 0xa74   : > { %v15841_v41 = vpop.permute.xlu0 %6072 }
 0xa77   : > { %8990 = vmatmul.mubr.msk.bf16.vlgmr.msra.gmra.mxu1 %vm1107_vm2, %v6057_v1  ;;  %v7355_v56 = vpop.permute.xlu1 %7354 }
 0xa78   : > { %8991 = vmatprep.mubr.msk.bf16.mxu1 %vm1107_vm2, %v15790_v7  ;;  %9538 = vmatmul.mubr.msk.bf16.vlgmr.msra.gmra.mxu0 %vm1107_vm2, %v15790_v7  ;;  %v15850_v8 = vpop.permute.xlu0 %6076 }
 0xa79   : > { %9541 = vmatprep.mubr.msk.bf16.mxu0 %vm1107_vm2, %v6061_v62 }
 0xa7b   : > { %v7353_v6 = vpop.permute.xlu1 %7352 }
 0xa7c   : > { %v15853_v21 = vpop.permute.xlu0 %6080 }
 0xa7f   : > { %8992 = vmatmul.mubr.msk.bf16.gmra.mxu1 %vm1107_vm2, %v15790_v7  ;;  %v7351_v52 = vpop.permute.xlu1 %7350 }
 0xa80   : > { %8993 = vmatprep.mubr.msk.bf16.mxu1 %vm1107_vm2, %v6061_v62  ;;  %9542 = vmatmul.mubr.msk.bf16.gmra.mxu0 %vm1107_vm2, %v15792_v17  ;;  %v15860_v48 = vpop.permute.xlu0 %6084 }
 0xa81   : > { %9545 = vmatprep.mubr.msk.bf16.mxu0 %vm1107_vm2, %v6065_v55 }
 0xa83   : > { %v7349_v40 = vpop.permute.xlu1 %7348 }
 0xa84   : > { %v7361_v51 = vpop.permute.xlu0 %7360 }
 0xa85   : > { %9045 = vmatprep.subr.bf16.mxu0 %v7361_v51 }
 0xa86   : > { %9046 = vmatpush3.bf16.msra.mxu0 %v7345_v28 }
 0xa87   : > { %8994 = vmatmul.mubr.msk.bf16.gmra.mxu1 %vm1107_vm2, %v6061_v62  ;;  %v7347_v27 = vpop.permute.xlu1 %7346 }
 0xa88   : > { %8995 = vmatprep.mubr.msk.bf16.mxu1 %vm1107_vm2, %v15792_v17  ;;  %9546 = vmatmul.mubr.msk.bf16.gmra.mxu0 %vm1107_vm2, %v15798_v35  ;;  %v7359_v7 = vpop.permute.xlu0 %7358 }
 0xa89   : > { %9549 = vmatprep.mubr.msk.bf16.mxu0 %vm1107_vm2, %v15838_v15  ;;  %9047 = vmatprep.subr.bf16.mxu0 %v7359_v7 }
 0xa8c   : > { %v7343_v36 = vpop.permute.xlu0 %7342 }
 0xa8d   : > { %9048 = vmatpush3.bf16.msra.mxu0 %v7343_v36 }
 0xa8e   : > { %9049 = vmatprep.subr.bf16.mxu0 %v7357_v14 }
 0xa8f   : > { %8996 = vmatmul.mubr.msk.bf16.gmra.mxu1 %vm1107_vm2, %v15792_v17 }
 0xa90   : > { %8997 = vmatprep.mubr.msk.bf16.mxu1 %vm1107_vm2, %v6065_v55  ;;  %9550 = vmatmul.mubr.msk.bf16.gmra.mxu0 %vm1107_vm2, %v15807_v31  ;;  %v7341_v42 = vpop.permute.xlu0 %7340 }
 0xa91   : > { %9553 = vmatprep.mubr.msk.bf16.mxu0 %vm1107_vm2, %v15841_v41  ;;  %9050 = vmatpush3.bf16.msra.mxu0 %v7341_v42 }
 0xa92   : > { %9051 = vmatprep.subr.bf16.mxu0 %v7355_v56 }
 0xa94   : > { %v7339_v54 = vpop.permute.xlu0 %7338 }
 0xa95   : > { %9052 = vmatpush3.bf16.msra.mxu0 %v7339_v54 }
 0xa96   : > { %9053 = vmatprep.subr.bf16.mxu0 %v7353_v6  ;;  %v8877_v63 = vpop.f32.mrf.mxu0 }
 0xa97   : > { %8998 = vmatmul.mubr.msk.bf16.gmra.mxu1 %vm1107_vm2, %v6065_v55 }
 0xa98   : > { %8999 = vmatprep.mubr.msk.bf16.mxu1 %vm1107_vm2, %v15798_v35  ;;  %9554 = vmatmul.mubr.msk.bf16.gmra.mxu0 %vm1107_vm2, %v15813_v58  ;;  %v7337_v17 = vpop.permute.xlu0 %7336  ;;  %v8878_v23 = vpop.f32.mrf.mxu0 }
 0xa99   : > { %9557 = vmatprep.mubr.msk.bf16.mxu0 %vm1107_vm2, %v15850_v8  ;;  %9054 = vmatpush3.bf16.msra.mxu0 %v7337_v17  ;;  %v8879_v59 = vadd.f32 %v8878_v23, %v8877_v63 }
 0xa9a   : > { %9055 = vmatprep.subr.bf16.mxu0 %v7351_v52  ;;  %v8880_v33 = vpop.f32.mrf.mxu0 }
 0xa9c   : > { %v7335_v43 = vpop.permute.xlu0 %7334  ;;  %v8881_v44 = vpop.f32.mrf.mxu0 }
 0xa9d   : > { %9056 = vmatpush3.bf16.msra.mxu0 %v7335_v43  ;;  %v9499_v10 = vpop.f32.mrf.mxu1 }
 0xa9e   : > { %9057 = vmatprep.subr.bf16.mxu0 %v7349_v40  ;;  %v8883_v60 = vpop.f32.mrf.mxu0 }
 0xa9f   : > { %9000 = vmatmul.mubr.msk.bf16.gmra.mxu1 %vm1107_vm2, %v15798_v35  ;;  %v5945_v45 = vpop.f32.mrf.mxu1  ;;  %v8882_v35 = vadd.f32 %v8881_v44, %v8880_v33 }
 0xaa0   : > { %9001 = vmatprep.mubr.msk.bf16.mxu1 %vm1107_vm2, %v15838_v15  ;;  %9558 = vmatmul.mubr.msk.bf16.gmra.mxu0 %vm1107_vm2, %v15821_v16  ;;  %v7333_v1 = vpop.permute.xlu0 %7332  ;;  %v15892_v47 = vadd.f32 %v8879_v59, %v5945_v45  ;;  %v8884_v62 = vpop.f32.mrf.mxu0 }
 0xaa1   : > { %9561 = vmatprep.mubr.msk.bf16.mxu0 %vm1107_vm2, %v15853_v21  ;;  %9058 = vmatpush3.bf16.msra.mxu0 %v7333_v1  ;;  %v9500_v39 = vpop.f32.mrf.mxu1  ;;  %v8885_v3 = vadd.f32 %v8884_v62, %v8883_v60 }
 0xaa2   : > { %9059 = vmatprep.subr.bf16.mxu0 %v7347_v27  ;;  %18961 = vst [vmem:[#allocation83_spill] sm:$0xff] %v15892_v47  ;;  %v8886_v12 = vpop.f32.mrf.mxu0 }
 0xaa3   : > { %v5948_v49 = vpop.f32.mrf.mxu1  ;;  %v15904_v57 = vadd.f32 %v9499_v10, %v8885_v3 }
 0xaa4   : > { %v7331_v32 = vpop.permute.xlu0 %7330  ;;  %v15894_v19 = vadd.f32 %v8882_v35, %v5948_v49  ;;  %v8887_v37 = vpop.f32.mrf.mxu0 }
 0xaa5   : > { %9060 = vmatpush3.bf16.msra.mxu0 %v7331_v32  ;;  %18963 = vst [vmem:[#allocation130_spill] sm:$0xff] %v15904_v57  ;;  %v8888_v34 = vadd.f32 %v8887_v37, %v8886_v12 }
 0xaa6   : > { %18962 = vst [vmem:[#allocation85_spill] sm:$0xff] %v15894_v19  ;;  %v8889_v4 = vpop.f32.mrf.mxu0 }
 0xaa7   : > { %9002 = vmatmul.mubr.msk.bf16.gmra.mxu1 %vm1107_vm2, %v15838_v15  ;;  %v15908_v61 = vadd.f32 %v9500_v39, %v8888_v34 }
 0xaa8   : > { %9003 = vmatprep.mubr.msk.bf16.mxu1 %vm1107_vm2, %v15807_v31  ;;  %9562 = vmatmul.mubr.msk.bf16.gmra.mxu0 %vm1107_vm2, %v15835_v46  ;;  %v9503_v53 = vpop.f32.mrf.mxu1  ;;  %v8890_v50 = vpop.f32.mrf.mxu0 }
 0xaa9   : > { %9565 = vmatprep.mubr.msk.bf16.mxu0 %vm1107_vm2, %v15860_v48  ;;  %18964 = vst [vmem:[#allocation157_spill] sm:$0xff] %v15908_v61  ;;  %v8891_v15 = vadd.f32 %v8890_v50, %v8889_v4 }
 0xaaa   : > { %v5961_v55 = vpop.f32.mrf.mxu1  ;;  %v8892_v14 = vpop.f32.mrf.mxu0 }
 0xaab   : > { %v15918_v51 = vadd.f32 %v8891_v15, %v5961_v55 }
 0xaac   : > { %v9504_v28 = vpop.f32.mrf.mxu1  ;;  %v8893_v56 = vpop.f32.mrf.mxu0 }
 0xaad   : > { %18965 = vst [vmem:[#allocation159_spill] sm:$0xff] %v15918_v51  ;;  %v8894_v7 = vadd.f32 %v8893_v56, %v8892_v14 }
 0xaae   : > { %v5964_v36 = vpop.f32.mrf.mxu1  ;;  %v8895_v6 = vpop.f32.mrf.mxu0 }
 0xaaf   : > { %9004 = vmatmul.mubr.msk.bf16.gmra.mxu1 %vm1107_vm2, %v15807_v31  ;;  %v15920_v42 = vadd.f32 %v8894_v7, %v5964_v36 }
 0xab0   : > { %9005 = vmatprep.mubr.msk.bf16.mxu1 %vm1107_vm2, %v15841_v41  ;;  %9566 = vmatmul.mubr.msk.bf16.gmra.mxu0 %vm1107_vm2, %v15843_v18  ;;  %v8896_v52 = vpop.f32.mrf.mxu0 }
 0xab1   : > { %18966 = vst [vmem:[#allocation156_spill] sm:$0xff] %v15920_v42  ;;  %v8897_v54 = vadd.f32 %v8896_v52, %v8895_v6 }
 0xab2   : > { %v8898_v40 = vpop.f32.mrf.mxu0 }
 0xab3   : > { %v15928_v63 = vadd.f32 %v9503_v53, %v8897_v54 }
 0xab4   : > { %v9507_v17 = vpop.f32.mrf.mxu1  ;;  %v8899_v43 = vpop.f32.mrf.mxu0 }
 0xab5   : > { %18967 = vst [vmem:[#allocation92_spill] sm:$0xff] %v15928_v63  ;;  %v8900_v23 = vadd.f32 %v8899_v43, %v8898_v40 }
 0xab6   : > { %v5977_v59 = vpop.f32.mrf.mxu1  ;;  %v8901_v10 = vpop.f32.mrf.mxu0 }
 0xab7   : > { %9006 = vmatmul.mubr.msk.bf16.gmra.mxu1 %vm1107_vm2, %v15841_v41  ;;  %v15930_v33 = vadd.f32 %v9504_v28, %v8900_v23 }
 0xab8   : > { %9007 = vmatprep.mubr.msk.bf16.mxu1 %vm1107_vm2, %v15813_v58  ;;  %v8902_v27 = vpop.f32.mrf.mxu0  ;;  %v9508_v44 = vpop.f32.mrf.mxu1 }
 0xab9   : > { %18968 = vst [vmem:[#allocation153_spill] sm:$0xff] %v15930_v33  ;;  %v8903_v45 = vadd.f32 %v8902_v27, %v8901_v10 }
 0xaba   : > { %v8904_v41 = vpop.f32.mrf.mxu0  ;;  %v5980_v32 = vpop.f32.mrf.mxu1 }
 0xabb   : > { %v15938_v35 = vadd.f32 %v8903_v45, %v5977_v59 }
 0xabc   : > { %v8905_v39 = vpop.f32.mrf.mxu0 }
 0xabd   : > { %18969 = vst [vmem:[#allocation131_spill] sm:$0xff] %v15938_v35  ;;  %v8906_v60 = vadd.f32 %v8905_v39, %v8904_v41 }
 0xabe   : > { %v8907_v49 = vpop.f32.mrf.mxu0 }
 0xabf   : > { %9008 = vmatmul.mubr.msk.bf16.gmra.mxu1 %vm1107_vm2, %v15813_v58  ;;  %v15940_v62 = vadd.f32 %v8906_v60, %v5980_v32 }
 0xac0   : > { %9009 = vmatprep.mubr.msk.bf16.mxu1 %vm1107_vm2, %v15850_v8  ;;  %v8908_v3 = vpop.f32.mrf.mxu0 }
 0xac1   : > { %18970 = vst [vmem:[#allocation78_spill] sm:$0xff] %v15940_v62  ;;  %v8909_v37 = vadd.f32 %v8908_v3, %v8907_v49 }
 0xac2   : > { %v8910_v58 = vpop.f32.mrf.mxu0 }
 0xac3   : > { %v15948_v53 = vadd.f32 %v9507_v17, %v8909_v37 }
 0xac4   : > { %v8911_v34 = vpop.f32.mrf.mxu0 }
 0xac5   : > { %18971 = vst [vmem:[#allocation162_spill] sm:$0xff] %v15948_v53  ;;  %v8912_v4 = vadd.f32 %v8911_v34, %v8910_v58 }
 0xac6   : > { %v8913_v55 = vpop.f32.mrf.mxu0 }
 0xac7   : > { %9010 = vmatmul.mubr.msk.bf16.gmra.mxu1 %vm1107_vm2, %v15850_v8  ;;  %v15950_v50 = vadd.f32 %v9508_v44, %v8912_v4 }
 0xac8   : > { %9011 = vmatprep.mubr.msk.bf16.mxu1 %vm1107_vm2, %v15821_v16  ;;  %v8914_v15 = vpop.f32.mrf.mxu0 }
 0xac9   : > { %18972 = vst [vmem:[#allocation129_spill] sm:$0xff] %v15950_v50  ;;  %v8915_v14 = vadd.f32 %v8914_v15, %v8913_v55 }
 0xacf   : > { %9012 = vmatmul.mubr.msk.bf16.gmra.mxu1 %vm1107_vm2, %v15821_v16  ;;  %v8916_v16 = vpop.f32.mrf.mxu0 }
 0xad0   : > { %9013 = vmatprep.mubr.msk.bf16.mxu1 %vm1107_vm2, %v15853_v21 }
 0xad1   : > { %v8917_v8 = vpop.f32.mrf.mxu0 }
 0xad2   : > { %v8918_v54 = vadd.f32 %v8917_v8, %v8916_v16 }
 0xad7   : > { %9014 = vmatmul.mubr.msk.bf16.gmra.mxu1 %vm1107_vm2, %v15853_v21 }
 0xad8   : > { %9015 = vmatprep.mubr.msk.bf16.mxu1 %vm1107_vm2, %v15835_v46 }
 0xadf   : > { %9016 = vmatmul.mubr.msk.bf16.gmra.mxu1 %vm1107_vm2, %v15835_v46 }
 0xae0   : > { %9017 = vmatprep.mubr.msk.bf16.mxu1 %vm1107_vm2, %v15860_v48 }
 0xae7   : > { %9018 = vmatmul.mubr.msk.bf16.gmra.mxu1 %vm1107_vm2, %v15860_v48 }
 0xae8   : > { %9019 = vmatprep.mubr.msk.bf16.mxu1 %vm1107_vm2, %v15843_v18 }
 0xaee   : > { %v9511_v56 = vpop.f32.mrf.mxu1 }
 0xaef   : > { %v8919_v7 = vpop.f32.mrf.mxu0  ;;  %9020 = vmatmul.mubr.msk.bf16.gmra.mxu1 %vm1107_vm2, %v15843_v18 }
 0xaf0   : > { %v5993_v21 = vpop.f32.mrf.mxu1 }
 0xaf1   : > { %v15972_v36 = vadd.f32 %v8915_v14, %v5993_v21  ;;  %v8920_v46 = vpop.f32.mrf.mxu0 }
 0xaf2   : > { %v8921_v6 = vadd.f32 %v8920_v46, %v8919_v7  ;;  %v9512_v52 = vpop.f32.mrf.mxu1 }
 0xaf3   : > { %18973 = vst [vmem:[#allocation158_spill] sm:$0xff] %v15972_v36  ;;  %v8922_v17 = vpop.f32.mrf.mxu0 }
 0xaf4   : > { %v15974_v40 = vadd.f32 %v9511_v56, %v8921_v6  ;;  %v5996_v48 = vpop.f32.mrf.mxu1 }
 0xaf5   : > { %v15976_v43 = vadd.f32 %v8918_v54, %v5996_v48  ;;  %v8923_v23 = vpop.f32.mrf.mxu0 }
 0xaf6   : > { %18974 = vst [vmem:[#allocation127_spill] sm:$0xff] %v15974_v40  ;;  %v8924_v59 = vadd.f32 %v8923_v23, %v8922_v17 }
 0xaf7   : > { %18975 = vst [vmem:[#allocation161_spill] sm:$0xff] %v15976_v43  ;;  %v8925_v27 = vpop.f32.mrf.mxu0  ;;  %v9515_v18 = vpop.f32.mrf.mxu1 }
 0xaf8   : > { %v15980_v45 = vadd.f32 %v9512_v52, %v8924_v59 }
 0xaf9   : > { %v8926_v44 = vpop.f32.mrf.mxu0  ;;  %v6009_v41 = vpop.f32.mrf.mxu1 }
 0xafa   : > { %18976 = vst [vmem:[#allocation81_spill] sm:$0xff] %v15980_v45  ;;  %v8927_v60 = vadd.f32 %v8926_v44, %v8925_v27  ;;  %v7377_v27 = vpop.permute.xlu1 %7376  ;;  %v7375_v44 = vpop.permute.xlu0 %7374 }
 0xafb   : > { %v8928_v32 = vpop.f32.mrf.mxu0  ;;  %v9516_v49 = vpop.f32.mrf.mxu1  ;;  %9569 = vmatprep.subr.bf16.mxu1 %v7377_v27 }
 0xafc   : > { %v15984_v3 = vadd.f32 %v8927_v60, %v6009_v41  ;;  %9570 = vmatpush3.bf16.msra.mxu1 %v7377_v27 }
 0xafd   : > { %v8929_v37 = vpop.f32.mrf.mxu0  ;;  %v6012_v58 = vpop.f32.mrf.mxu1  ;;  %9571 = vmatprep.subr.bf16.mxu1 %v7375_v44 }
 0xafe   : > { %18977 = vst [vmem:[#allocation160_spill] sm:$0xff] %v15984_v3  ;;  %v8930_v34 = vadd.f32 %v8929_v37, %v8928_v32 }
 0xaff   : > { %v8931_v4 = vpop.f32.mrf.mxu0 }
 0xb00   : > { %v15986_v55 = vadd.f32 %v8930_v34, %v6012_v58  ;;  %9572 = vmatpush3.bf16.msra.mxu1 %v7375_v44  ;;  %v18986_v44 = vld [vmem:[#allocation59_spill] sm:$0xff] }
 0xb01   : > { %v8932_v15 = vpop.f32.mrf.mxu0 }
 0xb02   : > { %18978 = vst [vmem:[#allocation88_spill] sm:$0xff] %v15986_v55  ;;  %v8933_v16 = vadd.f32 %v8932_v15, %v8931_v4 }
 0xb03   : > { %v8934_v8 = vpop.f32.mrf.mxu0 }
 0xb04   : > { %v15990_v56 = vadd.f32 %v9515_v18, %v8933_v16 }
 0xb05   : > { %v8935_v7 = vpop.f32.mrf.mxu0 }
 0xb06   : > { %18979 = vst [vmem:[#allocation19_spill] sm:$0xff] %v15990_v56  ;;  %v8936_v21 = vadd.f32 %v8935_v7, %v8934_v8 }
 0xb07   : > { %v8937_v46 = vpop.f32.mrf.mxu0 }
 0xb08   : > { %v15992_v6 = vadd.f32 %v9516_v49, %v8936_v21 }
 0xb09   : > { %v8938_v52 = vpop.f32.mrf.mxu0 }
 0xb0a   : > { %18980 = vst [vmem:[#allocation170_spill] sm:$0xff] %v15992_v6  ;;  %v8939_v17 = vadd.f32 %v8938_v52, %v8937_v46 }
 0xb0b   : > { %v8940_v48 = vpop.f32.mrf.mxu0 }
 0xb0d   : > { %v8941_v23 = vpop.f32.mrf.mxu0 }
 0xb0e   : > { %v8942_v59 = vadd.f32 %v8941_v23, %v8940_v48  ;;  %v18985_v23 = vld [vmem:[#allocation5_spill] sm:$0xff] }
 0xb2f   : > { %v9519_v18 = vpop.f32.mrf.mxu1 }
 0xb30   : > { %v8943_v41 = vpop.f32.mrf.mxu0 }
 0xb31   : > { %v6025_v60 = vpop.f32.mrf.mxu1 }
 0xb32   : > { %v15996_v32 = vadd.f32 %v8939_v17, %v6025_v60  ;;  %v8944_v49 = vpop.f32.mrf.mxu0  ;;  %v18987_v60 = vld [vmem:[#allocation60_spill] sm:$0xff] }
 0xb33   : > { %v8945_v37 = vadd.f32 %v8944_v49, %v8943_v41  ;;  %v9520_v58 = vpop.f32.mrf.mxu1 }
 0xb34   : > { %18981 = vst [vmem:[#allocation173_spill] sm:$0xff] %v15996_v32  ;;  %v8946_v34 = vpop.f32.mrf.mxu0 }
 0xb35   : > { %v15998_v4 = vadd.f32 %v9519_v18, %v8945_v37  ;;  %v6028_v15 = vpop.f32.mrf.mxu1 }
 0xb36   : > { %v16000_v16 = vadd.f32 %v8942_v59, %v6028_v15  ;;  %v8947_v8 = vpop.f32.mrf.mxu0 }
 0xb37   : > { %18982 = vst [vmem:[#allocation171_spill] sm:$0xff] %v15998_v4  ;;  %v8948_v7 = vadd.f32 %v8947_v8, %v8946_v34  ;;  %v6290_v21 = vpop.f32.mrf.mxu1 }
 0xb38   : > { %18983 = vst [vmem:[#allocation174_spill] sm:$0xff] %v16000_v16  ;;  %v9539_v52 = vpop.f32.mrf.mxu0  ;;  %v16007_v27 = vadd.f32 %v6290_v21, %v18985_v23 }
 0xb39   : > { %v16004_v48 = vadd.f32 %v9520_v58, %v8948_v7  ;;  %v6292_v17 = vpop.f32.mrf.mxu1  ;;  %v16039_v26 = vadd.f32 %v9539_v52, %v18987_v60 }
 0xb3a   : > { %v16010_v41 = vadd.f32 %v6292_v17, %v18986_v44  ;;  %v6483_v18 = vpop.f32.mrf.mxu0 }
 0xb3b   : > { %18984 = vst [vmem:[#allocation172_spill] sm:$0xff] %v16004_v48  ;;  %v16015_v49 = vadd.f32 %v6483_v18, %v18987_v60  ;;  %v6294_v37 = vpop.f32.mrf.mxu1 }
 0xb3c   : > { %v6610_v34 = vmax.f32 %v16007_v27, %v16010_v41  ;;  %v9540_v58 = vpop.f32.mrf.mxu0  ;;  %v16021_v7 = vadd.f32 %v6294_v37, %v18985_v23 }
 0xb3d   : > { %v6296_v15 = vpop.f32.mrf.mxu1  ;;  %v16051_v24 = vadd.f32 %v9540_v58, %v18987_v60 }
 0xb3e   : > { %v6611_v8 = vmax.f32 %v6610_v34, %v16015_v49  ;;  %v16024_v21 = vadd.f32 %v6296_v15, %v18986_v44  ;;  %v6486_v17 = vpop.f32.mrf.mxu0 }
 0xb3f   : > { %v16027_v12 = vadd.f32 %v6486_v17, %v18987_v60  ;;  %v6300_v18 = vpop.f32.mrf.mxu1 }
 0xb40   : > { %v6614_v28 = vmax.f32 %v16021_v7, %v16024_v21  ;;  %6612 = vmax.xlane.f32.xlu0 %v6611_v8  ;;  %v9543_v10 = vpop.f32.mrf.mxu0  ;;  %v16033_v34 = vadd.f32 %v6300_v18, %v18985_v23 }
 0xb41   : > { %v6302_v39 = vpop.f32.mrf.mxu1 }
 0xb42   : > { %v6615_v14 = vmax.f32 %v6614_v28, %v16027_v12  ;;  %v16036_v37 = vadd.f32 %v6302_v39, %v18986_v44  ;;  %v6499_v5 = vpop.f32.mrf.mxu0 }
 0xb43   : > { %v6304_v15 = vpop.f32.mrf.mxu1 }
 0xb44   : > { %v6618_v17 = vmax.f32 %v16033_v34, %v16036_v37  ;;  %6616 = vmax.xlane.f32.xlu1 %v6615_v14  ;;  %v16044_v25 = vadd.f32 %v6304_v15, %v18985_v23  ;;  %v9544_v38 = vpop.f32.mrf.mxu0 }
 0xb45   : > { %v6306_v8 = vpop.f32.mrf.mxu1 }
 0xb46   : > { %v16047_v28 = vadd.f32 %v6306_v8, %v18986_v44  ;;  %v6619_v18 = vmax.f32 %v6618_v17, %v16039_v26  ;;  %v16063_v17 = vadd.f32 %v6499_v5, %v18987_v60  ;;  %v6502_v46 = vpop.f32.mrf.mxu0 }
 0xb47   : > { %v6310_v39 = vpop.f32.mrf.mxu1 }
 0xb48   : > { %v6622_v52 = vmax.f32 %v16044_v25, %v16047_v28  ;;  %6620 = vmax.xlane.f32.xlu0 %v6619_v18  ;;  %v16056_v54 = vadd.f32 %v6310_v39, %v18985_v23  ;;  %v9547_v1 = vpop.f32.mrf.mxu0 }
 0xb49   : > { %v6312_v14 = vpop.f32.mrf.mxu1 }
 0xb4a   : > { %v16059_v15 = vadd.f32 %v6312_v14, %v18986_v44  ;;  %v6623_v8 = vmax.f32 %v6622_v52, %v16051_v24  ;;  %v16075_v52 = vadd.f32 %v6502_v46, %v18987_v60  ;;  %v6515_v53 = vpop.f32.mrf.mxu0 }
 0xb4b   : > { %v6314_v11 = vpop.f32.mrf.mxu1 }
 0xb4c   : > { %v6626_v58 = vmax.f32 %v16056_v54, %v16059_v15  ;;  %6624 = vmax.xlane.f32.xlu0 %v6623_v8  ;;  %v16068_v31 = vadd.f32 %v6314_v11, %v18985_v23  ;;  %v9548_v43 = vpop.f32.mrf.mxu0 }
 0xb4d   : > { %v6316_v18 = vpop.f32.mrf.mxu1 }
 0xb4e   : > { %v16071_v39 = vadd.f32 %v6316_v18, %v18986_v44  ;;  %v6627_v14 = vmax.f32 %v6626_v58, %v16063_v17  ;;  %v16087_v58 = vadd.f32 %v9543_v10, %v18987_v60  ;;  %v6518_v3 = vpop.f32.mrf.mxu0 }
 0xb4f   : > { %v6320_v59 = vpop.f32.mrf.mxu1 }
 0xb50   : > { %v6630_v5 = vmax.f32 %v16068_v31, %v16071_v39  ;;  %6628 = vmax.xlane.f32.xlu0 %v6627_v14  ;;  %v16080_v35 = vadd.f32 %v6320_v59, %v18985_v23  ;;  %v9551_v2 = vpop.f32.mrf.mxu0 }
 0xb51   : > { %v6322_v8 = vpop.f32.mrf.mxu1 }
 0xb52   : > { %v16083_v11 = vadd.f32 %v6322_v8, %v18986_v44  ;;  %v6631_v18 = vmax.f32 %v6630_v5, %v16075_v52  ;;  %v16099_v5 = vadd.f32 %v9544_v38, %v18987_v60  ;;  %v6531_v13 = vpop.f32.mrf.mxu0 }
 0xb53   : > { %v6324_v62 = vpop.f32.mrf.mxu1 }
 0xb54   : > { %v6634_v46 = vmax.f32 %v16080_v35, %v16083_v11  ;;  %6632 = vmax.xlane.f32.xlu1 %v6631_v18  ;;  %v16092_v50 = vadd.f32 %v6324_v62, %v18985_v23  ;;  %v9552_v22 = vpop.f32.mrf.mxu0 }
 0xb55   : > { %v6326_v14 = vpop.f32.mrf.mxu1 }
 0xb56   : > { %v16095_v59 = vadd.f32 %v6326_v14, %v18986_v44  ;;  %v6635_v8 = vmax.f32 %v6634_v46, %v16087_v58  ;;  %v16111_v46 = vadd.f32 %v6515_v53, %v18987_v60  ;;  %v6534_v56 = vpop.f32.mrf.mxu0 }
 0xb57   : > { %v6330_v36 = vpop.f32.mrf.mxu1 }
 0xb58   : > { %v6638_v10 = vmax.f32 %v16092_v50, %v16095_v59  ;;  %6636 = vmax.xlane.f32.xlu0 %v6635_v8  ;;  %v16104_v40 = vadd.f32 %v6330_v36, %v18985_v23  ;;  %v9555_v61 = vpop.f32.mrf.mxu0 }
 0xb59   : > { %v6332_v18 = vpop.f32.mrf.mxu1 }
 0xb5a   : > { %v16107_v62 = vadd.f32 %v6332_v18, %v18986_v44  ;;  %v6639_v14 = vmax.f32 %v6638_v10, %v16099_v5  ;;  %v16123_v10 = vadd.f32 %v6518_v3, %v18987_v60  ;;  %v6547_v51 = vpop.f32.mrf.mxu0 }
 0xb5b   : > { %v6334_v45 = vpop.f32.mrf.mxu1 }
 0xb5c   : > { %v6642_v38 = vmax.f32 %v16104_v40, %v16107_v62  ;;  %6640 = vmax.xlane.f32.xlu1 %v6639_v14  ;;  %v16116_v55 = vadd.f32 %v6334_v45, %v18985_v23  ;;  %v9556_v48 = vpop.f32.mrf.mxu0 }
 0xb5d   : > { %v6336_v8 = vpop.f32.mrf.mxu1 }
 0xb5e   : > { %v16119_v36 = vadd.f32 %v6336_v8, %v18986_v44  ;;  %v6643_v18 = vmax.f32 %v6642_v38, %v16111_v46  ;;  %v16135_v38 = vadd.f32 %v9547_v1, %v18987_v60 }
 0xb5f   : > { %v6340_v0 = vpop.f32.mrf.mxu1 }
 0xb60   : > { %v6646_v53 = vmax.f32 %v16116_v55, %v16119_v36  ;;  %6644 = vmax.xlane.f32.xlu0 %v6643_v18  ;;  %v16128_v30 = vadd.f32 %v6340_v0, %v18985_v23 }
 0xb61   : > { %v6342_v14 = vpop.f32.mrf.mxu1 }
 0xb62   : > { %v16131_v45 = vadd.f32 %v6342_v14, %v18986_v44  ;;  %v6647_v8 = vmax.f32 %v6646_v53, %v16123_v10  ;;  %v16147_v53 = vadd.f32 %v9548_v43, %v18987_v60 }
 0xb63   : > { %v6344_v9 = vpop.f32.mrf.mxu1 }
 0xb64   : > { %v6650_v3 = vmax.f32 %v16128_v30, %v16131_v45  ;;  %6648 = vmax.xlane.f32.xlu1 %v6647_v8  ;;  %v16140_v29 = vadd.f32 %v6344_v9, %v18985_v23 }
 0xb65   : > { %v6346_v18 = vpop.f32.mrf.mxu1 }
 0xb66   : > { %v16143_v0 = vadd.f32 %v6346_v18, %v18986_v44  ;;  %v6651_v14 = vmax.f32 %v6650_v3, %v16135_v38  ;;  %v16159_v3 = vadd.f32 %v6531_v13, %v18987_v60 }
 0xb67   : > { %v6350_v20 = vpop.f32.mrf.mxu1 }
 0xb68   : > { %v6654_v1 = vmax.f32 %v16140_v29, %v16143_v0  ;;  %6652 = vmax.xlane.f32.xlu0 %v6651_v14  ;;  %v16152_v47 = vadd.f32 %v6350_v20, %v18985_v23 }
 0xb69   : > { %v6352_v8 = vpop.f32.mrf.mxu1 }
 0xb6a   : > { %v16155_v9 = vadd.f32 %v6352_v8, %v18986_v44  ;;  %v6655_v18 = vmax.f32 %v6654_v1, %v16147_v53  ;;  %v16171_v1 = vadd.f32 %v6534_v56, %v18987_v60 }
 0xb6b   : > { %v6354_v19 = vpop.f32.mrf.mxu1 }
 0xb6c   : > { %v6658_v43 = vmax.f32 %v16152_v47, %v16155_v9  ;;  %6656 = vmax.xlane.f32.xlu1 %v6655_v18  ;;  %v16164_v6 = vadd.f32 %v6354_v19, %v18985_v23 }
 0xb6d   : > { %v6356_v14 = vpop.f32.mrf.mxu1 }
 0xb6e   : > { %v16167_v20 = vadd.f32 %v6356_v14, %v18986_v44  ;;  %v6659_v8 = vmax.f32 %v6658_v43, %v16159_v3  ;;  %v16183_v43 = vadd.f32 %v9551_v2, %v18987_v60 }
 0xb6f   : > { %v6360_v57 = vpop.f32.mrf.mxu1 }
 0xb70   : > { %v6662_v13 = vmax.f32 %v16164_v6, %v16167_v20  ;;  %6660 = vmax.xlane.f32.xlu0 %v6659_v8  ;;  %v16176_v32 = vadd.f32 %v6360_v57, %v18985_v23  ;;  %18988 = vst [vmem:[#allocation166_spill] sm:$0xff] %v16183_v43 }
 0xb71   : > { %v6362_v18 = vpop.f32.mrf.mxu1 }
 0xb72   : > { %v16179_v19 = vadd.f32 %v6362_v18, %v18986_v44  ;;  %v6663_v14 = vmax.f32 %v6662_v13, %v16171_v1  ;;  %v16195_v13 = vadd.f32 %v9552_v22, %v18987_v60 }
 0xb73   : > { %v6364_v16 = vpop.f32.mrf.mxu1 }
 0xb74   : > { %v6666_v56 = vmax.f32 %v16176_v32, %v16179_v19  ;;  %6664 = vmax.xlane.f32.xlu1 %v6663_v14  ;;  %v16188_v42 = vadd.f32 %v6364_v16, %v18985_v23  ;;  %18991 = vst [vmem:[#allocation165_spill] sm:$0xff] %v16195_v13 }
 0xb75   : > { %v6366_v8 = vpop.f32.mrf.mxu1 }
 0xb76   : > { %18989 = vst [vmem:[#allocation128_spill] sm:$0xff] %v16188_v42  ;;  %v16191_v57 = vadd.f32 %v6366_v8, %v18986_v44  ;;  %v6667_v18 = vmax.f32 %v6666_v56, %v16183_v43  ;;  %v16207_v56 = vadd.f32 %v6547_v51, %v18987_v60 }
 0xb77   : > { %v6370_v4 = vpop.f32.mrf.mxu1 }
 0xb78   : > { %18990 = vst [vmem:[#allocation86_spill] sm:$0xff] %v16191_v57  ;;  %v6670_v2 = vmax.f32 %v16188_v42, %v16191_v57  ;;  %6668 = vmax.xlane.f32.xlu0 %v6667_v18  ;;  %v16200_v63 = vadd.f32 %v6370_v4, %v18985_v23  ;;  %18994 = vst [vmem:[#allocation169_spill] sm:$0xff] %v16207_v56  ;;  %v6550_v57 = vpop.f32.mrf.mxu0 }
 0xb79   : > { %v6372_v14 = vpop.f32.mrf.mxu1 }
 0xb7a   : > { %18992 = vst [vmem:[#allocation168_spill] sm:$0xff] %v16200_v63  ;;  %v16203_v16 = vadd.f32 %v6372_v14, %v18986_v44  ;;  %v6671_v8 = vmax.f32 %v6670_v2, %v16195_v13  ;;  %v16219_v2 = vadd.f32 %v6550_v57, %v18987_v60 }
 0xb7b   : > { %v6374_v33 = vpop.f32.mrf.mxu1 }
 0xb7c   : > { %18993 = vst [vmem:[#allocation163_spill] sm:$0xff] %v16203_v16  ;;  %v6674_v22 = vmax.f32 %v16200_v63, %v16203_v16  ;;  %6672 = vmax.xlane.f32.xlu1 %v6671_v8  ;;  %v16212_v42 = vadd.f32 %v6374_v33, %v18985_v23  ;;  %18997 = vst [vmem:[#allocation29_spill] sm:$0xff] %v16219_v2  ;;  %v9559_v16 = vpop.f32.mrf.mxu0 }
 0xb7d   : > { %v6376_v18 = vpop.f32.mrf.mxu1 }
 0xb7e   : > { %18995 = vst [vmem:[#allocation167_spill] sm:$0xff] %v16212_v42  ;;  %v16215_v4 = vadd.f32 %v6376_v18, %v18986_v44  ;;  %v6675_v14 = vmax.f32 %v6674_v22, %v16207_v56  ;;  %v16231_v22 = vadd.f32 %v9555_v61, %v18987_v60 }
 0xb7f   : > { %v6380_v43 = vpop.f32.mrf.mxu1 }
 0xb80   : > { %18996 = vst [vmem:[#allocation175_spill] sm:$0xff] %v16215_v4  ;;  %v6678_v51 = vmax.f32 %v16212_v42, %v16215_v4  ;;  %6676 = vmax.xlane.f32.xlu0 %v6675_v14  ;;  %v16224_v63 = vadd.f32 %v6380_v43, %v18985_v23  ;;  %19000 = vst [vmem:[#allocation176_spill] sm:$0xff] %v16231_v22  ;;  %v6563_v4 = vpop.f32.mrf.mxu0 }
 0xb81   : > { %v6382_v8 = vpop.f32.mrf.mxu1 }
 0xb82   : > { %18998 = vst [vmem:[#allocation42_spill] sm:$0xff] %v16224_v63  ;;  %v16227_v33 = vadd.f32 %v6382_v8, %v18986_v44  ;;  %v6679_v18 = vmax.f32 %v6678_v51, %v16219_v2  ;;  %v16243_v51 = vadd.f32 %v9556_v48, %v18987_v60 }
 0xb83   : > { %v6384_v13 = vpop.f32.mrf.mxu1 }
 0xb84   : > { %18999 = vst [vmem:[#allocation87_spill] sm:$0xff] %v16227_v33  ;;  %v6682_v57 = vmax.f32 %v16224_v63, %v16227_v33  ;;  %6680 = vmax.xlane.f32.xlu1 %v6679_v18  ;;  %v16236_v42 = vadd.f32 %v6384_v13, %v18985_v23  ;;  %19003 = vst [vmem:[#allocation7_spill] sm:$0xff] %v16243_v51  ;;  %v9560_v33 = vpop.f32.mrf.mxu0 }
 0xb85   : > { %v6386_v14 = vpop.f32.mrf.mxu1 }
 0xb86   : > { %19001 = vst [vmem:[#allocation49_spill] sm:$0xff] %v16236_v42  ;;  %v16239_v43 = vadd.f32 %v6386_v14, %v18986_v44  ;;  %v6683_v8 = vmax.f32 %v6682_v57, %v16231_v22  ;;  %v16255_v57 = vadd.f32 %v6563_v4, %v18987_v60 }
 0xb87   : > { %v6390_v56 = vpop.f32.mrf.mxu1 }
 0xb88   : > { %19002 = vst [vmem:[#allocation164_spill] sm:$0xff] %v16239_v43  ;;  %v6686_v61 = vmax.f32 %v16236_v42, %v16239_v43  ;;  %6684 = vmax.xlane.f32.xlu0 %v6683_v8  ;;  %v16248_v63 = vadd.f32 %v6390_v56, %v18985_v23  ;;  %19006 = vst [vmem:[#allocation23_spill] sm:$0xff] %v16255_v57  ;;  %v6566_v43 = vpop.f32.mrf.mxu0 }
 0xb89   : > { %v6392_v18 = vpop.f32.mrf.mxu1 }
 0xb8a   : > { %19004 = vst [vmem:[#allocation9_spill] sm:$0xff] %v16248_v63  ;;  %v16251_v13 = vadd.f32 %v6392_v18, %v18986_v44  ;;  %v6687_v14 = vmax.f32 %v6686_v61, %v16243_v51  ;;  %v16267_v61 = vadd.f32 %v6566_v43, %v18987_v60 }
 0xb8b   : > { %v6394_v2 = vpop.f32.mrf.mxu1 }
 0xb8c   : > { %19005 = vst [vmem:[#allocation15_spill] sm:$0xff] %v16251_v13  ;;  %v6690_v48 = vmax.f32 %v16248_v63, %v16251_v13  ;;  %6688 = vmax.xlane.f32.xlu1 %v6687_v14  ;;  %v16260_v42 = vadd.f32 %v6394_v2, %v18985_v23  ;;  %19009 = vst [vmem:[#allocation10_spill] sm:$0xff] %v16267_v61  ;;  %v9563_v13 = vpop.f32.mrf.mxu0 }
 0xb8d   : > { %v6396_v8 = vpop.f32.mrf.mxu1 }
 0xb8e   : > { %19007 = vst [vmem:[#allocation27_spill] sm:$0xff] %v16260_v42  ;;  %v16263_v56 = vadd.f32 %v6396_v8, %v18986_v44  ;;  %v6691_v18 = vmax.f32 %v6690_v48, %v16255_v57  ;;  %v16279_v48 = vadd.f32 %v9559_v16, %v18987_v60  ;;  %v6579_v57 = vpop.f32.mrf.mxu0 }
 0xb8f   : > { %v6400_v22 = vpop.f32.mrf.mxu1 }
 0xb90   : > { %19008 = vst [vmem:[#allocation30_spill] sm:$0xff] %v16263_v56  ;;  %v6694_v4 = vmax.f32 %v16260_v42, %v16263_v56  ;;  %6692 = vmax.xlane.f32.xlu0 %v6691_v18  ;;  %v16272_v63 = vadd.f32 %v6400_v22, %v18985_v23  ;;  %19012 = vst [vmem:[#allocation63_spill] sm:$0xff] %v16279_v48 }
 0xb91   : > { %v6402_v14 = vpop.f32.mrf.mxu1 }
 0xb92   : > { %19010 = vst [vmem:[#allocation126_spill] sm:$0xff] %v16272_v63  ;;  %v16275_v2 = vadd.f32 %v6402_v14, %v18986_v44  ;;  %v6695_v8 = vmax.f32 %v6694_v4, %v16267_v61  ;;  %v16291_v4 = vadd.f32 %v9560_v33, %v18987_v60 }
 0xb93   : > { %v6404_v51 = vpop.f32.mrf.mxu1 }
 0xb94   : > { %19011 = vst [vmem:[#allocation35_spill] sm:$0xff] %v16275_v2  ;;  %v6698_v43 = vmax.f32 %v16272_v63, %v16275_v2  ;;  %6696 = vmax.xlane.f32.xlu1 %v6695_v8  ;;  %v16284_v56 = vadd.f32 %v6404_v51, %v18985_v23  ;;  %19015 = vst [vmem:[#allocation40_spill] sm:$0xff] %v16291_v4  ;;  %v9564_v2 = vpop.f32.mrf.mxu0 }
 0xb95   : > { %v6406_v18 = vpop.f32.mrf.mxu1 }
 0xb96   : > { %19013 = vst [vmem:[#allocation62_spill] sm:$0xff] %v16284_v56  ;;  %v16287_v22 = vadd.f32 %v6406_v18, %v18986_v44  ;;  %v6699_v14 = vmax.f32 %v6698_v43, %v16279_v48  ;;  %v16303_v43 = vadd.f32 %v6579_v57, %v18987_v60  ;;  %v6582_v48 = vpop.f32.mrf.mxu0 }
 0xb97   : > { %v6410_v42 = vpop.f32.mrf.mxu1 }
 0xb98   : > { %19014 = vst [vmem:[#allocation37_spill] sm:$0xff] %v16287_v22  ;;  %v6702_v16 = vmax.f32 %v16284_v56, %v16287_v22  ;;  %6700 = vmax.xlane.f32.xlu0 %v6699_v14  ;;  %v16296_v63 = vadd.f32 %v6410_v42, %v18985_v23  ;;  %19018 = vst [vmem:[#allocation43_spill] sm:$0xff] %v16303_v43 }
 0xb99   : > { %v6412_v8 = vpop.f32.mrf.mxu1 }
 0xb9a   : > { %19016 = vst [vmem:[#allocation64_spill] sm:$0xff] %v16296_v63  ;;  %v16299_v51 = vadd.f32 %v6412_v8, %v18986_v44  ;;  %v6703_v18 = vmax.f32 %v6702_v16, %v16291_v4  ;;  %v16315_v16 = vadd.f32 %v6582_v48, %v18987_v60 }
 0xb9b   : > { %v6414_v61 = vpop.f32.mrf.mxu1 }
 0xb9c   : > { %19017 = vst [vmem:[#allocation61_spill] sm:$0xff] %v16299_v51  ;;  %v6706_v33 = vmax.f32 %v16296_v63, %v16299_v51  ;;  %6704 = vmax.xlane.f32.xlu1 %v6703_v18  ;;  %v16308_v22 = vadd.f32 %v6414_v61, %v18985_v23  ;;  %19021 = vst [vmem:[#allocation6_spill] sm:$0xff] %v16315_v16  ;;  %v9567_v51 = vpop.f32.mrf.mxu0 }
 0xb9d   : > { %v6416_v14 = vpop.f32.mrf.mxu1 }
 0xb9e   : > { %19019 = vst [vmem:[#allocation47_spill] sm:$0xff] %v16308_v22  ;;  %v16311_v42 = vadd.f32 %v6416_v14, %v18986_v44  ;;  %v6707_v8 = vmax.f32 %v6706_v33, %v16303_v43  ;;  %v16327_v33 = vadd.f32 %v9563_v13, %v18987_v60 }
 0xb9f   : > { %v6420_v56 = vpop.f32.mrf.mxu1 }
 0xba0   : > { %19020 = vst [vmem:[#allocation46_spill] sm:$0xff] %v16311_v42  ;;  %v6710_v57 = vmax.f32 %v16308_v22, %v16311_v42  ;;  %6708 = vmax.xlane.f32.xlu1 %v6707_v8  ;;  %v16320_v63 = vadd.f32 %v6420_v56, %v18985_v23  ;;  %19024 = vst [vmem:[#allocation70_spill] sm:$0xff] %v16327_v33  ;;  %v6595_v42 = vpop.f32.mrf.mxu0 }
 0xba1   : > { %v6422_v18 = vpop.f32.mrf.mxu1 }
 0xba2   : > { %19022 = vst [vmem:[#allocation68_spill] sm:$0xff] %v16320_v63  ;;  %v16323_v61 = vadd.f32 %v6422_v18, %v18986_v44  ;;  %v6711_v14 = vmax.f32 %v6710_v57, %v16315_v16  ;;  %v16339_v57 = vadd.f32 %v9564_v2, %v18987_v60 }
 0xba3   : > { %v6424_v4 = vpop.f32.mrf.mxu1 }
 0xba4   : > { %19023 = vst [vmem:[#allocation74_spill] sm:$0xff] %v16323_v61  ;;  %v6714_v48 = vmax.f32 %v16320_v63, %v16323_v61  ;;  %6712 = vmax.xlane.f32.xlu0 %v6711_v14  ;;  %v16332_v22 = vadd.f32 %v6424_v4, %v18985_v23  ;;  %19027 = vst [vmem:[#allocation8_spill] sm:$0xff] %v16339_v57  ;;  %v9568_v61 = vpop.f32.mrf.mxu0 }
 0xba5   : > { %v6426_v8 = vpop.f32.mrf.mxu1 }
 0xba6   : > { %19025 = vst [vmem:[#allocation48_spill] sm:$0xff] %v16332_v22  ;;  %v16335_v56 = vadd.f32 %v6426_v8, %v18986_v44  ;;  %v6715_v18 = vmax.f32 %v6714_v48, %v16327_v33  ;;  %v16351_v48 = vadd.f32 %v6595_v42, %v18987_v60 }
 0xba7   : > { %v6430_v43 = vpop.f32.mrf.mxu1 }
 0xba8   : > { %19026 = vst [vmem:[#allocation24_spill] sm:$0xff] %v16335_v56  ;;  %v6718_v13 = vmax.f32 %v16332_v22, %v16335_v56  ;;  %6716 = vmax.xlane.f32.xlu1 %v6715_v18  ;;  %v16344_v63 = vadd.f32 %v6430_v43, %v18985_v23  ;;  %19030 = vst [vmem:[#allocation51_spill] sm:$0xff] %v16351_v48  ;;  %v6598_v56 = vpop.f32.mrf.mxu0 }
 0xba9   : > { %v6432_v14 = vpop.f32.mrf.mxu1 }
 0xbaa   : > { %19028 = vst [vmem:[#allocation14_spill] sm:$0xff] %v16344_v63  ;;  %v16347_v4 = vadd.f32 %v6432_v14, %v18986_v44  ;;  %v6719_v8 = vmax.f32 %v6718_v13, %v16339_v57  ;;  %v16363_v13 = vadd.f32 %v6598_v56, %v18987_v60 }
 0xbab   : > { %v6434_v16 = vpop.f32.mrf.mxu1 }
 0xbac   : > { %19029 = vst [vmem:[#allocation69_spill] sm:$0xff] %v16347_v4  ;;  %v6722_v2 = vmax.f32 %v16344_v63, %v16347_v4  ;;  %6720 = vmax.xlane.f32.xlu0 %v6719_v8  ;;  %v16356_v22 = vadd.f32 %v6434_v16, %v18985_v23  ;;  %19033 = vst [vmem:[#allocation71_spill] sm:$0xff] %v16363_v13 }
 0xbad   : > { %v6436_v18 = vpop.f32.mrf.mxu1 }
 0xbae   : > { %19031 = vst [vmem:[#allocation12_spill] sm:$0xff] %v16356_v22  ;;  %v16359_v43 = vadd.f32 %v6436_v18, %v18986_v44  ;;  %v6723_v14 = vmax.f32 %v6722_v2, %v16351_v48  ;;  %v16375_v2 = vadd.f32 %v9567_v51, %v18987_v60 }
 0xbaf   : > { %v6440_v33 = vpop.f32.mrf.mxu1 }
 0xbb0   : > { %19032 = vst [vmem:[#allocation65_spill] sm:$0xff] %v16359_v43  ;;  %v6726_v42 = vmax.f32 %v16356_v22, %v16359_v43  ;;  %6724 = vmax.xlane.f32.xlu1 %v6723_v14  ;;  %v16368_v8 = vadd.f32 %v6440_v33, %v18985_v23  ;;  %19036 = vst [vmem:[#allocation66_spill] sm:$0xff] %v16375_v2  ;;  %v16387_v43 = vadd.f32 %v9568_v61, %v18987_v60  ;;  %v19059_v22 = vld [vmem:[#allocation7_spill] sm:$0xff] }
 0xbb1   : > { %v6442_v4 = vpop.f32.mrf.mxu1 }
 0xbb2   : > { %19034 = vst [vmem:[#allocation20_spill] sm:$0xff] %v16368_v8  ;;  %v16371_v16 = vadd.f32 %v6442_v4, %v18986_v44  ;;  %v6727_v18 = vmax.f32 %v6726_v42, %v16363_v13  ;;  %19039 = vst [vmem:[#allocation18_spill] sm:$0xff] %v16387_v43 }
 0xbb3   : > { %v6444_v63 = vpop.f32.mrf.mxu1 }
 0xbb4   : > { %19035 = vst [vmem:[#allocation17_spill] sm:$0xff] %v16371_v16  ;;  %v6730_v56 = vmax.f32 %v16368_v8, %v16371_v16  ;;  %6728 = vmax.xlane.f32.xlu0 %v6727_v18  ;;  %v16380_v14 = vadd.f32 %v6444_v63, %v18985_v23 }
 0xbb5   : > { %v6446_v48 = vpop.f32.mrf.mxu1 }
 0xbb6   : > { %19037 = vst [vmem:[#allocation52_spill] sm:$0xff] %v16380_v14  ;;  %v16383_v33 = vadd.f32 %v6446_v48, %v18986_v44  ;;  %v6731_v4 = vmax.f32 %v6730_v56, %v16375_v2 }
 0xbb8   : > { %19038 = vst [vmem:[#allocation11_spill] sm:$0xff] %v16383_v33  ;;  %v6734_v51 = vmax.f32 %v16380_v14, %v16383_v33  ;;  %6732 = vmax.xlane.f32.xlu1 %v6731_v4 }
 0xbba   : > { %v6735_v42 = vmax.f32 %v6734_v51, %v16387_v43 }
 0xbbc   : > { %6736 = vmax.xlane.f32.xlu0 %v6735_v42 }
 0xbc9   : > { %v6613_v18 = vpop.xlane.xlu0 %6612 }
 0xbca   : > { %v6738_v13 = vsub.f32 %v16007_v27, %v6613_v18  ;;  %v6739_v63 = vsub.f32 %v16010_v41, %v6613_v18  ;;  %v6740_v23 = vsub.f32 %v16015_v49, %v6613_v18 }
 0xbcc   : > { %v6834_v44 = vmul.f32 1.442695, %v6738_v13  ;;  %v6836_v48 = vmul.f32 1.442695, %v6739_v63  ;;  %v6838_v56 = vmul.f32 1.442695, %v6740_v23 }
 0xbcd   : > { %v6617_v2 = vpop.xlane.xlu1 %6616 }
 0xbce   : > { %10587 = vpow2.f32 %v6834_v44  ;;  %v6741_v60 = vsub.f32 %v16021_v7, %v6617_v2  ;;  %v6742_v61 = vsub.f32 %v16024_v21, %v6617_v2  ;;  %v6743_v4 = vsub.f32 %v16027_v12, %v6617_v2 }
 0xbcf   : > { %10589 = vpow2.f32 %v6836_v48 }
 0xbd0   : > { %v6840_v51 = vmul.f32 1.442695, %v6741_v60  ;;  %v6842_v42 = vmul.f32 1.442695, %v6742_v61  ;;  %10591 = vpow2.f32 %v6838_v56  ;;  %v6844_v27 = vmul.f32 1.442695, %v6743_v4 }
 0xbd1   : > { %v6621_v43 = vpop.xlane.xlu0 %6620 }
 0xbd2   : > { %10593 = vpow2.f32 %v6840_v51  ;;  %v6744_v41 = vsub.f32 %v16033_v34, %v6621_v43  ;;  %v6745_v49 = vsub.f32 %v16036_v37, %v6621_v43  ;;  %v6746_v13 = vsub.f32 %v16039_v26, %v6621_v43 }
 0xbd3   : > { %10595 = vpow2.f32 %v6842_v42 }
 0xbd4   : > { %v6846_v18 = vmul.f32 1.442695, %v6744_v41  ;;  %v6848_v7 = vmul.f32 1.442695, %v6745_v49  ;;  %10597 = vpow2.f32 %v6844_v27  ;;  %v6850_v21 = vmul.f32 1.442695, %v6746_v13 }
 0xbd5   : > { %v6625_v63 = vpop.xlane.xlu0 %6624 }
 0xbd6   : > { %10599 = vpow2.f32 %v6846_v18  ;;  %v6747_v12 = vsub.f32 %v16044_v25, %v6625_v63  ;;  %v6748_v2 = vsub.f32 %v16047_v28, %v6625_v63  ;;  %v6749_v23 = vsub.f32 %v16051_v24, %v6625_v63 }
 0xbd7   : > { %10601 = vpow2.f32 %v6848_v7 }
 0xbd8   : > { %v6852_v44 = vmul.f32 1.442695, %v6747_v12  ;;  %v6854_v34 = vmul.f32 1.442695, %v6748_v2  ;;  %10603 = vpow2.f32 %v6850_v21  ;;  %v6856_v37 = vmul.f32 1.442695, %v6749_v23 }
 0xbd9   : > { %v6629_v48 = vpop.xlane.xlu0 %6628 }
 0xbda   : > { %10605 = vpow2.f32 %v6852_v44  ;;  %v6750_v26 = vsub.f32 %v16056_v54, %v6629_v48  ;;  %v6751_v43 = vsub.f32 %v16059_v15, %v6629_v48  ;;  %v6752_v56 = vsub.f32 %v16063_v17, %v6629_v48 }
 0xbdb   : > { %v16407_v60 = vpop.eup %10587  ;;  %10607 = vpow2.f32 %v6854_v34 }
 0xbdc   : > { %v16409_v25 = vpop.eup %10589  ;;  %v6858_v28 = vmul.f32 1.442695, %v6750_v26  ;;  %v6860_v24 = vmul.f32 1.442695, %v6751_v43  ;;  %10609 = vpow2.f32 %v6856_v37  ;;  %v6862_v61 = vmul.f32 1.442695, %v6752_v56 }
 0xbdd   : > { %v6633_v4 = vpop.xlane.xlu1 %6632  ;;  %v7026_v51 = vadd.f32 %v16409_v25, %v16407_v60  ;;  %v16413_v42 = vpop.eup %10591 }
 0xbde   : > { %10611 = vpow2.f32 %v6858_v28  ;;  %v6753_v54 = vsub.f32 %v16068_v31, %v6633_v4  ;;  %v6754_v15 = vsub.f32 %v16071_v39, %v6633_v4  ;;  %v6755_v17 = vsub.f32 %v16075_v52, %v6633_v4 }
 0xbdf   : > { %v16418_v27 = vpop.eup %10593  ;;  %10613 = vpow2.f32 %v6860_v24  ;;  %v7027_v41 = vadd.f32 %v16413_v42, %v7026_v51 }
 0xbe0   : > { %v16421_v49 = vpop.eup %10595  ;;  %v6864_v13 = vmul.f32 1.442695, %v6753_v54  ;;  %v6866_v18 = vmul.f32 1.442695, %v6754_v15  ;;  %10615 = vpow2.f32 %v6862_v61  ;;  %v6868_v7 = vmul.f32 1.442695, %v6755_v17 }
 0xbe1   : > { %7028 = vadd.xlane.f32.xlu1 %v7027_v41  ;;  %v6637_v21 = vpop.xlane.xlu0 %6636  ;;  %v7030_v31 = vadd.f32 %v16421_v49, %v16418_v27  ;;  %v16425_v63 = vpop.eup %10597 }
 0xbe2   : > { %10617 = vpow2.f32 %v6864_v13  ;;  %v6756_v39 = vsub.f32 %v16080_v35, %v6637_v21  ;;  %v6757_v52 = vsub.f32 %v16083_v11, %v6637_v21  ;;  %v6758_v12 = vsub.f32 %v16087_v58, %v6637_v21 }
 0xbe3   : > { %v16430_v2 = vpop.eup %10599  ;;  %10619 = vpow2.f32 %v6866_v18  ;;  %v7031_v23 = vadd.f32 %v16425_v63, %v7030_v31 }
 0xbe4   : > { %v16433_v44 = vpop.eup %10601  ;;  %v6870_v34 = vmul.f32 1.442695, %v6756_v39  ;;  %v6872_v37 = vmul.f32 1.442695, %v6757_v52  ;;  %10621 = vpow2.f32 %v6868_v7  ;;  %v6874_v48 = vmul.f32 1.442695, %v6758_v12 }
 0xbe5   : > { %7032 = vadd.xlane.f32.xlu1 %v7031_v23  ;;  %v6641_v26 = vpop.xlane.xlu1 %6640  ;;  %v7034_v35 = vadd.f32 %v16433_v44, %v16430_v2  ;;  %v16437_v43 = vpop.eup %10603 }
 0xbe6   : > { %10623 = vpow2.f32 %v6870_v34  ;;  %v6759_v11 = vsub.f32 %v16092_v50, %v6641_v26  ;;  %v6760_v58 = vsub.f32 %v16095_v59, %v6641_v26  ;;  %v6761_v56 = vsub.f32 %v16099_v5, %v6641_v26 }
 0xbe7   : > { %v16442_v28 = vpop.eup %10605  ;;  %10625 = vpow2.f32 %v6872_v37  ;;  %v7035_v24 = vadd.f32 %v16437_v43, %v7034_v35 }
 0xbe8   : > { %v16445_v61 = vpop.eup %10607  ;;  %v6876_v4 = vmul.f32 1.442695, %v6759_v11  ;;  %v6878_v51 = vmul.f32 1.442695, %v6760_v58  ;;  %10627 = vpow2.f32 %v6874_v48  ;;  %v6880_v54 = vmul.f32 1.442695, %v6761_v56 }
 0xbe9   : > { %7036 = vadd.xlane.f32.xlu1 %v7035_v24  ;;  %v6645_v15 = vpop.xlane.xlu0 %6644  ;;  %v7038_v50 = vadd.f32 %v16445_v61, %v16442_v28  ;;  %v16449_v17 = vpop.eup %10609 }
 0xbea   : > { %10629 = vpow2.f32 %v6876_v4  ;;  %v6762_v59 = vsub.f32 %v16104_v40, %v6645_v15  ;;  %v6763_v5 = vsub.f32 %v16107_v62, %v6645_v15  ;;  %v6764_v41 = vsub.f32 %v16111_v46, %v6645_v15 }
 0xbeb   : > { %v16454_v13 = vpop.eup %10611  ;;  %10631 = vpow2.f32 %v6878_v51  ;;  %v7039_v18 = vadd.f32 %v16449_v17, %v7038_v50 }
 0xbec   : > { %v16457_v7 = vpop.eup %10613  ;;  %v6882_v21 = vmul.f32 1.442695, %v6762_v59  ;;  %v6884_v31 = vmul.f32 1.442695, %v6763_v5  ;;  %10633 = vpow2.f32 %v6880_v54  ;;  %v6886_v39 = vmul.f32 1.442695, %v6764_v41 }
 0xbed   : > { %7040 = vadd.xlane.f32.xlu0 %v7039_v18  ;;  %v6649_v52 = vpop.xlane.xlu1 %6648  ;;  %v7042_v40 = vadd.f32 %v16457_v7, %v16454_v13  ;;  %v16461_v12 = vpop.eup %10615 }
 0xbee   : > { %10635 = vpow2.f32 %v6882_v21  ;;  %v6765_v62 = vsub.f32 %v16116_v55, %v6649_v52  ;;  %v6766_v46 = vsub.f32 %v16119_v36, %v6649_v52  ;;  %v6767_v23 = vsub.f32 %v16123_v10, %v6649_v52 }
 0xbef   : > { %v16466_v34 = vpop.eup %10617  ;;  %10637 = vpow2.f32 %v6884_v31  ;;  %v7043_v37 = vadd.f32 %v16461_v12, %v7042_v40 }
 0xbf0   : > { %v16469_v48 = vpop.eup %10619  ;;  %v6888_v26 = vmul.f32 1.442695, %v6765_v62  ;;  %v6890_v35 = vmul.f32 1.442695, %v6766_v46  ;;  %10639 = vpow2.f32 %v6886_v39  ;;  %v6892_v11 = vmul.f32 1.442695, %v6767_v23 }
 0xbf1   : > { %7044 = vadd.xlane.f32.xlu1 %v7043_v37  ;;  %v6653_v58 = vpop.xlane.xlu0 %6652  ;;  %v7046_v55 = vadd.f32 %v16469_v48, %v16466_v34  ;;  %v16473_v56 = vpop.eup %10621 }
 0xbf2   : > { %10641 = vpow2.f32 %v6888_v26  ;;  %v6768_v36 = vsub.f32 %v16128_v30, %v6653_v58  ;;  %v6769_v10 = vsub.f32 %v16131_v45, %v6653_v58  ;;  %v6770_v24 = vsub.f32 %v16135_v38, %v6653_v58 }
 0xbf3   : > { %v16478_v4 = vpop.eup %10623  ;;  %10643 = vpow2.f32 %v6890_v35  ;;  %v7047_v51 = vadd.f32 %v16473_v56, %v7046_v55 }
 0xbf4   : > { %v16481_v54 = vpop.eup %10625  ;;  %v6894_v15 = vmul.f32 1.442695, %v6768_v36  ;;  %v6896_v50 = vmul.f32 1.442695, %v6769_v10  ;;  %10645 = vpow2.f32 %v6892_v11  ;;  %v6898_v59 = vmul.f32 1.442695, %v6770_v24 }
 0xbf5   : > { %7048 = vadd.xlane.f32.xlu0 %v7047_v51  ;;  %v6657_v5 = vpop.xlane.xlu1 %6656  ;;  %v7050_v30 = vadd.f32 %v16481_v54, %v16478_v4  ;;  %v16485_v41 = vpop.eup %10627 }
 0xbf6   : > { %10647 = vpow2.f32 %v6894_v15  ;;  %v6771_v45 = vsub.f32 %v16140_v29, %v6657_v5  ;;  %v6772_v38 = vsub.f32 %v16143_v0, %v6657_v5  ;;  %v6773_v18 = vsub.f32 %v16147_v53, %v6657_v5 }
 0xbf7   : > { %v16490_v21 = vpop.eup %10629  ;;  %10649 = vpow2.f32 %v6896_v50  ;;  %v7051_v31 = vadd.f32 %v16485_v41, %v7050_v30 }
 0xbf8   : > { %v16493_v39 = vpop.eup %10631  ;;  %v6900_v52 = vmul.f32 1.442695, %v6771_v45  ;;  %v6902_v40 = vmul.f32 1.442695, %v6772_v38  ;;  %10651 = vpow2.f32 %v6898_v59  ;;  %v6904_v62 = vmul.f32 1.442695, %v6773_v18 }
 0xbf9   : > { %7052 = vadd.xlane.f32.xlu1 %v7051_v31  ;;  %v6661_v46 = vpop.xlane.xlu0 %6660  ;;  %v7054_v29 = vadd.f32 %v16493_v39, %v16490_v21  ;;  %v16497_v23 = vpop.eup %10633  ;;  %v19040_v31 = vld [vmem:[#allocation166_spill] sm:$0xff] }
 0xbfa   : > { %10653 = vpow2.f32 %v6900_v52  ;;  %v6774_v0 = vsub.f32 %v16152_v47, %v6661_v46  ;;  %v6775_v53 = vsub.f32 %v16155_v9, %v6661_v46  ;;  %v6776_v37 = vsub.f32 %v16159_v3, %v6661_v46 }
 0xbfb   : > { %v16502_v26 = vpop.eup %10635  ;;  %10655 = vpow2.f32 %v6902_v40  ;;  %v7055_v35 = vadd.f32 %v16497_v23, %v7054_v29 }
 0xbfc   : > { %v16505_v11 = vpop.eup %10637  ;;  %v6906_v58 = vmul.f32 1.442695, %v6774_v0  ;;  %v6908_v55 = vmul.f32 1.442695, %v6775_v53  ;;  %10657 = vpow2.f32 %v6904_v62  ;;  %v6910_v36 = vmul.f32 1.442695, %v6776_v37 }
 0xbfd   : > { %7056 = vadd.xlane.f32.xlu0 %v7055_v35  ;;  %v6665_v10 = vpop.xlane.xlu1 %6664  ;;  %v7058_v47 = vadd.f32 %v16505_v11, %v16502_v26  ;;  %v16509_v24 = vpop.eup %10639 }
 0xbfe   : > { %10659 = vpow2.f32 %v6906_v58  ;;  %v6777_v9 = vsub.f32 %v16164_v6, %v6665_v10  ;;  %v6778_v3 = vsub.f32 %v16167_v20, %v6665_v10  ;;  %v6779_v51 = vsub.f32 %v16171_v1, %v6665_v10  ;;  %v19043_v10 = vld [vmem:[#allocation165_spill] sm:$0xff] }
 0xbff   : > { %v16514_v15 = vpop.eup %10641  ;;  %10661 = vpow2.f32 %v6908_v55  ;;  %v7059_v50 = vadd.f32 %v16509_v24, %v7058_v47  ;;  %v19042_v55 = vld [vmem:[#allocation86_spill] sm:$0xff] }
 0xc00   : > { %v16517_v59 = vpop.eup %10643  ;;  %v6912_v5 = vmul.f32 1.442695, %v6777_v9  ;;  %v6914_v30 = vmul.f32 1.442695, %v6778_v3  ;;  %10663 = vpow2.f32 %v6910_v36  ;;  %v6916_v45 = vmul.f32 1.442695, %v6779_v51 }
 0xc01   : > { %7060 = vadd.xlane.f32.xlu1 %v7059_v50  ;;  %v6669_v38 = vpop.xlane.xlu0 %6668  ;;  %v7062_v6 = vadd.f32 %v16517_v59, %v16514_v15  ;;  %v16521_v18 = vpop.eup %10645 }
 0xc02   : > { %10665 = vpow2.f32 %v6912_v5  ;;  %v6780_v20 = vsub.f32 %v16176_v32, %v6669_v38  ;;  %v6781_v1 = vsub.f32 %v16179_v19, %v6669_v38  ;;  %v6782_v52 = vsub.f32 %v19040_v31, %v6669_v38  ;;  %v19041_v19 = vld [vmem:[#allocation128_spill] sm:$0xff]  ;;  %v19045_v31 = vld [vmem:[#allocation163_spill] sm:$0xff] }
 0xc03   : > { %v16526_v40 = vpop.eup %10647  ;;  %10667 = vpow2.f32 %v6914_v30  ;;  %v7063_v62 = vadd.f32 %v16521_v18, %v7062_v6 }
 0xc04   : > { %v16529_v46 = vpop.eup %10649  ;;  %v6918_v29 = vmul.f32 1.442695, %v6780_v20  ;;  %v6920_v0 = vmul.f32 1.442695, %v6781_v1  ;;  %10669 = vpow2.f32 %v6916_v45  ;;  %v6922_v53 = vmul.f32 1.442695, %v6782_v52 }
 0xc05   : > { %7064 = vadd.xlane.f32.xlu1 %v7063_v62  ;;  %v6673_v37 = vpop.xlane.xlu1 %6672  ;;  %v7066_v32 = vadd.f32 %v16529_v46, %v16526_v40  ;;  %v16533_v35 = vpop.eup %10651  ;;  %v19044_v20 = vld [vmem:[#allocation168_spill] sm:$0xff]  ;;  %v19046_v62 = vld [vmem:[#allocation169_spill] sm:$0xff] }
 0xc06   : > { %10671 = vpow2.f32 %v6918_v29  ;;  %v6783_v58 = vsub.f32 %v19041_v19, %v6673_v37  ;;  %v6784_v36 = vsub.f32 %v19042_v55, %v6673_v37  ;;  %v6785_v47 = vsub.f32 %v19043_v10, %v6673_v37 }
 0xc07   : > { %v16538_v9 = vpop.eup %10653  ;;  %10673 = vpow2.f32 %v6920_v0  ;;  %v7067_v3 = vadd.f32 %v16533_v35, %v7066_v32 }
 0xc08   : > { %v16541_v51 = vpop.eup %10655  ;;  %v6924_v50 = vmul.f32 1.442695, %v6783_v58  ;;  %v6926_v5 = vmul.f32 1.442695, %v6784_v36  ;;  %10675 = vpow2.f32 %v6922_v53  ;;  %v6928_v30 = vmul.f32 1.442695, %v6785_v47 }
 0xc09   : > { %7068 = vadd.xlane.f32.xlu1 %v7067_v3  ;;  %v6677_v45 = vpop.xlane.xlu0 %6676  ;;  %v7070_v38 = vadd.f32 %v16541_v51, %v16538_v9  ;;  %v16545_v6 = vpop.eup %10657  ;;  %v19047_v47 = vld [vmem:[#allocation167_spill] sm:$0xff] }
 0xc0a   : > { %10677 = vpow2.f32 %v6924_v50  ;;  %v6786_v1 = vsub.f32 %v19044_v20, %v6677_v45  ;;  %v6787_v52 = vsub.f32 %v19045_v31, %v6677_v45  ;;  %v6788_v29 = vsub.f32 %v19046_v62, %v6677_v45  ;;  %v19048_v50 = vld [vmem:[#allocation175_spill] sm:$0xff]  ;;  %v19049_v45 = vld [vmem:[#allocation29_spill] sm:$0xff] }
 0xc0b   : > { %v16550_v0 = vpop.eup %10659  ;;  %10679 = vpow2.f32 %v6926_v5  ;;  %v7071_v53 = vadd.f32 %v16545_v6, %v7070_v38 }
 0xc0c   : > { %v16553_v37 = vpop.eup %10661  ;;  %v6930_v32 = vmul.f32 1.442695, %v6786_v1  ;;  %v6932_v19 = vmul.f32 1.442695, %v6787_v52  ;;  %10681 = vpow2.f32 %v6928_v30  ;;  %v6934_v58 = vmul.f32 1.442695, %v6788_v29 }
 0xc0d   : > { %7072 = vadd.xlane.f32.xlu1 %v7071_v53  ;;  %v6681_v55 = vpop.xlane.xlu1 %6680  ;;  %v7074_v36 = vadd.f32 %v16553_v37, %v16550_v0  ;;  %v16557_v10 = vpop.eup %10663 }
 0xc0e   : > { %10683 = vpow2.f32 %v6930_v32  ;;  %v6789_v3 = vsub.f32 %v19047_v47, %v6681_v55  ;;  %v6790_v5 = vsub.f32 %v19048_v50, %v6681_v55  ;;  %v6791_v38 = vsub.f32 %v19049_v45, %v6681_v55  ;;  %v19051_v55 = vld [vmem:[#allocation42_spill] sm:$0xff]  ;;  %v19052_v50 = vld [vmem:[#allocation87_spill] sm:$0xff]  ;;  %v19053_v45 = vld [vmem:[#allocation176_spill] sm:$0xff] }
 0xc0f   : > { %v16562_v20 = vpop.eup %10665  ;;  %10685 = vpow2.f32 %v6932_v19  ;;  %v7075_v30 = vadd.f32 %v16557_v10, %v7074_v36 }
 0xc10   : > { %v16565_v1 = vpop.eup %10667  ;;  %v6936_v31 = vmul.f32 1.442695, %v6789_v3  ;;  %v6938_v52 = vmul.f32 1.442695, %v6790_v5  ;;  %10687 = vpow2.f32 %v6934_v58  ;;  %v6940_v62 = vmul.f32 1.442695, %v6791_v38 }
 0xc11   : > { %7076 = vadd.xlane.f32.xlu1 %v7075_v30  ;;  %v6685_v29 = vpop.xlane.xlu0 %6684  ;;  %v7078_v53 = vadd.f32 %v16565_v1, %v16562_v20  ;;  %v16569_v32 = vpop.eup %10669 }
 0xc12   : > { %19050 = vst [vmem:[#allocation26_spill] sm:$0xff] %v16569_v32  ;;  %10689 = vpow2.f32 %v6936_v31  ;;  %v6792_v47 = vsub.f32 %v19051_v55, %v6685_v29  ;;  %v6793_v19 = vsub.f32 %v19052_v50, %v6685_v29  ;;  %v6794_v36 = vsub.f32 %v19053_v45, %v6685_v29  ;;  %v19057_v29 = vld [vmem:[#allocation49_spill] sm:$0xff]  ;;  %v19058_v45 = vld [vmem:[#allocation164_spill] sm:$0xff] }
 0xc13   : > { %v16574_v33 = vpop.eup %10671  ;;  %10691 = vpow2.f32 %v6938_v52  ;;  %v7079_v58 = vadd.f32 %v16569_v32, %v7078_v53 }
 0xc14   : > { %19054 = vst [vmem:[#allocation72_spill] sm:$0xff] %v16574_v33  ;;  %v16577_v3 = vpop.eup %10673  ;;  %v6942_v5 = vmul.f32 1.442695, %v6792_v47  ;;  %v6944_v38 = vmul.f32 1.442695, %v6793_v19  ;;  %10693 = vpow2.f32 %v6940_v62 }
 0xc15   : > { %19055 = vst [vmem:[#allocation73_spill] sm:$0xff] %v16577_v3  ;;  %v6946_v30 = vmul.f32 1.442695, %v6794_v36  ;;  %7080 = vadd.xlane.f32.xlu0 %v7079_v58  ;;  %v6689_v14 = vpop.xlane.xlu1 %6688  ;;  %v7082_v31 = vadd.f32 %v16577_v3, %v16574_v33  ;;  %v16581_v55 = vpop.eup %10675 }
 0xc16   : > { %19056 = vst [vmem:[#allocation67_spill] sm:$0xff] %v16581_v55  ;;  %10695 = vpow2.f32 %v6942_v5  ;;  %v6795_v50 = vsub.f32 %v19057_v29, %v6689_v14  ;;  %v6796_v52 = vsub.f32 %v19058_v45, %v6689_v14  ;;  %v6797_v53 = vsub.f32 %v19059_v22, %v6689_v14 }
 0xc17   : > { %v16586_v16 = vpop.eup %10677  ;;  %10697 = vpow2.f32 %v6944_v38  ;;  %v7083_v62 = vadd.f32 %v16581_v55, %v7082_v31 }
 0xc18   : > { %19060 = vst [vmem:[#allocation22_spill] sm:$0xff] %v16586_v16  ;;  %v16589_v47 = vpop.eup %10679  ;;  %v6948_v19 = vmul.f32 1.442695, %v6795_v50  ;;  %v6950_v36 = vmul.f32 1.442695, %v6796_v52  ;;  %10699 = vpow2.f32 %v6946_v30 }
 0xc19   : > { %19061 = vst [vmem:[#allocation28_spill] sm:$0xff] %v16589_v47  ;;  %v6952_v58 = vmul.f32 1.442695, %v6797_v53  ;;  %7084 = vadd.xlane.f32.xlu1 %v7083_v62  ;;  %v7086_v5 = vadd.f32 %v16589_v47, %v16586_v16  ;;  %v16593_v29 = vpop.eup %10681  ;;  %v19080_v16 = vld [vmem:[#allocation10_spill] sm:$0xff] }
 0xc1a   : > { %19062 = vst [vmem:[#allocation32_spill] sm:$0xff] %v16593_v29  ;;  %10701 = vpow2.f32 %v6948_v19 }
 0xc1b   : > { %v16595_v45 = vpop.eup %10683  ;;  %10703 = vpow2.f32 %v6950_v36  ;;  %v7087_v22 = vadd.f32 %v16593_v29, %v7086_v5  ;;  %v19079_v29 = vld [vmem:[#allocation23_spill] sm:$0xff] }
 0xc1c   : > { %19063 = vst [vmem:[#allocation34_spill] sm:$0xff] %v16595_v45  ;;  %v16598_v14 = vpop.eup %10685  ;;  %10705 = vpow2.f32 %v6952_v58 }
 0xc1d   : > { %19064 = vst [vmem:[#allocation31_spill] sm:$0xff] %v16598_v14  ;;  %7088 = vadd.xlane.f32.xlu1 %v7087_v22  ;;  %v7090_v38 = vadd.f32 %v16598_v14, %v16595_v45  ;;  %v16602_v30 = vpop.eup %10687  ;;  %v19077_v14 = vld [vmem:[#allocation27_spill] sm:$0xff] }
 0xc1e   : > { %19065 = vst [vmem:[#allocation33_spill] sm:$0xff] %v16602_v30 }
 0xc1f   : > { %v16604_v31 = vpop.eup %10689  ;;  %v7091_v50 = vadd.f32 %v16602_v30, %v7090_v38 }
 0xc20   : > { %19066 = vst [vmem:[#allocation36_spill] sm:$0xff] %v16604_v31  ;;  %v16607_v52 = vpop.eup %10691 }
 0xc21   : > { %19067 = vst [vmem:[#allocation38_spill] sm:$0xff] %v16607_v52  ;;  %7092 = vadd.xlane.f32.xlu1 %v7091_v50  ;;  %v7094_v53 = vadd.f32 %v16607_v52, %v16604_v31  ;;  %v16611_v62 = vpop.eup %10693 }
 0xc22   : > { %19068 = vst [vmem:[#allocation39_spill] sm:$0xff] %v16611_v62 }
 0xc23   : > { %v16613_v19 = vpop.eup %10695  ;;  %v7095_v36 = vadd.f32 %v16611_v62, %v7094_v53 }
 0xc24   : > { %19069 = vst [vmem:[#allocation41_spill] sm:$0xff] %v16613_v19  ;;  %v16616_v58 = vpop.eup %10697 }
 0xc25   : > { %19070 = vst [vmem:[#allocation45_spill] sm:$0xff] %v16616_v58  ;;  %7096 = vadd.xlane.f32.xlu1 %v7095_v36  ;;  %v7098_v5 = vadd.f32 %v16616_v58, %v16613_v19  ;;  %v16620_v22 = vpop.eup %10699  ;;  %v10879_v36 = vld [vmem:[%s17461_s2 + $0x54] ss:$8 sps:$4 sm:$0xff]   ;;  %v6693_v19 = vpop.xlane.xlu0 %6692 }
 0xc26   : > { %19071 = vst [vmem:[#allocation25_spill] sm:$0xff] %v16620_v22  ;;  %v19075_v58 = vld [vmem:[#allocation9_spill] sm:$0xff] }
 0xc27   : > { %v16622_v38 = vpop.eup %10701  ;;  %v7099_v50 = vadd.f32 %v16620_v22, %v7098_v5  ;;  %v6798_v5 = vsub.f32 %v19075_v58, %v6693_v19  ;;  %v19076_v22 = vld [vmem:[#allocation15_spill] sm:$0xff] }
 0xc28   : > { %19072 = vst [vmem:[#allocation50_spill] sm:$0xff] %v16622_v38  ;;  %v16625_v30 = vpop.eup %10703  ;;  %v6799_v62 = vsub.f32 %v19076_v22, %v6693_v19 }
 0xc29   : > { %19073 = vst [vmem:[#allocation21_spill] sm:$0xff] %v16625_v30  ;;  %7100 = vadd.xlane.f32.xlu1 %v7099_v50  ;;  %v7102_v31 = vadd.f32 %v16625_v30, %v16622_v38  ;;  %v16629_v52 = vpop.eup %10705  ;;  %v6697_v50 = vpop.xlane.xlu1 %6696  ;;  %v6954_v45 = vmul.f32 1.442695, %v6798_v5 }
 0xc2a   : > { %19074 = vst [vmem:[#allocation76_spill] sm:$0xff] %v16629_v52  ;;  %v6801_v38 = vsub.f32 %v19077_v14, %v6697_v50  ;;  %v6803_v5 = vsub.f32 %v19080_v16, %v6697_v50 }
 0xc2b   : > { %v7103_v53 = vadd.f32 %v16629_v52, %v7102_v31  ;;  %v10880_v31 = vld [vmem:[%s17461_s2 + $0x44] ss:$8 sps:$4 sm:$0xff]   ;;  %v19078_v52 = vld [vmem:[#allocation30_spill] sm:$0xff]  ;;  %10707 = vpow2.f32 %v6954_v45 }
 0xc2c   : > { %v6802_v30 = vsub.f32 %v19078_v52, %v6697_v50  ;;  %v6960_v55 = vmul.f32 1.442695, %v6801_v38  ;;  %v6964_v14 = vmul.f32 1.442695, %v6803_v5 }
 0xc2d   : > { %7104 = vadd.xlane.f32.xlu0 %v7103_v53  ;;  %v6956_v53 = vmul.f32 1.442695, %v6799_v62 }
 0xc2e   : > { %v6962_v58 = vmul.f32 1.442695, %v6802_v30 }
 0xc2f   : > { %10709 = vpow2.f32 %v6956_v53 }
 0xc30   : > { %10711 = vpow2.f32 %v6960_v55 }
 0xc31   : > { %10713 = vpow2.f32 %v6962_v58 }
 0xc38   : > { %v16646_v47 = vpop.eup %10707 }
 0xc39   : > { %19081 = vst [vmem:[#allocation177_spill] sm:$0xff] %v16646_v47 }
 0xc3a   : > { %7372 = vrot.lane.b32.xlu1 %v10879_v36, %s10951_s10  ;;  %v6800_v36 = vsub.f32 %v19079_v29, %v6693_v19 }
 0xc3c   : > { %v6958_v22 = vmul.f32 1.442695, %v6800_v36  ;;  %v16650_v62 = vpop.eup %10709  ;;  %v6701_v36 = vpop.xlane.xlu0 %6700 }
 0xc3d   : > { %19082 = vst [vmem:[#allocation77_spill] sm:$0xff] %v16650_v62  ;;  %v16652_v52 = vpop.eup %10711  ;;  %v7106_v29 = vadd.f32 %v16650_v62, %v16646_v47  ;;  %v19092_v47 = vld [vmem:[#allocation35_spill] sm:$0xff] }
 0xc3e   : > { %10715 = vpow2.f32 %v6958_v22  ;;  %19083 = vst [vmem:[#allocation53_spill] sm:$0xff] %v16652_v52  ;;  %v16656_v45 = vpop.eup %10713  ;;  %v6805_v62 = vsub.f32 %v19092_v47, %v6701_v36 }
 0xc3f   : > { %10717 = vpow2.f32 %v6964_v14  ;;  %19084 = vst [vmem:[#allocation5_spill] sm:$0xff] %v16656_v45  ;;  %v7110_v19 = vadd.f32 %v16656_v45, %v16652_v52 }
 0xc40   : > { %v16672_v22 = vpop.xlane.xlu0 %6712 }
 0xc43   : > { %7370 = vrot.lane.b32.xlu0 %v10880_v31, %s10951_s10  ;;  %v16648_v31 = vpop.xlane.xlu1 %6704 }
 0xc44   : > { %v16676_v14 = vpop.xlane.xlu0 %6720 }
 0xc47   : > { %v16658_v30 = vpop.xlane.xlu1 %6708 }
 0xc4b   : > { %v16660_v16 = vpop.eup %10715  ;;  %v16665_v38 = vpop.xlane.xlu1 %6716 }
 0xc4c   : > { %19085 = vst [vmem:[#allocation59_spill] sm:$0xff] %v16660_v16  ;;  %v7107_v55 = vadd.f32 %v16660_v16, %v7106_v29  ;;  %v16667_v50 = vpop.eup %10717  ;;  %v16678_v16 = vpop.xlane.xlu0 %6728 }
 0xc4d   : > { %19086 = vst [vmem:[#allocation60_spill] sm:$0xff] %v16667_v50  ;;  %v7111_v53 = vadd.f32 %v16667_v50, %v7110_v19  ;;  %19089 = vst [vmem:[#allocation86_spill] sm:$0xff] %v16678_v16  ;;  %v19090_v19 = vld [vmem:[#allocation126_spill] sm:$0xff] }
 0xc4f   : > { %v16670_v58 = vpop.xlane.xlu1 %6724 }
 0xc50   : > { %19087 = vst [vmem:[#allocation166_spill] sm:$0xff] %v16670_v58  ;;  %v16685_v50 = vpop.xlane.xlu0 %6736  ;;  %v19094_v58 = vld [vmem:[#allocation37_spill] sm:$0xff] }
 0xc51   : > { %19091 = vst [vmem:[#allocation165_spill] sm:$0xff] %v16685_v50  ;;  %v6808_v8 = vsub.f32 %v19094_v58, %v16648_v31  ;;  %v19095_v50 = vld [vmem:[#allocation63_spill] sm:$0xff] }
 0xc52   : > { %v6806_v47 = vsub.f32 %v19095_v50, %v6701_v36 }
 0xc53   : > { %v16674_v5 = vpop.xlane.xlu1 %6732 }
 0xc54   : > { %19088 = vst [vmem:[#allocation128_spill] sm:$0xff] %v16674_v5  ;;  %v6974_v5 = vmul.f32 1.442695, %v6808_v8  ;;  %v6970_v50 = vmul.f32 1.442695, %v6806_v47 }
 0xc5e   : > { %7108 = vadd.xlane.f32.xlu1 %v7107_v55  ;;  %v10881_v55 = vld [vmem:[%s17461_s2 + $0x34] ss:$8 sps:$4 sm:$0xff]  }
 0xc62   : > { %7112 = vadd.xlane.f32.xlu0 %v7111_v53  ;;  %v6804_v53 = vsub.f32 %v19090_v19, %v6701_v36 }
 0xc64   : > { %v6966_v33 = vmul.f32 1.442695, %v6804_v53 }
 0xc6a   : > { %v7029_v29 = vpop.xlane.xlu1 %7028 }
 0xc6b   : > { %10719 = vrcp.f32 %v7029_v29  ;;  %v19093_v29 = vld [vmem:[#allocation62_spill] sm:$0xff] }
 0xc6c   : > { %v6807_v16 = vsub.f32 %v19093_v29, %v16648_v31 }
 0xc6e   : > { %v7033_v52 = vpop.xlane.xlu1 %7032 }
 0xc6f   : > { %10721 = vrcp.f32 %v7033_v52  ;;  %7368 = vrot.lane.b32.xlu1 %v10881_v55, %s10951_s10  ;;  %v6968_v52 = vmul.f32 1.442695, %v6805_v62  ;;  %v10882_v55 = vld [vmem:[%s17461_s2 + $0x24] ss:$8 sps:$4 sm:$0xff]  }
 0xc72   : > { %v7037_v45 = vpop.xlane.xlu1 %7036 }
 0xc73   : > { %10723 = vrcp.f32 %v7037_v45  ;;  %v6972_v45 = vmul.f32 1.442695, %v6807_v16 }
 0xc76   : > { %v7041_v3 = vpop.xlane.xlu0 %7040 }
 0xc77   : > { %10725 = vrcp.f32 %v7041_v3 }
 0xc78   : > { %7366 = vrot.lane.b32.xlu0 %v10882_v55, %s10951_s10  ;;  %v10720_v19 = vpop.eup %10719  ;;  %10727 = vpow2.f32 %v6966_v33  ;;  %v19096_v33 = vld [vmem:[#allocation40_spill] sm:$0xff] }
 0xc79   : > { %10729 = vpow2.f32 %v6968_v52  ;;  %v7187_v3 = vmul.f32 %v10720_v19, %v16409_v25  ;;  %v7188_v62 = vmul.f32 %v10720_v19, %v16413_v42  ;;  %v7186_v55 = vmul.f32 %v10720_v19, %v16407_v60 }
 0xc7a   : > { %v7045_v53 = vpop.xlane.xlu1 %7044  ;;  %v6809_v16 = vsub.f32 %v19096_v33, %v16648_v31 }
 0xc7b   : > { %10731 = vrcp.f32 %v7045_v53 }
 0xc7c   : > { %v10722_v29 = vpop.eup %10721  ;;  %10733 = vpow2.f32 %v6972_v45 }
 0xc7d   : > { %v7190_v58 = vmul.f32 %v10722_v29, %v16421_v49  ;;  %v7191_v57 = vmul.f32 %v10722_v29, %v16425_v63  ;;  %v7189_v32 = vmul.f32 %v10722_v29, %v16418_v27  ;;  %v6976_v49 = vmul.f32 1.442695, %v6809_v16 }
 0xc7e   : > { %v7049_v36 = vpop.xlane.xlu0 %7048 }
 0xc7f   : > { %10735 = vrcp.f32 %v7049_v36  ;;  %v7283_v8 = vpack.c.bf16 %v7190_v58, %v7187_v3  ;;  %v7284_v52 = vpack.c.bf16 %v7191_v57, %v7188_v62  ;;  %v7282_v25 = vpack.c.bf16 %v7189_v32, %v7186_v55 }
 0xc80   : > { %10737 = vpow2.f32 %v6974_v5  ;;  %v10724_v42 = vpop.eup %10723 }
 0xc81   : > { %7434 = vmatprep.mubr.bf16.mxu0 %v7283_v8  ;;  %9585 = vmatprep.mubr.bf16.mxu1 %v7284_v52  ;;  %10739 = vpow2.f32 %v6970_v50  ;;  %v7193_v27 = vmul.f32 %v10724_v42, %v16433_v44  ;;  %v7192_v31 = vmul.f32 %v10724_v42, %v16430_v2  ;;  %v16710_v57 = vmul.f32 %v10724_v42, %v16437_v43  ;;  %v19179_v2 = vld [vmem:[#allocation157_spill] sm:$0xff] }
 0xc82   : > { %7435 = vmatmul.mubr.bf16.vlgmr.msra.gmra.mxu0 %v7282_v25  ;;  %v7053_v63 = vpop.xlane.xlu1 %7052 }
 0xc83   : > { %10741 = vrcp.f32 %v7053_v63 }
 0xc84   : > { %v10726_v60 = vpop.eup %10725  ;;  %10743 = vpow2.f32 %v6976_v49 }
 0xc85   : > { %v7196_v19 = vmul.f32 %v10726_v60, %v16445_v61  ;;  %v7195_v47 = vmul.f32 %v10726_v60, %v16442_v28  ;;  %v16713_v32 = vmul.f32 %v10726_v60, %v16449_v17  ;;  %v16715_v45 = vpop.eup %10727 }
 0xc86   : > { %v7057_v5 = vpop.xlane.xlu0 %7056  ;;  %v16719_v44 = vpop.eup %10729 }
 0xc87   : > { %10745 = vrcp.f32 %v7057_v5  ;;  %v7286_v53 = vpack.c.bf16 %v7196_v19, %v7193_v27  ;;  %v7285_v29 = vpack.c.bf16 %v7195_v47, %v7192_v31  ;;  %v7114_v58 = vadd.f32 %v16719_v44, %v16715_v45 }
 0xc88   : > { %v10732_v61 = vpop.eup %10731 }
 0xc89   : > { %7442 = vmatprep.mubr.bf16.mxu0 %v7286_v53  ;;  %v16721_v43 = vpop.eup %10733  ;;  %v7199_v3 = vmul.f32 %v10732_v61, %v16457_v7  ;;  %v7198_v62 = vmul.f32 %v10732_v61, %v16454_v13  ;;  %v16732_v16 = vmul.f32 %v10732_v61, %v16461_v12 }
 0xc8a   : > { %v7061_v28 = vpop.xlane.xlu1 %7060  ;;  %7443 = vmatmul.mubr.bf16.gmra.mxu0 %v7285_v29 }
 0xc8b   : > { %10747 = vrcp.f32 %v7061_v28 }
 0xc8c   : > { %v10736_v17 = vpop.eup %10735 }
 0xc8d   : > { %v16727_v55 = vpop.eup %10737  ;;  %v7202_v50 = vmul.f32 %v10736_v17, %v16469_v48  ;;  %v7201_v33 = vmul.f32 %v10736_v17, %v16466_v34  ;;  %v16735_v36 = vmul.f32 %v10736_v17, %v16473_v56 }
 0xc8e   : > { %v7065_v8 = vpop.xlane.xlu1 %7064  ;;  %v16739_v25 = vpop.eup %10739  ;;  %v7118_v48 = vadd.f32 %v16727_v55, %v16721_v43 }
 0xc8f   : > { %10749 = vrcp.f32 %v7065_v8  ;;  %v7289_v7 = vpack.c.bf16 %v7202_v50, %v7199_v3  ;;  %v7288_v52 = vpack.c.bf16 %v7201_v33, %v7198_v62  ;;  %v7115_v12 = vadd.f32 %v16739_v25, %v7114_v58  ;;  %v19098_v33 = vld [vmem:[#allocation61_spill] sm:$0xff] }
 0xc90   : > { %v10742_v42 = vpop.eup %10741  ;;  %v6811_v8 = vsub.f32 %v19098_v33, %v16658_v30 }
 0xc91   : > { %7450 = vmatprep.mubr.bf16.mxu0 %v7289_v7  ;;  %v16744_v56 = vpop.eup %10743  ;;  %v7205_v60 = vmul.f32 %v10742_v42, %v16481_v54  ;;  %v7204_v27 = vmul.f32 %v10742_v42, %v16478_v4  ;;  %v16752_v47 = vmul.f32 %v10742_v42, %v16485_v41  ;;  %v19097_v4 = vld [vmem:[#allocation64_spill] sm:$0xff]  ;;  %v19099_v7 = vld [vmem:[#allocation43_spill] sm:$0xff] }
 0xc92   : > { %v7069_v34 = vpop.xlane.xlu1 %7068  ;;  %7451 = vmatmul.mubr.bf16.gmra.mxu0 %v7288_v52  ;;  %v7119_v63 = vadd.f32 %v16744_v56, %v7118_v48  ;;  %v6812_v52 = vsub.f32 %v19099_v7, %v16658_v30 }
 0xc93   : > { %7116 = vadd.xlane.f32.xlu1 %v7115_v12  ;;  %10751 = vrcp.f32 %v7069_v34  ;;  %v19101_v34 = vld [vmem:[#allocation46_spill] sm:$0xff] }
 0xc94   : > { %v10746_v49 = vpop.eup %10745 }
 0xc95   : > { %v7208_v31 = vmul.f32 %v10746_v49, %v16493_v39  ;;  %v7207_v19 = vmul.f32 %v10746_v49, %v16490_v21  ;;  %v16755_v5 = vmul.f32 %v10746_v49, %v16497_v23  ;;  %v6810_v39 = vsub.f32 %v19097_v4, %v16658_v30 }
 0xc96   : > { %v7073_v53 = vpop.xlane.xlu1 %7072  ;;  %v6814_v49 = vsub.f32 %v19101_v34, %v16672_v22  ;;  %v19107_v34 = vld [vmem:[#allocation26_spill] sm:$0xff] }
 0xc97   : > { %10753 = vrcp.f32 %v7073_v53  ;;  %7120 = vadd.xlane.f32.xlu0 %v7119_v63  ;;  %v7292_v29 = vpack.c.bf16 %v7208_v31, %v7205_v60  ;;  %v7291_v61 = vpack.c.bf16 %v7207_v19, %v7204_v27  ;;  %v6978_v48 = vmul.f32 1.442695, %v6810_v39  ;;  %v19102_v63 = vld [vmem:[#allocation6_spill] sm:$0xff] }
 0xc98   : > { %v10748_v28 = vpop.eup %10747  ;;  %v6815_v30 = vsub.f32 %v19102_v63, %v16672_v22  ;;  %v6982_v27 = vmul.f32 1.442695, %v6812_v52  ;;  %v10883_v53 = vld [vmem:[%s17461_s2 + $0x14] ss:$8 sps:$4 sm:$0xff]  }
 0xc99   : > { %7458 = vmatprep.mubr.bf16.mxu0 %v7292_v29  ;;  %v7211_v23 = vmul.f32 %v10748_v28, %v16505_v11  ;;  %v7210_v17 = vmul.f32 %v10748_v28, %v16502_v26  ;;  %v16766_v58 = vmul.f32 %v10748_v28, %v16509_v24  ;;  %v19100_v24 = vld [vmem:[#allocation47_spill] sm:$0xff] }
 0xc9a   : > { %v7077_v21 = vpop.xlane.xlu1 %7076  ;;  %7459 = vmatmul.mubr.bf16.gmra.mxu0 %v7291_v61 }
 0xc9b   : > { %10755 = vrcp.f32 %v7077_v21  ;;  %v6986_v21 = vmul.f32 1.442695, %v6814_v49 }
 0xc9c   : > { %v10750_v41 = vpop.eup %10749 }
 0xc9d   : > { %v7214_v3 = vmul.f32 %v10750_v41, %v16517_v59  ;;  %v7213_v62 = vmul.f32 %v10750_v41, %v16514_v15  ;;  %v16769_v50 = vmul.f32 %v10750_v41, %v16521_v18  ;;  %v6813_v59 = vsub.f32 %v19100_v24, %v16672_v22  ;;  %v19166_v15 = vld [vmem:[#allocation159_spill] sm:$0xff] }
 0xc9e   : > { %v7081_v11 = vpop.xlane.xlu0 %7080  ;;  %v6980_v18 = vmul.f32 1.442695, %v6811_v8  ;;  %v6988_v41 = vmul.f32 1.442695, %v6815_v30  ;;  %v19106_v8 = vld [vmem:[#allocation48_spill] sm:$0xff] }
 0xc9f   : > { %10757 = vrcp.f32 %v7081_v11  ;;  %v7295_v26 = vpack.c.bf16 %v7214_v3, %v7211_v23  ;;  %v7294_v42 = vpack.c.bf16 %v7213_v62, %v7210_v17  ;;  %v6984_v19 = vmul.f32 1.442695, %v6813_v59  ;;  %v19103_v23 = vld [vmem:[#allocation68_spill] sm:$0xff] }
 0xca0   : > { %v10752_v12 = vpop.eup %10751  ;;  %10759 = vpow2.f32 %v6978_v48  ;;  %v6816_v17 = vsub.f32 %v19103_v23, %v16665_v38  ;;  %v6819_v7 = vsub.f32 %v19106_v8, %v16676_v14  ;;  %v10884_v59 = vld [vmem:[%s17461_s2 + $0x4] ss:$8 sps:$4 sm:$0xff]   ;;  %v19114_v23 = vld [vmem:[#allocation17_spill] sm:$0xff] }
 0xca1   : > { %7466 = vmatprep.mubr.bf16.mxu0 %v7295_v26  ;;  %v7217_v29 = vmul.f32 %v10752_v12, %v16529_v46  ;;  %v7216_v61 = vmul.f32 %v10752_v12, %v16526_v40  ;;  %v16792_v4 = vmul.f32 %v10752_v12, %v16533_v35  ;;  %v19104_v35 = vld [vmem:[#allocation74_spill] sm:$0xff]  ;;  %v19109_v30 = vld [vmem:[#allocation8_spill] sm:$0xff] }
 0xca2   : > { %v7085_v60 = vpop.xlane.xlu1 %7084  ;;  %7467 = vmatmul.mubr.bf16.gmra.mxu0 %v7294_v42  ;;  %v6990_v48 = vmul.f32 1.442695, %v6816_v17 }
 0xca3   : > { %10761 = vrcp.f32 %v7085_v60  ;;  %v6821_v60 = vsub.f32 %v19109_v30, %v16676_v14  ;;  %v19123_v30 = vld [vmem:[#allocation12_spill] sm:$0xff] }
 0xca4   : > { %v10754_v31 = vpop.eup %10753  ;;  %7364 = vrot.lane.b32.xlu1 %v10883_v53, %s10951_s10  ;;  %10763 = vpow2.f32 %v6980_v18  ;;  %v19110_v53 = vld [vmem:[#allocation128_spill] sm:$0xff] }
 0xca5   : > { %v7220_v28 = vmul.f32 %v10754_v31, %v16541_v51  ;;  %v7219_v22 = vmul.f32 %v10754_v31, %v16538_v9  ;;  %v16795_v39 = vmul.f32 %v10754_v31, %v16545_v6  ;;  %v6817_v9 = vsub.f32 %v19104_v35, %v16665_v38  ;;  %v19105_v6 = vld [vmem:[#allocation70_spill] sm:$0xff]  ;;  %v19115_v35 = vld [vmem:[#allocation69_spill] sm:$0xff] }
 0xca6   : > { %v7089_v3 = vpop.xlane.xlu1 %7088  ;;  %v6818_v33 = vsub.f32 %v19105_v6, %v16665_v38  ;;  %v6829_v17 = vsub.f32 %v19114_v23, %v19110_v53 }
 0xca7   : > { %10765 = vrcp.f32 %v7089_v3  ;;  %v7298_v46 = vpack.c.bf16 %v7220_v28, %v7217_v29  ;;  %v7297_v40 = vpack.c.bf16 %v7219_v22, %v7216_v61  ;;  %v6992_v26 = vmul.f32 1.442695, %v6817_v9  ;;  %v19111_v29 = vld [vmem:[#allocation20_spill] sm:$0xff] }
 0xca8   : > { %10767 = vpow2.f32 %v6982_v27  ;;  %v10756_v62 = vpop.eup %10755  ;;  %v6994_v63 = vmul.f32 1.442695, %v6818_v33  ;;  %v6996_v27 = vmul.f32 1.442695, %v6819_v7  ;;  %v6828_v61 = vsub.f32 %v19111_v29, %v19110_v53  ;;  %v19116_v33 = vld [vmem:[#allocation73_spill] sm:$0xff]  ;;  %v19117_v7 = vld [vmem:[#allocation72_spill] sm:$0xff] }
 0xca9   : > { %10769 = vpow2.f32 %v6984_v19  ;;  %7474 = vmatprep.mubr.bf16.mxu0 %v7298_v46  ;;  %v7223_v42 = vmul.f32 %v10756_v62, %v16553_v37  ;;  %v7222_v24 = vmul.f32 %v10756_v62, %v16550_v0  ;;  %v16816_v18 = vmul.f32 %v10756_v62, %v16557_v10  ;;  %v19108_v37 = vld [vmem:[#allocation24_spill] sm:$0xff] }
 0xcaa   : > { %10771 = vpow2.f32 %v6986_v21  ;;  %v7093_v52 = vpop.xlane.xlu1 %7092  ;;  %7475 = vmatmul.mubr.bf16.gmra.mxu0 %v7297_v40  ;;  %v6820_v0 = vsub.f32 %v19108_v37, %v16676_v14  ;;  %v19112_v14 = vld [vmem:[#allocation166_spill] sm:$0xff]  ;;  %v7000_v40 = vmul.f32 1.442695, %v6821_v60  ;;  %v7014_v6 = vmul.f32 1.442695, %v6828_v61 }
 0xcab   : > { %10773 = vpow2.f32 %v6988_v41  ;;  %v19113_v21 = vld [vmem:[#allocation14_spill] sm:$0xff]  ;;  %v6823_v9 = vsub.f32 %v19115_v35, %v19112_v14 }
 0xcac   : > { %v10758_v11 = vpop.eup %10757  ;;  %10775 = vrcp.f32 %v7093_v52  ;;  %v6998_v22 = vmul.f32 1.442695, %v6820_v0  ;;  %v6822_v41 = vsub.f32 %v19113_v21, %v19112_v14  ;;  %v19122_v0 = vld [vmem:[#allocation86_spill] sm:$0xff] }
 0xcad   : > { %7362 = vrot.lane.b32.xlu0 %v10884_v59, %s10951_s10  ;;  %v7226_v38 = vmul.f32 %v10758_v11, %v16565_v1  ;;  %v7225_v12 = vmul.f32 %v10758_v11, %v16562_v20  ;;  %v16819_v49 = vmul.f32 %v10758_v11, %v19107_v34  ;;  %v16827_v10 = vpop.eup %10759  ;;  %v19118_v11 = vld [vmem:[#allocation28_spill] sm:$0xff]  ;;  %v19120_v59 = vld [vmem:[#allocation67_spill] sm:$0xff]  ;;  %v6825_v60 = vsub.f32 %v19123_v30, %v19122_v0 }
 0xcae   : > { %v7097_v31 = vpop.xlane.xlu1 %7096  ;;  %v7002_v37 = vmul.f32 1.442695, %v6822_v41  ;;  %v7004_v35 = vmul.f32 1.442695, %v6823_v9  ;;  %v19132_v30 = vld [vmem:[#allocation36_spill] sm:$0xff] }
 0xcaf   : > { %10777 = vrcp.f32 %v7097_v31  ;;  %v7301_v19 = vpack.c.bf16 %v7226_v38, %v7223_v42  ;;  %v7300_v1 = vpack.c.bf16 %v7225_v12, %v7222_v24  ;;  %v19119_v42 = vld [vmem:[#allocation22_spill] sm:$0xff]  ;;  %v19121_v12 = vld [vmem:[#allocation32_spill] sm:$0xff] }
 0xcb0   : > { %10779 = vpow2.f32 %v6990_v48  ;;  %v10762_v28 = vpop.eup %10761 }
 0xcb1   : > { %10781 = vpow2.f32 %v6992_v26  ;;  %7482 = vmatprep.mubr.bf16.mxu0 %v7301_v19  ;;  %v16835_v46 = vpop.eup %10763  ;;  %v7229_v8 = vmul.f32 %v10762_v28, %v19116_v33  ;;  %v7228_v52 = vmul.f32 %v10762_v28, %v19117_v7  ;;  %v16846_v38 = vmul.f32 %v10762_v28, %v19120_v59  ;;  %v19131_v59 = vld [vmem:[#allocation38_spill] sm:$0xff]  ;;  %v19154_v28 = vld [vmem:[#allocation92_spill] sm:$0xff] }
 0xcb2   : > { %10783 = vpow2.f32 %v6994_v63  ;;  %v7101_v3 = vpop.xlane.xlu1 %7100  ;;  %7483 = vmatmul.mubr.bf16.gmra.mxu0 %v7300_v1  ;;  %v7008_v7 = vmul.f32 1.442695, %v6825_v60  ;;  %v19134_v60 = vld [vmem:[#allocation39_spill] sm:$0xff] }
 0xcb3   : > { %10785 = vpow2.f32 %v6996_v27  ;;  %v7016_v27 = vmul.f32 1.442695, %v6829_v17  ;;  %v19125_v17 = vld [vmem:[#allocation51_spill] sm:$0xff] }
 0xcb4   : > { %v10766_v62 = vpop.eup %10765  ;;  %10787 = vrcp.f32 %v7101_v3  ;;  %v6824_v3 = vsub.f32 %v19125_v17, %v19112_v14 }
 0xcb5   : > { %v16841_v48 = vpop.eup %10767  ;;  %v7232_v26 = vmul.f32 %v10766_v62, %v19118_v11  ;;  %v7231_v24 = vmul.f32 %v10766_v62, %v19119_v42  ;;  %v16849_v34 = vmul.f32 %v10766_v62, %v19121_v12  ;;  %10789 = vpow2.f32 %v6998_v22  ;;  %v19124_v22 = vld [vmem:[#allocation66_spill] sm:$0xff]  ;;  %v19126_v62 = vld [vmem:[#allocation65_spill] sm:$0xff]  ;;  %v19128_v11 = vld [vmem:[#allocation52_spill] sm:$0xff] }
 0xcb6   : > { %v16851_v63 = vpop.eup %10769  ;;  %v7373_v31 = vpop.permute.xlu1 %7372  ;;  %v6830_v41 = vsub.f32 %v19124_v22, %v19110_v53  ;;  %v6826_v33 = vsub.f32 %v19126_v62, %v19122_v0  ;;  %v19127_v53 = vld [vmem:[#allocation165_spill] sm:$0xff] }
 0xcb7   : > { %v7105_v19 = vpop.xlane.xlu0 %7104  ;;  %v16855_v1 = vpop.eup %10771  ;;  %9573 = vmatprep.subr.bf16.mxu1 %v7373_v31  ;;  %v7304_v29 = vpack.c.bf16 %v7232_v26, %v7229_v8  ;;  %v7303_v61 = vpack.c.bf16 %v7231_v24, %v7228_v52  ;;  %v6831_v26 = vsub.f32 %v19128_v11, %v19127_v53  ;;  %v19130_v24 = vld [vmem:[#allocation34_spill] sm:$0xff] }
 0xcb8   : > { %10791 = vrcp.f32 %v7105_v19  ;;  %v16859_v21 = vpop.eup %10773  ;;  %9574 = vmatpush3.bf16.msra.mxu1 %v7373_v31  ;;  %v7018_v52 = vmul.f32 1.442695, %v6830_v41  ;;  %v19133_v31 = vld [vmem:[#allocation33_spill] sm:$0xff]  ;;  %v7010_v22 = vmul.f32 1.442695, %v6826_v33  ;;  %v19135_v41 = vld [vmem:[#allocation11_spill] sm:$0xff]  ;;  %v7122_v33 = vadd.f32 %v16835_v46, %v16827_v10 }
 0xcb9   : > { %10793 = vpow2.f32 %v7000_v40  ;;  %v10776_v23 = vpop.eup %10775  ;;  %7490 = vmatprep.mubr.bf16.mxu0 %v7304_v29  ;;  %v6832_v17 = vsub.f32 %v19135_v41, %v19127_v53  ;;  %v19141_v41 = vld [vmem:[#allocation50_spill] sm:$0xff] }
 0xcba   : > { %10795 = vpow2.f32 %v7014_v6  ;;  %7491 = vmatmul.mubr.bf16.gmra.mxu0 %v7303_v61  ;;  %v19129_v6 = vld [vmem:[#allocation31_spill] sm:$0xff]  ;;  %v7234_v14 = vmul.f32 %v10776_v23, %v19130_v24  ;;  %v7006_v61 = vmul.f32 1.442695, %v6824_v3 }
 0xcbb   : > { %10797 = vpow2.f32 %v7016_v27  ;;  %v7371_v8 = vpop.permute.xlu0 %7370  ;;  %v7235_v42 = vmul.f32 %v10776_v23, %v19129_v6  ;;  %v7022_v3 = vmul.f32 1.442695, %v6832_v17 }
 0xcbc   : > { %10799 = vpow2.f32 %v7002_v37  ;;  %9575 = vmatprep.subr.bf16.mxu1 %v7371_v8  ;;  %v10778_v40 = vpop.eup %10777  ;;  %v16876_v37 = vmul.f32 %v10776_v23, %v19133_v31 }
 0xcbd   : > { %9576 = vmatpush3.bf16.msra.mxu1 %v7371_v8  ;;  %v16871_v9 = vpop.eup %10779  ;;  %v7238_v12 = vmul.f32 %v10778_v40, %v19131_v59  ;;  %v7237_v27 = vmul.f32 %v10778_v40, %v19132_v30  ;;  %v16879_v19 = vmul.f32 %v10778_v40, %v19134_v60  ;;  %10801 = vpow2.f32 %v7004_v35  ;;  %v19136_v8 = vld [vmem:[#allocation71_spill] sm:$0xff]  ;;  %v19140_v60 = vld [vmem:[#allocation21_spill] sm:$0xff] }
 0xcbe   : > { %v16881_v29 = vpop.eup %10781  ;;  %v6827_v11 = vsub.f32 %v19136_v8, %v19122_v0  ;;  %10803 = vpow2.f32 %v7018_v52  ;;  %v7020_v59 = vmul.f32 1.442695, %v6831_v26  ;;  %v19138_v52 = vld [vmem:[#allocation45_spill] sm:$0xff] }
 0xcbf   : > { %v16885_v62 = vpop.eup %10783  ;;  %v7307_v6 = vpack.c.bf16 %v7238_v12, %v7235_v42  ;;  %v7306_v24 = vpack.c.bf16 %v7237_v27, %v7234_v14  ;;  %10805 = vpow2.f32 %v7008_v7  ;;  %v19137_v14 = vld [vmem:[#allocation18_spill] sm:$0xff]  ;;  %v19139_v27 = vld [vmem:[#allocation41_spill] sm:$0xff] }
 0xcc0   : > { %v16891_v40 = vpop.eup %10785  ;;  %10807 = vpow2.f32 %v7010_v22  ;;  %v7012_v0 = vmul.f32 1.442695, %v6827_v11  ;;  %v6833_v12 = vsub.f32 %v19137_v14, %v19127_v53  ;;  %v19142_v8 = vld [vmem:[#allocation25_spill] sm:$0xff]  ;;  %v7123_v53 = vadd.f32 %v16841_v48, %v7122_v33 }
 0xcc1   : > { %v10788_v35 = vpop.eup %10787  ;;  %7498 = vmatprep.mubr.bf16.mxu0 %v7307_v6  ;;  %10809 = vpow2.f32 %v7006_v61  ;;  %v19143_v61 = vld [vmem:[#allocation76_spill] sm:$0xff]  ;;  %v7126_v14 = vadd.f32 %v16855_v1, %v16851_v63 }
 0xcc2   : > { %7499 = vmatmul.mubr.bf16.gmra.mxu0 %v7306_v24  ;;  %v16895_v30 = vpop.eup %10789  ;;  %10811 = vpow2.f32 %v7020_v59  ;;  %v7241_v26 = vmul.f32 %v10788_v35, %v19138_v52  ;;  %v7240_v7 = vmul.f32 %v10788_v35, %v19139_v27  ;;  %v16906_v6 = vmul.f32 %v10788_v35, %v19142_v8 }
 0xcc3   : > { %10813 = vpow2.f32 %v7022_v3  ;;  %v7130_v59 = vadd.f32 %v16881_v29, %v16871_v9  ;;  %v7127_v33 = vadd.f32 %v16859_v21, %v7126_v14 }
 0xcc4   : > { %10815 = vpow2.f32 %v7012_v0 }
 0xcc5   : > { %v10792_v42 = vpop.eup %10791  ;;  %v7131_v3 = vadd.f32 %v16885_v62, %v7130_v59 }
 0xcc6   : > { %v16901_v31 = vpop.eup %10793  ;;  %v7244_v22 = vmul.f32 %v10792_v42, %v19140_v60  ;;  %v7243_v17 = vmul.f32 %v10792_v42, %v19141_v41  ;;  %v16909_v11 = vmul.f32 %v10792_v42, %v19143_v61  ;;  %v7024_v41 = vmul.f32 1.442695, %v6833_v12 }
 0xcc7   : > { %v16911_v24 = vpop.eup %10795 }
 0xcc8   : > { %19144 = vst [vmem:[#allocation168_spill] sm:$0xff] %v16911_v24  ;;  %v16918_v52 = vpop.eup %10797  ;;  %v7310_v27 = vpack.c.bf16 %v7244_v22, %v7241_v26  ;;  %v7309_v60 = vpack.c.bf16 %v7243_v17, %v7240_v7  ;;  %7124 = vadd.xlane.f32.xlu1 %v7123_v53  ;;  %v7134_v26 = vadd.f32 %v16895_v30, %v16891_v40  ;;  %10817 = vpow2.f32 %v7024_v41 }
 0xcc9   : > { %19145 = vst [vmem:[#allocation163_spill] sm:$0xff] %v16918_v52  ;;  %v16922_v42 = vpop.eup %10799  ;;  %v7146_v8 = vadd.f32 %v16918_v52, %v16911_v24  ;;  %v19185_v52 = vld [vmem:[#allocation60_spill] sm:$0xff] }
 0xcca   : > { %19146 = vst [vmem:[#allocation169_spill] sm:$0xff] %v16922_v42  ;;  %7506 = vmatprep.mubr.bf16.mxu0 %v7310_v27  ;;  %v16930_v7 = vpop.eup %10801  ;;  %v7135_v17 = vadd.f32 %v16901_v31, %v7134_v26 }
 0xccb   : > { %7507 = vmatmul.mubr.bf16.gmra.mxu0 %v7309_v60  ;;  %v16932_v0 = vpop.eup %10803  ;;  %v7138_v61 = vadd.f32 %v16930_v7, %v16922_v42 }
 0xccc   : > { %7132 = vadd.xlane.f32.xlu1 %v7131_v3  ;;  %7128 = vadd.xlane.f32.xlu0 %v7127_v33  ;;  %v16934_v12 = vpop.eup %10805  ;;  %v7147_v22 = vadd.f32 %v16932_v0, %v7146_v8 }
 0xccd   : > { %19147 = vst [vmem:[#allocation167_spill] sm:$0xff] %v16934_v12  ;;  %v16940_v53 = vpop.eup %10807 }
 0xcce   : > { %v16942_v59 = vpop.eup %10809  ;;  %v7142_v60 = vadd.f32 %v16940_v53, %v16934_v12  ;;  %v19189_v12 = vld [vmem:[#allocation140_spill] sm:$0xff] }
 0xccf   : > { %v16944_v14 = vpop.eup %10811  ;;  %v7139_v27 = vadd.f32 %v16942_v59, %v7138_v61  ;;  %v19151_v61 = vld [vmem:[#allocation154_spill] sm:$0xff] }
 0xcd0   : > { %7148 = vadd.xlane.f32.xlu0 %v7147_v22  ;;  %7136 = vadd.xlane.f32.xlu1 %v7135_v17  ;;  %19148 = vst [vmem:[#allocation175_spill] sm:$0xff] %v16944_v14  ;;  %v16949_v41 = vpop.eup %10813  ;;  %v19150_v17 = vld [vmem:[#allocation155_spill] sm:$0xff] }
 0xcd1   : > { %19149 = vst [vmem:[#allocation29_spill] sm:$0xff] %v16949_v41  ;;  %v16951_v3 = vpop.eup %10815  ;;  %v7150_v8 = vadd.f32 %v16949_v41, %v16944_v14  ;;  %v19152_v35 = vpack.c.bf16 %v19150_v17, %v19151_v61  ;;  %v19159_v17 = vld [vmem:[#allocation151_spill] sm:$0xff]  ;;  %v19183_v14 = vld [vmem:[#allocation53_spill] sm:$0xff] }
 0xcd2   : > { %v7143_v33 = vadd.f32 %v16951_v3, %v7142_v60 }
 0xcd4   : > { %7140 = vadd.xlane.f32.xlu1 %v7139_v27  ;;  %v19153_v27 = vld [vmem:[#allocation153_spill] sm:$0xff] }
 0xcd5   : > { %v16956_v26 = vpop.eup %10817  ;;  %v19155_v60 = vpack.c.bf16 %v19153_v27, %v19154_v28  ;;  %v19162_v28 = vld [vmem:[#allocation172_spill] sm:$0xff]  ;;  %v19163_v27 = vld [vmem:[#allocation171_spill] sm:$0xff] }
 0xcd6   : > { %v7151_v22 = vadd.f32 %v16956_v26, %v7150_v8  ;;  %v19157_v8 = vld [vmem:[#allocation152_spill] sm:$0xff] }
 0xcd8   : > { %7144 = vadd.xlane.f32.xlu1 %v7143_v33  ;;  %v19156_v33 = vld [vmem:[#allocation107_spill] sm:$0xff] }
 0xcdc   : > { %7152 = vadd.xlane.f32.xlu1 %v7151_v22  ;;  %v19158_v22 = vpack.c.bf16 %v19156_v33, %v19157_v8  ;;  %v19169_v33 = vld [vmem:[#allocation149_spill] sm:$0xff] }
 0xce6   : > { %7786 = vrot.lane.b32.xlu0 %v19152_v35, %s10951_s10  ;;  %v19160_v35 = vld [vmem:[#allocation132_spill] sm:$0xff] }
 0xce7   : > { %v7109_v23 = vpop.xlane.xlu1 %7108  ;;  %v19161_v61 = vpack.c.bf16 %v19159_v17, %v19160_v35  ;;  %v19171_v17 = vld [vmem:[#allocation102_spill] sm:$0xff]  ;;  %v19172_v35 = vld [vmem:[#allocation143_spill] sm:$0xff] }
 0xce8   : > { %10819 = vrcp.f32 %v7109_v23 }
 0xcea   : > { %7818 = vrot.lane.b32.xlu0 %v19155_v60, %s10950_s20  ;;  %v19164_v60 = vpack.c.bf16 %v19162_v28, %v19163_v27  ;;  %v19174_v28 = vld [vmem:[#allocation174_spill] sm:$0xff] }
 0xceb   : > { %v7369_v20 = vpop.permute.xlu1 %7368  ;;  %v7113_v51 = vpop.xlane.xlu0 %7112 }
 0xcec   : > { %10821 = vrcp.f32 %v7113_v51  ;;  %9577 = vmatprep.subr.bf16.mxu1 %v7369_v20  ;;  %v19165_v51 = vld [vmem:[#allocation156_spill] sm:$0xff] }
 0xced   : > { %7770 = vrot.lane.b32.xlu1 %v19158_v22, %s10951_s10  ;;  %9578 = vmatpush3.bf16.msra.mxu1 %v7369_v20  ;;  %v19167_v54 = vpack.c.bf16 %v19165_v51, %v19166_v15  ;;  %v19168_v20 = vld [vmem:[#allocation148_spill] sm:$0xff] }
 0xcee   : > { %7768 = vrot.lane.b32.xlu0 %v19161_v61, %s10951_s10  ;;  %v19170_v8 = vpack.c.bf16 %v19168_v20, %v19169_v33  ;;  %v19173_v61 = vpack.c.bf16 %v19171_v17, %v19172_v35  ;;  %v19180_v20 = vld [vmem:[#allocation130_spill] sm:$0xff]  ;;  %v19184_v35 = vld [vmem:[#allocation59_spill] sm:$0xff] }
 0xcef   : > { %v7367_v23 = vpop.permute.xlu0 %7366  ;;  %v19181_v33 = vpack.c.bf16 %v19179_v2, %v19180_v20  ;;  %v19190_v2 = vld [vmem:[#allocation139_spill] sm:$0xff] }
 0xcf0   : > { %9579 = vmatprep.subr.bf16.mxu1 %v7367_v23  ;;  %v19191_v20 = vpack.c.bf16 %v19189_v12, %v19190_v2 }
 0xcf1   : > { %7834 = vrot.lane.b32.xlu1 %v19164_v60, %s10950_s20  ;;  %9580 = vmatpush3.bf16.msra.mxu1 %v7367_v23  ;;  %v19175_v23 = vld [vmem:[#allocation173_spill] sm:$0xff] }
 0xcf2   : > { %7816 = vrot.lane.b32.xlu0 %v19167_v54, %s10950_s20  ;;  %v19176_v27 = vpack.c.bf16 %v19174_v28, %v19175_v23  ;;  %v19177_v60 = vld [vmem:[#allocation77_spill] sm:$0xff] }
 0xcf3   : > { %v19178_v54 = vld [vmem:[#allocation177_spill] sm:$0xff] }
 0xcf5   : > { %7784 = vrot.lane.b32.xlu1 %v19170_v8, %s10951_s10  ;;  %v10820_v22 = vpop.eup %10819  ;;  %v19182_v8 = vld [vmem:[#allocation5_spill] sm:$0xff] }
 0xcf6   : > { %7766 = vrot.lane.b32.xlu0 %v19173_v61, %s10951_s10  ;;  %v7247_v15 = vmul.f32 %v10820_v22, %v19177_v60  ;;  %v7246_v51 = vmul.f32 %v10820_v22, %v19178_v54  ;;  %v7248_v61 = vmul.f32 %v10820_v22, %v19184_v35  ;;  %v19187_v60 = vld [vmem:[#allocation150_spill] sm:$0xff]  ;;  %v19193_v22 = vld [vmem:[#allocation19_spill] sm:$0xff] }
 0xcf9   : > { %v10822_v13 = vpop.eup %10821  ;;  %7832 = vrot.lane.b32.xlu1 %v19176_v27, %s10950_s20  ;;  %v19186_v27 = vld [vmem:[#allocation144_spill] sm:$0xff] }
 0xcfa   : > { %7814 = vrot.lane.b32.xlu0 %v19181_v33, %s10950_s20  ;;  %v7250_v24 = vmul.f32 %v10822_v13, %v19182_v8  ;;  %v7249_v17 = vmul.f32 %v10822_v13, %v19183_v14  ;;  %v7251_v42 = vmul.f32 %v10822_v13, %v19185_v52  ;;  %v19188_v54 = vpack.c.bf16 %v19186_v27, %v19187_v60  ;;  %v19192_v14 = vld [vmem:[#allocation170_spill] sm:$0xff] }
 0xcfb   : > { %v19194_v33 = vpack.c.bf16 %v19192_v14, %v19193_v22  ;;  %v19195_v13 = vld [vmem:[#allocation146_spill] sm:$0xff]  ;;  %v19199_v8 = vpack.c.bf16 %v16735_v36, %v16732_v16  ;;  %v19201_v16 = vpack.c.bf16 %v16769_v50, %v16766_v58  ;;  %v19205_v36 = vpack.c.bf16 %v16879_v19, %v16876_v37 }
 0xcfc   : > { %v7313_v41 = vpack.c.bf16 %v7250_v24, %v7247_v15  ;;  %v7312_v28 = vpack.c.bf16 %v7249_v17, %v7246_v51  ;;  %v7314_v23 = vpack.c.bf16 %v7251_v42, %v7248_v61  ;;  %v19196_v24 = vld [vmem:[#allocation142_spill] sm:$0xff] }
 0xcfd   : > { %7782 = vrot.lane.b32.xlu1 %v19188_v54, %s10951_s10  ;;  %v19197_v52 = vpack.c.bf16 %v19195_v13, %v19196_v24  ;;  %v19200_v54 = vpack.c.bf16 %v16755_v5, %v16752_v47 }
 0xcfe   : > { %7764 = vrot.lane.b32.xlu0 %v19191_v20, %s10951_s10  ;;  %7514 = vmatprep.mubr.bf16.mxu0 %v7313_v41  ;;  %v19198_v41 = vpack.c.bf16 %v16713_v32, %v16710_v57 }
 0xcff   : > { %7515 = vmatmul.mubr.bf16.gmra.mxu0 %v7312_v28 }
 0xd01   : > { %7830 = vrot.lane.b32.xlu1 %v19194_v33, %s10950_s20 }
 0xd05   : > { %7780 = vrot.lane.b32.xlu1 %v19197_v52, %s10951_s10 }
 0xd1c   : > { %v7117_v42 = vpop.xlane.xlu1 %7116 }
 0xd1d   : > { %10823 = vrcp.f32 %v7117_v42 }
 0xd20   : > { %v7365_v15 = vpop.permute.xlu1 %7364  ;;  %v7121_v51 = vpop.xlane.xlu0 %7120 }
 0xd21   : > { %10825 = vrcp.f32 %v7121_v51  ;;  %9581 = vmatprep.subr.bf16.mxu1 %v7365_v15 }
 0xd22   : > { %9582 = vmatpush3.bf16.msra.mxu1 %v7365_v15 }
 0xd24   : > { %v7363_v12 = vpop.permute.xlu0 %7362 }
 0xd25   : > { %9583 = vmatprep.subr.bf16.mxu1 %v7363_v12 }
 0xd26   : > { %9584 = vmatpush3.bf16.msra.mxu1 %v7363_v12 }
 0xd29   : > { %9586 = vmatmul.mubr.bf16.vlgmr.msra.gmra.mxu1 %v19198_v41 }
 0xd2a   : > { %9589 = vmatprep.mubr.bf16.mxu1 %v19199_v8  ;;  %v10824_v17 = vpop.eup %10823 }
 0xd2b   : > { %v7253_v61 = vmul.f32 %v10824_v17, %v16719_v44  ;;  %v7252_v27 = vmul.f32 %v10824_v17, %v16715_v45  ;;  %v19202_v44 = vpack.c.bf16 %v16795_v39, %v16792_v4  ;;  %v19203_v45 = vpack.c.bf16 %v16819_v49, %v16816_v18 }
 0xd2c   : > { %v19206_v39 = vpack.c.bf16 %v16909_v11, %v16906_v6  ;;  %v7254_v37 = vmul.f32 %v10824_v17, %v16739_v25 }
 0xd2e   : > { %v10826_v35 = vpop.eup %10825 }
 0xd2f   : > { %v7256_v28 = vmul.f32 %v10826_v35, %v16727_v55  ;;  %v7255_v60 = vmul.f32 %v10826_v35, %v16721_v43  ;;  %v19204_v43 = vpack.c.bf16 %v16849_v34, %v16846_v38  ;;  %v7257_v49 = vmul.f32 %v10826_v35, %v16744_v56 }
 0xd31   : > { %9590 = vmatmul.mubr.bf16.gmra.mxu1 %v19200_v54  ;;  %v7316_v57 = vpack.c.bf16 %v7256_v28, %v7253_v61  ;;  %v7315_v32 = vpack.c.bf16 %v7255_v60, %v7252_v27  ;;  %v7317_v2 = vpack.c.bf16 %v7257_v49, %v7254_v37 }
 0xd32   : > { %9593 = vmatprep.mubr.bf16.mxu1 %v19201_v16 }
 0xd33   : > { %7522 = vmatprep.mubr.bf16.mxu0 %v7316_v57 }
 0xd34   : > { %7523 = vmatmul.mubr.bf16.gmra.mxu0 %v7315_v32 }
 0xd39   : > { %9594 = vmatmul.mubr.bf16.gmra.mxu1 %v19202_v44 }
 0xd3a   : > { %9597 = vmatprep.mubr.bf16.mxu1 %v19203_v45 }
 0xd41   : > { %9598 = vmatmul.mubr.bf16.gmra.mxu1 %v19204_v43 }
 0xd42   : > { %v9061_v55 = vpop.f32.mrf.mxu0  ;;  %9601 = vmatprep.mubr.bf16.mxu1 %v19205_v36 }
 0xd44   : > { %v9062_v47 = vpop.f32.mrf.mxu0 }
 0xd45   : > { %v17049_v5 = vadd.f32 %v9062_v47, %v9061_v55 }
 0xd46   : > { %v9064_v58 = vpop.f32.mrf.mxu0 }
 0xd48   : > { %v9065_v50 = vpop.f32.mrf.mxu0 }
 0xd49   : > { %v17051_v4 = vadd.f32 %v9065_v50, %v9064_v58  ;;  %9602 = vmatmul.mubr.bf16.gmra.mxu1 %v19206_v39 }
 0xd4a   : > { %v9067_v18 = vpop.f32.mrf.mxu0  ;;  %9605 = vmatprep.mubr.bf16.mxu1 %v7314_v23 }
 0xd4c   : > { %v9068_v38 = vpop.f32.mrf.mxu0 }
 0xd4d   : > { %v17057_v34 = vadd.f32 %v9068_v38, %v9067_v18 }
 0xd4e   : > { %v9070_v19 = vpop.f32.mrf.mxu0 }
 0xd50   : > { %v9071_v20 = vpop.f32.mrf.mxu0 }
 0xd51   : > { %v17060_v14 = vadd.f32 %v9071_v20, %v9070_v19  ;;  %v7125_v22 = vpop.xlane.xlu1 %7124  ;;  %9606 = vmatmul.mubr.bf16.gmra.mxu1 %v7317_v2 }
 0xd52   : > { %v9073_v33 = vpop.f32.mrf.mxu0  ;;  %10827 = vrcp.f32 %v7125_v22 }
 0xd54   : > { %v9074_v6 = vpop.f32.mrf.mxu0 }
 0xd55   : > { %v17062_v11 = vadd.f32 %v9074_v6, %v9073_v33  ;;  %v7133_v23 = vpop.xlane.xlu1 %7132  ;;  %v7129_v13 = vpop.xlane.xlu0 %7128 }
 0xd56   : > { %v9076_v56 = vpop.f32.mrf.mxu0  ;;  %10829 = vrcp.f32 %v7129_v13 }
 0xd57   : > { %10831 = vrcp.f32 %v7133_v23 }
 0xd58   : > { %v9077_v24 = vpop.f32.mrf.mxu0 }
 0xd59   : > { %v17064_v52 = vadd.f32 %v9077_v24, %v9076_v56  ;;  %v7137_v25 = vpop.xlane.xlu1 %7136  ;;  %v7149_v17 = vpop.xlane.xlu0 %7148 }
 0xd5a   : > { %10833 = vrcp.f32 %v7137_v25  ;;  %v17066_v42 = vpop.f32.mrf.mxu0 }
 0xd5c   : > { %v17068_v15 = vpop.f32.mrf.mxu0 }
 0xd5d   : > { %v7141_v51 = vpop.xlane.xlu1 %7140 }
 0xd5e   : > { %v17070_v12 = vpop.f32.mrf.mxu0  ;;  %10835 = vrcp.f32 %v7141_v51 }
 0xd5f   : > { %v10828_v8 = vpop.eup %10827 }
 0xd60   : > { %v17072_v41 = vpop.f32.mrf.mxu0  ;;  %v7259_v60 = vmul.f32 %v10828_v8, %v16835_v46  ;;  %v7260_v54 = vmul.f32 %v10828_v8, %v16841_v48  ;;  %v7258_v45 = vmul.f32 %v10828_v8, %v16827_v10 }
 0xd61   : > { %v7145_v35 = vpop.xlane.xlu1 %7144 }
 0xd62   : > { %10837 = vrcp.f32 %v7145_v35  ;;  %v17074_v61 = vpop.f32.mrf.mxu0 }
 0xd63   : > { %v10830_v28 = vpop.eup %10829  ;;  %10839 = vrcp.f32 %v7149_v17  ;;  %v19209_v17 = vld [vmem:[#allocation169_spill] sm:$0xff] }
 0xd64   : > { %v17076_v27 = vpop.f32.mrf.mxu0  ;;  %v10832_v57 = vpop.eup %10831  ;;  %v7262_v16 = vmul.f32 %v10830_v28, %v16855_v1  ;;  %v7263_v44 = vmul.f32 %v10830_v28, %v16859_v21  ;;  %v7261_v43 = vmul.f32 %v10830_v28, %v16851_v63  ;;  %v19210_v28 = vld [vmem:[#allocation163_spill] sm:$0xff] }
 0xd65   : > { %v7153_v32 = vpop.xlane.xlu1 %7152  ;;  %v7265_v48 = vmul.f32 %v10832_v57, %v16881_v29  ;;  %v7266_v1 = vmul.f32 %v10832_v57, %v16885_v62 }
 0xd66   : > { %10841 = vrcp.f32 %v7153_v32  ;;  %v17084_v55 = vpop.f32.mrf.mxu0  ;;  %v7319_v47 = vpack.c.bf16 %v7262_v16, %v7259_v60  ;;  %v7320_v58 = vpack.c.bf16 %v7263_v44, %v7260_v54  ;;  %v7318_v50 = vpack.c.bf16 %v7261_v43, %v7258_v45  ;;  %v19211_v16 = vld [vmem:[#allocation175_spill] sm:$0xff]  ;;  %v19212_v43 = vld [vmem:[#allocation168_spill] sm:$0xff] }
 0xd67   : > { %v10834_v36 = vpop.eup %10833 }
 0xd68   : > { %v17086_v46 = vpop.f32.mrf.mxu0  ;;  %v7268_v39 = vmul.f32 %v10834_v36, %v16895_v30  ;;  %v7269_v21 = vmul.f32 %v10834_v36, %v16901_v31  ;;  %7530 = vmatprep.mubr.bf16.mxu0 %v7319_v47  ;;  %9609 = vmatprep.mubr.bf16.mxu1 %v7320_v58  ;;  %v7267_v49 = vmul.f32 %v10834_v36, %v16891_v40 }
 0xd69   : > { %7531 = vmatmul.mubr.bf16.gmra.mxu0 %v7318_v50  ;;  %v7264_v30 = vmul.f32 %v10832_v57, %v16871_v9 }
 0xd6a   : > { %v17092_v10 = vpop.f32.mrf.mxu0  ;;  %v7322_v63 = vpack.c.bf16 %v7268_v39, %v7265_v48  ;;  %v7323_v18 = vpack.c.bf16 %v7269_v21, %v7266_v1 }
 0xd6b   : > { %v10836_v29 = vpop.eup %10835  ;;  %v7321_v31 = vpack.c.bf16 %v7267_v49, %v7264_v30 }
 0xd6c   : > { %v17095_v38 = vpop.f32.mrf.mxu0  ;;  %7538 = vmatprep.mubr.bf16.mxu0 %v7322_v63  ;;  %9610 = vmatmul.mubr.bf16.gmra.mxu1 %v7323_v18  ;;  %v7271_v2 = vmul.f32 %v10836_v29, %v16930_v7  ;;  %v7272_v22 = vmul.f32 %v10836_v29, %v16942_v59  ;;  %v19208_v59 = vld [vmem:[#allocation29_spill] sm:$0xff]  ;;  %v7270_v35 = vmul.f32 %v10836_v29, %v19209_v17 }
 0xd6e   : > { %v17098_v37 = vpop.f32.mrf.mxu0 }
 0xd6f   : > { %v10838_v62 = vpop.eup %10837 }
 0xd70   : > { %v17100_v19 = vpop.f32.mrf.mxu0  ;;  %v7274_v20 = vmul.f32 %v10838_v62, %v16940_v53  ;;  %v7275_v40 = vmul.f32 %v10838_v62, %v16951_v3  ;;  %v10840_v33 = vpop.eup %10839  ;;  %v19207_v53 = vld [vmem:[#allocation167_spill] sm:$0xff] }
 0xd71   : > { %7539 = vmatmul.mubr.bf16.gmra.mxu0 %v7321_v31  ;;  %v7278_v24 = vmul.f32 %v10840_v33, %v16932_v0  ;;  %v7273_v25 = vmul.f32 %v10838_v62, %v19207_v53  ;;  %v7277_v60 = vmul.f32 %v10840_v33, %v19210_v28  ;;  %v7276_v36 = vmul.f32 %v10840_v33, %v19212_v43 }
 0xd72   : > { %v17106_v6 = vpop.f32.mrf.mxu0  ;;  %v7325_v23 = vpack.c.bf16 %v7274_v20, %v7271_v2  ;;  %v7326_v9 = vpack.c.bf16 %v7275_v40, %v7272_v22 }
 0xd73   : > { %v10842_v13 = vpop.eup %10841  ;;  %v7324_v57 = vpack.c.bf16 %v7273_v25, %v7270_v35 }
 0xd74   : > { %v17108_v56 = vpop.f32.mrf.mxu0  ;;  %7546 = vmatprep.mubr.bf16.mxu0 %v7325_v23  ;;  %9613 = vmatprep.mubr.bf16.mxu1 %v7326_v9  ;;  %v7281_v7 = vmul.f32 %v10842_v13, %v16956_v26  ;;  %v7280_v51 = vmul.f32 %v10842_v13, %v19208_v59  ;;  %v7279_v44 = vmul.f32 %v10842_v13, %v19211_v16 }
 0xd75   : > { %v9093_v16 = vadd.f32 %v17095_v38, %v17092_v10 }
 0xd76   : > { %v17114_v3 = vpop.f32.mrf.mxu0  ;;  %v7329_v8 = vpack.c.bf16 %v7281_v7, %v7278_v24  ;;  %v7328_v32 = vpack.c.bf16 %v7280_v51, %v7277_v60  ;;  %v7327_v58 = vpack.c.bf16 %v7279_v44, %v7276_v36  ;;  %v9096_v44 = vadd.f32 %v17100_v19, %v17098_v37 }
 0xd78   : > { %v17118_v54 = vpop.f32.mrf.mxu0  ;;  %9614 = vmatmul.mubr.bf16.gmra.mxu1 %v7329_v8 }
 0xd79   : > { %7547 = vmatmul.mubr.bf16.gmra.mxu0 %v7324_v57 }
 0xd7a   : > { %v17120_v0 = vpop.f32.mrf.mxu0  ;;  %7554 = vmatprep.mubr.bf16.mxu0 %v7328_v32 }
 0xd7c   : > { %v9104_v26 = vpop.f32.mrf.mxu0 }
 0xd7e   : > { %v9106_v45 = vpop.f32.mrf.mxu0 }
 0xd80   : > { %v9107_v47 = vpop.f32.mrf.mxu0 }
 0xd81   : > { %7555 = vmatmul.mubr.bf16.gmra.mxu0 %v7327_v58  ;;  %v9108_v38 = vadd.f32 %v9107_v47, %v9106_v45  ;;  %v9090_v45 = vadd.f32 %v17086_v46, %v17084_v55  ;;  %v19213_v55 = vld [vmem:[#allocation85_spill] sm:$0xff]  ;;  %v19214_v46 = vld [vmem:[#allocation83_spill] sm:$0xff] }
 0xd82   : > { %v9109_v50 = vpop.f32.mrf.mxu0 }
 0xd84   : > { %v9110_v48 = vpop.f32.mrf.mxu0 }
 0xd85   : > { %v9111_v39 = vadd.f32 %v9110_v48, %v9109_v50 }
 0xd86   : > { %v9112_v1 = vpop.f32.mrf.mxu0 }
 0xd88   : > { %v9113_v21 = vpop.f32.mrf.mxu0 }
 0xd89   : > { %v17124_v63 = vadd.f32 %v9113_v21, %v9112_v1  ;;  %v9099_v21 = vadd.f32 %v17108_v56, %v17106_v6 }
 0xd8b   : > { %v9115_v18 = vpop.f32.mrf.mxu0 }
 0xd8d   : > { %v9116_v49 = vpop.f32.mrf.mxu0 }
 0xd8e   : > { %v9117_v29 = vadd.f32 %v9116_v49, %v9115_v18  ;;  %v9102_v18 = vadd.f32 %v17118_v54, %v17114_v3 }
 0xd8f   : > { %v9118_v30 = vpop.f32.mrf.mxu0 }
 0xd91   : > { %v9119_v62 = vpop.f32.mrf.mxu0 }
 0xd92   : > { %v9120_v31 = vadd.f32 %v9119_v62, %v9118_v30  ;;  %v9105_v30 = vadd.f32 %v9104_v26, %v17120_v0 }
 0xdbf   : > { %v9121_v2 = vpop.f32.mrf.mxu0 }
 0xdc1   : > { %v9122_v20 = vpop.f32.mrf.mxu0 }
 0xdc2   : > { %v17126_v22 = vadd.f32 %v9122_v20, %v9121_v2 }
 0xdc3   : > { %v9124_v40 = vpop.f32.mrf.mxu0 }
 0xdc5   : > { %v9125_v33 = vpop.f32.mrf.mxu0 }
 0xdc6   : > { %v17128_v23 = vadd.f32 %v9125_v33, %v9124_v40 }
 0xde9   : > { %v9587_v9 = vpop.f32.mrf.mxu1 }
 0xdea   : > { %v17131_v13 = vadd.f32 %v9587_v9, %v17057_v34 }
 0xdeb   : > { %v7597_v24 = vpop.f32.mrf.mxu1 }
 0xdec   : > { %v17134_v7 = vadd.f32 %v17049_v5, %v7597_v24 }
 0xded   : > { %v9588_v53 = vpop.f32.mrf.mxu1 }
 0xdee   : > { %v17137_v25 = vadd.f32 %v9588_v53, %v17060_v14 }
 0xdef   : > { %v7600_v59 = vpop.f32.mrf.mxu1 }
 0xdf0   : > { %v7725_v51 = vpack.c.bf16 %v17137_v25, %v17131_v13  ;;  %v17142_v8 = vadd.f32 %v17051_v4, %v7600_v59  ;;  %v19215_v59 = vpack.c.bf16 %v19213_v55, %v19214_v46  ;;  %v19237_v13 = vld [vmem:[#allocation79_spill] sm:$0xff]  ;;  %v19238_v25 = vld [vmem:[#allocation16_spill] sm:$0xff] }
 0xdf1   : > { %v17144_v17 = vpop.f32.mrf.mxu1 }
 0xdf2   : > { %v7724_v34 = vpack.c.bf16 %v17142_v8, %v17134_v7  ;;  %v19243_v8 = vld [vmem:[#allocation147_spill] sm:$0xff] }
 0xdf3   : > { %v7613_v35 = vpop.f32.mrf.mxu1 }
 0xdf4   : > { %v17149_v60 = vadd.f32 %v17062_v11, %v7613_v35 }
 0xdf5   : > { %v9592_v28 = vpop.f32.mrf.mxu1 }
 0xdf7   : > { %v7616_v5 = vpop.f32.mrf.mxu1 }
 0xdf8   : > { %v17152_v14 = vadd.f32 %v17064_v52, %v7616_v5 }
 0xdf9   : > { %v9595_v57 = vpop.f32.mrf.mxu1 }
 0xdfa   : > { %v7726_v32 = vpack.c.bf16 %v17152_v14, %v17149_v60  ;;  %v7638_v36 = vadd.f32 %v9595_v57, %v9093_v16  ;;  %v17204_v16 = vpop.f32.mrf.mxu0 }
 0xdfb   : > { %v7629_v4 = vpop.f32.mrf.mxu1 }
 0xdfd   : > { %v9596_v43 = vpop.f32.mrf.mxu1 }
 0xdfe   : > { %v7641_v58 = vadd.f32 %v9596_v43, %v9096_v44  ;;  %v19216_v44 = vld [vmem:[#allocation136_spill] sm:$0xff]  ;;  %v19217_v43 = vld [vmem:[#allocation135_spill] sm:$0xff] }
 0xdff   : > { %v7632_v50 = vpop.f32.mrf.mxu1 }
 0xe00   : > { %v7729_v11 = vpack.c.bf16 %v7641_v58, %v7638_v36  ;;  %v19218_v36 = vpack.c.bf16 %v19216_v44, %v19217_v43 }
 0xe01   : > { %v9599_v48 = vpop.f32.mrf.mxu1 }
 0xe02   : > { %7862 = vrot.lane.b32.xlu0 %v7729_v11, %s10949_s17  ;;  %v7654_v33 = vadd.f32 %v9599_v48, %v9105_v30  ;;  %v19219_v11 = vld [vmem:[#allocation13_spill] sm:$0xff]  ;;  %v19220_v48 = vld [vmem:[#allocation44_spill] sm:$0xff] }
 0xe03   : > { %v7645_v52 = vpop.f32.mrf.mxu1 }
 0xe04   : > { %v7646_v49 = vadd.f32 %v9099_v21, %v7645_v52  ;;  %v19221_v52 = vpack.c.bf16 %v19219_v11, %v19220_v48  ;;  %v19222_v21 = vld [vmem:[#allocation134_spill] sm:$0xff] }
 0xe05   : > { %v9600_v1 = vpop.f32.mrf.mxu1 }
 0xe06   : > { %v7657_v62 = vadd.f32 %v9600_v1, %v9108_v38 }
 0xe07   : > { %v7648_v10 = vpop.f32.mrf.mxu1 }
 0xe08   : > { %v7649_v37 = vadd.f32 %v9102_v18, %v7648_v10  ;;  %v7731_v56 = vpack.c.bf16 %v7657_v62, %v7654_v33  ;;  %v19223_v18 = vld [vmem:[#allocation96_spill] sm:$0xff]  ;;  %v19228_v33 = vld [vmem:[#allocation94_spill] sm:$0xff] }
 0xe09   : > { %v9603_v19 = vpop.f32.mrf.mxu1  ;;  %v19224_v10 = vpack.c.bf16 %v19222_v21, %v19223_v18 }
 0xe0a   : > { %v7730_v2 = vpack.c.bf16 %v7649_v37, %v7646_v49  ;;  %v17166_v20 = vadd.f32 %v9603_v19, %v9117_v29  ;;  %v7633_v29 = vadd.f32 %v9090_v45, %v7632_v50  ;;  %v17213_v50 = vpop.f32.mrf.mxu0 }
 0xe0b   : > { %v7661_v40 = vpop.f32.mrf.mxu1 }
 0xe0c   : > { %v17168_v9 = vadd.f32 %v9111_v39, %v7661_v40  ;;  %7864 = vrot.lane.b32.xlu0 %v7730_v2, %s10949_s17  ;;  %v9087_v39 = vadd.f32 %v17076_v27, %v17074_v61 }
 0xe0d   : > { %v9604_v6 = vpop.f32.mrf.mxu1 }
 0xe0e   : > { %v17171_v3 = vadd.f32 %v9604_v6, %v9120_v31  ;;  %v7630_v53 = vadd.f32 %v9087_v39, %v7629_v4  ;;  %v9084_v4 = vadd.f32 %v17072_v41, %v17070_v12  ;;  %v9130_v41 = vpop.f32.mrf.mxu0  ;;  %v19229_v6 = vld [vmem:[#allocation91_spill] sm:$0xff] }
 0xe0f   : > { %v7664_v54 = vpop.f32.mrf.mxu1 }
 0xe10   : > { %v7733_v0 = vpack.c.bf16 %v17171_v3, %v17166_v20  ;;  %v17178_v26 = vadd.f32 %v17124_v63, %v7664_v54  ;;  %7866 = vrot.lane.b32.xlu0 %v7731_v56, %s10949_s17  ;;  %v7728_v35 = vpack.c.bf16 %v7633_v29, %v7630_v53  ;;  %v9131_v1 = vpop.f32.mrf.mxu0  ;;  %v19230_v56 = vpack.c.bf16 %v19228_v33, %v19229_v6  ;;  %v19232_v53 = vld [vmem:[#allocation75_spill] sm:$0xff] }
 0xe11   : > { %v17181_v47 = vpop.f32.mrf.mxu1  ;;  %v9132_v7 = vadd.f32 %v9131_v1, %v9130_v41  ;;  %v19249_v41 = vld [vmem:[#allocation133_spill] sm:$0xff]  ;;  %v8015_v3 = vld [vmem:[%s17464_s5] sm:$0xf] }
 0xe12   : > { %v7732_v31 = vpack.c.bf16 %v17178_v26, %v17168_v9  ;;  %v19250_v1 = vld [vmem:[#allocation145_spill] sm:$0xff] }
 0xe13   : > { %v7677_v24 = vpop.f32.mrf.mxu1 }
 0xe14   : > { %7812 = vrot.lane.b32.xlu0 %v19215_v59, %s10950_s20  ;;  %v17194_v57 = vadd.f32 %v17126_v22, %v7677_v24  ;;  %v9081_v22 = vadd.f32 %v17068_v15, %v17066_v42  ;;  %v19231_v24 = vld [vmem:[#allocation84_spill] sm:$0xff] }
 0xe15   : > { %v17191_v63 = vpop.f32.mrf.mxu1  ;;  %v19233_v55 = vpack.c.bf16 %v19231_v24, %v19232_v53  ;;  %v19241_v24 = vld [vmem:[#allocation160_spill] sm:$0xff] }
 0xe16   : > { %v7622_v58 = vadd.f32 %v17144_v17, %v9081_v22  ;;  %v19225_v17 = vld [vmem:[#allocation80_spill] sm:$0xff] }
 0xe17   : > { %v7680_v5 = vpop.f32.mrf.mxu1 }
 0xe18   : > { %v17197_v61 = vadd.f32 %v17128_v23, %v7680_v5  ;;  %7860 = vrot.lane.b32.xlu0 %v7728_v35, %s10949_s17  ;;  %v7625_v23 = vadd.f32 %v9592_v28, %v9084_v4  ;;  %v19226_v28 = vld [vmem:[#allocation82_spill] sm:$0xff] }
 0xe19   : > { %v19227_v38 = vpack.c.bf16 %v19225_v17, %v19226_v28 }
 0xe1a   : > { %v7734_v27 = vpack.c.bf16 %v17197_v61, %v17194_v57  ;;  %v7727_v12 = vpack.c.bf16 %v7625_v23, %v7622_v58  ;;  %v19234_v23 = vld [vmem:[#allocation93_spill] sm:$0xff]  ;;  %v17304_v57 = vld [vmem:[%s17463_s4] sm:$0x3] }
 0xe1b   : > { %v19235_v58 = vld [vmem:[#allocation89_spill] sm:$0xff]  ;;  %9197 = vmatprep.mubr.bf16.mxu1 %v17304_v57 }
 0xe1c   : > { %7762 = vrot.lane.b32.xlu0 %v19218_v36, %s10951_s10  ;;  %v19236_v11 = vpack.c.bf16 %v19234_v23, %v19235_v58  ;;  %v19264_v23 = vld [vmem:[#allocation78_spill] sm:$0xff]  ;;  %v19265_v58 = vld [vmem:[#allocation131_spill] sm:$0xff] }
 0xe20   : > { %7810 = vrot.lane.b32.xlu0 %v19221_v52, %s10950_s20 }
 0xe24   : > { %7858 = vrot.lane.b32.xlu0 %v7727_v12, %s10949_s17 }
 0xe28   : > { %7760 = vrot.lane.b32.xlu0 %v19224_v10, %s10951_s10 }
 0xe29   : > { %v9133_v42 = vpop.f32.mrf.mxu0 }
 0xe2b   : > { %v9134_v15 = vpop.f32.mrf.mxu0 }
 0xe2c   : > { %7808 = vrot.lane.b32.xlu0 %v19227_v38, %s10950_s20  ;;  %v9611_v49 = vpop.f32.mrf.mxu1 }
 0xe2d   : > { %v9136_v37 = vpop.f32.mrf.mxu0 }
 0xe2e   : > { %v7693_v19 = vpop.f32.mrf.mxu1 }
 0xe2f   : > { %v9137_v30 = vpop.f32.mrf.mxu0 }
 0xe30   : > { %7856 = vrot.lane.b32.xlu0 %v7726_v32, %s10949_s17  ;;  %v9612_v62 = vpop.f32.mrf.mxu1  ;;  %v9138_v33 = vadd.f32 %v9137_v30, %v9136_v37  ;;  %v19247_v30 = vld [vmem:[#allocation127_spill] sm:$0xff] }
 0xe31   : > { %v9139_v2 = vpop.f32.mrf.mxu0 }
 0xe32   : > { %v7696_v54 = vpop.f32.mrf.mxu1 }
 0xe33   : > { %v9140_v40 = vpop.f32.mrf.mxu0 }
 0xe34   : > { %7758 = vrot.lane.b32.xlu0 %v19230_v56, %s10951_s10  ;;  %v9141_v39 = vadd.f32 %v9140_v40, %v9139_v2  ;;  %v9135_v56 = vadd.f32 %v9134_v15, %v9133_v42  ;;  %v9129_v42 = vadd.f32 %v17213_v50, %v17204_v16  ;;  %v7689_v15 = vadd.f32 %v17191_v63, %v9132_v7  ;;  %v19253_v16 = vld [vmem:[#allocation158_spill] sm:$0xff]  ;;  %v19255_v63 = vld [vmem:[#allocation137_spill] sm:$0xff] }
 0xe35   : > { %v9142_v45 = vpop.f32.mrf.mxu0  ;;  %v19273_v7 = vld [vmem:[#allocation122_spill] sm:$0xff] }
 0xe36   : > { %v7702_v59 = vadd.f32 %v9611_v49, %v9141_v39  ;;  %v7694_v39 = vadd.f32 %v9135_v56, %v7693_v19  ;;  %v7686_v37 = vadd.f32 %v17181_v47, %v9129_v42  ;;  %v19246_v19 = vld [vmem:[#allocation81_spill] sm:$0xff]  ;;  %v7787_v47 = vpop.permute.xlu0 %7786 }
 0xe37   : > { %v9143_v29 = vpop.f32.mrf.mxu0 }
 0xe38   : > { %7806 = vrot.lane.b32.xlu0 %v19233_v55, %s10950_s20  ;;  %v9615_v46 = vpop.f32.mrf.mxu1  ;;  %v9144_v60 = vadd.f32 %v9143_v29, %v9142_v45  ;;  %v7697_v45 = vadd.f32 %v9138_v33, %v7696_v54  ;;  %v19240_v29 = vld [vmem:[#allocation88_spill] sm:$0xff]  ;;  %v19248_v54 = vpack.c.bf16 %v19246_v19, %v19247_v30  ;;  %v19268_v33 = vld [vmem:[#allocation58_spill] sm:$0xff] }
 0xe39   : > { %v9145_v14 = vpop.f32.mrf.mxu0  ;;  %v19242_v53 = vpack.c.bf16 %v19240_v29, %v19241_v24 }
 0xe3a   : > { %v7709_v32 = vpop.f32.mrf.mxu1  ;;  %v7705_v35 = vadd.f32 %v9612_v62, %v9144_v60  ;;  %v7736_v55 = vpack.c.bf16 %v7697_v45, %v7694_v39  ;;  %v7735_v60 = vpack.c.bf16 %v7689_v15, %v7686_v37  ;;  %v19270_v45 = vld [vmem:[#allocation124_spill] sm:$0xff]  ;;  %v19271_v39 = vld [vmem:[#allocation125_spill] sm:$0xff] }
 0xe3b   : > { %v9146_v5 = vpop.f32.mrf.mxu0  ;;  %v19272_v29 = vpack.c.bf16 %v19270_v45, %v19271_v39 }
 0xe3c   : > { %7854 = vrot.lane.b32.xlu0 %v7725_v51, %s10949_s17  ;;  %v7737_v4 = vpack.c.bf16 %v7705_v35, %v7702_v59  ;;  %v9616_v44 = vpop.f32.mrf.mxu1  ;;  %v9147_v36 = vadd.f32 %v9146_v5, %v9145_v14  ;;  %v19239_v51 = vpack.c.bf16 %v19237_v13, %v19238_v25  ;;  %v19251_v14 = vpack.c.bf16 %v19249_v41, %v19250_v1  ;;  %v19256_v59 = vld [vmem:[#allocation95_spill] sm:$0xff]  ;;  %v19258_v5 = vld [vmem:[#allocation129_spill] sm:$0xff] }
 0xe3d   : > { %v9148_v43 = vpop.f32.mrf.mxu0  ;;  %v19257_v35 = vpack.c.bf16 %v19255_v63, %v19256_v59  ;;  %v7931_v24 = vsel %vm1107_vm2, %v19272_v29, %v7787_v47  ;;  %v19276_v1 = vld [vmem:[#allocation117_spill] sm:$0xff]  ;;  %v19279_v63 = vld [vmem:[#allocation114_spill] sm:$0xff] }
 0xe3e   : > { %7878 = vrot.lane.b32.xlu1 %v7737_v4, %s10949_s17  ;;  %v7712_v52 = vpop.f32.mrf.mxu1  ;;  %v7710_v21 = vadd.f32 %v9147_v36, %v7709_v32  ;;  %v19252_v32 = vld [vmem:[#allocation161_spill] sm:$0xff]  ;;  %v19259_v4 = vld [vmem:[#allocation162_spill] sm:$0xff] }
 0xe3f   : > { %v9149_v22 = vpop.f32.mrf.mxu0  ;;  %v19254_v50 = vpack.c.bf16 %v19252_v32, %v19253_v16  ;;  %v19262_v36 = vld [vmem:[#allocation90_spill] sm:$0xff] }
 0xe40   : > { %7756 = vrot.lane.b32.xlu0 %v19236_v11, %s10951_s10  ;;  %v9150_v48 = vadd.f32 %v9149_v22, %v9148_v43  ;;  %v7819_v43 = vpop.permute.xlu0 %7818  ;;  %v19266_v11 = vpack.c.bf16 %v19264_v23, %v19265_v58  ;;  %v19280_v59 = vld [vmem:[#allocation118_spill] sm:$0xff] }
 0xe41   : > { %v9151_v12 = vpop.f32.mrf.mxu0 }
 0xe42   : > { %v7713_v18 = vadd.f32 %v9150_v48, %v7712_v52  ;;  %v7771_v52 = vpop.permute.xlu1 %7770 }
 0xe43   : > { %v9152_v10 = vpop.f32.mrf.mxu0 }
 0xe44   : > { %7804 = vrot.lane.b32.xlu0 %v19239_v51, %s10950_s20  ;;  %v7738_v17 = vpack.c.bf16 %v7713_v18, %v7710_v21  ;;  %v9153_v38 = vadd.f32 %v9152_v10, %v9151_v12  ;;  %v7769_v61 = vpop.permute.xlu0 %7768 }
 0xe45   : > { %v9154_v28 = vpop.f32.mrf.mxu0 }
 0xe46   : > { %7880 = vrot.lane.b32.xlu1 %v7738_v17, %s10949_s17  ;;  %v7718_v2 = vadd.f32 %v9615_v46, %v9153_v38  ;;  %v7835_v21 = vpop.permute.xlu1 %7834 }
 0xe47   : > { %v9155_v49 = vpop.f32.mrf.mxu0 }
 0xe48   : > { %7852 = vrot.lane.b32.xlu0 %v7724_v34, %s10949_s17  ;;  %v9156_v62 = vadd.f32 %v9155_v49, %v9154_v28  ;;  %v19244_v34 = vld [vmem:[#allocation141_spill] sm:$0xff]  ;;  %v7817_v20 = vpop.permute.xlu0 %7816 }
 0xe49   : > { %v19245_v46 = vpack.c.bf16 %v19243_v8, %v19244_v34  ;;  %v19274_v8 = vld [vmem:[#allocation123_spill] sm:$0xff] }
 0xe4a   : > { %v7721_v40 = vadd.f32 %v9616_v44, %v9156_v62  ;;  %v19260_v44 = vpack.c.bf16 %v19258_v5, %v19259_v4  ;;  %v7785_v10 = vpop.permute.xlu1 %7784  ;;  %v19275_v34 = vpack.c.bf16 %v19273_v7, %v19274_v8  ;;  %v19295_v7 = vld [vmem:[#allocation106_spill] sm:$0xff] }
 0xe4c   : > { %v7739_v6 = vpack.c.bf16 %v7721_v40, %v7718_v2  ;;  %v19267_v40 = vld [vmem:[#allocation97_spill] sm:$0xff] }
 0xe4e   : > { %7882 = vrot.lane.b32.xlu1 %v7739_v6, %s10949_s17  ;;  %v7833_v25 = vpop.permute.xlu1 %7832  ;;  %v19269_v6 = vpack.c.bf16 %v19267_v40, %v19268_v33 }
 0xe50   : > { %v7907_v56 = vsel %vm1107_vm2, %v19269_v6, %v7771_v52  ;;  %v19286_v52 = vld [vmem:[#allocation56_spill] sm:$0xff] }
 0xe51   : > { %v7948_v42 = vsel %vm7932_vm3, %v7907_v56, %v7819_v43  ;;  %v19292_v56 = vld [vmem:[#allocation111_spill] sm:$0xff] }
 0xe52   : > { %7828 = vrot.lane.b32.xlu1 %v19242_v53, %s10950_s20  ;;  %v7783_v17 = vpop.permute.xlu1 %7782  ;;  %v7964_v53 = vsel %vm7932_vm3, %v7931_v24, %v7835_v21 }
 0xe56   : > { %7876 = vrot.lane.b32.xlu1 %v7736_v55, %s10949_s17  ;;  %v7831_v38 = vpop.permute.xlu1 %7830 }
 0xe5a   : > { %7778 = vrot.lane.b32.xlu1 %v19245_v46, %s10951_s10  ;;  %v7781_v26 = vpop.permute.xlu1 %7780  ;;  %v7928_v46 = vsel %vm1107_vm2, %v19275_v34, %v7785_v10 }
 0xe5b   : > { %v7962_v19 = vsel %vm7932_vm3, %v7928_v46, %v7833_v25 }
 0xe5e   : > { %7826 = vrot.lane.b32.xlu1 %v19248_v54, %s10950_s20 }
 0xe62   : > { %7874 = vrot.lane.b32.xlu1 %v7735_v60, %s10949_s17 }
 0xe66   : > { %7776 = vrot.lane.b32.xlu1 %v19251_v14, %s10951_s10  ;;  %v19277_v14 = vld [vmem:[#allocation121_spill] sm:$0xff] }
 0xe67   : > { %v19278_v32 = vpack.c.bf16 %v19276_v1, %v19277_v14 }
 0xe69   : > { %v7904_v16 = vsel %vm1107_vm2, %v19278_v32, %v7769_v61  ;;  %v19283_v61 = vld [vmem:[#allocation54_spill] sm:$0xff]  ;;  %v19300_v32 = vld [vmem:[#allocation105_spill] sm:$0xff] }
 0xe6a   : > { %7824 = vrot.lane.b32.xlu1 %v19254_v50, %s10950_s20  ;;  %v7946_v47 = vsel %vm7932_vm3, %v7904_v16, %v7817_v20 }
 0xe6e   : > { %7872 = vrot.lane.b32.xlu1 %v7734_v27, %s10949_s17  ;;  %v19261_v27 = vld [vmem:[#allocation138_spill] sm:$0xff] }
 0xe6f   : > { %v19263_v22 = vpack.c.bf16 %v19261_v27, %v19262_v36 }
 0xe72   : > { %7774 = vrot.lane.b32.xlu1 %v19257_v35, %s10951_s10  ;;  %v19281_v35 = vpack.c.bf16 %v19279_v63, %v19280_v59 }
 0xe74   : > { %v7925_v5 = vsel %vm1107_vm2, %v19281_v35, %v7783_v17  ;;  %v19304_v35 = vld [vmem:[#allocation103_spill] sm:$0xff] }
 0xe75   : > { %v7960_v4 = vsel %vm7932_vm3, %v7925_v5, %v7831_v38 }
 0xe76   : > { %7822 = vrot.lane.b32.xlu1 %v19260_v44, %s10950_s20 }
 0xe7a   : > { %7870 = vrot.lane.b32.xlu1 %v7733_v0, %s10949_s17  ;;  %v7767_v0 = vpop.permute.xlu0 %7766 }
 0xe7e   : > { %7772 = vrot.lane.b32.xlu1 %v19263_v22, %s10951_s10  ;;  %v7815_v48 = vpop.permute.xlu0 %7814  ;;  %v19282_v22 = vld [vmem:[#allocation55_spill] sm:$0xff]  ;;  %s8331_s10 = sshll.u32 %s11009_s25, 7  ;;  %s10952_s25 = smov [#allocation2]  }
 0xe7f   : > { %v19284_v23 = vpack.c.bf16 %v19282_v22, %v19283_v61  ;;  %v19306_v22 = vld [vmem:[#allocation101_spill] sm:$0xff]  ;;  %s17424_s13 = scalar_lea.hbm %s17465_s6, %s8331_s10  ;;  %s10889_s16 = sshll.u32 %s10952_s25, 4  ;;  %s10890_s16 = int_to_ptr.vmem [resolvable:$false] %s10889_s16 }
 0xe80   : > { %s10891_s18 = scalar_lea.vmem %s10890_s16, 256 }
 0xe81   : > { %v7901_v58 = vsel %vm1107_vm2, %v19284_v23, %v7767_v0  ;;  %v19289_v0 = vld [vmem:[#allocation112_spill] sm:$0xff] }
 0xe82   : > { %7820 = vrot.lane.b32.xlu1 %v19266_v11, %s10950_s20  ;;  %v7765_v12 = vpop.permute.xlu0 %7764  ;;  %v7944_v20 = vsel %vm7932_vm3, %v7901_v58, %v7815_v48 }
 0xe86   : > { %7868 = vrot.lane.b32.xlu1 %v7732_v31, %s10949_s17  ;;  %v7863_v18 = vpop.permute.xlu0 %7862  ;;  %s242_s17 = sand.u32 1, %s10937_s22  }
 0xe87   : > { %s8145_s20 = sshll.u32 %s242_s17, 3  ;;  %s8068_s14 = scalar_lea.sflag [#allocation3], %s242_s17 }
 0xe88   : > { %s244_s29 = scalar_lea.vmem [#allocation2], %s8145_s20 }
 0xe89   : > { %s8082_s9 = sshll.u32 %s244_s29, 4  ;;  %s8083_s9 = int_to_ptr.vmem [resolvable:$true] %s8082_s9 }
 0xe8a   : > { %8018 = vperm.xlu1 %9728, %v8015_v3   ;;  %v7865_v13 = vpop.permute.xlu0 %7864  ;;  %v19285_v3 = vld [vmem:[#allocation116_spill] sm:$0xff]  ;;  %s10885_s15 = scalar_lea.vmem %s8083_s9, 128  ;;  %p10892_p0 = scmp.lt.s32.totalorder %s8083_s9, %s10890_s16 }
 0xe8b   : > { %v7985_v44 = vsel %vm7965_vm4, %v7946_v47, %v7865_v13  ;;  %v19287_v21 = vpack.c.bf16 %v19285_v3, %v19286_v52  ;;  %v7982_v13 = vsel %vm7965_vm4, %v7944_v20, %v7863_v18  ;;  %p10886_p11 = scmp.ne.s32.totalorder %s8083_s9, %s10885_s15  ;;  %p10893_p1 = scmp.lt.s32.totalorder %s10891_s18, %s10885_s15 }
 0xe8d   : > { %v7922_v10 = vsel %vm1107_vm2, %v19287_v21, %v7781_v26  ;;  %v19291_v26 = vld [vmem:[#allocation119_spill] sm:$0xff]  ;;  %v19309_v21 = vld [vmem:[#allocation57_spill] sm:$0xff]  ;;  %p10887_p12 = pnand %p10886_p11, %p11026_p5  ;;  %p10894_p2 = por %p10893_p1, %p10892_p0 }
 0xe8e   : > { %v7867_v51 = vpop.permute.xlu0 %7866  ;;  %v19293_v18 = vpack.c.bf16 %v19291_v26, %v19292_v56 }
 0xe8f   : > { %v7988_v30 = vsel %vm7965_vm4, %v7948_v42, %v7867_v51  ;;  %v19297_v42 = vld [vmem:[#allocation108_spill] sm:$0xff]  ;;  %p10888_p13 = pneg %p10887_p12 }
 0xe91   : > { %p10895_p3 = pnand %p10894_p2, %p10888_p13 }
 0xe92   : > { %v7813_v28 = vpop.permute.xlu0 %7812 }
 0xe96   : > { %v7861_v9 = vpop.permute.xlu0 %7860 }
 0xe9a   : > { %v7763_v31 = vpop.permute.xlu0 %7762 }
 0xe9e   : > { %v7811_v62 = vpop.permute.xlu0 %7810 }
 0xea2   : > { %v7859_v15 = vpop.permute.xlu0 %7858 }
 0xea6   : > { %v7761_v41 = vpop.permute.xlu0 %7760 }
 0xeaa   : > { %v7809_v36 = vpop.permute.xlu0 %7808 }
 0xeae   : > { %v7857_v51 = vpop.permute.xlu0 %7856 }
 0xeb0   : > { %v7879_v49 = vpop.permute.xlu1 %7878 }
 0xeb1   : > { %v8006_v43 = vsel %vm7965_vm4, %v7960_v4, %v7879_v49  ;;  %v19288_v49 = vld [vmem:[#allocation110_spill] sm:$0xff] }
 0xeb2   : > { %v7759_v6 = vpop.permute.xlu0 %7758 }
 0xeb8   : > { %v7881_v2 = vpop.permute.xlu1 %7880 }
 0xeb9   : > { %v8009_v54 = vsel %vm7965_vm4, %v7962_v19, %v7881_v2  ;;  %v19290_v2 = vpack.c.bf16 %v19288_v49, %v19289_v0 }
 0xebb   : > { %v7898_v48 = vsel %vm1107_vm2, %v19290_v2, %v7765_v12  ;;  %v19294_v12 = vld [vmem:[#allocation109_spill] sm:$0xff] }
 0xebc   : > { %v7942_v33 = vsel %vm7932_vm3, %v7898_v48, %v7813_v28  ;;  %v19296_v8 = vpack.c.bf16 %v19294_v12, %v19295_v7 }
 0xebd   : > { %v7979_v39 = vsel %vm7965_vm4, %v7942_v33, %v7861_v9 }
 0xebe   : > { %v7895_v28 = vsel %vm1107_vm2, %v19296_v8, %v7763_v31  ;;  %v19301_v31 = vld [vmem:[#allocation104_spill] sm:$0xff] }
 0xebf   : > { %v7940_v46 = vsel %vm7932_vm3, %v7895_v28, %v7811_v62  ;;  %v19302_v16 = vpack.c.bf16 %v19300_v32, %v19301_v31 }
 0xec0   : > { %v7883_v55 = vpop.permute.xlu1 %7882 }
 0xec1   : > { %v8012_v37 = vsel %vm7965_vm4, %v7964_v53, %v7883_v55  ;;  %v7807_v55 = vpop.permute.xlu0 %7806  ;;  %v7892_v62 = vsel %vm1107_vm2, %v19302_v16, %v7761_v41  ;;  %v19307_v41 = vld [vmem:[#allocation99_spill] sm:$0xff] }
 0xec2   : > { %9181 = vmatprep.subr.bf16.mxu1 %v8012_v37  ;;  %v19298_v37 = vld [vmem:[#allocation120_spill] sm:$0xff]  ;;  %v7938_v47 = vsel %vm7932_vm3, %v7892_v62, %v7809_v36  ;;  %v19308_v61 = vpack.c.bf16 %v19306_v22, %v19307_v41 }
 0xec3   : > { %9182 = vmatpush3.bf16.xpose.msra.mxu1 %v7988_v30  ;;  %v19299_v19 = vpack.c.bf16 %v19297_v42, %v19298_v37  ;;  %v7976_v30 = vsel %vm7965_vm4, %v7940_v46, %v7859_v15  ;;  %v7973_v63 = vsel %vm7965_vm4, %v7938_v47, %v7857_v51  ;;  %v19303_v15 = vld [vmem:[#allocation113_spill] sm:$0xff]  ;;  %v19312_v51 = vld [vmem:[#allocation100_spill] sm:$0xff] }
 0xec4   : > { %v7829_v60 = vpop.permute.xlu1 %7828  ;;  %9183 = vmatprep.subr.bf16.mxu1 %v8009_v54  ;;  %v19305_v5 = vpack.c.bf16 %v19303_v15, %v19304_v35  ;;  %v7889_v36 = vsel %vm1107_vm2, %v19308_v61, %v7759_v6 }
 0xec5   : > { %v7958_v25 = vsel %vm7932_vm3, %v7922_v10, %v7829_v60  ;;  %v7855_v14 = vpop.permute.xlu0 %7854  ;;  %v7936_v58 = vsel %vm7932_vm3, %v7889_v36, %v7807_v55  ;;  %v19310_v10 = vld [vmem:[#allocation115_spill] sm:$0xff] }
 0xec6   : > { %v7970_v20 = vsel %vm7965_vm4, %v7936_v58, %v7855_v14 }
 0xec8   : > { %v7877_v50 = vpop.permute.xlu1 %7876 }
 0xec9   : > { %v8003_v17 = vsel %vm7965_vm4, %v7958_v25, %v7877_v50  ;;  %v7757_v59 = vpop.permute.xlu0 %7756 }
 0xecb   : > { %9184 = vmatpush3.bf16.xpose.msra.mxu1 %v7985_v44 }
 0xecc   : > { %v7779_v27 = vpop.permute.xlu1 %7778  ;;  %9185 = vmatprep.subr.bf16.mxu1 %v8006_v43 }
 0xecd   : > { %v7919_v45 = vsel %vm1107_vm2, %v19293_v18, %v7779_v27 }
 0xed0   : > { %v7827_v11 = vpop.permute.xlu1 %7826 }
 0xed1   : > { %v7956_v29 = vsel %vm7932_vm3, %v7919_v45, %v7827_v11  ;;  %v7805_v11 = vpop.permute.xlu0 %7804 }
 0xed3   : > { %9186 = vmatpush3.bf16.xpose.msra.mxu1 %v7982_v13  ;;  %v19311_v13 = vpack.c.bf16 %v19309_v21, %v19310_v10 }
 0xed4   : > { %v7875_v38 = vpop.permute.xlu1 %7874  ;;  %9187 = vmatprep.subr.bf16.mxu1 %v8003_v17  ;;  %v19313_v17 = vld [vmem:[#allocation98_spill] sm:$0xff] }
 0xed5   : > { %v8000_v24 = vsel %vm7965_vm4, %v7956_v29, %v7875_v38  ;;  %v7853_v52 = vpop.permute.xlu0 %7852  ;;  %v19314_v38 = vpack.c.bf16 %v19312_v51, %v19313_v17 }
 0xed7   : > { %v7886_v49 = vsel %vm1107_vm2, %v19314_v38, %v7757_v59 }
 0xed8   : > { %v7777_v40 = vpop.permute.xlu1 %7776  ;;  %v7934_v48 = vsel %vm7932_vm3, %v7886_v49, %v7805_v11 }
 0xed9   : > { %v7916_v9 = vsel %vm1107_vm2, %v19299_v19, %v7777_v40  ;;  %v7967_v33 = vsel %vm7965_vm4, %v7934_v48, %v7853_v52 }
 0xedb   : > { %9188 = vmatpush3.bf16.xpose.msra.mxu1 %v7979_v39 }
 0xedc   : > { %v7825_v53 = vpop.permute.xlu1 %7824  ;;  %9189 = vmatprep.subr.bf16.mxu1 %v8000_v24 }
 0xedd   : > { %v7954_v54 = vsel %vm7932_vm3, %v7916_v9, %v7825_v53 }
 0xee0   : > { %v7873_v34 = vpop.permute.xlu1 %7872 }
 0xee1   : > { %v7997_v60 = vsel %vm7965_vm4, %v7954_v54, %v7873_v34 }
 0xee3   : > { %9190 = vmatpush3.bf16.xpose.msra.mxu1 %v7976_v30 }
 0xee4   : > { %v7775_v1 = vpop.permute.xlu1 %7774  ;;  %9191 = vmatprep.subr.bf16.mxu1 %v7997_v60 }
 0xee5   : > { %v7913_v4 = vsel %vm1107_vm2, %v19305_v5, %v7775_v1 }
 0xee8   : > { %v7823_v50 = vpop.permute.xlu1 %7822 }
 0xee9   : > { %v7952_v44 = vsel %vm7932_vm3, %v7913_v4, %v7823_v50 }
 0xeeb   : > { %9192 = vmatpush3.bf16.xpose.msra.mxu1 %v7973_v63 }
 0xeec   : > { %v7871_v43 = vpop.permute.xlu1 %7870 }
 0xeed   : > { %v7994_v27 = vsel %vm7965_vm4, %v7952_v44, %v7871_v43 }
 0xeee   : > { %9193 = vmatprep.subr.bf16.mxu1 %v7994_v27 }
 0xef0   : > { %v7773_v23 = vpop.permute.xlu1 %7772 }
 0xef1   : > { %v7910_v25 = vsel %vm1107_vm2, %v19311_v13, %v7773_v23 }
 0xef3   : > { %9194 = vmatpush3.bf16.xpose.msra.mxu1 %v7970_v20 }
 0xef4   : > { %v7821_v3 = vpop.permute.xlu1 %7820 }
 0xef5   : > { %v7950_v0 = vsel %vm7932_vm3, %v7910_v25, %v7821_v3 }
 0xef8   : > { %v7869_v2 = vpop.permute.xlu1 %7868 }
 0xef9   : > { %v7991_v40 = vsel %vm7965_vm4, %v7950_v0, %v7869_v2 }
 0xefa   : > { %9195 = vmatprep.subr.bf16.mxu1 %v7991_v40 }
 0xefb   : > { %9196 = vmatpush3.bf16.xpose.msra.mxu1 %v7967_v33 }
 0xf02   : > { %9198 = vmatmul.mubr.bf16.vlgmr.msra.gmra.mxu1 %v17304_v57 }
 0xf05   : > { %v8019_v26 = vpop.permute.xlu1 %8018 }
 0xfc2   : > { %v8055_v6 = vpop.f32.mrf.mxu1 }
 0xfc3   : > { %v8056_v18 = vadd.f32 %v8055_v6, %v8019_v26 }
 0xfc4   : > { %v8057_v56 = vpop.f32.mrf.mxu1 }
 0xfc5   : > { %v8058_v45 = vadd.f32 %v8057_v56, %v8019_v26 }
 0xfc6   : > { %v8059_v39 = vpop.f32.mrf.mxu1 }
 0xfc7   : > { %v8064_v29 = vcombine.low %v8056_v18, %v8058_v45 }
 0xfc8   : > { %v8060_v57 = vpop.f32.mrf.mxu1 }
 0xfc9   : > { %8066 = vst [vmem:[%s244_s29] sm:$0xff] %v8064_v29 }
 0xfca   : > { %10898 = shalt.err (!%p10895_p3)
}
 0xfcb   : > { %s10899_s19 = scalar_lea.hbm %s17424_s13, 128  ;;  %s10903_s17 = scalar_lea.hbm %s17465_s6, 256 }
 0xfcc   : > { %p10900_p4 = scmp.ne.s32.totalorder %s17424_s13, %s10899_s19  ;;  %p10904_p9 = scmp.lt.s32.totalorder %s17424_s13, %s17465_s6 }
 0xfcd   : > { %p10905_p10 = scmp.lt.s32.totalorder %s10903_s17, %s10899_s19 }
 0xfce   : > { %p10901_p7 = pnand %p10900_p4, %p11026_p5 }
 0xfcf   : > { %p10906_p11 = por %p10905_p10, %p10904_p9 }
 0xfd0   : > { %p10902_p8 = pneg %p10901_p7 }
 0xfd2   : > { %p10907_p12 = pnand %p10906_p11, %p10902_p8 }
 0xfd4   : > { %10910 = shalt.err (!%p10907_p12)
}
 0xfd5   : > { %9684 = dma.vmem_to_hbm [thread:$0]  (%p11026_p5), %s8083_s9, 128, %s17424_s13, %s8068_s14  }
 0xfd6 PF: > { %p9690_p13 = scmp.ge.s32.totalorder %s10945_s24, 2  ;;  %s8094_s29 = sand.u32 1, %s10933_s21  }
 0xfd7   : > { %s8095_s11 = scalar_lea.sflag [#allocation3], %s8094_s29 }
 0xfd8   : > { %p9687_p0 = pnand %p9690_p13, %p11030_p6 }
 0xfda   : > { %p9688_p1 = pneg %p9687_p0 }
 0xfdc   : > { %10928 = dma.done.wait (%p9688_p1), %s8095_s11, 128  }
 0xfdd   : > { %10930 = vsyncadd (%p9688_p1), %s8095_s11, 4294967168  ;;  %p16_p2 = scmp.ge.s32.totalorder %s11013_s27, 4   ;;  %s19315_s21 = smov %s10937_s22 }
 0xfde   : > { %s19316_s22 = smov %s10941_s23  ;;  %s19317_s23 = smov %s11024_s30 }
 0xfdf   : > { %s19318_s24 = smov %s11013_s27  ;;  %18 = sbr.rel (!%p16_p2) target bundleno = 3 (0x3), region = 79 }
 0xfe4   :  { %8100 = vsyncpa [#allocation3], 1 }
 0xfe5   :  { %8102 = vsyncpa [#allocation3 + $0x1], 1 }

</bundles_post_ra>
